<compile_context>
chip_gen: v7x
topology: tpu7x:2x2x1
jax: 0.10.0
libtpu: 0.0.40
codegen_flags: <defaults>
</compile_context>

<pallas_src>
import jax
import jax.numpy as jnp
from jax.experimental import pallas as pl
from jax.experimental.pallas import tpu as pltpu

IN_DIM = 54 * 3       # 162 (K of first layer; full-dim block, Mosaic pads internally)
HID = 1024
OUT_DIM = 10
OUT_PAD = 128         # zero-padded N for lane-dense, unmasked stores
BN_EPS = 1e-5
MAX_TILE_B = 512      # batch tile; weights stay VMEM-resident across tiles


def _round_up(x, m):
    return (x + m - 1) // m * m


def _cdiv(a, b):
    return (a + b - 1) // b


def _choose_tile_b(B):
    if B <= 256:
        # Small batch is weight-DMA bound: keep a single tile so the (shared)
        # weight set is DMA'd once.
        return _round_up(B, 8)
    # Larger batch: ensure >= 2 grid iterations so the "parallel" axis can
    # shard across both TensorCores on v7x, capped at MAX_TILE_B.
    return min(_round_up(_cdiv(B, 2), 16), MAX_TILE_B)


def _regressor_kernel(x_ref, w1, w2a, w2b, w3a, w3b, w4, sh_ref, out_ref):
    # x: (TB, IN_DIM) bf16. Weights: bf16, BN scale folded into columns.
    # sh: (8, HID) f32; rows 0..4 = per-layer shifts, row 5[:OUT_PAD] = final bias.
    sh = sh_ref[...]
    x = x_ref[...]

    # --- FCBlock: Linear(162,1024) + BN(folded) + ReLU ---
    h = jnp.dot(x, w1[...], preferred_element_type=jnp.float32)
    h = jnp.maximum(h + sh[0:1, :], 0.0)

    # --- FCResBlock 1: relu(h + BN(Linear(relu(BN(Linear(h)))))) ---
    t = jnp.dot(h.astype(jnp.bfloat16), w2a[...], preferred_element_type=jnp.float32)
    t = jnp.maximum(t + sh[1:2, :], 0.0)
    t = jnp.dot(t.astype(jnp.bfloat16), w2b[...], preferred_element_type=jnp.float32)
    h = jnp.maximum(h + t + sh[2:3, :], 0.0)

    # --- FCResBlock 2 ---
    t = jnp.dot(h.astype(jnp.bfloat16), w3a[...], preferred_element_type=jnp.float32)
    t = jnp.maximum(t + sh[3:4, :], 0.0)
    t = jnp.dot(t.astype(jnp.bfloat16), w3b[...], preferred_element_type=jnp.float32)
    h = jnp.maximum(h + t + sh[4:5, :], 0.0)

    # --- Final Linear(1024, OUT_PAD) (zero-padded columns) ---
    o = jnp.dot(h.astype(jnp.bfloat16), w4[...], preferred_element_type=jnp.float32)
    out_ref[...] = o + sh[5:6, :OUT_PAD]


def smpl_beta_regressor(x, params):
    """x: (B, 162) float32 -> (B, 10) float32."""
    B = x.shape[0]
    w1, w2a, w2b, w3a, w3b, w4, shifts = params

    tile_b = _choose_tile_b(B)
    b_pad = _round_up(B, tile_b)
    n_tiles = b_pad // tile_b

    # Cast to bf16 in the wrapper (halves per-tile x DMA); pad batch only if needed.
    xb = x.astype(jnp.bfloat16)
    if b_pad != B:
        xb = jnp.pad(xb, ((0, b_pad - B), (0, 0)))

    def w_spec(shape):
        # Constant block index -> weight stays resident in VMEM across batch
        # tiles; Buffered(1) drops the dead second pipeline buffer.
        return pl.BlockSpec(shape, lambda i: (0, 0), pipeline_mode=pl.Buffered(1))

    weight_bytes = (IN_DIM * HID + 4 * HID * HID + HID * OUT_PAD) * 2 + 8 * HID * 4
    cost = pl.CostEstimate(
        flops=2 * b_pad * (IN_DIM * HID + 4 * HID * HID + HID * OUT_DIM),
        transcendentals=0,
        bytes_accessed=weight_bytes + b_pad * (IN_DIM * 2 + OUT_PAD * 4),
    )

    out = pl.pallas_call(
        _regressor_kernel,
        out_shape=jax.ShapeDtypeStruct((b_pad, OUT_PAD), jnp.float32),
        grid=(n_tiles,),
        in_specs=[
            pl.BlockSpec((tile_b, IN_DIM), lambda i: (i, 0)),  # x tile (bf16)
            w_spec((IN_DIM, HID)),
            w_spec((HID, HID)),
            w_spec((HID, HID)),
            w_spec((HID, HID)),
            w_spec((HID, HID)),
            w_spec((HID, OUT_PAD)),
            w_spec((8, HID)),                                  # packed shifts/bias
        ],
        out_specs=pl.BlockSpec((tile_b, OUT_PAD), lambda i: (i, 0)),
        compiler_params=pltpu.CompilerParams(
            dimension_semantics=("parallel",),
            vmem_limit_bytes=48 << 20,
        ),
        cost_estimate=cost,
    )(xb, w1, w2a, w2b, w3a, w3b, w4, shifts)
    return out[:B, :OUT_DIM]


# -------------------- deterministic parameter construction (glue) --------------------

def _init_linear(key, in_size, out_size):
    kw, kb = jax.random.split(key)
    bound = 1.0 / (in_size ** 0.5)
    w = jax.random.uniform(kw, (in_size, out_size), jnp.float32, -bound, bound)
    b = jax.random.uniform(kb, (out_size,), jnp.float32, -bound, bound)
    return w, b


def _init_bn(key, size):
    kg, kb, km, kv = jax.random.split(key, 4)
    gamma = 1.0 + 0.1 * jax.random.normal(kg, (size,), jnp.float32)
    beta = 0.1 * jax.random.normal(kb, (size,), jnp.float32)
    mean = 0.1 * jax.random.normal(km, (size,), jnp.float32)
    var = 0.9 + 0.1 * jnp.abs(jax.random.normal(kv, (size,), jnp.float32))
    return gamma, beta, mean, var


def _fold_bn_into_weight(w, b, gamma, beta, mean, var):
    # Eval-mode BatchNorm1d folded: scale into weight columns, shift kept as a row.
    # TODO(synk): training-mode batch statistics of BatchNorm1d are not replicated.
    scale = gamma / jnp.sqrt(var + BN_EPS)
    w_folded = (w * scale[None, :]).astype(jnp.bfloat16)
    shift = (b - mean) * scale + beta
    return w_folded, shift


def init_params(key):
    keys = jax.random.split(key, 12)

    w1, b1 = _init_linear(keys[0], IN_DIM, HID)
    w1f, sh1 = _fold_bn_into_weight(w1, b1, *_init_bn(keys[1], HID))

    w2a, b2a = _init_linear(keys[2], HID, HID)
    w2af, sh2a = _fold_bn_into_weight(w2a, b2a, *_init_bn(keys[3], HID))
    w2b, b2b = _init_linear(keys[4], HID, HID)
    w2bf, sh2b = _fold_bn_into_weight(w2b, b2b, *_init_bn(keys[5], HID))

    w3a, b3a = _init_linear(keys[6], HID, HID)
    w3af, sh3a = _fold_bn_into_weight(w3a, b3a, *_init_bn(keys[7], HID))
    w3b, b3b = _init_linear(keys[8], HID, HID)
    w3bf, sh3b = _fold_bn_into_weight(w3b, b3b, *_init_bn(keys[9], HID))

    w4, b4 = _init_linear(keys[10], HID, OUT_DIM)

    # Last-layer columns zero-padded (N: 10 -> 128) for lane-dense stores.
    # First-layer weight is left at K = 162 (full-dim block; no host x pad needed).
    w4p = jnp.zeros((HID, OUT_PAD), jnp.bfloat16).at[:, :OUT_DIM].set(
        w4.astype(jnp.bfloat16))

    # Pack all per-layer shifts + final bias into one (8, HID) f32 array.
    shifts = jnp.zeros((8, HID), jnp.float32)
    shifts = shifts.at[0].set(sh1).at[1].set(sh2a).at[2].set(sh2b)
    shifts = shifts.at[3].set(sh3a).at[4].set(sh3b)
    shifts = shifts.at[5, :OUT_DIM].set(b4)

    return (w1f, w2af, w2bf, w3af, w3bf, w4p, shifts)


def reference_forward(x, params):
    """Pure-JAX reference with identical folding/padding/bf16 casts."""
    w1, w2a, w2b, w3a, w3b, w4, sh = params

    def mm(a, w):
        return jnp.dot(a.astype(jnp.bfloat16), w,
                       preferred_element_type=jnp.float32)

    h = jnp.maximum(mm(x, w1) + sh[0:1, :], 0.0)
    t = jnp.maximum(mm(h, w2a) + sh[1:2, :], 0.0)
    t = mm(t, w2b)
    h = jnp.maximum(h + t + sh[2:3, :], 0.0)
    t = jnp.maximum(mm(h, w3a) + sh[3:4, :], 0.0)
    t = mm(t, w3b)
    h = jnp.maximum(h + t + sh[4:5, :], 0.0)
    o = mm(h, w4) + sh[5:6, :OUT_PAD]
    return o[:, :OUT_DIM]


if __name__ == "__main__":
    key = jax.random.PRNGKey(0)
    k_x, k_p = jax.random.split(key)

    B = 8
    # Input matches the module contract: (B, 54 * 3)
    x = jax.random.normal(k_x, (B, IN_DIM), dtype=jnp.float32)
    params = init_params(k_p)

    out = smpl_beta_regressor(x, params)
    out = jax.block_until_ready(out)

    ref = reference_forward(x, params)
    assert out.shape == (B, OUT_DIM), out.shape
    assert jnp.allclose(out, ref, atol=1e-2, rtol=1e-2), "mismatch vs JAX reference"

    print("KERNEL_OK")
</pallas_src>

<mosaic_0001>
module attributes {stable_mosaic.version = 11 : i64} {
  func.func @_regressor_kernel(%arg0: i32, %arg1: memref<8x162xbf16, #tpu.memory_space<vmem>>, %arg2: memref<162x1024xbf16, #tpu.memory_space<vmem>>, %arg3: memref<1024x1024xbf16, #tpu.memory_space<vmem>>, %arg4: memref<1024x1024xbf16, #tpu.memory_space<vmem>>, %arg5: memref<1024x1024xbf16, #tpu.memory_space<vmem>>, %arg6: memref<1024x1024xbf16, #tpu.memory_space<vmem>>, %arg7: memref<1024x128xbf16, #tpu.memory_space<vmem>>, %arg8: memref<8x1024xf32, #tpu.memory_space<vmem>>, %arg9: memref<8x128xf32, #tpu.memory_space<vmem>>) attributes {dimension_semantics = [#tpu.dimension_semantics<parallel>], iteration_bounds = array<i64: 1>, scalar_prefetch = 0 : i64, scratch_operands = 0 : i64, tpu.core_type = #tpu.core_type<tc>, window_params = [{transform_indices = @transform_0, window_bounds = array<i64: 8, 162>}, {pipeline_mode = #tpu.pipeline_mode<synchronous>, transform_indices = @transform_1, window_bounds = array<i64: 162, 1024>}, {pipeline_mode = #tpu.pipeline_mode<synchronous>, transform_indices = @transform_2, window_bounds = array<i64: 1024, 1024>}, {pipeline_mode = #tpu.pipeline_mode<synchronous>, transform_indices = @transform_3, window_bounds = array<i64: 1024, 1024>}, {pipeline_mode = #tpu.pipeline_mode<synchronous>, transform_indices = @transform_4, window_bounds = array<i64: 1024, 1024>}, {pipeline_mode = #tpu.pipeline_mode<synchronous>, transform_indices = @transform_5, window_bounds = array<i64: 1024, 1024>}, {pipeline_mode = #tpu.pipeline_mode<synchronous>, transform_indices = @transform_6, window_bounds = array<i64: 1024, 128>}, {pipeline_mode = #tpu.pipeline_mode<synchronous>, transform_indices = @transform_7, window_bounds = array<i64: 8, 1024>}, {transform_indices = @transform_8, window_bounds = array<i64: 8, 128>}]} {
    %c0 = arith.constant 0 : index
    %c0_0 = arith.constant 0 : index
    %0 = vector.load %arg8[%c0, %c0_0] : memref<8x1024xf32, #tpu.memory_space<vmem>>, vector<8x1024xf32>
    %c0_1 = arith.constant 0 : index
    %c0_2 = arith.constant 0 : index
    %1 = vector.load %arg1[%c0_1, %c0_2] : memref<8x162xbf16, #tpu.memory_space<vmem>>, vector<8x162xbf16>
    %c0_3 = arith.constant 0 : index
    %c0_4 = arith.constant 0 : index
    %2 = vector.load %arg2[%c0_3, %c0_4] : memref<162x1024xbf16, #tpu.memory_space<vmem>>, vector<162x1024xbf16>
    %cst = arith.constant dense<0.000000e+00> : vector<8x1024xf32>
    %3 = tpu.matmul %1, %2, %cst {dimension_numbers = #tpu.dot_dimension_numbers<[1], [0], [0], [1], [0, 0, 1, 1], [], []>} : vector<8x162xbf16>, vector<162x1024xbf16>, vector<8x1024xf32> -> vector<8x1024xf32>
    %4 = vector.extract_strided_slice %0 {offsets = [0, 0], sizes = [1, 1024], strides = [1, 1]} : vector<8x1024xf32> to vector<1x1024xf32>
    %5 = vector.broadcast %4 : vector<1x1024xf32> to vector<8x1024xf32>
    %6 = arith.addf %3, %5 : vector<8x1024xf32>
    %cst_5 = arith.constant 0.000000e+00 : f32
    %7 = vector.broadcast %cst_5 : f32 to vector<8x1024xf32>
    %8 = arith.maximumf %6, %7 : vector<8x1024xf32>
    %9 = arith.truncf %8 : vector<8x1024xf32> to vector<8x1024xbf16>
    %c0_6 = arith.constant 0 : index
    %c0_7 = arith.constant 0 : index
    %10 = vector.load %arg3[%c0_6, %c0_7] : memref<1024x1024xbf16, #tpu.memory_space<vmem>>, vector<1024x1024xbf16>
    %cst_8 = arith.constant dense<0.000000e+00> : vector<8x1024xf32>
    %11 = tpu.matmul %9, %10, %cst_8 {dimension_numbers = #tpu.dot_dimension_numbers<[1], [0], [0], [1], [0, 0, 1, 1], [], []>} : vector<8x1024xbf16>, vector<1024x1024xbf16>, vector<8x1024xf32> -> vector<8x1024xf32>
    %12 = vector.extract_strided_slice %0 {offsets = [1, 0], sizes = [1, 1024], strides = [1, 1]} : vector<8x1024xf32> to vector<1x1024xf32>
    %13 = vector.broadcast %12 : vector<1x1024xf32> to vector<8x1024xf32>
    %14 = arith.addf %11, %13 : vector<8x1024xf32>
    %cst_9 = arith.constant 0.000000e+00 : f32
    %15 = vector.broadcast %cst_9 : f32 to vector<8x1024xf32>
    %16 = arith.maximumf %14, %15 : vector<8x1024xf32>
    %17 = arith.truncf %16 : vector<8x1024xf32> to vector<8x1024xbf16>
    %c0_10 = arith.constant 0 : index
    %c0_11 = arith.constant 0 : index
    %18 = vector.load %arg4[%c0_10, %c0_11] : memref<1024x1024xbf16, #tpu.memory_space<vmem>>, vector<1024x1024xbf16>
    %cst_12 = arith.constant dense<0.000000e+00> : vector<8x1024xf32>
    %19 = tpu.matmul %17, %18, %cst_12 {dimension_numbers = #tpu.dot_dimension_numbers<[1], [0], [0], [1], [0, 0, 1, 1], [], []>} : vector<8x1024xbf16>, vector<1024x1024xbf16>, vector<8x1024xf32> -> vector<8x1024xf32>
    %20 = arith.addf %8, %19 : vector<8x1024xf32>
    %21 = vector.extract_strided_slice %0 {offsets = [2, 0], sizes = [1, 1024], strides = [1, 1]} : vector<8x1024xf32> to vector<1x1024xf32>
    %22 = vector.broadcast %21 : vector<1x1024xf32> to vector<8x1024xf32>
    %23 = arith.addf %20, %22 : vector<8x1024xf32>
    %cst_13 = arith.constant 0.000000e+00 : f32
    %24 = vector.broadcast %cst_13 : f32 to vector<8x1024xf32>
    %25 = arith.maximumf %23, %24 : vector<8x1024xf32>
    %26 = arith.truncf %25 : vector<8x1024xf32> to vector<8x1024xbf16>
    %c0_14 = arith.constant 0 : index
    %c0_15 = arith.constant 0 : index
    %27 = vector.load %arg5[%c0_14, %c0_15] : memref<1024x1024xbf16, #tpu.memory_space<vmem>>, vector<1024x1024xbf16>
    %cst_16 = arith.constant dense<0.000000e+00> : vector<8x1024xf32>
    %28 = tpu.matmul %26, %27, %cst_16 {dimension_numbers = #tpu.dot_dimension_numbers<[1], [0], [0], [1], [0, 0, 1, 1], [], []>} : vector<8x1024xbf16>, vector<1024x1024xbf16>, vector<8x1024xf32> -> vector<8x1024xf32>
    %29 = vector.extract_strided_slice %0 {offsets = [3, 0], sizes = [1, 1024], strides = [1, 1]} : vector<8x1024xf32> to vector<1x1024xf32>
    %30 = vector.broadcast %29 : vector<1x1024xf32> to vector<8x1024xf32>
    %31 = arith.addf %28, %30 : vector<8x1024xf32>
    %cst_17 = arith.constant 0.000000e+00 : f32
    %32 = vector.broadcast %cst_17 : f32 to vector<8x1024xf32>
    %33 = arith.maximumf %31, %32 : vector<8x1024xf32>
    %34 = arith.truncf %33 : vector<8x1024xf32> to vector<8x1024xbf16>
    %c0_18 = arith.constant 0 : index
    %c0_19 = arith.constant 0 : index
    %35 = vector.load %arg6[%c0_18, %c0_19] : memref<1024x1024xbf16, #tpu.memory_space<vmem>>, vector<1024x1024xbf16>
    %cst_20 = arith.constant dense<0.000000e+00> : vector<8x1024xf32>
    %36 = tpu.matmul %34, %35, %cst_20 {dimension_numbers = #tpu.dot_dimension_numbers<[1], [0], [0], [1], [0, 0, 1, 1], [], []>} : vector<8x1024xbf16>, vector<1024x1024xbf16>, vector<8x1024xf32> -> vector<8x1024xf32>
    %37 = arith.addf %25, %36 : vector<8x1024xf32>
    %38 = vector.extract_strided_slice %0 {offsets = [4, 0], sizes = [1, 1024], strides = [1, 1]} : vector<8x1024xf32> to vector<1x1024xf32>
    %39 = vector.broadcast %38 : vector<1x1024xf32> to vector<8x1024xf32>
    %40 = arith.addf %37, %39 : vector<8x1024xf32>
    %cst_21 = arith.constant 0.000000e+00 : f32
    %41 = vector.broadcast %cst_21 : f32 to vector<8x1024xf32>
    %42 = arith.maximumf %40, %41 : vector<8x1024xf32>
    %43 = arith.truncf %42 : vector<8x1024xf32> to vector<8x1024xbf16>
    %c0_22 = arith.constant 0 : index
    %c0_23 = arith.constant 0 : index
    %44 = vector.load %arg7[%c0_22, %c0_23] : memref<1024x128xbf16, #tpu.memory_space<vmem>>, vector<1024x128xbf16>
    %cst_24 = arith.constant dense<0.000000e+00> : vector<8x128xf32>
    %45 = tpu.matmul %43, %44, %cst_24 {dimension_numbers = #tpu.dot_dimension_numbers<[1], [0], [0], [1], [0, 0, 1, 1], [], []>} : vector<8x1024xbf16>, vector<1024x128xbf16>, vector<8x128xf32> -> vector<8x128xf32>
    %46 = vector.extract_strided_slice %0 {offsets = [5, 0], sizes = [1, 128], strides = [1, 1]} : vector<8x1024xf32> to vector<1x128xf32>
    %47 = vector.broadcast %46 : vector<1x128xf32> to vector<8x128xf32>
    %48 = arith.addf %45, %47 : vector<8x128xf32>
    %c0_25 = arith.constant 0 : index
    %c0_26 = arith.constant 0 : index
    %49 = vector.load %arg9[%c0_25, %c0_26] : memref<8x128xf32, #tpu.memory_space<vmem>>, vector<8x128xf32>
    tpu.vector_store %arg9[%c0_25, %c0_26], %48 {strides = array<i32>} : memref<8x128xf32, #tpu.memory_space<vmem>>, vector<8x128xf32>,
    return
  }
  func.func @transform_0(%arg0: i32) -> (i32, i32) {
    %c0_i32 = arith.constant 0 : i32
    %c0_i32_0 = arith.constant 0 : i32
    return %arg0, %c0_i32 : i32, i32
  }
  func.func @transform_1(%arg0: i32) -> (i32, i32) {
    %c0_i32 = arith.constant 0 : i32
    %c0_i32_0 = arith.constant 0 : i32
    %c0_i32_1 = arith.constant 0 : i32
    return %c0_i32, %c0_i32_0 : i32, i32
  }
  func.func @transform_2(%arg0: i32) -> (i32, i32) {
    %c0_i32 = arith.constant 0 : i32
    %c0_i32_0 = arith.constant 0 : i32
    %c0_i32_1 = arith.constant 0 : i32
    return %c0_i32, %c0_i32_0 : i32, i32
  }
  func.func @transform_3(%arg0: i32) -> (i32, i32) {
    %c0_i32 = arith.constant 0 : i32
    %c0_i32_0 = arith.constant 0 : i32
    %c0_i32_1 = arith.constant 0 : i32
    return %c0_i32, %c0_i32_0 : i32, i32
  }
  func.func @transform_4(%arg0: i32) -> (i32, i32) {
    %c0_i32 = arith.constant 0 : i32
    %c0_i32_0 = arith.constant 0 : i32
    %c0_i32_1 = arith.constant 0 : i32
    return %c0_i32, %c0_i32_0 : i32, i32
  }
  func.func @transform_5(%arg0: i32) -> (i32, i32) {
    %c0_i32 = arith.constant 0 : i32
    %c0_i32_0 = arith.constant 0 : i32
    %c0_i32_1 = arith.constant 0 : i32
    return %c0_i32, %c0_i32_0 : i32, i32
  }
  func.func @transform_6(%arg0: i32) -> (i32, i32) {
    %c0_i32 = arith.constant 0 : i32
    %c0_i32_0 = arith.constant 0 : i32
    %c0_i32_1 = arith.constant 0 : i32
    return %c0_i32, %c0_i32_0 : i32, i32
  }
  func.func @transform_7(%arg0: i32) -> (i32, i32) {
    %c0_i32 = arith.constant 0 : i32
    %c0_i32_0 = arith.constant 0 : i32
    %c0_i32_1 = arith.constant 0 : i32
    return %c0_i32, %c0_i32_0 : i32, i32
  }
  func.func @transform_8(%arg0: i32) -> (i32, i32) {
    %c0_i32 = arith.constant 0 : i32
    %c0_i32_0 = arith.constant 0 : i32
    return %arg0, %c0_i32 : i32, i32
  }
}

</mosaic_0001>

<bundles_post_ra>
// kernel: tpu_custom_call.1
= control target key start
LH: loop header
LB: loop body
LE: loop exit
PB: predicated region body
PF: predicated region fallthrough
CT: control target
= control target key end

     0   :  { %13 = vsyncpa [#allocation3], 0  ;;  %s20201_s0 = inlined_call_operand.hbm [shape: bf16[8,162], index: 0, kind: input, shape index: {}]   ;;  %s20202_s1 = inlined_call_operand.hbm [shape: bf16[162,1024], index: 1, kind: input, shape index: {}]   ;;  %s20203_s2 = inlined_call_operand.hbm [shape: bf16[1024,1024], index: 2, kind: input, shape index: {}]   ;;  %s20204_s3 = inlined_call_operand.hbm [shape: bf16[1024,1024], index: 3, kind: input, shape index: {}]   ;;  %s20205_s4 = inlined_call_operand.hbm [shape: bf16[1024,1024], index: 4, kind: input, shape index: {}]   ;;  %s20206_s5 = inlined_call_operand.hbm [shape: bf16[1024,1024], index: 5, kind: input, shape index: {}]   ;;  %s20207_s6 = inlined_call_operand.hbm [shape: bf16[1024,128], index: 6, kind: input, shape index: {}]   ;;  %s20208_s7 = inlined_call_operand.hbm [shape: f32[8,1024], index: 7, kind: input, shape index: {}]   ;;  %s20209_s8 = inlined_call_operand.hbm [shape: f32[8,128], index: 8, kind: output, shape index: {}]  }
   0x1   :  { %14 = vsyncpa [#allocation6], 0 }
   0x2   :  { %15 = vsyncpa [#allocation9], 0 }
   0x3   :  { %16 = vsyncpa [#allocation12], 0 }
   0x4   :  { %17 = vsyncpa [#allocation15], 0 }
   0x5   :  { %18 = vsyncpa [#allocation4], 0  ;;  %s19467_s27 = smov [#allocation5]   ;;  %s19257_s9 = scalar_lea.hbm %s20202_s1, 10752 }
   0x6   :  { %s34_s28 = sshll.u32 %s19467_s27, 4  ;;  %p19258_p0 = scmp.ne.s32.totalorder %s20202_s1, %s19257_s9  ;;  %s35_s28 = int_to_ptr.vmem [resolvable:$true] %s34_s28 }
   0x7   :  { %p19261_p1 = scmp.lt.u32.totalorder %s19257_s9, %s20202_s1 }
   0x9   :  { %p19263_p2 = pnand %p19261_p1, %p19258_p0 }
   0xb   :  { %19266 = shalt.err (!%p19263_p2)
}
   0xc   :  { %s19267_s14 = scalar_lea.vmem %s35_s28, 10752  ;;  %p19272_p4 = scmp.lt.s32.totalorder %s35_s28, %s35_s28 }
   0xd   :  { %p19268_p3 = scmp.ne.s32.totalorder %s35_s28, %s19267_s14  ;;  %p19273_p5 = scmp.lt.s32.totalorder %s19267_s14, %s19267_s14 }
   0xf   :  { %p19274_p6 = por %p19273_p5, %p19272_p4 }
  0x11   :  { %p19275_p7 = pnand %p19274_p6, %p19268_p3 }
  0x13   :  { %19278 = shalt.err (!%p19275_p7)
}
  0x14   :  { %s19468_s15 = smov 512   ;;  %s19469_s16 = smov 32  }
  0x15   :  { %40 = dma.hbm_to_vmem [thread:$0]  %s20202_s1, 10752, %s35_s28, [#allocation6], %s19468_s15, %s19468_s15, %s19469_s16  }
  0x16   :  { %s19470_s19 = smov [#allocation8]   ;;  %s19471_s21 = smov [#allocation11]  }
  0x17   :  { %s58_s20 = sshll.u32 %s19470_s19, 4  ;;  %s82_s22 = sshll.u32 %s19471_s21, 4  ;;  %s59_s20 = int_to_ptr.vmem [resolvable:$true] %s58_s20  ;;  %s83_s22 = int_to_ptr.vmem [resolvable:$true] %s82_s22 }
  0x18   :  { %s19279_s25 = scalar_lea.hbm %s20204_s3, 65536 }
  0x19   :  { %p19280_p8 = scmp.ne.s32.totalorder %s20204_s3, %s19279_s25  ;;  %p19283_p9 = scmp.lt.u32.totalorder %s19279_s25, %s20204_s3 }
  0x1b   :  { %p19285_p10 = pnand %p19283_p9, %p19280_p8 }
  0x1d   :  { %19288 = shalt.err (!%p19285_p10)
}
  0x1e   :  { %s19289_s1 = scalar_lea.vmem %s59_s20, 65536  ;;  %p19294_p12 = scmp.lt.s32.totalorder %s59_s20, %s59_s20 }
  0x1f   :  { %p19290_p11 = scmp.ne.s32.totalorder %s59_s20, %s19289_s1  ;;  %p19295_p13 = scmp.lt.s32.totalorder %s19289_s1, %s19289_s1 }
  0x21   :  { %p19296_p0 = por %p19295_p13, %p19294_p12 }
  0x23   :  { %p19297_p1 = pnand %p19296_p0, %p19290_p11 }
  0x25   :  { %19300 = shalt.err (!%p19297_p1)
}
  0x26   :  { %64 = dma.hbm_to_vmem [thread:$0]  %s20204_s3, 65536, %s59_s20, [#allocation9], %s19468_s15, %s19468_s15, %s19469_s16  }
  0x27   :  { %s19301_s12 = scalar_lea.hbm %s20206_s5, 65536 }
  0x28   :  { %p19302_p2 = scmp.ne.s32.totalorder %s20206_s5, %s19301_s12  ;;  %p19305_p3 = scmp.lt.u32.totalorder %s19301_s12, %s20206_s5 }
  0x2a   :  { %p19307_p4 = pnand %p19305_p3, %p19302_p2 }
  0x2c   :  { %19310 = shalt.err (!%p19307_p4)
}
  0x2d   :  { %s19311_s19 = scalar_lea.vmem %s83_s22, 65536  ;;  %p19316_p6 = scmp.lt.s32.totalorder %s83_s22, %s83_s22 }
  0x2e   :  { %p19312_p5 = scmp.ne.s32.totalorder %s83_s22, %s19311_s19  ;;  %p19317_p7 = scmp.lt.s32.totalorder %s19311_s19, %s19311_s19 }
  0x30   :  { %p19318_p8 = por %p19317_p7, %p19316_p6 }
  0x32   :  { %p19319_p9 = pnand %p19318_p8, %p19312_p5 }
  0x34   :  { %19322 = shalt.err (!%p19319_p9)
}
  0x35   :  { %88 = dma.hbm_to_vmem [thread:$0]  %s20206_s5, 65536, %s83_s22, [#allocation12], %s19468_s15, %s19468_s15, %s19469_s16  }
  0x36   :  { %s19472_s21 = smov [#allocation2]   ;;  %s19473_s24 = smov [#allocation7]  }
  0x37   :  { %s25_s23 = sshll.u32 %s19472_s21, 4  ;;  %s46_s25 = sshll.u32 %s19473_s24, 4  ;;  %s26_s23 = int_to_ptr.vmem [resolvable:$true] %s25_s23  ;;  %s47_s25 = int_to_ptr.vmem [resolvable:$true] %s46_s25 }
  0x38   :  { %s19323_s29 = scalar_lea.hbm %s20201_s0, 128 }
  0x39   :  { %p19324_p10 = scmp.ne.s32.totalorder %s20201_s0, %s19323_s29  ;;  %p19327_p11 = scmp.lt.u32.totalorder %s19323_s29, %s20201_s0 }
  0x3b   :  { %p19329_p12 = pnand %p19327_p11, %p19324_p10 }
  0x3d   :  { %19332 = shalt.err (!%p19329_p12)
}
  0x3e   :  { %s19333_s5 = scalar_lea.vmem %s26_s23, 128  ;;  %p19338_p0 = scmp.lt.s32.totalorder %s26_s23, %s26_s23 }
  0x3f   :  { %p19334_p13 = scmp.ne.s32.totalorder %s26_s23, %s19333_s5  ;;  %p19339_p1 = scmp.lt.s32.totalorder %s19333_s5, %s19333_s5 }
  0x41   :  { %p19340_p2 = por %p19339_p1, %p19338_p0 }
  0x43   :  { %p19341_p3 = pnand %p19340_p2, %p19334_p13 }
  0x45   :  { %19344 = shalt.err (!%p19341_p3)
}
  0x46   :  { %28 = dma.hbm_to_vmem [thread:$0]  %s20201_s0, 128, %s26_s23, [#allocation3]  }
  0x47   :  { %s19345_s13 = scalar_lea.hbm %s20203_s2, 65536 }
  0x48   :  { %p19346_p4 = scmp.ne.s32.totalorder %s20203_s2, %s19345_s13  ;;  %p19349_p5 = scmp.lt.u32.totalorder %s19345_s13, %s20203_s2 }
  0x4a   :  { %p19351_p6 = pnand %p19349_p5, %p19346_p4 }
  0x4c   :  { %19354 = shalt.err (!%p19351_p6)
}
  0x4d   :  { %s19355_s3 = scalar_lea.vmem %s47_s25, 65536  ;;  %p19360_p8 = scmp.lt.s32.totalorder %s47_s25, %s47_s25 }
  0x4e   :  { %p19356_p7 = scmp.ne.s32.totalorder %s47_s25, %s19355_s3  ;;  %p19361_p9 = scmp.lt.s32.totalorder %s19355_s3, %s19355_s3 }
  0x50   :  { %p19362_p10 = por %p19361_p9, %p19360_p8 }
  0x52   :  { %p19363_p11 = pnand %p19362_p10, %p19356_p7 }
  0x54   :  { %19366 = shalt.err (!%p19363_p11)
}
  0x55   :  { %52 = dma.hbm_to_vmem [thread:$0]  %s20203_s2, 65536, %s47_s25, [#allocation6], %s19468_s15, %s19468_s15, %s19469_s16  }
  0x56   :  { %s19474_s21 = smov [#allocation10]   ;;  %s19475_s24 = smov [#allocation13]  }
  0x57   :  { %s70_s23 = sshll.u32 %s19474_s21, 4  ;;  %s94_s26 = sshll.u32 %s19475_s24, 4  ;;  %s71_s23 = int_to_ptr.vmem [resolvable:$true] %s70_s23  ;;  %s95_s26 = int_to_ptr.vmem [resolvable:$true] %s94_s26 }
  0x58   :  { %s19367_s30 = scalar_lea.hbm %s20205_s4, 65536 }
  0x59   :  { %p19368_p12 = scmp.ne.s32.totalorder %s20205_s4, %s19367_s30  ;;  %p19371_p13 = scmp.lt.u32.totalorder %s19367_s30, %s20205_s4 }
  0x5b   :  { %p19373_p0 = pnand %p19371_p13, %p19368_p12 }
  0x5d   :  { %19376 = shalt.err (!%p19373_p0)
}
  0x5e   :  { %s19377_s2 = scalar_lea.vmem %s71_s23, 65536  ;;  %p19382_p2 = scmp.lt.s32.totalorder %s71_s23, %s71_s23 }
  0x5f   :  { %p19378_p1 = scmp.ne.s32.totalorder %s71_s23, %s19377_s2  ;;  %p19383_p3 = scmp.lt.s32.totalorder %s19377_s2, %s19377_s2 }
  0x61   :  { %p19384_p4 = por %p19383_p3, %p19382_p2 }
  0x63   :  { %p19385_p5 = pnand %p19384_p4, %p19378_p1 }
  0x65   :  { %19388 = shalt.err (!%p19385_p5)
}
  0x66   :  { %76 = dma.hbm_to_vmem [thread:$0]  %s20205_s4, 65536, %s71_s23, [#allocation9], %s19468_s15, %s19468_s15, %s19469_s16  }
  0x67   :  { %s19389_s12 = scalar_lea.hbm %s20207_s6, 8192 }
  0x68   :  { %p19390_p6 = scmp.ne.s32.totalorder %s20207_s6, %s19389_s12  ;;  %p19393_p7 = scmp.lt.u32.totalorder %s19389_s12, %s20207_s6 }
  0x6a   :  { %p19395_p8 = pnand %p19393_p7, %p19390_p6 }
  0x6c   :  { %19398 = shalt.err (!%p19395_p8)
}
  0x6d   :  { %s19399_s19 = scalar_lea.vmem %s95_s26, 8192  ;;  %p19404_p10 = scmp.lt.s32.totalorder %s95_s26, %s95_s26 }
  0x6e   :  { %p19400_p9 = scmp.ne.s32.totalorder %s95_s26, %s19399_s19  ;;  %p19405_p11 = scmp.lt.s32.totalorder %s19399_s19, %s19399_s19 }
  0x70   :  { %p19406_p12 = por %p19405_p11, %p19404_p10 }
  0x72   :  { %p19407_p13 = pnand %p19406_p12, %p19400_p9 }
  0x74   :  { %19410 = shalt.err (!%p19407_p13)
}
  0x75   :  { %s19476_s4 = smov 64   ;;  %s19477_s15 = smov 4  }
  0x76   :  { %100 = dma.hbm_to_vmem [thread:$0]  %s20207_s6, 8192, %s95_s26, [#allocation12], %s19476_s4, %s19476_s4, %s19477_s15  }
  0x77   :  { %s19478_s0 = smov [#allocation14]   ;;  %s19411_s24 = scalar_lea.hbm %s20208_s7, 1024 }
  0x78   :  { %s107_s20 = sshll.u32 %s19478_s0, 4  ;;  %p19412_p0 = scmp.ne.s32.totalorder %s20208_s7, %s19411_s24  ;;  %s108_s20 = int_to_ptr.vmem [resolvable:$true] %s107_s20 }
  0x79   :  { %p19415_p1 = scmp.lt.u32.totalorder %s19411_s24, %s20208_s7 }
  0x7b   :  { %p19417_p2 = pnand %p19415_p1, %p19412_p0 }
  0x7d   :  { %19420 = shalt.err (!%p19417_p2)
}
  0x7e   :  { %s19421_s28 = scalar_lea.vmem %s108_s20, 1024  ;;  %p19426_p4 = scmp.lt.s32.totalorder %s108_s20, %s108_s20 }
  0x7f   :  { %p19422_p3 = scmp.ne.s32.totalorder %s108_s20, %s19421_s28  ;;  %p19427_p5 = scmp.lt.s32.totalorder %s19421_s28, %s19421_s28 }
  0x81   :  { %p19428_p6 = por %p19427_p5, %p19426_p4 }
  0x83   :  { %p19429_p7 = pnand %p19428_p6, %p19422_p3 }
  0x85   :  { %19432 = shalt.err (!%p19429_p7)
}
  0x86   :  { %110 = dma.hbm_to_vmem [thread:$0]  %s20208_s7, 1024, %s108_s20, [#allocation15]  }
  0x87   :  { %19455 = dma.done.wait [#allocation3], 128  }
  0x88   :  { %19456 = vsyncadd [#allocation3], 4294967168 }
  0x89   :  { %19457 = dma.done.wait [#allocation6], 76288  }
  0x8a   :  { %19458 = vsyncadd [#allocation6], 4294891008 }
  0x8b   :  { %19459 = dma.done.wait [#allocation9], 131072  }
  0x8c   :  { %19460 = vsyncadd [#allocation9], 4294836224 }
  0x8d   :  { %19461 = dma.done.wait [#allocation12], 73728  }
  0x8e   :  { %19462 = vsyncadd [#allocation12], 4294893568 }
  0x8f   :  { %19463 = dma.done.wait [#allocation15], 1024  }
  0x90   :  { %19464 = vsyncadd [#allocation15], 4294966272  ;;  %v145_v0 = vld [vmem:[#allocation5] sm:$0xff]  ;;  %v19636_v13 = vld [vmem:[#allocation2] sm:$0xff]  ;;  %vm687_vm0 = vcmask 277504   ;;  %vm691_vm1 = vcmask 1040384  }
  0x91   :  { %v149_v1 = vld [vmem:[#allocation5 + $0x20] sm:$0xff]  ;;  %v146_v14 = vld [vmem:[#allocation5 + $0x8] sm:$0xff]  ;;  %v19640_v17 = vcombine.high %v19636_v13, %v19636_v13  ;;  %s19479_s7 = smov [#allocation16]  }
  0x92   :  { %v153_v2 = vld [vmem:[#allocation5 + $0x40] sm:$0xff]  ;;  %v16731_v3 = vcombine.high %v145_v0, %v149_v1  ;;  %v16730_v4 = vcombine.low %v145_v0, %v149_v1  ;;  %v150_v15 = vld [vmem:[#allocation5 + $0x28] sm:$0xff]  ;;  %s16715_s9 = sshll.u32 %s19479_s7, 4  ;;  %s16716_s9 = int_to_ptr.vmem [resolvable:$true] %s16715_s9 }
  0x93   :  { %v157_v5 = vld [vmem:[#allocation5 + $0x60] sm:$0xff]  ;;  %v16733_v18 = vcombine.high %v146_v14, %v150_v15  ;;  %v16732_v19 = vcombine.low %v146_v14, %v150_v15  ;;  %v154_v20 = vld [vmem:[#allocation5 + $0x48] sm:$0xff]  ;;  %16819 = vmatprep.mubr.msk.bf16.mxu0 %vm687_vm0, %v19640_v17  ;;  %16821 = vmatprep.mubr.msk.bf16.mxu1 %vm687_vm0, %v19640_v17  ;;  %s19433_s5 = scalar_lea.vmem %s16716_s9, 128  ;;  %p19438_p9 = scmp.lt.s32.totalorder %s16716_s9, %s16716_s9 }
  0x94   :  { %v16739_v6 = vcombine.high %v153_v2, %v157_v5  ;;  %v161_v7 = vld [vmem:[#allocation5 + $0x80] sm:$0xff]  ;;  %716 = vmatprep.subr.bf16.mxu0 %v16731_v3  ;;  %v16738_v9 = vcombine.low %v153_v2, %v157_v5  ;;  %v158_v21 = vld [vmem:[#allocation5 + $0x68] sm:$0xff]  ;;  %p19434_p8 = scmp.ne.s32.totalorder %s16716_s9, %s19433_s5  ;;  %p19439_p10 = scmp.lt.s32.totalorder %s19433_s5, %s19433_s5 }
  0x95   :  { %v165_v8 = vld [vmem:[#allocation5 + $0xa0] sm:$0xff]  ;;  %717 = vmatpush1.bf16.msra.mxu0 %v16730_v4  ;;  %v16741_v23 = vcombine.high %v154_v20, %v158_v21  ;;  %v162_v24 = vld [vmem:[#allocation5 + $0x88] sm:$0xff]  ;;  %757 = vmatprep.subr.bf16.mxu1 %v16733_v18  ;;  %v16740_v28 = vcombine.low %v154_v20, %v158_v21  ;;  %v147_v20 = vld [vmem:[#allocation5 + $0x10] sm:$0xff] }
  0x96   :  { %718 = vmatprep.subr.bf16.mxu0 %v16739_v6  ;;  %v16747_v10 = vcombine.high %v161_v7, %v165_v8  ;;  %v169_v11 = vld [vmem:[#allocation5 + $0xc0] sm:$0xff]  ;;  %v16746_v16 = vcombine.low %v161_v7, %v165_v8  ;;  %v166_v25 = vld [vmem:[#allocation5 + $0xa8] sm:$0xff]  ;;  %758 = vmatpush1.bf16.msra.mxu1 %v16732_v19  ;;  %v151_v21 = vld [vmem:[#allocation5 + $0x30] sm:$0xff]  ;;  %p19440_p11 = por %p19439_p10, %p19438_p9 }
  0x97   :  { %v173_v12 = vld [vmem:[#allocation5 + $0xe0] sm:$0xff]  ;;  %759 = vmatprep.subr.bf16.mxu1 %v16741_v23  ;;  %v16749_v30 = vcombine.high %v162_v24, %v166_v25  ;;  %v170_v32 = vld [vmem:[#allocation5 + $0xc8] sm:$0xff]  ;;  %v16748_v36 = vcombine.low %v162_v24, %v166_v25  ;;  %v19646_v25 = vld [vmem:[#allocation5 + $0x290] sm:$0x11] }
  0x98   :  { %v16755_v22 = vcombine.high %v169_v11, %v173_v12  ;;  %v177_v26 = vld [vmem:[#allocation5 + $0x100] sm:$0xff]  ;;  %v16754_v29 = vcombine.low %v169_v11, %v173_v12  ;;  %v174_v33 = vld [vmem:[#allocation5 + $0xe8] sm:$0xff]  ;;  %p19441_p12 = pnand %p19440_p11, %p19434_p8 }
  0x99   :  { %719 = vmatpush1.bf16.msra.mxu0 %v16738_v9  ;;  %v181_v27 = vld [vmem:[#allocation5 + $0x120] sm:$0xff]  ;;  %v16757_v38 = vcombine.high %v170_v32, %v174_v33  ;;  %v178_v40 = vld [vmem:[#allocation5 + $0x108] sm:$0xff]  ;;  %v16756_v44 = vcombine.low %v170_v32, %v174_v33  ;;  %v16814_v33 = vcombine.low %v19646_v25, %v19646_v25 }
  0x9a   :  { %720 = vmatprep.subr.bf16.mxu0 %v16747_v10  ;;  %v16763_v31 = vcombine.high %v177_v26, %v181_v27  ;;  %v185_v34 = vld [vmem:[#allocation5 + $0x140] sm:$0xff]  ;;  %760 = vmatpush1.bf16.msra.mxu1 %v16740_v28  ;;  %v16762_v37 = vcombine.low %v177_v26, %v181_v27  ;;  %v182_v41 = vld [vmem:[#allocation5 + $0x128] sm:$0xff]  ;;  %v16735_v27 = vcombine.high %v147_v20, %v151_v21 }
  0x9b   :  { %v189_v35 = vld [vmem:[#allocation5 + $0x160] sm:$0xff]  ;;  %761 = vmatprep.subr.bf16.mxu1 %v16749_v30  ;;  %v16765_v46 = vcombine.high %v178_v40, %v182_v41  ;;  %v186_v48 = vld [vmem:[#allocation5 + $0x148] sm:$0xff]  ;;  %v16764_v52 = vcombine.low %v178_v40, %v182_v41  ;;  %v159_v30 = vld [vmem:[#allocation5 + $0x70] sm:$0xff] }
  0x9c   :  { %v16771_v39 = vcombine.high %v185_v34, %v189_v35  ;;  %v193_v42 = vld [vmem:[#allocation5 + $0x180] sm:$0xff]  ;;  %v16770_v45 = vcombine.low %v185_v34, %v189_v35  ;;  %v190_v49 = vld [vmem:[#allocation5 + $0x168] sm:$0xff]  ;;  %v16734_v35 = vcombine.low %v147_v20, %v151_v21  ;;  %v163_v40 = vld [vmem:[#allocation5 + $0x90] sm:$0xff] }
  0x9d   :  { %721 = vmatpush1.bf16.msra.mxu0 %v16746_v16  ;;  %v197_v43 = vld [vmem:[#allocation5 + $0x1a0] sm:$0xff]  ;;  %v16773_v54 = vcombine.high %v186_v48, %v190_v49  ;;  %v194_v56 = vld [vmem:[#allocation5 + $0x188] sm:$0xff]  ;;  %v16772_v60 = vcombine.low %v186_v48, %v190_v49  ;;  %v167_v41 = vld [vmem:[#allocation5 + $0xb0] sm:$0xff] }
  0x9e   :  { %722 = vmatprep.subr.bf16.mxu0 %v16755_v22  ;;  %762 = vmatpush1.bf16.msra.mxu1 %v16748_v36  ;;  %v16779_v47 = vcombine.high %v193_v42, %v197_v43  ;;  %v201_v50 = vld [vmem:[#allocation5 + $0x1c0] sm:$0xff]  ;;  %v16778_v53 = vcombine.low %v193_v42, %v197_v43  ;;  %v198_v57 = vld [vmem:[#allocation5 + $0x1a8] sm:$0xff]  ;;  %v160_v42 = vld [vmem:[#allocation5 + $0x78] sm:$0xff]  ;;  %v19659_v43 = vsel %vm691_vm1, %v16814_v33, 0  ;;  %v16751_v48 = vcombine.high %v163_v40, %v167_v41 }
  0x9f   :  { %763 = vmatprep.subr.bf16.mxu1 %v16757_v38  ;;  %v205_v51 = vld [vmem:[#allocation5 + $0x1e0] sm:$0xff]  ;;  %v16781_v62 = vcombine.high %v194_v56, %v198_v57  ;;  %v202_v0 = vld [vmem:[#allocation5 + $0x1c8] sm:$0xff]  ;;  %v16780_v4 = vcombine.low %v194_v56, %v198_v57  ;;  %v152_v38 = vld [vmem:[#allocation5 + $0x38] sm:$0xff] }
  0xa0   :  { %v16787_v55 = vcombine.high %v201_v50, %v205_v51  ;;  %v209_v58 = vld [vmem:[#allocation5 + $0x200] sm:$0xff]  ;;  %v16786_v61 = vcombine.low %v201_v50, %v205_v51  ;;  %v206_v1 = vld [vmem:[#allocation5 + $0x1e8] sm:$0xff]  ;;  %v164_v50 = vld [vmem:[#allocation5 + $0x98] sm:$0xff] }
  0xa1   :  { %723 = vmatpush1.bf16.msra.mxu0 %v16754_v29  ;;  %v213_v59 = vld [vmem:[#allocation5 + $0x220] sm:$0xff]  ;;  %v16789_v6 = vcombine.high %v202_v0, %v206_v1  ;;  %v210_v8 = vld [vmem:[#allocation5 + $0x208] sm:$0xff]  ;;  %v16788_v11 = vcombine.low %v202_v0, %v206_v1  ;;  %v155_v29 = vld [vmem:[#allocation5 + $0x50] sm:$0xff] }
  0xa2   :  { %724 = vmatprep.subr.bf16.mxu0 %v16763_v31  ;;  %764 = vmatpush1.bf16.msra.mxu1 %v16756_v44  ;;  %v16795_v63 = vcombine.high %v209_v58, %v213_v59  ;;  %v217_v2 = vld [vmem:[#allocation5 + $0x240] sm:$0xff]  ;;  %v16794_v5 = vcombine.low %v209_v58, %v213_v59  ;;  %v214_v9 = vld [vmem:[#allocation5 + $0x228] sm:$0xff]  ;;  %v19652_v31 = vcombine.low %v19636_v13, %v19636_v13  ;;  %v156_v13 = vld [vmem:[#allocation5 + $0x58] sm:$0xff] }
  0xa3   :  { %765 = vmatprep.subr.bf16.mxu1 %v16765_v46  ;;  %v221_v3 = vld [vmem:[#allocation5 + $0x260] sm:$0xff]  ;;  %v16797_v14 = vcombine.high %v210_v8, %v214_v9  ;;  %v218_v18 = vld [vmem:[#allocation5 + $0x248] sm:$0xff]  ;;  %v16796_v22 = vcombine.low %v210_v8, %v214_v9  ;;  %v16743_v36 = vcombine.high %v155_v29, %v159_v30  ;;  %v16742_v44 = vcombine.low %v155_v29, %v159_v30  ;;  %v175_v46 = vld [vmem:[#allocation5 + $0xf0] sm:$0xff] }
  0xa4   :  { %v16803_v7 = vcombine.high %v217_v2, %v221_v3  ;;  %v225_v10 = vld [vmem:[#allocation5 + $0x280] sm:$0x11]  ;;  %v16802_v12 = vcombine.low %v217_v2, %v221_v3  ;;  %v222_v19 = vld [vmem:[#allocation5 + $0x268] sm:$0xff]  ;;  %v168_v51 = vld [vmem:[#allocation5 + $0xb8] sm:$0xff]  ;;  %v16744_v57 = vcombine.low %v156_v13, %v160_v42 }
  0xa5   :  { %725 = vmatpush1.bf16.msra.mxu0 %v16762_v37  ;;  %v16811_v15 = vcombine.high %v225_v10, %v225_v10  ;;  %v16810_v16 = vcombine.low %v225_v10, %v225_v10  ;;  %v226_v23 = vld [vmem:[#allocation5 + $0x288] sm:$0x11]  ;;  %v16805_v24 = vcombine.high %v218_v18, %v222_v19  ;;  %v16804_v32 = vcombine.low %v218_v18, %v222_v19  ;;  %v148_v37 = vld [vmem:[#allocation5 + $0x18] sm:$0xff]  ;;  %v223_v33 = vld [vmem:[#allocation5 + $0x270] sm:$0xff] }
  0xa6   :  { %726 = vmatprep.subr.bf16.mxu0 %v16771_v39  ;;  %766 = vmatpush1.bf16.msra.mxu1 %v16764_v52  ;;  %v16812_v28 = vcombine.low %v226_v23, %v226_v23  ;;  %v16813_v34 = vcombine.high %v226_v23, %v226_v23  ;;  %v16736_v49 = vcombine.low %v148_v37, %v152_v38  ;;  %v172_v58 = vld [vmem:[#allocation5 + $0xd8] sm:$0xff]  ;;  %v215_v23 = vld [vmem:[#allocation5 + $0x230] sm:$0xff] }
  0xa7   :  { %767 = vmatprep.subr.bf16.mxu1 %v16773_v54  ;;  %v693_v26 = vsel %vm691_vm1, %v16810_v16, 0  ;;  %v16750_v52 = vcombine.low %v163_v40, %v167_v41  ;;  %v183_v54 = vld [vmem:[#allocation5 + $0x130] sm:$0xff]  ;;  %v176_v59 = vld [vmem:[#allocation5 + $0xf8] sm:$0xff]  ;;  %v16752_v1 = vcombine.low %v164_v50, %v168_v51 }
  0xa8   :  { %v699_v39 = vsel %vm691_vm1, %v16812_v28, 0  ;;  %v180_v2 = vld [vmem:[#allocation5 + $0x118] sm:$0xff]  ;;  %v16760_v8 = vcombine.low %v172_v58, %v176_v59 }
  0xa9   :  { %727 = vmatpush1.bf16.msra.mxu0 %v16770_v45  ;;  %v171_v45 = vld [vmem:[#allocation5 + $0xd0] sm:$0xff]  ;;  %v184_v3 = vld [vmem:[#allocation5 + $0x138] sm:$0xff] }
  0xaa   :  { %728 = vmatprep.subr.bf16.mxu0 %v16779_v47  ;;  %768 = vmatpush1.bf16.msra.mxu1 %v16772_v60  ;;  %v16737_v47 = vcombine.high %v148_v37, %v152_v38  ;;  %v16759_v56 = vcombine.high %v171_v45, %v175_v46  ;;  %v16758_v60 = vcombine.low %v171_v45, %v175_v46  ;;  %v188_v9 = vld [vmem:[#allocation5 + $0x158] sm:$0xff] }
  0xab   :  { %769 = vmatprep.subr.bf16.mxu1 %v16781_v62  ;;  %v191_v62 = vld [vmem:[#allocation5 + $0x170] sm:$0xff]  ;;  %v192_v10 = vld [vmem:[#allocation5 + $0x178] sm:$0xff]  ;;  %v16768_v18 = vcombine.low %v180_v2, %v184_v3 }
  0xac   :  { %v196_v19 = vld [vmem:[#allocation5 + $0x198] sm:$0xff] }
  0xad   :  { %729 = vmatpush1.bf16.msra.mxu0 %v16778_v53  ;;  %v179_v53 = vld [vmem:[#allocation5 + $0x110] sm:$0xff]  ;;  %v200_v20 = vld [vmem:[#allocation5 + $0x1b8] sm:$0xff] }
  0xae   :  { %730 = vmatprep.subr.bf16.mxu0 %v16787_v55  ;;  %770 = vmatpush1.bf16.msra.mxu1 %v16780_v4  ;;  %v16745_v55 = vcombine.high %v156_v13, %v160_v42  ;;  %v16767_v0 = vcombine.high %v179_v53, %v183_v54  ;;  %v16766_v4 = vcombine.low %v179_v53, %v183_v54  ;;  %v204_v28 = vld [vmem:[#allocation5 + $0x1d8] sm:$0xff]  ;;  %v904_v53 = vld [vmem:[#allocation7 + $0x40] sm:$0xff] }
  0xaf   :  { %771 = vmatprep.subr.bf16.mxu1 %v16789_v6  ;;  %v199_v6 = vld [vmem:[#allocation5 + $0x1b0] sm:$0xff]  ;;  %v208_v29 = vld [vmem:[#allocation5 + $0x1f8] sm:$0xff]  ;;  %v908_v54 = vld [vmem:[#allocation7 + $0x60] sm:$0xff] }
  0xb0   :  { %v212_v37 = vld [vmem:[#allocation5 + $0x218] sm:$0xff]  ;;  %v16793_v40 = vcombine.high %v204_v28, %v208_v29  ;;  %v16792_v13 = vcombine.low %v204_v28, %v208_v29  ;;  %v933_v28 = vld [vmem:[#allocation7 + $0x128] sm:$0xff] }
  0xb1   :  { %731 = vmatpush1.bf16.msra.mxu0 %v16786_v61  ;;  %v187_v61 = vld [vmem:[#allocation5 + $0x150] sm:$0xff]  ;;  %v216_v38 = vld [vmem:[#allocation5 + $0x238] sm:$0xff] }
  0xb2   :  { %732 = vmatprep.subr.bf16.mxu0 %v16795_v63  ;;  %772 = vmatpush1.bf16.msra.mxu1 %v16788_v11  ;;  %v16753_v63 = vcombine.high %v164_v50, %v168_v51  ;;  %v16774_v11 = vcombine.low %v187_v61, %v191_v62  ;;  %v220_v42 = vld [vmem:[#allocation5 + $0x258] sm:$0xff]  ;;  %v16801_v46 = vcombine.high %v212_v37, %v216_v38 }
  0xb3   :  { %773 = vmatprep.subr.bf16.mxu1 %v16797_v14  ;;  %v207_v14 = vld [vmem:[#allocation5 + $0x1f0] sm:$0xff]  ;;  %v16800_v50 = vcombine.low %v212_v37, %v216_v38  ;;  %v228_v51 = vld [vmem:[#allocation5 + $0x298] sm:$0x11]  ;;  %v941_v37 = vld [vmem:[#allocation7 + $0x168] sm:$0xff] }
  0xb5   :  { %733 = vmatpush1.bf16.msra.mxu0 %v16794_v5  ;;  %v195_v5 = vld [vmem:[#allocation5 + $0x190] sm:$0xff] }
  0xb6   :  { %734 = vmatprep.subr.bf16.mxu0 %v16803_v7  ;;  %774 = vmatpush1.bf16.msra.mxu1 %v16796_v22  ;;  %v16761_v7 = vcombine.high %v172_v58, %v176_v59  ;;  %v16783_v16 = vcombine.high %v195_v5, %v199_v6  ;;  %v16782_v21 = vcombine.low %v195_v5, %v199_v6  ;;  %v211_v22 = vld [vmem:[#allocation5 + $0x210] sm:$0xff]  ;;  %v901_v58 = vld [vmem:[#allocation7 + $0x28] sm:$0xff]  ;;  %v920_v5 = vld [vmem:[#allocation7 + $0xc0] sm:$0xff] }
  0xb7   :  { %775 = vmatprep.subr.bf16.mxu1 %v16805_v24  ;;  %v16777_v24 = vcombine.high %v188_v9, %v192_v10  ;;  %v16817_v59 = vcombine.high %v228_v51, %v228_v51  ;;  %v924_v6 = vld [vmem:[#allocation7 + $0xe0] sm:$0xff] }
  0xb9   :  { %735 = vmatpush1.bf16.msra.mxu0 %v16802_v12  ;;  %v203_v12 = vld [vmem:[#allocation5 + $0x1d0] sm:$0xff] }
  0xba   :  { %16818 = vmatprep.subr.msk.bf16.mxu0 %vm691_vm1, %v16811_v15  ;;  %776 = vmatpush1.bf16.msra.mxu1 %v16804_v32  ;;  %v16769_v15 = vcombine.high %v180_v2, %v184_v3  ;;  %v16790_v30 = vcombine.low %v203_v12, %v207_v14  ;;  %v219_v32 = vld [vmem:[#allocation5 + $0x250] sm:$0xff]  ;;  %v16834_v2 = vcombine.low %v904_v53, %v908_v54  ;;  %v909_v3 = vld [vmem:[#allocation7 + $0x68] sm:$0xff] }
  0xbb   :  { %16820 = vmatprep.subr.msk.bf16.mxu1 %vm691_vm1, %v16813_v34  ;;  %v16785_v34 = vcombine.high %v196_v19, %v200_v20  ;;  %v16807_v41 = vcombine.high %v219_v32, %v223_v33  ;;  %v16806_v45 = vcombine.low %v219_v32, %v223_v33  ;;  %v948_v32 = vld [vmem:[#allocation7 + $0x1a0] sm:$0xff] }
  0xbd   :  { %737 = vmatpush1.bf16.msra.mxu0 %v693_v26  ;;  %v16791_v26 = vcombine.high %v203_v12, %v207_v14  ;;  %v928_v12 = vld [vmem:[#allocation7 + $0x100] sm:$0xff] }
  0xbe   :  { %798 = vmatprep.subr.bf16.mxu0 %v16735_v27  ;;  %778 = vmatpush1.bf16.msra.mxu1 %v699_v39  ;;  %v16776_v27 = vcombine.low %v188_v9, %v192_v10  ;;  %v16798_v39 = vcombine.low %v211_v22, %v215_v23  ;;  %v913_v9 = vld [vmem:[#allocation7 + $0x88] sm:$0xff]  ;;  %v932_v14 = vld [vmem:[#allocation7 + $0x120] sm:$0xff] }
  0xbf   :  { %839 = vmatprep.subr.bf16.mxu1 %v16737_v47  ;;  %v896_v47 = vld [vmem:[#allocation7] sm:$0xff]  ;;  %v917_v10 = vld [vmem:[#allocation7 + $0xa8] sm:$0xff] }
  0xc0   :  { %749 = vmatmul.mubr.bf16.vlgmr.msra.gmra.mrb[0].mxu0 %v19652_v31 }
  0xc1   :  { %799 = vmatpush1.bf16.msra.mxu0 %v16734_v35  ;;  %16823 = vmatprep.mubr.msk.bf16.mxu0 %vm687_vm0, %v19640_v17  ;;  %v16799_v35 = vcombine.high %v211_v22, %v215_v23  ;;  %v936_v22 = vld [vmem:[#allocation7 + $0x140] sm:$0xff] }
  0xc2   :  { %800 = vmatprep.subr.bf16.mxu0 %v16743_v36  ;;  %790 = vmatmul.mubr.bf16.vlgmr.msra.gmra.mrb[0].mxu1 %v19652_v31  ;;  %v16784_v36 = vcombine.low %v196_v19, %v200_v20  ;;  %v921_v19 = vld [vmem:[#allocation7 + $0xc8] sm:$0xff]  ;;  %v940_v23 = vld [vmem:[#allocation7 + $0x160] sm:$0xff] }
  0xc3   :  { %840 = vmatpush1.bf16.msra.mxu1 %v16736_v49  ;;  %16825 = vmatprep.mubr.msk.bf16.mxu1 %vm687_vm0, %v19640_v17  ;;  %v16775_v17 = vcombine.high %v187_v61, %v191_v62  ;;  %v16815_v49 = vcombine.high %v19646_v25, %v19646_v25  ;;  %v16816_v25 = vcombine.low %v228_v51, %v228_v51  ;;  %v912_v62 = vld [vmem:[#allocation7 + $0x80] sm:$0xff]  ;;  %v925_v20 = vld [vmem:[#allocation7 + $0xe8] sm:$0xff] }
  0xc4   :  { %841 = vmatprep.subr.bf16.mxu1 %v16745_v55  ;;  %v16835_v61 = vcombine.high %v904_v53, %v908_v54  ;;  %v16867_v29 = vcombine.high %v936_v22, %v940_v23  ;;  %v16852_v33 = vcombine.low %v921_v19, %v925_v20  ;;  %v957_v53 = vld [vmem:[#allocation7 + $0x1e8] sm:$0xff] }
  0xc5   :  { %801 = vmatpush1.bf16.msra.mxu0 %v16742_v44  ;;  %v224_v44 = vld [vmem:[#allocation5 + $0x278] sm:$0xff] }
  0xc6   :  { %802 = vmatprep.subr.bf16.mxu0 %v16751_v48  ;;  %v900_v48 = vld [vmem:[#allocation7 + $0x20] sm:$0xff] }
  0xc7   :  { %842 = vmatpush1.bf16.msra.mxu1 %v16744_v57  ;;  %v16827_v55 = vcombine.high %v896_v47, %v900_v48  ;;  %v897_v57 = vld [vmem:[#allocation7 + $0x8] sm:$0xff] }
  0xc8   :  { %843 = vmatprep.subr.bf16.mxu1 %v16753_v63  ;;  %v916_v63 = vld [vmem:[#allocation7 + $0xa0] sm:$0xff] }
  0xc9   :  { %803 = vmatpush1.bf16.msra.mxu0 %v16750_v52  ;;  %v16809_v52 = vcombine.high %v220_v42, %v224_v44 }
  0xca   :  { %804 = vmatprep.subr.bf16.mxu0 %v16759_v56  ;;  %v16808_v56 = vcombine.low %v220_v42, %v224_v44  ;;  %v945_v44 = vld [vmem:[#allocation7 + $0x188] sm:$0xff] }
  0xcb   :  { %844 = vmatpush1.bf16.msra.mxu1 %v16752_v1  ;;  %v16829_v1 = vcombine.high %v897_v57, %v901_v58 }
  0xcc   :  { %845 = vmatprep.subr.bf16.mxu1 %v16761_v7  ;;  %v16828_v7 = vcombine.low %v897_v57, %v901_v58 }
  0xcd   :  { %805 = vmatpush1.bf16.msra.mxu0 %v16758_v60  ;;  %v16826_v60 = vcombine.low %v896_v47, %v900_v48  ;;  %v960_v47 = vld [vmem:[#allocation7 + $0x200] sm:$0xff] }
  0xce   :  { %806 = vmatprep.subr.bf16.mxu0 %v16767_v0  ;;  %v711_v0 = vsel %vm691_vm1, %v16816_v25, 0  ;;  %v964_v48 = vld [vmem:[#allocation7 + $0x220] sm:$0xff]  ;;  %v961_v25 = vld [vmem:[#allocation7 + $0x208] sm:$0xff] }
  0xcf   :  { %846 = vmatpush1.bf16.msra.mxu1 %v16760_v8  ;;  %v16842_v8 = vcombine.low %v912_v62, %v916_v63  ;;  %v16891_v54 = vcombine.high %v960_v47, %v964_v48 }
  0xd0   :  { %847 = vmatprep.subr.bf16.mxu1 %v16769_v15 }
  0xd1   :  { %807 = vmatpush1.bf16.msra.mxu0 %v16766_v4  ;;  %v16843_v4 = vcombine.high %v912_v62, %v916_v63  ;;  %v976_v62 = vld [vmem:[#allocation7 + $0x280] sm:$0xff] }
  0xd2   :  { %808 = vmatprep.subr.bf16.mxu0 %v16775_v17  ;;  %v980_v63 = vld [vmem:[#allocation7 + $0x2a0] sm:$0xff] }
  0xd3   :  { %848 = vmatpush1.bf16.msra.mxu1 %v16768_v18  ;;  %v16850_v18 = vcombine.low %v920_v5, %v924_v6 }
  0xd4   :  { %849 = vmatprep.subr.bf16.mxu1 %v16777_v24  ;;  %v16844_v24 = vcombine.low %v913_v9, %v917_v10 }
  0xd5   :  { %809 = vmatpush1.bf16.msra.mxu0 %v16774_v11  ;;  %v16851_v11 = vcombine.high %v920_v5, %v924_v6  ;;  %v984_v5 = vld [vmem:[#allocation7 + $0x2c0] sm:$0xff] }
  0xd6   :  { %810 = vmatprep.subr.bf16.mxu0 %v16783_v16  ;;  %v16845_v16 = vcombine.high %v913_v9, %v917_v10  ;;  %v988_v6 = vld [vmem:[#allocation7 + $0x2e0] sm:$0xff]  ;;  %v977_v9 = vld [vmem:[#allocation7 + $0x288] sm:$0xff] }
  0xd7   :  { %850 = vmatpush1.bf16.msra.mxu1 %v16776_v27  ;;  %v929_v27 = vld [vmem:[#allocation7 + $0x108] sm:$0xff] }
  0xd8   :  { %851 = vmatprep.subr.bf16.mxu1 %v16785_v34  ;;  %v16861_v34 = vcombine.high %v929_v27, %v933_v28  ;;  %v981_v10 = vld [vmem:[#allocation7 + $0x2a8] sm:$0xff] }
  0xd9   :  { %811 = vmatpush1.bf16.msra.mxu0 %v16782_v21  ;;  %v16859_v21 = vcombine.high %v928_v12, %v932_v14 }
  0xda   :  { %812 = vmatprep.subr.bf16.mxu0 %v16791_v26  ;;  %v16853_v26 = vcombine.high %v921_v19, %v925_v20  ;;  %v985_v19 = vld [vmem:[#allocation7 + $0x2c8] sm:$0xff] }
  0xdb   :  { %852 = vmatpush1.bf16.msra.mxu1 %v16784_v36  ;;  %v937_v36 = vld [vmem:[#allocation7 + $0x148] sm:$0xff] }
  0xdc   :  { %853 = vmatprep.subr.bf16.mxu1 %v16793_v40  ;;  %v956_v40 = vld [vmem:[#allocation7 + $0x1e0] sm:$0xff]  ;;  %v989_v20 = vld [vmem:[#allocation7 + $0x2e8] sm:$0xff] }
  0xdd   :  { %813 = vmatpush1.bf16.msra.mxu0 %v16790_v30  ;;  %v944_v30 = vld [vmem:[#allocation7 + $0x180] sm:$0xff] }
  0xde   :  { %814 = vmatprep.subr.bf16.mxu0 %v16799_v35  ;;  %v16866_v35 = vcombine.low %v936_v22, %v940_v23  ;;  %v16875_v38 = vcombine.high %v944_v30, %v948_v32  ;;  %v16874_v42 = vcombine.low %v944_v30, %v948_v32  ;;  %v1000_v22 = vld [vmem:[#allocation7 + $0x340] sm:$0xff]  ;;  %v19681_v30 = vld [vmem:[#allocation7 + $0x428] sm:$0xff] }
  0xdf   :  { %854 = vmatpush1.bf16.msra.mxu1 %v16792_v13  ;;  %v16869_v13 = vcombine.high %v937_v36, %v941_v37  ;;  %v1004_v23 = vld [vmem:[#allocation7 + $0x360] sm:$0xff]  ;;  %v993_v32 = vld [vmem:[#allocation7 + $0x308] sm:$0xff] }
  0xe0   :  { %855 = vmatprep.subr.bf16.mxu1 %v16801_v46 }
  0xe1   :  { %815 = vmatpush1.bf16.msra.mxu0 %v16798_v39  ;;  %v952_v39 = vld [vmem:[#allocation7 + $0x1c0] sm:$0xff] }
  0xe2   :  { %816 = vmatprep.subr.bf16.mxu0 %v16807_v41  ;;  %v16860_v41 = vcombine.low %v929_v27, %v933_v28  ;;  %v16883_v46 = vcombine.high %v952_v39, %v956_v40  ;;  %v16882_v51 = vcombine.low %v952_v39, %v956_v40  ;;  %v19679_v27 = vld [vmem:[#allocation7 + $0x408] sm:$0xff]  ;;  %v16917_v28 = vcombine.high %v985_v19, %v989_v20 }
  0xe3   :  { %856 = vmatpush1.bf16.msra.mxu1 %v16800_v50  ;;  %v16916_v39 = vcombine.low %v985_v19, %v989_v20 }
  0xe4   :  { %857 = vmatprep.subr.bf16.mxu1 %v16809_v52  ;;  %v953_v52 = vld [vmem:[#allocation7 + $0x1c8] sm:$0xff] }
  0xe5   :  { %817 = vmatpush1.bf16.msra.mxu0 %v16806_v45  ;;  %v949_v45 = vld [vmem:[#allocation7 + $0x1a8] sm:$0xff]  ;;  %v16885_v58 = vcombine.high %v953_v52, %v957_v53 }
  0xe6   :  { %16822 = vmatprep.subr.msk.bf16.mxu0 %vm691_vm1, %v16815_v49  ;;  %v16868_v49 = vcombine.low %v937_v36, %v941_v37  ;;  %v16877_v50 = vcombine.high %v945_v44, %v949_v45  ;;  %v16876_v57 = vcombine.low %v945_v44, %v949_v45  ;;  %v16956_v36 = vcombine.low %v19679_v27, %v19681_v30  ;;  %v1008_v37 = vld [vmem:[#allocation7 + $0x380] sm:$0xff] }
  0xe7   :  { %858 = vmatpush1.bf16.msra.mxu1 %v16808_v56  ;;  %v972_v56 = vld [vmem:[#allocation7 + $0x260] sm:$0xff] }
  0xe8   :  { %16824 = vmatprep.subr.msk.bf16.mxu1 %vm691_vm1, %v16817_v59  ;;  %v16890_v59 = vcombine.low %v960_v47, %v964_v48  ;;  %v1016_v45 = vld [vmem:[#allocation7 + $0x3c0] sm:$0xff] }
  0xe9   :  { %819 = vmatpush1.bf16.msra.mxu0 %v19659_v43  ;;  %v905_v43 = vld [vmem:[#allocation7 + $0x48] sm:$0xff] }
  0xea   :  { %4000 = vmatprep.subr.bf16.mxu0 %v16827_v55  ;;  %v16837_v17 = vcombine.high %v905_v43, %v909_v3  ;;  %v16836_v15 = vcombine.low %v905_v43, %v909_v3  ;;  %v968_v55 = vld [vmem:[#allocation7 + $0x240] sm:$0xff]  ;;  %v969_v43 = vld [vmem:[#allocation7 + $0x248] sm:$0xff] }
  0xeb   :  { %860 = vmatpush1.bf16.msra.mxu1 %v711_v0  ;;  %v16884_v0 = vcombine.low %v953_v52, %v957_v53  ;;  %v973_v3 = vld [vmem:[#allocation7 + $0x268] sm:$0xff] }
  0xec   :  { %831 = vmatmul.mubr.bf16.vlgmr.msra.gmra.mrb[4].mxu0 %v19652_v31  ;;  %4164 = vmatprep.subr.bf16.mxu1 %v16829_v1 }
  0xed   :  { %4001 = vmatpush1.bf16.msra.mxu0 %v16826_v60  ;;  %v965_v60 = vld [vmem:[#allocation7 + $0x228] sm:$0xff] }
  0xee   :  { %4002 = vmatprep.subr.bf16.mxu0 %v16835_v61  ;;  %872 = vmatmul.mubr.bf16.vlgmr.msra.gmra.mrb[4].mxu1 %v19652_v31  ;;  %v16858_v31 = vcombine.low %v928_v12, %v932_v14  ;;  %v16899_v61 = vcombine.high %v968_v55, %v972_v56  ;;  %v16893_v1 = vcombine.high %v961_v25, %v965_v60  ;;  %v992_v12 = vld [vmem:[#allocation7 + $0x300] sm:$0xff] }
  0xef   :  { %4165 = vmatpush1.bf16.msra.mxu1 %v16828_v7  ;;  %v16892_v7 = vcombine.low %v961_v25, %v965_v60  ;;  %v996_v14 = vld [vmem:[#allocation7 + $0x320] sm:$0xff] }
  0xf0   :  { %4166 = vmatprep.subr.bf16.mxu1 %v16837_v17  ;;  %v16901_v17 = vcombine.high %v969_v43, %v973_v3 }
  0xf1   :  { %4003 = vmatpush1.bf16.msra.mxu0 %v16834_v2  ;;  %v16898_v2 = vcombine.low %v968_v55, %v972_v56  ;;  %v1017_v56 = vld [vmem:[#allocation7 + $0x3c8] sm:$0xff] }
  0xf2   :  { %4004 = vmatprep.subr.bf16.mxu0 %v16843_v4  ;;  %v16907_v4 = vcombine.high %v976_v62, %v980_v63 }
  0xf3   :  { %4167 = vmatpush1.bf16.msra.mxu1 %v16836_v15  ;;  %v16900_v15 = vcombine.low %v969_v43, %v973_v3 }
  0xf4   :  { %4168 = vmatprep.subr.bf16.mxu1 %v16845_v16  ;;  %v16909_v16 = vcombine.high %v977_v9, %v981_v10 }
  0xf5   :  { %4005 = vmatpush1.bf16.msra.mxu0 %v16842_v8  ;;  %v16906_v8 = vcombine.low %v976_v62, %v980_v63  ;;  %v229_v62 = vlaneseq }
  0xf6   :  { %4006 = vmatprep.subr.bf16.mxu0 %v16851_v11  ;;  %v16915_v11 = vcombine.high %v984_v5, %v988_v6 }
  0xf7   :  { %4169 = vmatpush1.bf16.msra.mxu1 %v16844_v24  ;;  %v16908_v24 = vcombine.low %v977_v9, %v981_v10  ;;  %v19691_v63 = vshrl.u32 %v229_v62, 7  ;;  %v1072_v62 = vld [vmem:[#allocation7 + $0x580] sm:$0xff] }
  0xf8   :  { %4170 = vmatprep.subr.bf16.mxu1 %v16853_v26  ;;  %v19675_v26 = vld [vmem:[#allocation7 + $0x400] sm:$0xff] }
  0xf9   :  { %4007 = vmatpush1.bf16.msra.mxu0 %v16850_v18  ;;  %v16914_v18 = vcombine.low %v984_v5, %v988_v6 }
  0xfa   :  { %4008 = vmatprep.subr.bf16.mxu0 %v16859_v21  ;;  %v16923_v21 = vcombine.high %v992_v12, %v996_v14 }
  0xfb   :  { %4171 = vmatpush1.bf16.msra.mxu1 %v16852_v33  ;;  %v997_v33 = vld [vmem:[#allocation7 + $0x328] sm:$0xff] }
  0xfc   :  { %4172 = vmatprep.subr.bf16.mxu1 %v16861_v34  ;;  %v16931_v34 = vcombine.high %v1000_v22, %v1004_v23  ;;  %v16925_v40 = vcombine.high %v993_v32, %v997_v33  ;;  %v16924_v47 = vcombine.low %v993_v32, %v997_v33  ;;  %v1045_v32 = vld [vmem:[#allocation7 + $0x4a8] sm:$0xff] }
  0xfd   :  { %4009 = vmatpush1.bf16.msra.mxu0 %v16858_v31  ;;  %v19677_v31 = vld [vmem:[#allocation7 + $0x420] sm:$0xff] }
  0xfe   :  { %4010 = vmatprep.subr.bf16.mxu0 %v16867_v29  ;;  %v16922_v29 = vcombine.low %v992_v12, %v996_v14  ;;  %v1036_v14 = vld [vmem:[#allocation7 + $0x460] sm:$0xff] }
  0xff   :  { %4173 = vmatpush1.bf16.msra.mxu1 %v16860_v41  ;;  %v16930_v41 = vcombine.low %v1000_v22, %v1004_v23  ;;  %v1040_v23 = vld [vmem:[#allocation7 + $0x480] sm:$0xff] }
 0x100   :  { %4174 = vmatprep.subr.bf16.mxu1 %v16869_v13  ;;  %v1001_v13 = vld [vmem:[#allocation7 + $0x348] sm:$0xff] }
 0x101   :  { %4011 = vmatpush1.bf16.msra.mxu0 %v16866_v35  ;;  %v16954_v35 = vcombine.low %v19675_v26, %v19677_v31 }
 0x102   :  { %4012 = vmatprep.subr.bf16.mxu0 %v16875_v38  ;;  %v1012_v38 = vld [vmem:[#allocation7 + $0x3a0] sm:$0xff] }
 0x103   :  { %4175 = vmatpush1.bf16.msra.mxu1 %v16868_v49  ;;  %v16939_v44 = vcombine.high %v1008_v37, %v1012_v38  ;;  %v16938_v49 = vcombine.low %v1008_v37, %v1012_v38 }
 0x104   :  { %4176 = vmatprep.subr.bf16.mxu1 %v16877_v50  ;;  %v1009_v50 = vld [vmem:[#allocation7 + $0x388] sm:$0xff] }
 0x105   :  { %4013 = vmatpush1.bf16.msra.mxu0 %v16874_v42  ;;  %v1005_v42 = vld [vmem:[#allocation7 + $0x368] sm:$0xff] }
 0x106   :  { %4014 = vmatprep.subr.bf16.mxu0 %v16883_v46  ;;  %v1020_v46 = vld [vmem:[#allocation7 + $0x3e0] sm:$0xff]  ;;  %v16933_v48 = vcombine.high %v1001_v13, %v1005_v42  ;;  %v16932_v53 = vcombine.low %v1001_v13, %v1005_v42 }
 0x107   :  { %4177 = vmatpush1.bf16.msra.mxu1 %v16876_v57  ;;  %v16947_v52 = vcombine.high %v1016_v45, %v1020_v46  ;;  %v16946_v55 = vcombine.low %v1016_v45, %v1020_v46  ;;  %v1021_v57 = vld [vmem:[#allocation7 + $0x3e8] sm:$0xff]  ;;  %v1048_v42 = vld [vmem:[#allocation7 + $0x4c0] sm:$0xff] }
 0x108   :  { %4178 = vmatprep.subr.bf16.mxu1 %v16885_v58  ;;  %v16955_v58 = vcombine.high %v19675_v26, %v19677_v31  ;;  %v16949_v25 = vcombine.high %v1017_v56, %v1021_v57  ;;  %v16948_v60 = vcombine.low %v1017_v56, %v1021_v57  ;;  %v1052_v45 = vld [vmem:[#allocation7 + $0x4e0] sm:$0xff]  ;;  %v1049_v46 = vld [vmem:[#allocation7 + $0x4c8] sm:$0xff] }
 0x109   :  { %4015 = vmatpush1.bf16.msra.mxu0 %v16882_v51  ;;  %v1013_v51 = vld [vmem:[#allocation7 + $0x3a8] sm:$0xff]  ;;  %v1068_v56 = vld [vmem:[#allocation7 + $0x560] sm:$0xff] }
 0x10a   :  { %4016 = vmatprep.subr.bf16.mxu0 %v16891_v54  ;;  %v16941_v54 = vcombine.high %v1009_v50, %v1013_v51  ;;  %v1065_v57 = vld [vmem:[#allocation7 + $0x548] sm:$0xff] }
 0x10b   :  { %4179 = vmatpush1.bf16.msra.mxu1 %v16884_v0  ;;  %v19694_v0 = vsub.s32 0, %v19691_v63 }
 0x10c   :  { %4180 = vmatprep.subr.bf16.mxu1 %v16893_v1  ;;  %v136_v1 = vld [vmem:[#allocation14] sm:$0xff] }
 0x10d   :  { %4017 = vmatpush1.bf16.msra.mxu0 %v16890_v59  ;;  %v16940_v59 = vcombine.low %v1009_v50, %v1013_v51  ;;  %v232_v43 = vrot.slane %v136_v1, %v19694_v0  ;;  %v1061_v50 = vld [vmem:[#allocation7 + $0x528] sm:$0xff]  ;;  %v16978_v51 = vcombine.low %v1048_v42, %v1052_v45  ;;  %v1076_v1 = vld [vmem:[#allocation7 + $0x5a0] sm:$0xff] }
 0x10e   :  { %4018 = vmatprep.subr.bf16.mxu0 %v16899_v61  ;;  %v16957_v61 = vcombine.high %v19679_v27, %v19681_v30  ;;  %v16979_v30 = vcombine.high %v1048_v42, %v1052_v45  ;;  %v1104_v45 = vld [vmem:[#allocation7 + $0x680] sm:$0xff] }
 0x10f   :  { %4181 = vmatpush1.bf16.msra.mxu1 %v16892_v7 }
 0x110   :  { %4182 = vmatprep.subr.bf16.mxu1 %v16901_v17 }
 0x111   :  { %4019 = vmatpush1.bf16.msra.mxu0 %v16898_v2  ;;  %v137_v2 = vld [vmem:[#allocation14 + $0x8] sm:$0xff] }
 0x112   :  { %4020 = vmatprep.subr.bf16.mxu0 %v16907_v4  ;;  %v236_v3 = vrot.slane %v137_v2, %v19694_v0  ;;  %v1073_v2 = vld [vmem:[#allocation7 + $0x588] sm:$0xff] }
 0x113   :  { %4183 = vmatpush1.bf16.msra.mxu1 %v16900_v15  ;;  %v1033_v15 = vld [vmem:[#allocation7 + $0x448] sm:$0xff] }
 0x114   :  { %4184 = vmatprep.subr.bf16.mxu1 %v16909_v16  ;;  %v1037_v16 = vld [vmem:[#allocation7 + $0x468] sm:$0xff] }
 0x115   :  { %4021 = vmatpush1.bf16.msra.mxu0 %v16906_v8  ;;  %v139_v8 = vld [vmem:[#allocation14 + $0x18] sm:$0xff]  ;;  %v16965_v22 = vcombine.high %v1033_v15, %v1037_v16 }
 0x116   :  { %4022 = vmatprep.subr.bf16.mxu0 %v16915_v11  ;;  %v1032_v11 = vld [vmem:[#allocation7 + $0x440] sm:$0xff] }
 0x117   :  { %4185 = vmatpush1.bf16.msra.mxu1 %v16908_v24  ;;  %v16962_v38 = vcombine.low %v1032_v11, %v1036_v14 }
 0x118   :  { %4186 = vmatprep.subr.bf16.mxu1 %v16917_v28  ;;  %v1044_v28 = vld [vmem:[#allocation7 + $0x4a0] sm:$0xff] }
 0x119   :  { %4023 = vmatpush1.bf16.msra.mxu0 %v16914_v18  ;;  %v244_v18 = vrot.slane %v139_v8, %v19694_v0  ;;  %v16970_v31 = vcombine.low %v1040_v23, %v1044_v28  ;;  %v1081_v8 = vld [vmem:[#allocation7 + $0x5c8] sm:$0xff] }
 0x11a   :  { %4024 = vmatprep.subr.bf16.mxu0 %v16923_v21  ;;  %v16963_v21 = vcombine.high %v1032_v11, %v1036_v14  ;;  %v17002_v11 = vcombine.low %v1072_v62, %v1076_v1 }
 0x11b   :  { %4187 = vmatpush1.bf16.msra.mxu1 %v16916_v39  ;;  %v16964_v39 = vcombine.low %v1033_v15, %v1037_v16 }
 0x11c   :  { %4188 = vmatprep.subr.bf16.mxu1 %v16925_v40 }
 0x11d   :  { %4025 = vmatpush1.bf16.msra.mxu0 %v16922_v29  ;;  %v1041_v29 = vld [vmem:[#allocation7 + $0x488] sm:$0xff] }
 0x11e   :  { %4026 = vmatprep.subr.bf16.mxu0 %v16931_v34  ;;  %v16973_v13 = vcombine.high %v1041_v29, %v1045_v32  ;;  %v16972_v27 = vcombine.low %v1041_v29, %v1045_v32 }
 0x11f   :  { %4189 = vmatpush1.bf16.msra.mxu1 %v16924_v47  ;;  %v1053_v47 = vld [vmem:[#allocation7 + $0x4e8] sm:$0xff] }
 0x120   :  { %4190 = vmatprep.subr.bf16.mxu1 %v16933_v48  ;;  %v1060_v48 = vld [vmem:[#allocation7 + $0x520] sm:$0xff] }
 0x121   :  { %4027 = vmatpush1.bf16.msra.mxu0 %v16930_v41  ;;  %v16971_v41 = vcombine.high %v1040_v23, %v1044_v28  ;;  %v1093_v23 = vld [vmem:[#allocation7 + $0x628] sm:$0xff] }
 0x122   :  { %4028 = vmatprep.subr.bf16.mxu0 %v16939_v44 }
 0x123   :  { %4191 = vmatpush1.bf16.msra.mxu1 %v16932_v53 }
 0x124   :  { %4192 = vmatprep.subr.bf16.mxu1 %v16941_v54 }
 0x125   :  { %4029 = vmatpush1.bf16.msra.mxu0 %v16938_v49  ;;  %v1057_v49 = vld [vmem:[#allocation7 + $0x508] sm:$0xff] }
 0x126   :  { %4030 = vmatprep.subr.bf16.mxu0 %v16947_v52  ;;  %v16980_v52 = vcombine.low %v1049_v46, %v1053_v47  ;;  %v16989_v54 = vcombine.high %v1057_v49, %v1061_v50 }
 0x127   :  { %4193 = vmatpush1.bf16.msra.mxu1 %v16940_v59 }
 0x128   :  { %4194 = vmatprep.subr.bf16.mxu1 %v16949_v25  ;;  %v16988_v25 = vcombine.low %v1057_v49, %v1061_v50  ;;  %v1116_v49 = vld [vmem:[#allocation7 + $0x6e0] sm:$0xff]  ;;  %v1113_v50 = vld [vmem:[#allocation7 + $0x6c8] sm:$0xff] }
 0x129   :  { %4031 = vmatpush1.bf16.msra.mxu0 %v16946_v55  ;;  %v1064_v55 = vld [vmem:[#allocation7 + $0x540] sm:$0xff] }
 0x12a   :  { %4041 = vmatprep.subr.bf16.mxu0 %v16955_v58  ;;  %v1069_v58 = vld [vmem:[#allocation7 + $0x568] sm:$0xff] }
 0x12b   :  { %4195 = vmatpush1.bf16.msra.mxu1 %v16948_v60  ;;  %v16995_v60 = vcombine.high %v1064_v55, %v1068_v56 }
 0x12c   :  { %4205 = vmatprep.subr.bf16.mxu1 %v16957_v61  ;;  %v16997_v61 = vcombine.high %v1065_v57, %v1069_v58 }
 0x193   :  { %v750_v4 = vpop.f32.mrb[0].mxu0 }
 0x194   :  { %v751_v5 = vadd.f32 %v750_v4, %v232_v43  ;;  %v752_v6 = vpop.f32.mrb[1].mxu0  ;;  %v1077_v43 = vld [vmem:[#allocation7 + $0x5a8] sm:$0xff]  ;;  %v16996_v4 = vcombine.low %v1065_v57, %v1069_v58 }
 0x195   :  { %v753_v7 = vadd.f32 %v752_v6, %v236_v3  ;;  %v754_v17 = vpop.f32.mrb[2].mxu0  ;;  %v19711_v24 = vpop.f32.mrb[0].mxu1  ;;  %v16994_v3 = vcombine.low %v1064_v55, %v1068_v56  ;;  %v17005_v6 = vcombine.high %v1073_v2, %v1077_v43  ;;  %v17004_v14 = vcombine.low %v1073_v2, %v1077_v43 }
 0x196   :  { %v19698_v9 = vmax.f32 %v751_v5, 0.0  ;;  %v755_v10 = vpop.f32.mrb[3].mxu0  ;;  %v793_v33 = vpop.f32.mrb[1].mxu1  ;;  %v17003_v5 = vcombine.high %v1072_v62, %v1076_v1  ;;  %v1084_v17 = vld [vmem:[#allocation7 + $0x5e0] sm:$0xff]  ;;  %v1125_v62 = vld [vmem:[#allocation7 + $0x728] sm:$0xff] }
 0x197   :  { %v19700_v12 = vmax.f32 %v753_v7, 0.0  ;;  %v794_v34 = vadd.f32 %v793_v33, %v244_v18  ;;  %v795_v37 = vpop.f32.mrb[2].mxu1  ;;  %v1080_v7 = vld [vmem:[#allocation7 + $0x5c0] sm:$0xff]  ;;  %v1085_v10 = vld [vmem:[#allocation7 + $0x5e8] sm:$0xff] }
 0x198   :  { %v19709_v20 = vpack.c.bf16 %v19698_v9, %v19698_v9  ;;  %v796_v40 = vpop.f32.mrb[3].mxu1  ;;  %v17011_v15 = vcombine.high %v1080_v7, %v1084_v17  ;;  %v17013_v16 = vcombine.high %v1081_v8, %v1085_v10  ;;  %v1088_v18 = vld [vmem:[#allocation7 + $0x600] sm:$0xff]  ;;  %v17010_v28 = vcombine.low %v1080_v7, %v1084_v17  ;;  %v1129_v7 = vld [vmem:[#allocation7 + $0x748] sm:$0xff] }
 0x199   :  { %v19705_v19 = vpack.c.bf16 %v19700_v12, %v19700_v12  ;;  %v19723_v44 = vmax.f32 %v794_v34, 0.0  ;;  %v17012_v29 = vcombine.low %v1081_v8, %v1085_v10  ;;  %v1096_v34 = vld [vmem:[#allocation7 + $0x640] sm:$0xff]  ;;  %v1133_v17 = vld [vmem:[#allocation7 + $0x768] sm:$0xff] }
 0x19a   :  { %v1100_v37 = vld [vmem:[#allocation7 + $0x660] sm:$0xff] }
 0x19b   :  { %4032 = vmatprep.mubr.bf16.mxu0 %v19705_v19  ;;  %4196 = vmatprep.mubr.bf16.mxu1 %v19705_v19  ;;  %v19727_v26 = vpack.c.bf16 %v19723_v44, %v19723_v44 }
 0x19c   :  { %4033 = vmatmul.mubr.bf16.vlgmr.msra.gmra.mrb[8].mxu0 %v19709_v20  ;;  %4197 = vmatmul.mubr.bf16.vlgmr.msra.gmra.mrb[8].mxu1 %v19709_v20 }
 0x19d   :  { %4042 = vmatpush1.bf16.msra.mxu0 %v16954_v35  ;;  %4206 = vmatpush1.bf16.msra.mxu1 %v16956_v36  ;;  %v16981_v35 = vcombine.high %v1049_v46, %v1053_v47  ;;  %v1056_v36 = vld [vmem:[#allocation7 + $0x500] sm:$0xff]  ;;  %v1105_v47 = vld [vmem:[#allocation7 + $0x688] sm:$0xff] }
 0x19e   :  { %4043 = vmatprep.subr.bf16.mxu0 %v16963_v21  ;;  %4207 = vmatprep.subr.bf16.mxu1 %v16965_v22  ;;  %v16987_v53 = vcombine.high %v1056_v36, %v1060_v48  ;;  %v16986_v59 = vcombine.low %v1056_v36, %v1060_v48  ;;  %v1092_v21 = vld [vmem:[#allocation7 + $0x620] sm:$0xff]  ;;  %v1089_v22 = vld [vmem:[#allocation7 + $0x608] sm:$0xff] }
 0x19f   :  { %4073 = vmatprep.mubr.bf16.mxu0 %v19727_v26  ;;  %4237 = vmatprep.mubr.bf16.mxu1 %v19727_v26  ;;  %v17019_v32 = vcombine.high %v1088_v18, %v1092_v21  ;;  %v17021_v33 = vcombine.high %v1089_v22, %v1093_v23  ;;  %v17018_v40 = vcombine.low %v1088_v18, %v1092_v21  ;;  %v1108_v46 = vld [vmem:[#allocation7 + $0x6a0] sm:$0xff] }
 0x1a0   :  { %v1112_v48 = vld [vmem:[#allocation7 + $0x6c0] sm:$0xff]  ;;  %v17061_v21 = vcombine.high %v1129_v7, %v1133_v17 }
 0x1a1   :  { %4044 = vmatpush1.bf16.msra.mxu0 %v16962_v38  ;;  %4208 = vmatpush1.bf16.msra.mxu1 %v16964_v39  ;;  %v1097_v38 = vld [vmem:[#allocation7 + $0x648] sm:$0xff]  ;;  %v17043_v57 = vcombine.high %v1112_v48, %v1116_v49  ;;  %v17042_v1 = vcombine.low %v1112_v48, %v1116_v49 }
 0x1a2   :  { %4045 = vmatprep.subr.bf16.mxu0 %v16971_v41  ;;  %4209 = vmatprep.subr.bf16.mxu1 %v16973_v13  ;;  %v1101_v39 = vld [vmem:[#allocation7 + $0x668] sm:$0xff]  ;;  %v17020_v41 = vcombine.low %v1089_v22, %v1093_v23  ;;  %v17027_v13 = vcombine.high %v1096_v34, %v1100_v37  ;;  %v1136_v22 = vld [vmem:[#allocation7 + $0x780] sm:$0xff] }
 0x1a3   :  { %v17029_v42 = vcombine.high %v1097_v38, %v1101_v39  ;;  %v1140_v23 = vld [vmem:[#allocation7 + $0x7a0] sm:$0xff]  ;;  %v1153_v48 = vld [vmem:[#allocation7 + $0x808] sm:$0xff] }
 0x1a4   :  { %v1157_v49 = vld [vmem:[#allocation7 + $0x828] sm:$0xff] }
 0x1a5   :  { %4046 = vmatpush1.bf16.msra.mxu0 %v16970_v31  ;;  %4210 = vmatpush1.bf16.msra.mxu1 %v16972_v27  ;;  %v1109_v31 = vld [vmem:[#allocation7 + $0x6a8] sm:$0xff]  ;;  %v17026_v27 = vcombine.low %v1096_v34, %v1100_v37  ;;  %v17060_v37 = vcombine.low %v1129_v7, %v1133_v17 }
 0x1a6   :  { %4047 = vmatprep.subr.bf16.mxu0 %v16979_v30  ;;  %4211 = vmatprep.subr.bf16.mxu1 %v16981_v35  ;;  %v17028_v30 = vcombine.low %v1097_v38, %v1101_v39  ;;  %v17035_v35 = vcombine.high %v1104_v45, %v1108_v46  ;;  %v17037_v36 = vcombine.high %v1105_v47, %v1109_v31 }
 0x1a7   :  { %v17036_v55 = vcombine.low %v1105_v47, %v1109_v31  ;;  %v17067_v38 = vcombine.high %v1136_v22, %v1140_v23  ;;  %v17066_v47 = vcombine.low %v1136_v22, %v1140_v23 }
 0x1a9   :  { %4048 = vmatpush1.bf16.msra.mxu0 %v16978_v51  ;;  %4212 = vmatpush1.bf16.msra.mxu1 %v16980_v52  ;;  %v1117_v51 = vld [vmem:[#allocation7 + $0x6e8] sm:$0xff] }
 0x1aa   :  { %4049 = vmatprep.subr.bf16.mxu0 %v16987_v53  ;;  %4213 = vmatprep.subr.bf16.mxu1 %v16989_v54  ;;  %v17034_v54 = vcombine.low %v1104_v45, %v1108_v46  ;;  %v17045_v58 = vcombine.high %v1113_v50, %v1117_v51  ;;  %v17044_v2 = vcombine.low %v1113_v50, %v1117_v51 }
 0x1ad   :  { %4050 = vmatpush1.bf16.msra.mxu0 %v16986_v59  ;;  %4214 = vmatpush1.bf16.msra.mxu1 %v16988_v25  ;;  %v1120_v59 = vld [vmem:[#allocation7 + $0x700] sm:$0xff] }
 0x1ae   :  { %4051 = vmatprep.subr.bf16.mxu0 %v16995_v60  ;;  %4215 = vmatprep.subr.bf16.mxu1 %v16997_v61  ;;  %v1124_v60 = vld [vmem:[#allocation7 + $0x720] sm:$0xff]  ;;  %v1121_v61 = vld [vmem:[#allocation7 + $0x708] sm:$0xff] }
 0x1af   :  { %v17051_v43 = vcombine.high %v1120_v59, %v1124_v60 }
 0x1b1   :  { %4052 = vmatpush1.bf16.msra.mxu0 %v16994_v3  ;;  %4216 = vmatpush1.bf16.msra.mxu1 %v16996_v4  ;;  %v17053_v3 = vcombine.high %v1121_v61, %v1125_v62  ;;  %v1128_v4 = vld [vmem:[#allocation7 + $0x740] sm:$0xff] }
 0x1b2   :  { %4053 = vmatprep.subr.bf16.mxu0 %v17003_v5  ;;  %4217 = vmatprep.subr.bf16.mxu1 %v17005_v6  ;;  %v1132_v6 = vld [vmem:[#allocation7 + $0x760] sm:$0xff] }
 0x1b3   :  { %v17059_v18 = vcombine.high %v1128_v4, %v1132_v6  ;;  %v17058_v34 = vcombine.low %v1128_v4, %v1132_v6  ;;  %v1169_v4 = vld [vmem:[#allocation7 + $0x888] sm:$0xff] }
 0x1b4   :  { %v1173_v6 = vld [vmem:[#allocation7 + $0x8a8] sm:$0xff] }
 0x1b5   :  { %4054 = vmatpush1.bf16.msra.mxu0 %v17002_v11  ;;  %4218 = vmatpush1.bf16.msra.mxu1 %v17004_v14  ;;  %v17050_v11 = vcombine.low %v1120_v59, %v1124_v60  ;;  %v17052_v14 = vcombine.low %v1121_v61, %v1125_v62  ;;  %v1161_v59 = vld [vmem:[#allocation7 + $0x848] sm:$0xff]  ;;  %v17084_v62 = vcombine.low %v1153_v48, %v1157_v49 }
 0x1b6   :  { %4055 = vmatprep.subr.bf16.mxu0 %v17011_v15  ;;  %4219 = vmatprep.subr.bf16.mxu1 %v17013_v16  ;;  %v138_v15 = vld [vmem:[#allocation14 + $0x10] sm:$0xff]  ;;  %v17100_v23 = vcombine.low %v1169_v4, %v1173_v6 }
 0x1b9   :  { %4056 = vmatpush1.bf16.msra.mxu0 %v17010_v28  ;;  %4220 = vmatpush1.bf16.msra.mxu1 %v17012_v29  ;;  %v1137_v28 = vld [vmem:[#allocation7 + $0x788] sm:$0xff] }
 0x1ba   :  { %4057 = vmatprep.subr.bf16.mxu0 %v17019_v32  ;;  %4221 = vmatprep.subr.bf16.mxu1 %v17021_v33  ;;  %v1141_v29 = vld [vmem:[#allocation7 + $0x7a8] sm:$0xff]  ;;  %v240_v32 = vrot.slane %v138_v15, %v19694_v0  ;;  %v1176_v15 = vld [vmem:[#allocation7 + $0x8c0] sm:$0xff] }
 0x1bb   :  { %v141_v33 = vld [vmem:[#allocation14 + $0x28] sm:$0xff]  ;;  %v17069_v39 = vcombine.high %v1137_v28, %v1141_v29  ;;  %v17068_v31 = vcombine.low %v1137_v28, %v1141_v29 }
 0x1bc   :  { %v252_v45 = vrot.slane %v141_v33, %v19694_v0  ;;  %v792_v46 = vadd.f32 %v19711_v24, %v240_v32  ;;  %v1184_v32 = vld [vmem:[#allocation7 + $0x900] sm:$0xff] }
 0x1bd   :  { %4058 = vmatpush1.bf16.msra.mxu0 %v17018_v40  ;;  %4222 = vmatpush1.bf16.msra.mxu1 %v17020_v41  ;;  %v1144_v40 = vld [vmem:[#allocation7 + $0x7c0] sm:$0xff] }
 0x1be   :  { %4059 = vmatprep.subr.bf16.mxu0 %v17027_v13  ;;  %4223 = vmatprep.subr.bf16.mxu1 %v17029_v42  ;;  %v1148_v41 = vld [vmem:[#allocation7 + $0x7e0] sm:$0xff]  ;;  %v1145_v13 = vld [vmem:[#allocation7 + $0x7c8] sm:$0xff]  ;;  %v19743_v51 = vmax.f32 %v792_v46, 0.0 }
 0x1bf   :  { %v19731_v52 = vpop.f32.mrb[4].mxu0  ;;  %v1149_v42 = vld [vmem:[#allocation7 + $0x7e8] sm:$0xff]  ;;  %v1188_v33 = vld [vmem:[#allocation7 + $0x920] sm:$0xff] }
 0x1c0   :  { %v19733_v53 = vpop.f32.mrb[5].mxu0  ;;  %v17076_v24 = vcombine.low %v1145_v13, %v1149_v42  ;;  %v19749_v61 = vpack.c.bf16 %v19743_v51, %v19743_v51  ;;  %v1197_v46 = vld [vmem:[#allocation7 + $0x968] sm:$0xff] }
 0x1c1   :  { %4060 = vmatpush1.bf16.msra.mxu0 %v17026_v27  ;;  %4224 = vmatpush1.bf16.msra.mxu1 %v17028_v30  ;;  %v836_v56 = vpop.f32.mrb[6].mxu0  ;;  %v19735_v5 = vpop.f32.mrb[4].mxu1  ;;  %v17075_v27 = vcombine.high %v1144_v40, %v1148_v41  ;;  %v17077_v30 = vcombine.high %v1145_v13, %v1149_v42  ;;  %v835_v50 = vadd.f32 %v19733_v53, %v252_v45  ;;  %v1192_v13 = vld [vmem:[#allocation7 + $0x940] sm:$0xff]  ;;  %v1193_v45 = vld [vmem:[#allocation7 + $0x948] sm:$0xff] }
 0x1c2   :  { %4061 = vmatprep.subr.bf16.mxu0 %v17035_v35  ;;  %4225 = vmatprep.subr.bf16.mxu1 %v17037_v36  ;;  %v837_v25 = vpop.f32.mrb[7].mxu0  ;;  %v19737_v8 = vpop.f32.mrb[5].mxu1  ;;  %v1152_v35 = vld [vmem:[#allocation7 + $0x800] sm:$0xff]  ;;  %v17085_v56 = vcombine.high %v1153_v48, %v1157_v49  ;;  %v1201_v48 = vld [vmem:[#allocation7 + $0x988] sm:$0xff] }
 0x1c3   :  { %v877_v10 = vpop.f32.mrb[6].mxu1  ;;  %v1156_v36 = vld [vmem:[#allocation7 + $0x820] sm:$0xff]  ;;  %v1165_v25 = vld [vmem:[#allocation7 + $0x868] sm:$0xff]  ;;  %v19745_v60 = vmax.f32 %v835_v50, 0.0 }
 0x1c4   :  { %v878_v16 = vpop.f32.mrb[7].mxu1  ;;  %v17082_v53 = vcombine.low %v1152_v35, %v1156_v36  ;;  %v17092_v10 = vcombine.low %v1161_v59, %v1165_v25  ;;  %v1196_v42 = vld [vmem:[#allocation7 + $0x960] sm:$0xff]  ;;  %v1205_v49 = vld [vmem:[#allocation7 + $0x9a8] sm:$0xff] }
 0x1c5   :  { %4062 = vmatpush1.bf16.msra.mxu0 %v17034_v54  ;;  %4226 = vmatpush1.bf16.msra.mxu1 %v17036_v55  ;;  %v17074_v54 = vcombine.low %v1144_v40, %v1148_v41  ;;  %v17083_v55 = vcombine.high %v1152_v35, %v1156_v36  ;;  %v19753_v7 = vpack.c.bf16 %v19745_v60, %v19745_v60  ;;  %v1180_v16 = vld [vmem:[#allocation7 + $0x8e0] sm:$0xff] }
 0x1c6   :  { %4063 = vmatprep.subr.bf16.mxu0 %v17043_v57  ;;  %4227 = vmatprep.subr.bf16.mxu1 %v17045_v58  ;;  %v1160_v57 = vld [vmem:[#allocation7 + $0x840] sm:$0xff]  ;;  %v17107_v28 = vcombine.high %v1176_v15, %v1180_v16  ;;  %v17115_v40 = vcombine.high %v1184_v32, %v1188_v33  ;;  %v17122_v50 = vcombine.low %v1192_v13, %v1196_v42 }
 0x1c7   :  { %v1164_v58 = vld [vmem:[#allocation7 + $0x860] sm:$0xff] }
 0x1c8   :  { %v17090_v17 = vcombine.low %v1160_v57, %v1164_v58  ;;  %v1200_v35 = vld [vmem:[#allocation7 + $0x980] sm:$0xff] }
 0x1c9   :  { %4064 = vmatpush1.bf16.msra.mxu0 %v17042_v1  ;;  %4228 = vmatpush1.bf16.msra.mxu1 %v17044_v2  ;;  %v17091_v1 = vcombine.high %v1160_v57, %v1164_v58  ;;  %v17093_v2 = vcombine.high %v1161_v59, %v1165_v25  ;;  %v1204_v36 = vld [vmem:[#allocation7 + $0x9a0] sm:$0xff]  ;;  %v1209_v58 = vld [vmem:[#allocation7 + $0x9c8] sm:$0xff] }
 0x1ca   :  { %4065 = vmatprep.subr.bf16.mxu0 %v17051_v43  ;;  %4229 = vmatprep.subr.bf16.mxu1 %v17053_v3  ;;  %v1168_v43 = vld [vmem:[#allocation7 + $0x880] sm:$0xff]  ;;  %v1213_v59 = vld [vmem:[#allocation7 + $0x9e8] sm:$0xff]  ;;  %v17130_v25 = vcombine.low %v1200_v35, %v1204_v36 }
 0x1cb   :  { %v1172_v3 = vld [vmem:[#allocation7 + $0x8a0] sm:$0xff] }
 0x1cc   :  { %v17098_v22 = vcombine.low %v1168_v43, %v1172_v3  ;;  %v1212_v57 = vld [vmem:[#allocation7 + $0x9e0] sm:$0xff] }
 0x1cd   :  { %4066 = vmatpush1.bf16.msra.mxu0 %v17050_v11  ;;  %4230 = vmatpush1.bf16.msra.mxu1 %v17052_v14  ;;  %v17099_v11 = vcombine.high %v1168_v43, %v1172_v3  ;;  %v17101_v14 = vcombine.high %v1169_v4, %v1173_v6  ;;  %v1220_v43 = vld [vmem:[#allocation7 + $0xa20] sm:$0xff]  ;;  %v1217_v3 = vld [vmem:[#allocation7 + $0xa08] sm:$0xff] }
 0x1ce   :  { %4067 = vmatprep.subr.bf16.mxu0 %v17059_v18  ;;  %4231 = vmatprep.subr.bf16.mxu1 %v17061_v21  ;;  %v1177_v18 = vld [vmem:[#allocation7 + $0x8c8] sm:$0xff] }
 0x1cf   :  { %v1181_v21 = vld [vmem:[#allocation7 + $0x8e8] sm:$0xff] }
 0x1d0   :  { %v17109_v29 = vcombine.high %v1177_v18, %v1181_v21  ;;  %v1221_v4 = vld [vmem:[#allocation7 + $0xa28] sm:$0xff] }
 0x1d1   :  { %4068 = vmatpush1.bf16.msra.mxu0 %v17058_v34  ;;  %4232 = vmatpush1.bf16.msra.mxu1 %v17060_v37  ;;  %v1185_v34 = vld [vmem:[#allocation7 + $0x908] sm:$0xff] }
 0x1d2   :  { %4069 = vmatprep.subr.bf16.mxu0 %v17067_v38  ;;  %4233 = vmatprep.subr.bf16.mxu1 %v17069_v39  ;;  %v1189_v37 = vld [vmem:[#allocation7 + $0x928] sm:$0xff]  ;;  %v17106_v38 = vcombine.low %v1176_v15, %v1180_v16  ;;  %v17108_v39 = vcombine.low %v1177_v18, %v1181_v21  ;;  %v1228_v15 = vld [vmem:[#allocation7 + $0xa60] sm:$0xff] }
 0x1d3   :  { %v17117_v41 = vcombine.high %v1185_v34, %v1189_v37  ;;  %v1225_v16 = vld [vmem:[#allocation7 + $0xa48] sm:$0xff] }
 0x1d4   :  { %v1229_v18 = vld [vmem:[#allocation7 + $0xa68] sm:$0xff] }
 0x1d5   :  { %4070 = vmatpush1.bf16.msra.mxu0 %v17066_v47  ;;  %4234 = vmatpush1.bf16.msra.mxu1 %v17068_v31  ;;  %v17114_v47 = vcombine.low %v1184_v32, %v1188_v33  ;;  %v17116_v31 = vcombine.low %v1185_v34, %v1189_v37  ;;  %v1236_v32 = vld [vmem:[#allocation7 + $0xaa0] sm:$0xff]  ;;  %v1233_v33 = vld [vmem:[#allocation7 + $0xa88] sm:$0xff] }
 0x1d6   :  { %4071 = vmatprep.subr.bf16.mxu0 %v17075_v27  ;;  %4235 = vmatprep.subr.bf16.mxu1 %v17077_v30  ;;  %v17123_v27 = vcombine.high %v1192_v13, %v1196_v42  ;;  %v17125_v30 = vcombine.high %v1193_v45, %v1197_v46  ;;  %v1237_v34 = vld [vmem:[#allocation7 + $0xaa8] sm:$0xff]  ;;  %v1244_v13 = vld [vmem:[#allocation7 + $0xae0] sm:$0xff] }
 0x1d7   :  { %v1241_v42 = vld [vmem:[#allocation7 + $0xac8] sm:$0xff] }
 0x1d9   :  { %4072 = vmatpush1.bf16.msra.mxu0 %v17074_v54  ;;  %4236 = vmatpush1.bf16.msra.mxu1 %v17076_v24  ;;  %v17124_v54 = vcombine.low %v1193_v45, %v1197_v46  ;;  %v17131_v24 = vcombine.high %v1200_v35, %v1204_v36  ;;  %v1245_v45 = vld [vmem:[#allocation7 + $0xae8] sm:$0xff]  ;;  %v1252_v35 = vld [vmem:[#allocation7 + $0xb20] sm:$0xff] }
 0x1da   :  { %4082 = vmatprep.subr.bf16.mxu0 %v17083_v55  ;;  %4246 = vmatprep.subr.bf16.mxu1 %v17085_v56  ;;  %v17133_v55 = vcombine.high %v1201_v48, %v1205_v49  ;;  %v1208_v56 = vld [vmem:[#allocation7 + $0x9c0] sm:$0xff]  ;;  %v1249_v36 = vld [vmem:[#allocation7 + $0xb08] sm:$0xff] }
 0x1db   :  { %v17138_v6 = vcombine.low %v1208_v56, %v1212_v57 }
 0x1dc   :  { %4074 = vmatmul.mubr.bf16.vlgmr.msra.gmra.mrb[8].mxu0 %v19749_v61  ;;  %4238 = vmatmul.mubr.bf16.vlgmr.msra.gmra.mrb[8].mxu1 %v19749_v61 }
 0x1dd   :  { %4083 = vmatpush1.bf16.msra.mxu0 %v17082_v53  ;;  %4247 = vmatpush1.bf16.msra.mxu1 %v17084_v62  ;;  %v17132_v53 = vcombine.low %v1201_v48, %v1205_v49  ;;  %v17139_v62 = vcombine.high %v1208_v56, %v1212_v57  ;;  %v1253_v48 = vld [vmem:[#allocation7 + $0xb28] sm:$0xff]  ;;  %v1260_v56 = vld [vmem:[#allocation7 + $0xb60] sm:$0xff] }
 0x1de   :  { %4084 = vmatprep.subr.bf16.mxu0 %v17091_v1  ;;  %4248 = vmatprep.subr.bf16.mxu1 %v17093_v2  ;;  %v17141_v1 = vcombine.high %v1209_v58, %v1213_v59  ;;  %v1216_v2 = vld [vmem:[#allocation7 + $0xa00] sm:$0xff]  ;;  %v1257_v57 = vld [vmem:[#allocation7 + $0xb48] sm:$0xff] }
 0x1df   :  { %4114 = vmatprep.mubr.bf16.mxu0 %v19753_v7  ;;  %4278 = vmatprep.mubr.bf16.mxu1 %v19753_v7  ;;  %v17146_v21 = vcombine.low %v1216_v2, %v1220_v43 }
 0x1e1   :  { %4085 = vmatpush1.bf16.msra.mxu0 %v17090_v17  ;;  %4249 = vmatpush1.bf16.msra.mxu1 %v17092_v10  ;;  %v17140_v17 = vcombine.low %v1209_v58, %v1213_v59  ;;  %v17147_v10 = vcombine.high %v1216_v2, %v1220_v43  ;;  %v1261_v58 = vld [vmem:[#allocation7 + $0xb68] sm:$0xff]  ;;  %v1264_v2 = vld [vmem:[#allocation7 + $0xb80] sm:$0xff] }
 0x1e2   :  { %4086 = vmatprep.subr.bf16.mxu0 %v17099_v11  ;;  %4250 = vmatprep.subr.bf16.mxu1 %v17101_v14  ;;  %v17149_v11 = vcombine.high %v1217_v3, %v1221_v4  ;;  %v1224_v14 = vld [vmem:[#allocation7 + $0xa40] sm:$0xff] }
 0x1e3   :  { %v17154_v37 = vcombine.low %v1224_v14, %v1228_v15  ;;  %v1268_v43 = vld [vmem:[#allocation7 + $0xba0] sm:$0xff] }
 0x1e5   :  { %4087 = vmatpush1.bf16.msra.mxu0 %v17098_v22  ;;  %4251 = vmatpush1.bf16.msra.mxu1 %v17100_v23  ;;  %v17148_v22 = vcombine.low %v1217_v3, %v1221_v4  ;;  %v17155_v23 = vcombine.high %v1224_v14, %v1228_v15  ;;  %v1265_v3 = vld [vmem:[#allocation7 + $0xb88] sm:$0xff]  ;;  %v17195_v14 = vcombine.high %v1264_v2, %v1268_v43 }
 0x1e6   :  { %4088 = vmatprep.subr.bf16.mxu0 %v17107_v28  ;;  %4252 = vmatprep.subr.bf16.mxu1 %v17109_v29  ;;  %v17157_v28 = vcombine.high %v1225_v16, %v1229_v18  ;;  %v1232_v29 = vld [vmem:[#allocation7 + $0xa80] sm:$0xff]  ;;  %v1269_v4 = vld [vmem:[#allocation7 + $0xba8] sm:$0xff] }
 0x1e7   :  { %v17162_v46 = vcombine.low %v1232_v29, %v1236_v32  ;;  %v17197_v15 = vcombine.high %v1265_v3, %v1269_v4 }
 0x1e9   :  { %4089 = vmatpush1.bf16.msra.mxu0 %v17106_v38  ;;  %4253 = vmatpush1.bf16.msra.mxu1 %v17108_v39  ;;  %v17156_v38 = vcombine.low %v1225_v16, %v1229_v18  ;;  %v17163_v39 = vcombine.high %v1232_v29, %v1236_v32  ;;  %v1272_v16 = vld [vmem:[#allocation7 + $0xbc0] sm:$0xff]  ;;  %v17194_v29 = vcombine.low %v1264_v2, %v1268_v43  ;;  %v1305_v2 = vld [vmem:[#allocation7 + $0xcc8] sm:$0xff] }
 0x1ea   :  { %4090 = vmatprep.subr.bf16.mxu0 %v17115_v40  ;;  %4254 = vmatprep.subr.bf16.mxu1 %v17117_v41  ;;  %v17165_v40 = vcombine.high %v1233_v33, %v1237_v34  ;;  %v1240_v41 = vld [vmem:[#allocation7 + $0xac0] sm:$0xff]  ;;  %v17196_v32 = vcombine.low %v1265_v3, %v1269_v4  ;;  %v1309_v43 = vld [vmem:[#allocation7 + $0xce8] sm:$0xff] }
 0x1eb   :  { %v17170_v49 = vcombine.low %v1240_v41, %v1244_v13  ;;  %v1276_v18 = vld [vmem:[#allocation7 + $0xbe0] sm:$0xff] }
 0x1ed   :  { %4091 = vmatpush1.bf16.msra.mxu0 %v17114_v47  ;;  %4255 = vmatpush1.bf16.msra.mxu1 %v17116_v31  ;;  %v17164_v47 = vcombine.low %v1233_v33, %v1237_v34  ;;  %v17171_v31 = vcombine.high %v1240_v41, %v1244_v13  ;;  %v17203_v33 = vcombine.high %v1272_v16, %v1276_v18 }
 0x1ee   :  { %4092 = vmatprep.subr.bf16.mxu0 %v17123_v27  ;;  %4256 = vmatprep.subr.bf16.mxu1 %v17125_v30  ;;  %v17173_v27 = vcombine.high %v1241_v42, %v1245_v45  ;;  %v1248_v30 = vld [vmem:[#allocation7 + $0xb00] sm:$0xff] }
 0x1ef   :  { %v17178_v59 = vcombine.low %v1248_v30, %v1252_v35 }
 0x1f1   :  { %4093 = vmatpush1.bf16.msra.mxu0 %v17122_v50  ;;  %4257 = vmatpush1.bf16.msra.mxu1 %v17124_v54  ;;  %v17172_v50 = vcombine.low %v1241_v42, %v1245_v45  ;;  %v17179_v54 = vcombine.high %v1248_v30, %v1252_v35  ;;  %v17202_v42 = vcombine.low %v1272_v16, %v1276_v18  ;;  %v1293_v30 = vld [vmem:[#allocation7 + $0xc68] sm:$0xff] }
 0x1f2   :  { %4094 = vmatprep.subr.bf16.mxu0 %v17131_v24  ;;  %4258 = vmatprep.subr.bf16.mxu1 %v17133_v55  ;;  %v17181_v24 = vcombine.high %v1249_v36, %v1253_v48  ;;  %v1256_v55 = vld [vmem:[#allocation7 + $0xb40] sm:$0xff]  ;;  %v17236_v18 = vcombine.low %v1305_v2, %v1309_v43 }
 0x1f5   :  { %4095 = vmatpush1.bf16.msra.mxu0 %v17130_v25  ;;  %4259 = vmatpush1.bf16.msra.mxu1 %v17132_v53  ;;  %v17180_v25 = vcombine.low %v1249_v36, %v1253_v48  ;;  %v140_v53 = vld [vmem:[#allocation14 + $0x20] sm:$0xff] }
 0x1f6   :  { %4096 = vmatprep.subr.bf16.mxu0 %v17139_v62  ;;  %4260 = vmatprep.subr.bf16.mxu1 %v17141_v1  ;;  %v17187_v62 = vcombine.high %v1256_v55, %v1260_v56  ;;  %v17189_v1 = vcombine.high %v1257_v57, %v1261_v58 }
 0x1f9   :  { %4097 = vmatpush1.bf16.msra.mxu0 %v17138_v6  ;;  %4261 = vmatpush1.bf16.msra.mxu1 %v17140_v17  ;;  %v248_v6 = vrot.slane %v140_v53, %v19694_v0  ;;  %v143_v17 = vld [vmem:[#allocation14 + $0x38] sm:$0xff] }
 0x1fa   :  { %4098 = vmatprep.subr.bf16.mxu0 %v17147_v10  ;;  %4262 = vmatprep.subr.bf16.mxu1 %v17149_v11  ;;  %v17186_v10 = vcombine.low %v1256_v55, %v1260_v56  ;;  %v17188_v11 = vcombine.low %v1257_v57, %v1261_v58  ;;  %v1297_v55 = vld [vmem:[#allocation7 + $0xc88] sm:$0xff] }
 0x1fb   :  { %v1301_v56 = vld [vmem:[#allocation7 + $0xca8] sm:$0xff] }
 0x1fc   :  { %v17229_v53 = vcombine.high %v1297_v55, %v1301_v56  ;;  %v17228_v4 = vcombine.low %v1297_v55, %v1301_v56  ;;  %v1348_v55 = vld [vmem:[#allocation7 + $0xe20] sm:$0xff]  ;;  %v1345_v56 = vld [vmem:[#allocation7 + $0xe08] sm:$0xff] }
 0x1fd   :  { %4099 = vmatpush1.bf16.msra.mxu0 %v17146_v21  ;;  %4263 = vmatpush1.bf16.msra.mxu1 %v17148_v22  ;;  %v1273_v21 = vld [vmem:[#allocation7 + $0xbc8] sm:$0xff] }
 0x1fe   :  { %4100 = vmatprep.subr.bf16.mxu0 %v17155_v23  ;;  %4264 = vmatprep.subr.bf16.mxu1 %v17157_v28  ;;  %v1277_v22 = vld [vmem:[#allocation7 + $0xbe8] sm:$0xff]  ;;  %v260_v23 = vrot.slane %v143_v17, %v19694_v0  ;;  %v833_v28 = vadd.f32 %v19731_v52, %v248_v6  ;;  %v17237_v17 = vcombine.high %v1305_v2, %v1309_v43  ;;  %v1356_v2 = vld [vmem:[#allocation7 + $0xe60] sm:$0xff] }
 0x1ff   :  { %v17205_v34 = vcombine.high %v1273_v21, %v1277_v22  ;;  %v17204_v52 = vcombine.low %v1273_v21, %v1277_v22  ;;  %v1353_v43 = vld [vmem:[#allocation7 + $0xe48] sm:$0xff] }
 0x200   :  { %v876_v41 = vadd.f32 %v19737_v8, %v260_v23  ;;  %v19763_v13 = vmax.f32 %v833_v28, 0.0  ;;  %v1320_v23 = vld [vmem:[#allocation7 + $0xd40] sm:$0xff] }
 0x201   :  { %4101 = vmatpush1.bf16.msra.mxu0 %v17154_v37  ;;  %4265 = vmatpush1.bf16.msra.mxu1 %v17156_v38  ;;  %v1280_v37 = vld [vmem:[#allocation7 + $0xc00] sm:$0xff] }
 0x202   :  { %4102 = vmatprep.subr.bf16.mxu0 %v17163_v39  ;;  %4266 = vmatprep.subr.bf16.mxu1 %v17165_v40  ;;  %v1284_v38 = vld [vmem:[#allocation7 + $0xc20] sm:$0xff]  ;;  %v1281_v39 = vld [vmem:[#allocation7 + $0xc08] sm:$0xff]  ;;  %v19765_v35 = vmax.f32 %v876_v41, 0.0  ;;  %v19769_v36 = vpack.c.bf16 %v19763_v13, %v19763_v13 }
 0x203   :  { %v1285_v40 = vld [vmem:[#allocation7 + $0xc28] sm:$0xff]  ;;  %v17211_v45 = vcombine.high %v1280_v37, %v1284_v38  ;;  %v17210_v8 = vcombine.low %v1280_v37, %v1284_v38  ;;  %v1324_v28 = vld [vmem:[#allocation7 + $0xd60] sm:$0xff] }
 0x204   :  { %v17212_v48 = vcombine.low %v1281_v39, %v1285_v40  ;;  %v19773_v57 = vpack.c.bf16 %v19765_v35, %v19765_v35  ;;  %v17251_v37 = vcombine.high %v1320_v23, %v1324_v28  ;;  %v1329_v41 = vld [vmem:[#allocation7 + $0xd88] sm:$0xff] }
 0x205   :  { %4103 = vmatpush1.bf16.msra.mxu0 %v17162_v46  ;;  %4267 = vmatpush1.bf16.msra.mxu1 %v17164_v47  ;;  %v17213_v46 = vcombine.high %v1281_v39, %v1285_v40  ;;  %v1288_v47 = vld [vmem:[#allocation7 + $0xc40] sm:$0xff] }
 0x206   :  { %4104 = vmatprep.subr.bf16.mxu0 %v17171_v31  ;;  %4268 = vmatprep.subr.bf16.mxu1 %v17173_v27  ;;  %v1292_v31 = vld [vmem:[#allocation7 + $0xc60] sm:$0xff]  ;;  %v1289_v27 = vld [vmem:[#allocation7 + $0xc48] sm:$0xff] }
 0x207   :  { %v17218_v58 = vcombine.low %v1288_v47, %v1292_v31  ;;  %v1328_v39 = vld [vmem:[#allocation7 + $0xd80] sm:$0xff] }
 0x208   :  { %v1332_v40 = vld [vmem:[#allocation7 + $0xda0] sm:$0xff] }
 0x209   :  { %4105 = vmatpush1.bf16.msra.mxu0 %v17170_v49  ;;  %4269 = vmatpush1.bf16.msra.mxu1 %v17172_v50  ;;  %v17219_v49 = vcombine.high %v1288_v47, %v1292_v31  ;;  %v17221_v50 = vcombine.high %v1289_v27, %v1293_v30  ;;  %v1336_v31 = vld [vmem:[#allocation7 + $0xdc0] sm:$0xff] }
 0x20a   :  { %4106 = vmatprep.subr.bf16.mxu0 %v17179_v54  ;;  %4270 = vmatprep.subr.bf16.mxu1 %v17181_v24  ;;  %v1296_v54 = vld [vmem:[#allocation7 + $0xc80] sm:$0xff] }
 0x20b   :  { %v1300_v24 = vld [vmem:[#allocation7 + $0xca0] sm:$0xff] }
 0x20c   :  { %v17226_v3 = vcombine.low %v1296_v54, %v1300_v24 }
 0x20d   :  { %4107 = vmatpush1.bf16.msra.mxu0 %v17178_v59  ;;  %4271 = vmatpush1.bf16.msra.mxu1 %v17180_v25  ;;  %v17220_v59 = vcombine.low %v1289_v27, %v1293_v30  ;;  %v17227_v25 = vcombine.high %v1296_v54, %v1300_v24  ;;  %v1340_v27 = vld [vmem:[#allocation7 + $0xde0] sm:$0xff]  ;;  %v1337_v30 = vld [vmem:[#allocation7 + $0xdc8] sm:$0xff] }
 0x20e   :  { %4108 = vmatprep.subr.bf16.mxu0 %v17187_v62  ;;  %4272 = vmatprep.subr.bf16.mxu1 %v17189_v1  ;;  %v1304_v62 = vld [vmem:[#allocation7 + $0xcc0] sm:$0xff] }
 0x20f   :  { %v1308_v1 = vld [vmem:[#allocation7 + $0xce0] sm:$0xff] }
 0x210   :  { %v17235_v6 = vcombine.high %v1304_v62, %v1308_v1  ;;  %v17234_v16 = vcombine.low %v1304_v62, %v1308_v1  ;;  %v1344_v24 = vld [vmem:[#allocation7 + $0xe00] sm:$0xff] }
 0x211   :  { %4109 = vmatpush1.bf16.msra.mxu0 %v17186_v10  ;;  %4273 = vmatpush1.bf16.msra.mxu1 %v17188_v11  ;;  %v1312_v10 = vld [vmem:[#allocation7 + $0xd00] sm:$0xff] }
 0x212   :  { %4110 = vmatprep.subr.bf16.mxu0 %v17195_v14  ;;  %4274 = vmatprep.subr.bf16.mxu1 %v17197_v15  ;;  %v1316_v11 = vld [vmem:[#allocation7 + $0xd20] sm:$0xff]  ;;  %v1313_v14 = vld [vmem:[#allocation7 + $0xd08] sm:$0xff] }
 0x213   :  { %v1317_v15 = vld [vmem:[#allocation7 + $0xd28] sm:$0xff]  ;;  %v17243_v21 = vcombine.high %v1312_v10, %v1316_v11  ;;  %v1352_v1 = vld [vmem:[#allocation7 + $0xe40] sm:$0xff] }
 0x214   :  { %v17245_v22 = vcombine.high %v1313_v14, %v1317_v15 }
 0x215   :  { %4111 = vmatpush1.bf16.msra.mxu0 %v17194_v29  ;;  %4275 = vmatpush1.bf16.msra.mxu1 %v17196_v32  ;;  %v1321_v29 = vld [vmem:[#allocation7 + $0xd48] sm:$0xff] }
 0x216   :  { %4112 = vmatprep.subr.bf16.mxu0 %v17203_v33  ;;  %4276 = vmatprep.subr.bf16.mxu1 %v17205_v34  ;;  %v1325_v32 = vld [vmem:[#allocation7 + $0xd68] sm:$0xff]  ;;  %v17242_v33 = vcombine.low %v1312_v10, %v1316_v11  ;;  %v17244_v34 = vcombine.low %v1313_v14, %v1317_v15  ;;  %v1360_v11 = vld [vmem:[#allocation7 + $0xe80] sm:$0xff] }
 0x217   :  { %v17253_v38 = vcombine.high %v1321_v29, %v1325_v32  ;;  %v1364_v14 = vld [vmem:[#allocation7 + $0xea0] sm:$0xff]  ;;  %v1361_v15 = vld [vmem:[#allocation7 + $0xe88] sm:$0xff] }
 0x219   :  { %4113 = vmatpush1.bf16.msra.mxu0 %v17202_v42  ;;  %4277 = vmatpush1.bf16.msra.mxu1 %v17204_v52  ;;  %v1333_v42 = vld [vmem:[#allocation7 + $0xda8] sm:$0xff]  ;;  %v17250_v52 = vcombine.low %v1320_v23, %v1324_v28  ;;  %v1368_v28 = vld [vmem:[#allocation7 + $0xec0] sm:$0xff] }
 0x21a   :  { %4123 = vmatprep.subr.bf16.mxu0 %v17211_v45  ;;  %4287 = vmatprep.subr.bf16.mxu1 %v17213_v46  ;;  %v17252_v45 = vcombine.low %v1321_v29, %v1325_v32  ;;  %v17259_v46 = vcombine.high %v1328_v39, %v1332_v40  ;;  %v17261_v47 = vcombine.high %v1329_v41, %v1333_v42  ;;  %v1372_v29 = vld [vmem:[#allocation7 + $0xee0] sm:$0xff]  ;;  %v1369_v32 = vld [vmem:[#allocation7 + $0xec8] sm:$0xff] }
 0x21c   :  { %4115 = vmatmul.mubr.bf16.vlgmr.msra.gmra.mrb[8].mxu0 %v19769_v36  ;;  %4279 = vmatmul.mubr.bf16.vlgmr.msra.gmra.mrb[8].mxu1 %v19769_v36 }
 0x21d   :  { %4124 = vmatpush1.bf16.msra.mxu0 %v17210_v8  ;;  %4288 = vmatpush1.bf16.msra.mxu1 %v17212_v48  ;;  %v1341_v8 = vld [vmem:[#allocation7 + $0xde8] sm:$0xff]  ;;  %v17258_v48 = vcombine.low %v1328_v39, %v1332_v40  ;;  %v1376_v40 = vld [vmem:[#allocation7 + $0xf00] sm:$0xff] }
 0x21e   :  { %4125 = vmatprep.subr.bf16.mxu0 %v17219_v49  ;;  %4289 = vmatprep.subr.bf16.mxu1 %v17221_v50  ;;  %v17260_v49 = vcombine.low %v1329_v41, %v1333_v42  ;;  %v17267_v50 = vcombine.high %v1336_v31, %v1340_v27  ;;  %v17269_v54 = vcombine.high %v1337_v30, %v1341_v8  ;;  %v1380_v41 = vld [vmem:[#allocation7 + $0xf20] sm:$0xff]  ;;  %v1377_v42 = vld [vmem:[#allocation7 + $0xf08] sm:$0xff] }
 0x21f   :  { %4155 = vmatprep.mubr.bf16.mxu0 %v19773_v57  ;;  %4319 = vmatprep.mubr.bf16.mxu1 %v19773_v57 }
 0x221   :  { %4126 = vmatpush1.bf16.msra.mxu0 %v17218_v58  ;;  %4290 = vmatpush1.bf16.msra.mxu1 %v17220_v59  ;;  %v1349_v58 = vld [vmem:[#allocation7 + $0xe28] sm:$0xff]  ;;  %v17266_v59 = vcombine.low %v1336_v31, %v1340_v27  ;;  %v1384_v27 = vld [vmem:[#allocation7 + $0xf40] sm:$0xff] }
 0x222   :  { %4127 = vmatprep.subr.bf16.mxu0 %v17227_v25  ;;  %4291 = vmatprep.subr.bf16.mxu1 %v17229_v53  ;;  %v17268_v25 = vcombine.low %v1337_v30, %v1341_v8  ;;  %v17275_v53 = vcombine.high %v1344_v24, %v1348_v55  ;;  %v17277_v62 = vcombine.high %v1345_v56, %v1349_v58  ;;  %v1388_v30 = vld [vmem:[#allocation7 + $0xf60] sm:$0xff]  ;;  %v1385_v8 = vld [vmem:[#allocation7 + $0xf48] sm:$0xff] }
 0x225   :  { %4128 = vmatpush1.bf16.msra.mxu0 %v17226_v3  ;;  %4292 = vmatpush1.bf16.msra.mxu1 %v17228_v4  ;;  %v1357_v3 = vld [vmem:[#allocation7 + $0xe68] sm:$0xff]  ;;  %v17274_v4 = vcombine.low %v1344_v24, %v1348_v55  ;;  %v17315_v24 = vcombine.high %v1384_v27, %v1388_v30 }
 0x226   :  { %4129 = vmatprep.subr.bf16.mxu0 %v17235_v6  ;;  %4293 = vmatprep.subr.bf16.mxu1 %v17237_v17  ;;  %v17276_v6 = vcombine.low %v1345_v56, %v1349_v58  ;;  %v17283_v17 = vcombine.high %v1352_v1, %v1356_v2  ;;  %v17285_v10 = vcombine.high %v1353_v43, %v1357_v3  ;;  %v1392_v56 = vld [vmem:[#allocation7 + $0xf80] sm:$0xff] }
 0x227   :  { %v1396_v58 = vld [vmem:[#allocation7 + $0xfa0] sm:$0xff] }
 0x229   :  { %4130 = vmatpush1.bf16.msra.mxu0 %v17234_v16  ;;  %4294 = vmatpush1.bf16.msra.mxu1 %v17236_v18  ;;  %v1365_v16 = vld [vmem:[#allocation7 + $0xea8] sm:$0xff]  ;;  %v17282_v18 = vcombine.low %v1352_v1, %v1356_v2  ;;  %v17323_v2 = vcombine.high %v1392_v56, %v1396_v58 }
 0x22a   :  { %4131 = vmatprep.subr.bf16.mxu0 %v17243_v21  ;;  %4295 = vmatprep.subr.bf16.mxu1 %v17245_v22  ;;  %v17284_v21 = vcombine.low %v1353_v43, %v1357_v3  ;;  %v17291_v22 = vcombine.high %v1360_v11, %v1364_v14  ;;  %v17293_v23 = vcombine.high %v1361_v15, %v1365_v16  ;;  %v1400_v3 = vld [vmem:[#allocation7 + $0xfc0] sm:$0xff] }
 0x22d   :  { %4132 = vmatpush1.bf16.msra.mxu0 %v17242_v33  ;;  %4296 = vmatpush1.bf16.msra.mxu1 %v17244_v34  ;;  %v1373_v33 = vld [vmem:[#allocation7 + $0xee8] sm:$0xff]  ;;  %v17290_v34 = vcombine.low %v1360_v11, %v1364_v14 }
 0x22e   :  { %4133 = vmatprep.subr.bf16.mxu0 %v17251_v37  ;;  %4297 = vmatprep.subr.bf16.mxu1 %v17253_v38  ;;  %v17292_v37 = vcombine.low %v1361_v15, %v1365_v16  ;;  %v17299_v38 = vcombine.high %v1368_v28, %v1372_v29  ;;  %v17301_v39 = vcombine.high %v1369_v32, %v1373_v33 }
 0x231   :  { %4134 = vmatpush1.bf16.msra.mxu0 %v17250_v52  ;;  %4298 = vmatpush1.bf16.msra.mxu1 %v17252_v45  ;;  %v1381_v52 = vld [vmem:[#allocation7 + $0xf28] sm:$0xff]  ;;  %v17298_v45 = vcombine.low %v1368_v28, %v1372_v29 }
 0x232   :  { %4135 = vmatprep.subr.bf16.mxu0 %v17259_v46  ;;  %4299 = vmatprep.subr.bf16.mxu1 %v17261_v47  ;;  %v17300_v46 = vcombine.low %v1369_v32, %v1373_v33  ;;  %v17307_v47 = vcombine.high %v1376_v40, %v1380_v41  ;;  %v17309_v31 = vcombine.high %v1377_v42, %v1381_v52 }
 0x235   :  { %4136 = vmatpush1.bf16.msra.mxu0 %v17258_v48  ;;  %4300 = vmatpush1.bf16.msra.mxu1 %v17260_v49  ;;  %v1389_v48 = vld [vmem:[#allocation7 + $0xf68] sm:$0xff]  ;;  %v17306_v49 = vcombine.low %v1376_v40, %v1380_v41 }
 0x236   :  { %4137 = vmatprep.subr.bf16.mxu0 %v17267_v50  ;;  %4301 = vmatprep.subr.bf16.mxu1 %v17269_v54  ;;  %v17308_v50 = vcombine.low %v1377_v42, %v1381_v52  ;;  %v142_v54 = vld [vmem:[#allocation14 + $0x30] sm:$0xff]  ;;  %v17317_v55 = vcombine.high %v1385_v8, %v1389_v48 }
 0x237   :  { %v256_v1 = vrot.slane %v142_v54, %v19694_v0  ;;  %v902_v0 = vld [vmem:[#allocation7 + $0x30] sm:$0xff]  ;;  %v923_v54 = vld [vmem:[#allocation7 + $0xd8] sm:$0xff] }
 0x239   :  { %4138 = vmatpush1.bf16.msra.mxu0 %v17266_v59  ;;  %4302 = vmatpush1.bf16.msra.mxu1 %v17268_v25  ;;  %v1393_v59 = vld [vmem:[#allocation7 + $0xf88] sm:$0xff]  ;;  %v874_v14 = vadd.f32 %v19735_v5, %v256_v1  ;;  %v910_v5 = vld [vmem:[#allocation7 + $0x70] sm:$0xff] }
 0x23a   :  { %4139 = vmatprep.subr.bf16.mxu0 %v17275_v53  ;;  %4303 = vmatprep.subr.bf16.mxu1 %v17277_v62  ;;  %v1397_v25 = vld [vmem:[#allocation7 + $0xfa8] sm:$0xff]  ;;  %v17314_v53 = vcombine.low %v1384_v27, %v1388_v30  ;;  %v17316_v62 = vcombine.low %v1385_v8, %v1389_v48 }
 0x23b   :  { %v17325_v43 = vcombine.high %v1393_v59, %v1397_v25  ;;  %v17324_v11 = vcombine.low %v1393_v59, %v1397_v25  ;;  %v19781_v29 = vmax.f32 %v874_v14, 0.0  ;;  %v930_v25 = vld [vmem:[#allocation7 + $0x110] sm:$0xff] }
 0x23d   :  { %4140 = vmatpush1.bf16.msra.mxu0 %v17274_v4  ;;  %4304 = vmatpush1.bf16.msra.mxu1 %v17276_v6  ;;  %v1404_v4 = vld [vmem:[#allocation7 + $0xfe0] sm:$0xff]  ;;  %v1401_v6 = vld [vmem:[#allocation7 + $0xfc8] sm:$0xff]  ;;  %v19785_v40 = vpack.c.bf16 %v19781_v29, %v19781_v29 }
 0x23e   :  { %4141 = vmatprep.subr.bf16.mxu0 %v17283_v17  ;;  %4305 = vmatprep.subr.bf16.mxu1 %v17285_v10  ;;  %v1405_v17 = vld [vmem:[#allocation7 + $0xfe8] sm:$0xff]  ;;  %v17322_v10 = vcombine.low %v1392_v56, %v1396_v58  ;;  %v17331_v15 = vcombine.high %v1400_v3, %v1404_v4 }
 0x23f   :  { %v17333_v16 = vcombine.high %v1401_v6, %v1405_v17  ;;  %v17332_v28 = vcombine.low %v1401_v6, %v1405_v17  ;;  %v942_v6 = vld [vmem:[#allocation7 + $0x170] sm:$0xff]  ;;  %v939_v17 = vld [vmem:[#allocation7 + $0x158] sm:$0xff] }
 0x241   :  { %4142 = vmatpush1.bf16.msra.mxu0 %v17282_v18  ;;  %4306 = vmatpush1.bf16.msra.mxu1 %v17284_v21  ;;  %v898_v18 = vld [vmem:[#allocation7 + $0x10] sm:$0xff]  ;;  %v899_v21 = vld [vmem:[#allocation7 + $0x18] sm:$0xff] }
 0x242   :  { %4143 = vmatprep.subr.bf16.mxu0 %v17291_v22  ;;  %4307 = vmatprep.subr.bf16.mxu1 %v17293_v23  ;;  %v903_v22 = vld [vmem:[#allocation7 + $0x38] sm:$0xff]  ;;  %v17330_v23 = vcombine.low %v1400_v3, %v1404_v4  ;;  %v16831_v32 = vcombine.high %v898_v18, %v902_v0  ;;  %v938_v4 = vld [vmem:[#allocation7 + $0x150] sm:$0xff] }
 0x243   :  { %v16833_v33 = vcombine.high %v899_v21, %v903_v22  ;;  %v16832_v41 = vcombine.low %v899_v21, %v903_v22  ;;  %v947_v21 = vld [vmem:[#allocation7 + $0x198] sm:$0xff] }
 0x244   :  { %v951_v22 = vld [vmem:[#allocation7 + $0x1b8] sm:$0xff] }
 0x245   :  { %4144 = vmatpush1.bf16.msra.mxu0 %v17290_v34  ;;  %4308 = vmatpush1.bf16.msra.mxu1 %v17292_v37  ;;  %v906_v34 = vld [vmem:[#allocation7 + $0x50] sm:$0xff]  ;;  %v907_v37 = vld [vmem:[#allocation7 + $0x58] sm:$0xff] }
 0x246   :  { %4145 = vmatprep.subr.bf16.mxu0 %v17299_v38  ;;  %4309 = vmatprep.subr.bf16.mxu1 %v17301_v39  ;;  %v911_v38 = vld [vmem:[#allocation7 + $0x78] sm:$0xff]  ;;  %v16830_v39 = vcombine.low %v898_v18, %v902_v0  ;;  %v16839_v42 = vcombine.high %v906_v34, %v910_v5  ;;  %v16838_v27 = vcombine.low %v906_v34, %v910_v5  ;;  %v946_v18 = vld [vmem:[#allocation7 + $0x190] sm:$0xff] }
 0x247   :  { %v16841_v52 = vcombine.high %v907_v37, %v911_v38  ;;  %v16840_v30 = vcombine.low %v907_v37, %v911_v38  ;;  %v950_v0 = vld [vmem:[#allocation7 + $0x1b0] sm:$0xff]  ;;  %v955_v37 = vld [vmem:[#allocation7 + $0x1d8] sm:$0xff] }
 0x248   :  { %v954_v34 = vld [vmem:[#allocation7 + $0x1d0] sm:$0xff]  ;;  %v959_v38 = vld [vmem:[#allocation7 + $0x1f8] sm:$0xff] }
 0x249   :  { %4146 = vmatpush1.bf16.msra.mxu0 %v17298_v45  ;;  %4310 = vmatpush1.bf16.msra.mxu1 %v17300_v46  ;;  %v914_v45 = vld [vmem:[#allocation7 + $0x90] sm:$0xff] }
 0x24a   :  { %4147 = vmatprep.subr.bf16.mxu0 %v17307_v47  ;;  %4311 = vmatprep.subr.bf16.mxu1 %v17309_v31  ;;  %v918_v46 = vld [vmem:[#allocation7 + $0xb0] sm:$0xff]  ;;  %v915_v47 = vld [vmem:[#allocation7 + $0x98] sm:$0xff] }
 0x24b   :  { %v919_v31 = vld [vmem:[#allocation7 + $0xb8] sm:$0xff]  ;;  %v16847_v8 = vcombine.high %v914_v45, %v918_v46  ;;  %v958_v5 = vld [vmem:[#allocation7 + $0x1f0] sm:$0xff] }
 0x24c   :  { %v16849_v48 = vcombine.high %v915_v47, %v919_v31  ;;  %v16848_v56 = vcombine.low %v915_v47, %v919_v31  ;;  %v963_v47 = vld [vmem:[#allocation7 + $0x218] sm:$0xff] }
 0x24d   :  { %4148 = vmatpush1.bf16.msra.mxu0 %v17306_v49  ;;  %4312 = vmatpush1.bf16.msra.mxu1 %v17308_v50  ;;  %v922_v49 = vld [vmem:[#allocation7 + $0xd0] sm:$0xff]  ;;  %v967_v31 = vld [vmem:[#allocation7 + $0x238] sm:$0xff] }
 0x24e   :  { %4149 = vmatprep.subr.bf16.mxu0 %v17315_v24  ;;  %4313 = vmatprep.subr.bf16.mxu1 %v17317_v55  ;;  %v926_v50 = vld [vmem:[#allocation7 + $0xf0] sm:$0xff]  ;;  %v927_v24 = vld [vmem:[#allocation7 + $0xf8] sm:$0xff]  ;;  %v16846_v55 = vcombine.low %v914_v45, %v918_v46 }
 0x24f   :  { %v16855_v58 = vcombine.high %v922_v49, %v926_v50  ;;  %v16857_v59 = vcombine.high %v923_v54, %v927_v24  ;;  %v16854_v1 = vcombine.low %v922_v49, %v926_v50  ;;  %v962_v45 = vld [vmem:[#allocation7 + $0x210] sm:$0xff] }
 0x250   :  { %v966_v46 = vld [vmem:[#allocation7 + $0x230] sm:$0xff] }
 0x251   :  { %4150 = vmatpush1.bf16.msra.mxu0 %v17314_v53  ;;  %4314 = vmatpush1.bf16.msra.mxu1 %v17316_v62  ;;  %v934_v53 = vld [vmem:[#allocation7 + $0x130] sm:$0xff]  ;;  %v935_v62 = vld [vmem:[#allocation7 + $0x138] sm:$0xff] }
 0x252   :  { %4151 = vmatprep.subr.bf16.mxu0 %v17323_v2  ;;  %4315 = vmatprep.subr.bf16.mxu1 %v17325_v43  ;;  %v16856_v2 = vcombine.low %v923_v54, %v927_v24  ;;  %v16863_v43 = vcombine.high %v930_v25, %v934_v53  ;;  %v970_v49 = vld [vmem:[#allocation7 + $0x250] sm:$0xff]  ;;  %v971_v54 = vld [vmem:[#allocation7 + $0x258] sm:$0xff] }
 0x253   :  { %v974_v50 = vld [vmem:[#allocation7 + $0x270] sm:$0xff]  ;;  %v975_v24 = vld [vmem:[#allocation7 + $0x278] sm:$0xff] }
 0x255   :  { %4152 = vmatpush1.bf16.msra.mxu0 %v17322_v10  ;;  %4316 = vmatpush1.bf16.msra.mxu1 %v17324_v11  ;;  %v943_v10 = vld [vmem:[#allocation7 + $0x178] sm:$0xff]  ;;  %v16862_v11 = vcombine.low %v930_v25, %v934_v53  ;;  %v978_v25 = vld [vmem:[#allocation7 + $0x290] sm:$0xff] }
 0x256   :  { %4153 = vmatprep.subr.bf16.mxu0 %v17331_v15  ;;  %4317 = vmatprep.subr.bf16.mxu1 %v17333_v16  ;;  %v16871_v15 = vcombine.high %v938_v4, %v942_v6  ;;  %v16873_v16 = vcombine.high %v939_v17, %v943_v10  ;;  %v982_v53 = vld [vmem:[#allocation7 + $0x2b0] sm:$0xff] }
 0x259   :  { %4154 = vmatpush1.bf16.msra.mxu0 %v17330_v23  ;;  %4318 = vmatpush1.bf16.msra.mxu1 %v17332_v28  ;;  %v16870_v23 = vcombine.low %v938_v4, %v942_v6  ;;  %v16872_v28 = vcombine.low %v939_v17, %v943_v10  ;;  %v986_v4 = vld [vmem:[#allocation7 + $0x2d0] sm:$0xff]  ;;  %v987_v17 = vld [vmem:[#allocation7 + $0x2d8] sm:$0xff] }
 0x25a   :  { %4328 = vmatprep.subr.bf16.mxu0 %v16831_v32  ;;  %4492 = vmatprep.subr.bf16.mxu1 %v16833_v33  ;;  %v16879_v32 = vcombine.high %v946_v18, %v950_v0  ;;  %v16881_v33 = vcombine.high %v947_v21, %v951_v22  ;;  %v990_v6 = vld [vmem:[#allocation7 + $0x2f0] sm:$0xff]  ;;  %v991_v10 = vld [vmem:[#allocation7 + $0x2f8] sm:$0xff] }
 0x25c   :  { %4156 = vmatmul.mubr.bf16.vlgmr.msra.gmra.mrb[8].mxu0 %v19785_v40  ;;  %4320 = vmatmul.mubr.bf16.vlgmr.msra.gmra.mrb[8].mxu1 %v19785_v40 }
 0x25d   :  { %4329 = vmatpush1.bf16.msra.mxu0 %v16830_v39  ;;  %4360 = vmatprep.mubr.bf16.mxu0 %v19705_v19  ;;  %v16878_v39 = vcombine.low %v946_v18, %v950_v0  ;;  %v994_v18 = vld [vmem:[#allocation7 + $0x310] sm:$0xff] }
 0x25e   :  { %4493 = vmatpush1.bf16.msra.mxu1 %v16832_v41  ;;  %4524 = vmatprep.mubr.bf16.mxu1 %v19705_v19  ;;  %v931_v19 = vld [vmem:[#allocation7 + $0x118] sm:$0xff]  ;;  %v16880_v41 = vcombine.low %v947_v21, %v951_v22  ;;  %v998_v0 = vld [vmem:[#allocation7 + $0x330] sm:$0xff] }
 0x25f   :  { %4330 = vmatprep.subr.bf16.mxu0 %v16839_v42  ;;  %4494 = vmatprep.subr.bf16.mxu1 %v16841_v52  ;;  %v16865_v3 = vcombine.high %v931_v19, %v935_v62  ;;  %v16864_v14 = vcombine.low %v931_v19, %v935_v62  ;;  %v16887_v42 = vcombine.high %v954_v34, %v958_v5  ;;  %v979_v19 = vld [vmem:[#allocation7 + $0x298] sm:$0xff] }
 0x260   :  { %v16889_v52 = vcombine.high %v955_v37, %v959_v38  ;;  %v983_v62 = vld [vmem:[#allocation7 + $0x2b8] sm:$0xff] }
 0x261   :  { %4331 = vmatpush1.bf16.msra.mxu0 %v16838_v27  ;;  %v16886_v27 = vcombine.low %v954_v34, %v958_v5  ;;  %v995_v21 = vld [vmem:[#allocation7 + $0x318] sm:$0xff]  ;;  %v1002_v34 = vld [vmem:[#allocation7 + $0x350] sm:$0xff] }
 0x262   :  { %4495 = vmatpush1.bf16.msra.mxu1 %v16840_v30  ;;  %4332 = vmatprep.subr.bf16.mxu0 %v16847_v8  ;;  %v16888_v30 = vcombine.low %v955_v37, %v959_v38  ;;  %v16895_v8 = vcombine.high %v962_v45, %v966_v46  ;;  %v999_v22 = vld [vmem:[#allocation7 + $0x338] sm:$0xff]  ;;  %v1006_v5 = vld [vmem:[#allocation7 + $0x370] sm:$0xff] }
 0x263   :  { %4496 = vmatprep.subr.bf16.mxu1 %v16849_v48  ;;  %v16897_v48 = vcombine.high %v963_v47, %v967_v31  ;;  %v1003_v37 = vld [vmem:[#allocation7 + $0x358] sm:$0xff] }
 0x264   :  { %v1007_v38 = vld [vmem:[#allocation7 + $0x378] sm:$0xff] }
 0x265   :  { %4333 = vmatpush1.bf16.msra.mxu0 %v16846_v55  ;;  %v16894_v55 = vcombine.low %v962_v45, %v966_v46  ;;  %v1010_v45 = vld [vmem:[#allocation7 + $0x390] sm:$0xff] }
 0x266   :  { %4497 = vmatpush1.bf16.msra.mxu1 %v16848_v56  ;;  %4334 = vmatprep.subr.bf16.mxu0 %v16855_v58  ;;  %v16896_v56 = vcombine.low %v963_v47, %v967_v31  ;;  %v16903_v58 = vcombine.high %v970_v49, %v974_v50  ;;  %v1014_v46 = vld [vmem:[#allocation7 + $0x3b0] sm:$0xff]  ;;  %v1011_v47 = vld [vmem:[#allocation7 + $0x398] sm:$0xff] }
 0x267   :  { %4498 = vmatprep.subr.bf16.mxu1 %v16857_v59  ;;  %v16905_v59 = vcombine.high %v971_v54, %v975_v24  ;;  %v1015_v31 = vld [vmem:[#allocation7 + $0x3b8] sm:$0xff] }
 0x269   :  { %4335 = vmatpush1.bf16.msra.mxu0 %v16854_v1  ;;  %v16902_v1 = vcombine.low %v970_v49, %v974_v50  ;;  %v1018_v49 = vld [vmem:[#allocation7 + $0x3d0] sm:$0xff] }
 0x26a   :  { %4499 = vmatpush1.bf16.msra.mxu1 %v16856_v2  ;;  %4336 = vmatprep.subr.bf16.mxu0 %v16863_v43  ;;  %v16904_v2 = vcombine.low %v971_v54, %v975_v24  ;;  %v16911_v43 = vcombine.high %v978_v25, %v982_v53  ;;  %v1022_v50 = vld [vmem:[#allocation7 + $0x3f0] sm:$0xff]  ;;  %v1019_v54 = vld [vmem:[#allocation7 + $0x3d8] sm:$0xff] }
 0x26b   :  { %4500 = vmatprep.subr.bf16.mxu1 %v16865_v3  ;;  %v16913_v3 = vcombine.high %v979_v19, %v983_v62  ;;  %v1023_v24 = vld [vmem:[#allocation7 + $0x3f8] sm:$0xff] }
 0x26d   :  { %4337 = vmatpush1.bf16.msra.mxu0 %v16862_v11  ;;  %v16910_v11 = vcombine.low %v978_v25, %v982_v53  ;;  %v1026_v25 = vld [vmem:[#allocation7 + $0x410] sm:$0xff] }
 0x26e   :  { %4501 = vmatpush1.bf16.msra.mxu1 %v16864_v14  ;;  %4338 = vmatprep.subr.bf16.mxu0 %v16871_v15  ;;  %v16912_v14 = vcombine.low %v979_v19, %v983_v62  ;;  %v16919_v15 = vcombine.high %v986_v4, %v990_v6  ;;  %v1030_v53 = vld [vmem:[#allocation7 + $0x430] sm:$0xff]  ;;  %v1027_v19 = vld [vmem:[#allocation7 + $0x418] sm:$0xff] }
 0x26f   :  { %4502 = vmatprep.subr.bf16.mxu1 %v16873_v16  ;;  %v16921_v16 = vcombine.high %v987_v17, %v991_v10  ;;  %v1031_v62 = vld [vmem:[#allocation7 + $0x438] sm:$0xff] }
 0x271   :  { %4339 = vmatpush1.bf16.msra.mxu0 %v16870_v23  ;;  %v16918_v23 = vcombine.low %v986_v4, %v990_v6  ;;  %v1034_v4 = vld [vmem:[#allocation7 + $0x450] sm:$0xff] }
 0x272   :  { %4503 = vmatpush1.bf16.msra.mxu1 %v16872_v28  ;;  %4340 = vmatprep.subr.bf16.mxu0 %v16879_v32  ;;  %v16920_v28 = vcombine.low %v987_v17, %v991_v10  ;;  %v16927_v32 = vcombine.high %v994_v18, %v998_v0  ;;  %v1038_v6 = vld [vmem:[#allocation7 + $0x470] sm:$0xff]  ;;  %v16958_v17 = vcombine.low %v1026_v25, %v1030_v53  ;;  %v1035_v10 = vld [vmem:[#allocation7 + $0x458] sm:$0xff] }
 0x273   :  { %4504 = vmatprep.subr.bf16.mxu1 %v16881_v33  ;;  %v16929_v33 = vcombine.high %v995_v21, %v999_v22 }
 0x275   :  { %4341 = vmatpush1.bf16.msra.mxu0 %v16878_v39  ;;  %v16926_v39 = vcombine.low %v994_v18, %v998_v0  ;;  %v1046_v18 = vld [vmem:[#allocation7 + $0x4b0] sm:$0xff] }
 0x276   :  { %4505 = vmatpush1.bf16.msra.mxu1 %v16880_v41  ;;  %4342 = vmatprep.subr.bf16.mxu0 %v16887_v42  ;;  %v16928_v41 = vcombine.low %v995_v21, %v999_v22  ;;  %v16935_v42 = vcombine.high %v1002_v34, %v1006_v5  ;;  %v1043_v21 = vld [vmem:[#allocation7 + $0x498] sm:$0xff] }
 0x277   :  { %4506 = vmatprep.subr.bf16.mxu1 %v16889_v52  ;;  %v16937_v52 = vcombine.high %v1003_v37, %v1007_v38  ;;  %v1047_v22 = vld [vmem:[#allocation7 + $0x4b8] sm:$0xff] }
 0x279   :  { %4343 = vmatpush1.bf16.msra.mxu0 %v16886_v27  ;;  %v16934_v27 = vcombine.low %v1002_v34, %v1006_v5  ;;  %v1050_v34 = vld [vmem:[#allocation7 + $0x4d0] sm:$0xff] }
 0x27a   :  { %4507 = vmatpush1.bf16.msra.mxu1 %v16888_v30  ;;  %4344 = vmatprep.subr.bf16.mxu0 %v16895_v8  ;;  %v16936_v30 = vcombine.low %v1003_v37, %v1007_v38  ;;  %v16943_v8 = vcombine.high %v1010_v45, %v1014_v46  ;;  %v1054_v5 = vld [vmem:[#allocation7 + $0x4f0] sm:$0xff]  ;;  %v1051_v37 = vld [vmem:[#allocation7 + $0x4d8] sm:$0xff] }
 0x27b   :  { %4508 = vmatprep.subr.bf16.mxu1 %v16897_v48  ;;  %v16945_v48 = vcombine.high %v1011_v47, %v1015_v31  ;;  %v1055_v38 = vld [vmem:[#allocation7 + $0x4f8] sm:$0xff] }
 0x27d   :  { %4345 = vmatpush1.bf16.msra.mxu0 %v16894_v55  ;;  %v16942_v55 = vcombine.low %v1010_v45, %v1014_v46  ;;  %v1062_v45 = vld [vmem:[#allocation7 + $0x530] sm:$0xff]  ;;  %v1059_v46 = vld [vmem:[#allocation7 + $0x518] sm:$0xff] }
 0x27e   :  { %4509 = vmatpush1.bf16.msra.mxu1 %v16896_v56  ;;  %4346 = vmatprep.subr.bf16.mxu0 %v16903_v58  ;;  %v16944_v56 = vcombine.low %v1011_v47, %v1015_v31  ;;  %v16951_v58 = vcombine.high %v1018_v49, %v1022_v50  ;;  %v1063_v47 = vld [vmem:[#allocation7 + $0x538] sm:$0xff]  ;;  %v16984_v31 = vcombine.low %v1051_v37, %v1055_v38 }
 0x27f   :  { %4510 = vmatprep.subr.bf16.mxu1 %v16905_v59  ;;  %v16953_v59 = vcombine.high %v1019_v54, %v1023_v24 }
 0x281   :  { %4347 = vmatpush1.bf16.msra.mxu0 %v16902_v1  ;;  %v16950_v1 = vcombine.low %v1018_v49, %v1022_v50  ;;  %v1067_v49 = vld [vmem:[#allocation7 + $0x558] sm:$0xff] }
 0x282   :  { %4511 = vmatpush1.bf16.msra.mxu1 %v16904_v2  ;;  %4348 = vmatprep.subr.bf16.mxu0 %v16911_v43  ;;  %v16952_v2 = vcombine.low %v1019_v54, %v1023_v24  ;;  %v16959_v43 = vcombine.high %v1026_v25, %v1030_v53  ;;  %v1071_v50 = vld [vmem:[#allocation7 + $0x578] sm:$0xff]  ;;  %v16992_v24 = vcombine.low %v1059_v46, %v1063_v47 }
 0x283   :  { %4512 = vmatprep.subr.bf16.mxu1 %v16913_v3  ;;  %v16961_v3 = vcombine.high %v1027_v19, %v1031_v62  ;;  %v1075_v25 = vld [vmem:[#allocation7 + $0x598] sm:$0xff] }
 0x284   :  { %v1079_v53 = vld [vmem:[#allocation7 + $0x5b8] sm:$0xff] }
 0x285   :  { %4349 = vmatpush1.bf16.msra.mxu0 %v16910_v11  ;;  %v1039_v11 = vld [vmem:[#allocation7 + $0x478] sm:$0xff] }
 0x286   :  { %4513 = vmatpush1.bf16.msra.mxu1 %v16912_v14  ;;  %4350 = vmatprep.subr.bf16.mxu0 %v16919_v15  ;;  %v16960_v14 = vcombine.low %v1027_v19, %v1031_v62  ;;  %v16967_v15 = vcombine.high %v1034_v4, %v1038_v6  ;;  %v16969_v0 = vcombine.high %v1035_v10, %v1039_v11 }
 0x287   :  { %4514 = vmatprep.subr.bf16.mxu1 %v16921_v16  ;;  %v1042_v16 = vld [vmem:[#allocation7 + $0x490] sm:$0xff]  ;;  %v17000_v62 = vcombine.low %v1067_v49, %v1071_v50 }
 0x289   :  { %4351 = vmatpush1.bf16.msra.mxu0 %v16918_v23  ;;  %v16966_v23 = vcombine.low %v1034_v4, %v1038_v6  ;;  %v1083_v4 = vld [vmem:[#allocation7 + $0x5d8] sm:$0xff] }
 0x28a   :  { %4515 = vmatpush1.bf16.msra.mxu1 %v16920_v28  ;;  %4352 = vmatprep.subr.bf16.mxu0 %v16927_v32  ;;  %v16968_v28 = vcombine.low %v1035_v10, %v1039_v11  ;;  %v16975_v32 = vcombine.high %v1042_v16, %v1046_v18  ;;  %v1087_v6 = vld [vmem:[#allocation7 + $0x5f8] sm:$0xff]  ;;  %v17008_v10 = vcombine.low %v1075_v25, %v1079_v53 }
 0x28b   :  { %4516 = vmatprep.subr.bf16.mxu1 %v16929_v33  ;;  %v16977_v33 = vcombine.high %v1043_v21, %v1047_v22 }
 0x28d   :  { %4353 = vmatpush1.bf16.msra.mxu0 %v16926_v39  ;;  %v16974_v39 = vcombine.low %v1042_v16, %v1046_v18  ;;  %v1094_v16 = vld [vmem:[#allocation7 + $0x630] sm:$0xff]  ;;  %v1091_v18 = vld [vmem:[#allocation7 + $0x618] sm:$0xff] }
 0x28e   :  { %4517 = vmatpush1.bf16.msra.mxu1 %v16928_v41  ;;  %4354 = vmatprep.subr.bf16.mxu0 %v16935_v42  ;;  %v16983_v41 = vcombine.high %v1050_v34, %v1054_v5  ;;  %v16985_v42 = vcombine.high %v1051_v37, %v1055_v38 }
 0x28f   :  { %4518 = vmatprep.subr.bf16.mxu1 %v16937_v52  ;;  %v1058_v52 = vld [vmem:[#allocation7 + $0x510] sm:$0xff] }
 0x290   :  { %v16990_v54 = vcombine.low %v1058_v52, %v1062_v45 }
 0x291   :  { %4355 = vmatpush1.bf16.msra.mxu0 %v16934_v27  ;;  %v16991_v27 = vcombine.high %v1058_v52, %v1062_v45  ;;  %v1107_v52 = vld [vmem:[#allocation7 + $0x698] sm:$0xff] }
 0x292   :  { %4519 = vmatpush1.bf16.msra.mxu1 %v16936_v30  ;;  %4356 = vmatprep.subr.bf16.mxu0 %v16943_v8  ;;  %v16993_v30 = vcombine.high %v1059_v46, %v1063_v47  ;;  %v1066_v8 = vld [vmem:[#allocation7 + $0x550] sm:$0xff]  ;;  %v1111_v45 = vld [vmem:[#allocation7 + $0x6b8] sm:$0xff] }
 0x293   :  { %4520 = vmatprep.subr.bf16.mxu1 %v16945_v48  ;;  %v1070_v48 = vld [vmem:[#allocation7 + $0x570] sm:$0xff] }
 0x294   :  { %v16998_v19 = vcombine.low %v1066_v8, %v1070_v48 }
 0x295   :  { %4357 = vmatpush1.bf16.msra.mxu0 %v16942_v55  ;;  %v16999_v55 = vcombine.high %v1066_v8, %v1070_v48  ;;  %v1115_v8 = vld [vmem:[#allocation7 + $0x6d8] sm:$0xff] }
 0x296   :  { %4521 = vmatpush1.bf16.msra.mxu1 %v16944_v56  ;;  %4358 = vmatprep.subr.bf16.mxu0 %v16951_v58  ;;  %v17001_v56 = vcombine.high %v1067_v49, %v1071_v50  ;;  %v1074_v58 = vld [vmem:[#allocation7 + $0x590] sm:$0xff]  ;;  %v1119_v48 = vld [vmem:[#allocation7 + $0x6f8] sm:$0xff]  ;;  %v17040_v50 = vcombine.low %v1107_v52, %v1111_v45 }
 0x297   :  { %4522 = vmatprep.subr.bf16.mxu1 %v16953_v59  ;;  %v1078_v59 = vld [vmem:[#allocation7 + $0x5b0] sm:$0xff] }
 0x299   :  { %4359 = vmatpush1.bf16.msra.mxu0 %v16950_v1  ;;  %v17007_v1 = vcombine.high %v1074_v58, %v1078_v59 }
 0x29a   :  { %4523 = vmatpush1.bf16.msra.mxu1 %v16952_v2  ;;  %4369 = vmatprep.subr.bf16.mxu0 %v16959_v43  ;;  %v17009_v2 = vcombine.high %v1075_v25, %v1079_v53  ;;  %v1082_v43 = vld [vmem:[#allocation7 + $0x5d0] sm:$0xff]  ;;  %v17048_v53 = vcombine.low %v1115_v8, %v1119_v48 }
 0x29b   :  { %4533 = vmatprep.subr.bf16.mxu1 %v16961_v3  ;;  %v1086_v3 = vld [vmem:[#allocation7 + $0x5f0] sm:$0xff] }
 0x29c   :  { %4361 = vmatmul.mubr.bf16.vlgmr.msra.gmra.mrb[12].mxu0 %v19709_v20  ;;  %v17015_v11 = vcombine.high %v1082_v43, %v1086_v3 }
 0x29d   :  { %4525 = vmatmul.mubr.bf16.vlgmr.msra.gmra.mrb[12].mxu1 %v19709_v20  ;;  %4370 = vmatpush1.bf16.msra.mxu0 %v16958_v17  ;;  %v16976_v20 = vcombine.low %v1043_v21, %v1047_v22  ;;  %v17006_v17 = vcombine.low %v1074_v58, %v1078_v59  ;;  %v17014_v21 = vcombine.low %v1082_v43, %v1086_v3  ;;  %v1123_v58 = vld [vmem:[#allocation7 + $0x718] sm:$0xff] }
 0x29e   :  { %4401 = vmatprep.mubr.bf16.mxu0 %v19727_v26  ;;  %4534 = vmatpush1.bf16.msra.mxu1 %v16960_v14  ;;  %v17017_v14 = vcombine.high %v1083_v4, %v1087_v6  ;;  %v17016_v22 = vcombine.low %v1083_v4, %v1087_v6  ;;  %v1127_v59 = vld [vmem:[#allocation7 + $0x738] sm:$0xff] }
 0x29f   :  { %4565 = vmatprep.mubr.bf16.mxu1 %v19727_v26  ;;  %4371 = vmatprep.subr.bf16.mxu0 %v16967_v15  ;;  %v16982_v26 = vcombine.low %v1050_v34, %v1054_v5  ;;  %v1090_v15 = vld [vmem:[#allocation7 + $0x610] sm:$0xff]  ;;  %v1099_v34 = vld [vmem:[#allocation7 + $0x658] sm:$0xff]  ;;  %v17056_v6 = vcombine.low %v1123_v58, %v1127_v59 }
 0x2a0   :  { %4535 = vmatprep.subr.bf16.mxu1 %v16969_v0  ;;  %v1095_v0 = vld [vmem:[#allocation7 + $0x638] sm:$0xff]  ;;  %v17022_v37 = vcombine.low %v1090_v15, %v1094_v16 }
 0x2a1   :  { %4372 = vmatpush1.bf16.msra.mxu0 %v16966_v23  ;;  %v17023_v23 = vcombine.high %v1090_v15, %v1094_v16  ;;  %v1103_v5 = vld [vmem:[#allocation7 + $0x678] sm:$0xff]  ;;  %v17024_v38 = vcombine.low %v1091_v18, %v1095_v0 }
 0x2a2   :  { %4536 = vmatpush1.bf16.msra.mxu1 %v16968_v28  ;;  %4373 = vmatprep.subr.bf16.mxu0 %v16975_v32  ;;  %v17025_v28 = vcombine.high %v1091_v18, %v1095_v0  ;;  %v1098_v32 = vld [vmem:[#allocation7 + $0x650] sm:$0xff]  ;;  %v17032_v47 = vcombine.low %v1099_v34, %v1103_v5  ;;  %v1131_v43 = vld [vmem:[#allocation7 + $0x758] sm:$0xff] }
 0x2a3   :  { %4537 = vmatprep.subr.bf16.mxu1 %v16977_v33  ;;  %v1102_v33 = vld [vmem:[#allocation7 + $0x670] sm:$0xff]  ;;  %v1135_v3 = vld [vmem:[#allocation7 + $0x778] sm:$0xff] }
 0x2a4   :  { %v17030_v46 = vcombine.low %v1098_v32, %v1102_v33  ;;  %v1139_v15 = vld [vmem:[#allocation7 + $0x798] sm:$0xff]  ;;  %v17064_v0 = vcombine.low %v1131_v43, %v1135_v3 }
 0x2a5   :  { %4374 = vmatpush1.bf16.msra.mxu0 %v16974_v39  ;;  %v17031_v39 = vcombine.high %v1098_v32, %v1102_v33  ;;  %v1143_v16 = vld [vmem:[#allocation7 + $0x7b8] sm:$0xff] }
 0x2a6   :  { %4538 = vmatpush1.bf16.msra.mxu1 %v16976_v20  ;;  %4375 = vmatprep.subr.bf16.mxu0 %v16983_v41  ;;  %v17033_v20 = vcombine.high %v1099_v34, %v1103_v5  ;;  %v1106_v41 = vld [vmem:[#allocation7 + $0x690] sm:$0xff]  ;;  %v1147_v32 = vld [vmem:[#allocation7 + $0x7d8] sm:$0xff]  ;;  %v17072_v5 = vcombine.low %v1139_v15, %v1143_v16 }
 0x2a7   :  { %4539 = vmatprep.subr.bf16.mxu1 %v16985_v42  ;;  %v1110_v42 = vld [vmem:[#allocation7 + $0x6b0] sm:$0xff]  ;;  %v1151_v33 = vld [vmem:[#allocation7 + $0x7f8] sm:$0xff] }
 0x2a8   :  { %v17038_v49 = vcombine.low %v1106_v41, %v1110_v42 }
 0x2a9   :  { %4376 = vmatpush1.bf16.msra.mxu0 %v16982_v26  ;;  %v17039_v26 = vcombine.high %v1106_v41, %v1110_v42  ;;  %v1155_v41 = vld [vmem:[#allocation7 + $0x818] sm:$0xff] }
 0x2aa   :  { %4540 = vmatpush1.bf16.msra.mxu1 %v16984_v31  ;;  %4377 = vmatprep.subr.bf16.mxu0 %v16991_v27  ;;  %v17041_v31 = vcombine.high %v1107_v52, %v1111_v45  ;;  %v1114_v27 = vld [vmem:[#allocation7 + $0x6d0] sm:$0xff]  ;;  %v1159_v42 = vld [vmem:[#allocation7 + $0x838] sm:$0xff]  ;;  %v17080_v45 = vcombine.low %v1147_v32, %v1151_v33 }
 0x2ab   :  { %4541 = vmatprep.subr.bf16.mxu1 %v16993_v30  ;;  %v1118_v30 = vld [vmem:[#allocation7 + $0x6f0] sm:$0xff] }
 0x2ac   :  { %v17046_v25 = vcombine.low %v1114_v27, %v1118_v30 }
 0x2ad   :  { %4378 = vmatpush1.bf16.msra.mxu0 %v16990_v54  ;;  %v17047_v54 = vcombine.high %v1114_v27, %v1118_v30  ;;  %v1163_v30 = vld [vmem:[#allocation7 + $0x858] sm:$0xff] }
 0x2ae   :  { %4542 = vmatpush1.bf16.msra.mxu1 %v16992_v24  ;;  %4379 = vmatprep.subr.bf16.mxu0 %v16999_v55  ;;  %v17049_v24 = vcombine.high %v1115_v8, %v1119_v48  ;;  %v1122_v55 = vld [vmem:[#allocation7 + $0x710] sm:$0xff]  ;;  %v1167_v8 = vld [vmem:[#allocation7 + $0x878] sm:$0xff]  ;;  %v17088_v48 = vcombine.low %v1155_v41, %v1159_v42 }
 0x2af   :  { %4543 = vmatprep.subr.bf16.mxu1 %v17001_v56  ;;  %v1126_v56 = vld [vmem:[#allocation7 + $0x730] sm:$0xff] }
 0x2b0   :  { %v17054_v4 = vcombine.low %v1122_v55, %v1126_v56 }
 0x2b1   :  { %4380 = vmatpush1.bf16.msra.mxu0 %v16998_v19  ;;  %v17055_v19 = vcombine.high %v1122_v55, %v1126_v56  ;;  %v1171_v55 = vld [vmem:[#allocation7 + $0x898] sm:$0xff] }
 0x2b2   :  { %4544 = vmatpush1.bf16.msra.mxu1 %v17000_v62  ;;  %4381 = vmatprep.subr.bf16.mxu0 %v17007_v1  ;;  %v17057_v62 = vcombine.high %v1123_v58, %v1127_v59  ;;  %v1130_v1 = vld [vmem:[#allocation7 + $0x750] sm:$0xff]  ;;  %v1175_v56 = vld [vmem:[#allocation7 + $0x8b8] sm:$0xff]  ;;  %v17096_v59 = vcombine.low %v1163_v30, %v1167_v8 }
 0x2b3   :  { %4545 = vmatprep.subr.bf16.mxu1 %v17009_v2  ;;  %v1134_v2 = vld [vmem:[#allocation7 + $0x770] sm:$0xff] }
 0x2b4   :  { %v17062_v18 = vcombine.low %v1130_v1, %v1134_v2 }
 0x2b5   :  { %4382 = vmatpush1.bf16.msra.mxu0 %v17006_v17  ;;  %v17063_v17 = vcombine.high %v1130_v1, %v1134_v2  ;;  %v1179_v1 = vld [vmem:[#allocation7 + $0x8d8] sm:$0xff] }
 0x2b6   :  { %4546 = vmatpush1.bf16.msra.mxu1 %v17008_v10  ;;  %4383 = vmatprep.subr.bf16.mxu0 %v17015_v11  ;;  %v17065_v10 = vcombine.high %v1131_v43, %v1135_v3  ;;  %v1138_v11 = vld [vmem:[#allocation7 + $0x790] sm:$0xff]  ;;  %v1183_v2 = vld [vmem:[#allocation7 + $0x8f8] sm:$0xff] }
 0x2b7   :  { %4547 = vmatprep.subr.bf16.mxu1 %v17017_v14  ;;  %v1142_v14 = vld [vmem:[#allocation7 + $0x7b0] sm:$0xff] }
 0x2b8   :  { %v17070_v34 = vcombine.low %v1138_v11, %v1142_v14 }
 0x2b9   :  { %4384 = vmatpush1.bf16.msra.mxu0 %v17014_v21  ;;  %v17071_v21 = vcombine.high %v1138_v11, %v1142_v14  ;;  %v1191_v11 = vld [vmem:[#allocation7 + $0x938] sm:$0xff]  ;;  %v17112_v14 = vcombine.low %v1179_v1, %v1183_v2 }
 0x2ba   :  { %4548 = vmatpush1.bf16.msra.mxu1 %v17016_v22  ;;  %4385 = vmatprep.subr.bf16.mxu0 %v17023_v23  ;;  %v17073_v22 = vcombine.high %v1139_v15, %v1143_v16  ;;  %v1146_v23 = vld [vmem:[#allocation7 + $0x7d0] sm:$0xff] }
 0x2bb   :  { %4549 = vmatprep.subr.bf16.mxu1 %v17025_v28  ;;  %v1150_v28 = vld [vmem:[#allocation7 + $0x7f0] sm:$0xff] }
 0x2bc   :  { %v17078_v52 = vcombine.low %v1146_v23, %v1150_v28 }
 0x2bd   :  { %4386 = vmatpush1.bf16.msra.mxu0 %v17022_v37  ;;  %v17079_v37 = vcombine.high %v1146_v23, %v1150_v28 }
 0x2be   :  { %4550 = vmatpush1.bf16.msra.mxu1 %v17024_v38  ;;  %4387 = vmatprep.subr.bf16.mxu0 %v17031_v39  ;;  %v17081_v38 = vcombine.high %v1147_v32, %v1151_v33  ;;  %v1154_v39 = vld [vmem:[#allocation7 + $0x810] sm:$0xff] }
 0x2bf   :  { %4551 = vmatprep.subr.bf16.mxu1 %v17033_v20  ;;  %v1158_v20 = vld [vmem:[#allocation7 + $0x830] sm:$0xff] }
 0x2c0   :  { %v17086_v27 = vcombine.low %v1154_v39, %v1158_v20 }
 0x2c1   :  { %4388 = vmatpush1.bf16.msra.mxu0 %v17030_v46  ;;  %v17087_v46 = vcombine.high %v1154_v39, %v1158_v20 }
 0x2c2   :  { %4552 = vmatpush1.bf16.msra.mxu1 %v17032_v47  ;;  %4389 = vmatprep.subr.bf16.mxu0 %v17039_v26  ;;  %v17089_v47 = vcombine.high %v1155_v41, %v1159_v42  ;;  %v1162_v26 = vld [vmem:[#allocation7 + $0x850] sm:$0xff] }
 0x2c3   :  { %4553 = vmatprep.subr.bf16.mxu1 %v17041_v31  ;;  %v1166_v31 = vld [vmem:[#allocation7 + $0x870] sm:$0xff] }
 0x2c4   :  { %v17094_v58 = vcombine.low %v1162_v26, %v1166_v31 }
 0x2c5   :  { %4390 = vmatpush1.bf16.msra.mxu0 %v17038_v49  ;;  %v17095_v49 = vcombine.high %v1162_v26, %v1166_v31 }
 0x2c6   :  { %4554 = vmatpush1.bf16.msra.mxu1 %v17040_v50  ;;  %4391 = vmatprep.subr.bf16.mxu0 %v17047_v54  ;;  %v1170_v50 = vld [vmem:[#allocation7 + $0x890] sm:$0xff] }
 0x2c7   :  { %4555 = vmatprep.subr.bf16.mxu1 %v17049_v24  ;;  %v1174_v54 = vld [vmem:[#allocation7 + $0x8b0] sm:$0xff]  ;;  %v17097_v24 = vcombine.high %v1163_v30, %v1167_v8 }
 0x2c8   :  { %v17102_v43 = vcombine.low %v1170_v50, %v1174_v54  ;;  %v1218_v8 = vld [vmem:[#allocation7 + $0xa10] sm:$0xff] }
 0x2c9   :  { %4392 = vmatpush1.bf16.msra.mxu0 %v17046_v25  ;;  %v17103_v25 = vcombine.high %v1170_v50, %v1174_v54  ;;  %v1223_v50 = vld [vmem:[#allocation7 + $0xa38] sm:$0xff] }
 0x2ca   :  { %4556 = vmatpush1.bf16.msra.mxu1 %v17048_v53  ;;  %4393 = vmatprep.subr.bf16.mxu0 %v17055_v19  ;;  %v17105_v53 = vcombine.high %v1171_v55, %v1175_v56  ;;  %v1178_v19 = vld [vmem:[#allocation7 + $0x8d0] sm:$0xff] }
 0x2cb   :  { %4557 = vmatprep.subr.bf16.mxu1 %v17057_v62  ;;  %v1182_v62 = vld [vmem:[#allocation7 + $0x8f0] sm:$0xff] }
 0x2cc   :  { %v17111_v3 = vcombine.high %v1178_v19, %v1182_v62 }
 0x2cd   :  { %4394 = vmatpush1.bf16.msra.mxu0 %v17054_v4  ;;  %v17113_v4 = vcombine.high %v1179_v1, %v1183_v2 }
 0x2ce   :  { %4558 = vmatpush1.bf16.msra.mxu1 %v17056_v6  ;;  %4395 = vmatprep.subr.bf16.mxu0 %v17063_v17  ;;  %v1186_v6 = vld [vmem:[#allocation7 + $0x910] sm:$0xff] }
 0x2cf   :  { %4559 = vmatprep.subr.bf16.mxu1 %v17065_v10  ;;  %v1190_v17 = vld [vmem:[#allocation7 + $0x930] sm:$0xff]  ;;  %v1187_v10 = vld [vmem:[#allocation7 + $0x918] sm:$0xff] }
 0x2d0   :  { %v17119_v15 = vcombine.high %v1186_v6, %v1190_v17  ;;  %v17121_v16 = vcombine.high %v1187_v10, %v1191_v11  ;;  %v17118_v23 = vcombine.low %v1186_v6, %v1190_v17  ;;  %v17120_v28 = vcombine.low %v1187_v10, %v1191_v11 }
 0x2d1   :  { %4396 = vmatpush1.bf16.msra.mxu0 %v17062_v18  ;;  %v1194_v18 = vld [vmem:[#allocation7 + $0x950] sm:$0xff] }
 0x2d2   :  { %4560 = vmatpush1.bf16.msra.mxu1 %v17064_v0  ;;  %4397 = vmatprep.subr.bf16.mxu0 %v17071_v21  ;;  %v1198_v0 = vld [vmem:[#allocation7 + $0x970] sm:$0xff]  ;;  %v1195_v21 = vld [vmem:[#allocation7 + $0x958] sm:$0xff] }
 0x2d3   :  { %4561 = vmatprep.subr.bf16.mxu1 %v17073_v22  ;;  %v1199_v22 = vld [vmem:[#allocation7 + $0x978] sm:$0xff]  ;;  %v17127_v32 = vcombine.high %v1194_v18, %v1198_v0  ;;  %v17126_v39 = vcombine.low %v1194_v18, %v1198_v0 }
 0x2d4   :  { %v17129_v33 = vcombine.high %v1195_v21, %v1199_v22  ;;  %v17128_v20 = vcombine.low %v1195_v21, %v1199_v22 }
 0x2d5   :  { %4398 = vmatpush1.bf16.msra.mxu0 %v17070_v34  ;;  %v1202_v34 = vld [vmem:[#allocation7 + $0x990] sm:$0xff] }
 0x2d6   :  { %4562 = vmatpush1.bf16.msra.mxu1 %v17072_v5  ;;  %4399 = vmatprep.subr.bf16.mxu0 %v17079_v37  ;;  %v1206_v5 = vld [vmem:[#allocation7 + $0x9b0] sm:$0xff]  ;;  %v1203_v37 = vld [vmem:[#allocation7 + $0x998] sm:$0xff] }
 0x2d7   :  { %4563 = vmatprep.subr.bf16.mxu1 %v17081_v38  ;;  %v1207_v38 = vld [vmem:[#allocation7 + $0x9b8] sm:$0xff]  ;;  %v17135_v41 = vcombine.high %v1202_v34, %v1206_v5  ;;  %v17134_v26 = vcombine.low %v1202_v34, %v1206_v5 }
 0x2d8   :  { %v17137_v42 = vcombine.high %v1203_v37, %v1207_v38  ;;  %v17136_v31 = vcombine.low %v1203_v37, %v1207_v38 }
 0x2d9   :  { %4400 = vmatpush1.bf16.msra.mxu0 %v17078_v52  ;;  %v1210_v52 = vld [vmem:[#allocation7 + $0x9d0] sm:$0xff] }
 0x2da   :  { %4564 = vmatpush1.bf16.msra.mxu1 %v17080_v45  ;;  %4410 = vmatprep.subr.bf16.mxu0 %v17087_v46  ;;  %v1214_v45 = vld [vmem:[#allocation7 + $0x9f0] sm:$0xff]  ;;  %v1211_v46 = vld [vmem:[#allocation7 + $0x9d8] sm:$0xff] }
 0x2db   :  { %4574 = vmatprep.subr.bf16.mxu1 %v17089_v47  ;;  %v1215_v47 = vld [vmem:[#allocation7 + $0x9f8] sm:$0xff]  ;;  %v17142_v54 = vcombine.low %v1210_v52, %v1214_v45 }
 0x2dc   :  { %4402 = vmatmul.mubr.bf16.vlgmr.msra.gmra.mrb[12].mxu0 %v19749_v61  ;;  %v17145_v30 = vcombine.high %v1211_v46, %v1215_v47 }
 0x2dd   :  { %4566 = vmatmul.mubr.bf16.vlgmr.msra.gmra.mrb[12].mxu1 %v19749_v61  ;;  %4411 = vmatpush1.bf16.msra.mxu0 %v17086_v27  ;;  %v17104_v61 = vcombine.low %v1171_v55, %v1175_v56  ;;  %v17143_v27 = vcombine.high %v1210_v52, %v1214_v45 }
 0x2de   :  { %4442 = vmatprep.mubr.bf16.mxu0 %v19753_v7  ;;  %4575 = vmatpush1.bf16.msra.mxu1 %v17088_v48  ;;  %v1222_v48 = vld [vmem:[#allocation7 + $0xa30] sm:$0xff] }
 0x2df   :  { %4606 = vmatprep.mubr.bf16.mxu1 %v19753_v7  ;;  %4412 = vmatprep.subr.bf16.mxu0 %v17095_v49  ;;  %v17110_v7 = vcombine.low %v1178_v19, %v1182_v62  ;;  %v1219_v49 = vld [vmem:[#allocation7 + $0xa18] sm:$0xff]  ;;  %v17151_v55 = vcombine.high %v1218_v8, %v1222_v48  ;;  %v17150_v19 = vcombine.low %v1218_v8, %v1222_v48 }
 0x2e0   :  { %4576 = vmatprep.subr.bf16.mxu1 %v17097_v24  ;;  %v17144_v24 = vcombine.low %v1211_v46, %v1215_v47  ;;  %v17153_v56 = vcombine.high %v1219_v49, %v1223_v50  ;;  %v17152_v62 = vcombine.low %v1219_v49, %v1223_v50 }
 0x2e1   :  { %4413 = vmatpush1.bf16.msra.mxu0 %v17094_v58  ;;  %v1226_v58 = vld [vmem:[#allocation7 + $0xa50] sm:$0xff] }
 0x2e2   :  { %4577 = vmatpush1.bf16.msra.mxu1 %v17096_v59  ;;  %4414 = vmatprep.subr.bf16.mxu0 %v17103_v25  ;;  %v1230_v59 = vld [vmem:[#allocation7 + $0xa70] sm:$0xff]  ;;  %v1227_v25 = vld [vmem:[#allocation7 + $0xa58] sm:$0xff] }
 0x2e3   :  { %4578 = vmatprep.subr.bf16.mxu1 %v17105_v53  ;;  %v1231_v53 = vld [vmem:[#allocation7 + $0xa78] sm:$0xff]  ;;  %v17159_v1 = vcombine.high %v1226_v58, %v1230_v59  ;;  %v17158_v6 = vcombine.low %v1226_v58, %v1230_v59 }
 0x2e4   :  { %v17161_v2 = vcombine.high %v1227_v25, %v1231_v53  ;;  %v17160_v17 = vcombine.low %v1227_v25, %v1231_v53 }
 0x2e5   :  { %4415 = vmatpush1.bf16.msra.mxu0 %v17102_v43  ;;  %v1234_v43 = vld [vmem:[#allocation7 + $0xa90] sm:$0xff] }
 0x2e6   :  { %4579 = vmatpush1.bf16.msra.mxu1 %v17104_v61  ;;  %4416 = vmatprep.subr.bf16.mxu0 %v17111_v3  ;;  %v1238_v61 = vld [vmem:[#allocation7 + $0xab0] sm:$0xff]  ;;  %v1235_v3 = vld [vmem:[#allocation7 + $0xa98] sm:$0xff] }
 0x2e7   :  { %4580 = vmatprep.subr.bf16.mxu1 %v17113_v4  ;;  %v1239_v4 = vld [vmem:[#allocation7 + $0xab8] sm:$0xff]  ;;  %v17167_v10 = vcombine.high %v1234_v43, %v1238_v61  ;;  %v17166_v18 = vcombine.low %v1234_v43, %v1238_v61 }
 0x2e8   :  { %v17169_v11 = vcombine.high %v1235_v3, %v1239_v4  ;;  %v17168_v0 = vcombine.low %v1235_v3, %v1239_v4 }
 0x2e9   :  { %4417 = vmatpush1.bf16.msra.mxu0 %v17110_v7  ;;  %v1242_v7 = vld [vmem:[#allocation7 + $0xad0] sm:$0xff] }
 0x2ea   :  { %4581 = vmatpush1.bf16.msra.mxu1 %v17112_v14  ;;  %4418 = vmatprep.subr.bf16.mxu0 %v17119_v15  ;;  %v1246_v14 = vld [vmem:[#allocation7 + $0xaf0] sm:$0xff]  ;;  %v1243_v15 = vld [vmem:[#allocation7 + $0xad8] sm:$0xff] }
 0x2eb   :  { %4582 = vmatprep.subr.bf16.mxu1 %v17121_v16  ;;  %v1247_v16 = vld [vmem:[#allocation7 + $0xaf8] sm:$0xff]  ;;  %v17175_v21 = vcombine.high %v1242_v7, %v1246_v14  ;;  %v17174_v34 = vcombine.low %v1242_v7, %v1246_v14 }
 0x2ec   :  { %v17177_v22 = vcombine.high %v1243_v15, %v1247_v16  ;;  %v17176_v5 = vcombine.low %v1243_v15, %v1247_v16  ;;  %v1295_v7 = vld [vmem:[#allocation7 + $0xc78] sm:$0xff]  ;;  %v1298_v16 = vld [vmem:[#allocation7 + $0xc90] sm:$0xff] }
 0x2ed   :  { %4419 = vmatpush1.bf16.msra.mxu0 %v17118_v23  ;;  %v1250_v23 = vld [vmem:[#allocation7 + $0xb10] sm:$0xff] }
 0x2ee   :  { %4583 = vmatpush1.bf16.msra.mxu1 %v17120_v28  ;;  %4420 = vmatprep.subr.bf16.mxu0 %v17127_v32  ;;  %v1254_v28 = vld [vmem:[#allocation7 + $0xb30] sm:$0xff]  ;;  %v1251_v32 = vld [vmem:[#allocation7 + $0xb18] sm:$0xff] }
 0x2ef   :  { %4584 = vmatprep.subr.bf16.mxu1 %v17129_v33  ;;  %v1255_v33 = vld [vmem:[#allocation7 + $0xb38] sm:$0xff]  ;;  %v17183_v37 = vcombine.high %v1250_v23, %v1254_v28  ;;  %v17182_v52 = vcombine.low %v1250_v23, %v1254_v28 }
 0x2f0   :  { %v17185_v38 = vcombine.high %v1251_v32, %v1255_v33  ;;  %v17184_v45 = vcombine.low %v1251_v32, %v1255_v33 }
 0x2f1   :  { %4421 = vmatpush1.bf16.msra.mxu0 %v17126_v39  ;;  %v1258_v39 = vld [vmem:[#allocation7 + $0xb50] sm:$0xff] }
 0x2f2   :  { %4585 = vmatpush1.bf16.msra.mxu1 %v17128_v20  ;;  %4422 = vmatprep.subr.bf16.mxu0 %v17135_v41  ;;  %v1262_v20 = vld [vmem:[#allocation7 + $0xb70] sm:$0xff]  ;;  %v1259_v41 = vld [vmem:[#allocation7 + $0xb58] sm:$0xff] }
 0x2f3   :  { %4586 = vmatprep.subr.bf16.mxu1 %v17137_v42  ;;  %v1263_v42 = vld [vmem:[#allocation7 + $0xb78] sm:$0xff]  ;;  %v17191_v46 = vcombine.high %v1258_v39, %v1262_v20  ;;  %v17190_v8 = vcombine.low %v1258_v39, %v1262_v20 }
 0x2f4   :  { %v17193_v47 = vcombine.high %v1259_v41, %v1263_v42  ;;  %v17192_v48 = vcombine.low %v1259_v41, %v1263_v42  ;;  %v1314_v42 = vld [vmem:[#allocation7 + $0xd10] sm:$0xff] }
 0x2f5   :  { %4423 = vmatpush1.bf16.msra.mxu0 %v17134_v26  ;;  %v1266_v26 = vld [vmem:[#allocation7 + $0xb90] sm:$0xff] }
 0x2f6   :  { %4587 = vmatpush1.bf16.msra.mxu1 %v17136_v31  ;;  %4424 = vmatprep.subr.bf16.mxu0 %v17143_v27  ;;  %v1270_v31 = vld [vmem:[#allocation7 + $0xbb0] sm:$0xff]  ;;  %v1267_v27 = vld [vmem:[#allocation7 + $0xb98] sm:$0xff] }
 0x2f7   :  { %4588 = vmatprep.subr.bf16.mxu1 %v17145_v30  ;;  %v1271_v30 = vld [vmem:[#allocation7 + $0xbb8] sm:$0xff]  ;;  %v17199_v49 = vcombine.high %v1266_v26, %v1270_v31  ;;  %v17198_v58 = vcombine.low %v1266_v26, %v1270_v31 }
 0x2f8   :  { %v17201_v50 = vcombine.high %v1267_v27, %v1271_v30  ;;  %v17200_v59 = vcombine.low %v1267_v27, %v1271_v30  ;;  %v1322_v27 = vld [vmem:[#allocation7 + $0xd50] sm:$0xff] }
 0x2f9   :  { %4425 = vmatpush1.bf16.msra.mxu0 %v17142_v54  ;;  %v1274_v54 = vld [vmem:[#allocation7 + $0xbd0] sm:$0xff] }
 0x2fa   :  { %4589 = vmatpush1.bf16.msra.mxu1 %v17144_v24  ;;  %4426 = vmatprep.subr.bf16.mxu0 %v17151_v55  ;;  %v1278_v24 = vld [vmem:[#allocation7 + $0xbf0] sm:$0xff]  ;;  %v1275_v55 = vld [vmem:[#allocation7 + $0xbd8] sm:$0xff] }
 0x2fb   :  { %4590 = vmatprep.subr.bf16.mxu1 %v17153_v56  ;;  %v1279_v56 = vld [vmem:[#allocation7 + $0xbf8] sm:$0xff]  ;;  %v17207_v25 = vcombine.high %v1274_v54, %v1278_v24  ;;  %v17206_v43 = vcombine.low %v1274_v54, %v1278_v24  ;;  %v1326_v30 = vld [vmem:[#allocation7 + $0xd70] sm:$0xff] }
 0x2fc   :  { %v17209_v53 = vcombine.high %v1275_v55, %v1279_v56  ;;  %v17208_v61 = vcombine.low %v1275_v55, %v1279_v56  ;;  %v17255_v54 = vcombine.high %v1322_v27, %v1326_v30  ;;  %v1330_v55 = vld [vmem:[#allocation7 + $0xd90] sm:$0xff] }
 0x2fd   :  { %4427 = vmatpush1.bf16.msra.mxu0 %v17150_v19  ;;  %v1282_v19 = vld [vmem:[#allocation7 + $0xc10] sm:$0xff] }
 0x2fe   :  { %4591 = vmatpush1.bf16.msra.mxu1 %v17152_v62  ;;  %4428 = vmatprep.subr.bf16.mxu0 %v17159_v1  ;;  %v1286_v62 = vld [vmem:[#allocation7 + $0xc30] sm:$0xff]  ;;  %v1283_v1 = vld [vmem:[#allocation7 + $0xc18] sm:$0xff] }
 0x2ff   :  { %4592 = vmatprep.subr.bf16.mxu1 %v17161_v2  ;;  %v1287_v2 = vld [vmem:[#allocation7 + $0xc38] sm:$0xff]  ;;  %v17215_v3 = vcombine.high %v1282_v19, %v1286_v62  ;;  %v1334_v56 = vld [vmem:[#allocation7 + $0xdb0] sm:$0xff] }
 0x300   :  { %v17217_v4 = vcombine.high %v1283_v1, %v1287_v2  ;;  %v17216_v14 = vcombine.low %v1283_v1, %v1287_v2 }
 0x301   :  { %4429 = vmatpush1.bf16.msra.mxu0 %v17158_v6  ;;  %v1290_v6 = vld [vmem:[#allocation7 + $0xc50] sm:$0xff] }
 0x302   :  { %4593 = vmatpush1.bf16.msra.mxu1 %v17160_v17  ;;  %4430 = vmatprep.subr.bf16.mxu0 %v17167_v10  ;;  %v1294_v17 = vld [vmem:[#allocation7 + $0xc70] sm:$0xff]  ;;  %v17214_v10 = vcombine.low %v1282_v19, %v1286_v62  ;;  %v17263_v19 = vcombine.high %v1330_v55, %v1334_v56 }
 0x303   :  { %4594 = vmatprep.subr.bf16.mxu1 %v17169_v11  ;;  %v1291_v11 = vld [vmem:[#allocation7 + $0xc58] sm:$0xff]  ;;  %v17223_v15 = vcombine.high %v1290_v6, %v1294_v17  ;;  %v17222_v23 = vcombine.low %v1290_v6, %v1294_v17 }
 0x304   :  { %v17224_v28 = vcombine.low %v1291_v11, %v1295_v7  ;;  %v1339_v6 = vld [vmem:[#allocation7 + $0xdd8] sm:$0xff] }
 0x305   :  { %4431 = vmatpush1.bf16.msra.mxu0 %v17166_v18  ;;  %v1302_v18 = vld [vmem:[#allocation7 + $0xcb0] sm:$0xff]  ;;  %v1343_v17 = vld [vmem:[#allocation7 + $0xdf8] sm:$0xff] }
 0x306   :  { %4595 = vmatpush1.bf16.msra.mxu1 %v17168_v0  ;;  %4432 = vmatprep.subr.bf16.mxu0 %v17175_v21  ;;  %v17225_v0 = vcombine.high %v1291_v11, %v1295_v7  ;;  %v1299_v21 = vld [vmem:[#allocation7 + $0xc98] sm:$0xff]  ;;  %v17231_v32 = vcombine.high %v1298_v16, %v1302_v18  ;;  %v17230_v39 = vcombine.low %v1298_v16, %v1302_v18 }
 0x307   :  { %4596 = vmatprep.subr.bf16.mxu1 %v17177_v22  ;;  %v1303_v22 = vld [vmem:[#allocation7 + $0xcb8] sm:$0xff]  ;;  %v17262_v7 = vcombine.low %v1330_v55, %v1334_v56 }
 0x308   :  { %v17233_v33 = vcombine.high %v1299_v21, %v1303_v22 }
 0x309   :  { %4433 = vmatpush1.bf16.msra.mxu0 %v17174_v34  ;;  %v1306_v34 = vld [vmem:[#allocation7 + $0xcd0] sm:$0xff] }
 0x30a   :  { %4597 = vmatpush1.bf16.msra.mxu1 %v17176_v5  ;;  %4434 = vmatprep.subr.bf16.mxu0 %v17183_v37  ;;  %v1310_v5 = vld [vmem:[#allocation7 + $0xcf0] sm:$0xff]  ;;  %v1307_v37 = vld [vmem:[#allocation7 + $0xcd8] sm:$0xff] }
 0x30b   :  { %4598 = vmatprep.subr.bf16.mxu1 %v17185_v38  ;;  %v1311_v38 = vld [vmem:[#allocation7 + $0xcf8] sm:$0xff]  ;;  %v17239_v20 = vcombine.high %v1306_v34, %v1310_v5 }
 0x30c   :  { %v17241_v41 = vcombine.high %v1307_v37, %v1311_v38 }
 0x30d   :  { %4435 = vmatpush1.bf16.msra.mxu0 %v17182_v52  ;;  %v1318_v52 = vld [vmem:[#allocation7 + $0xd30] sm:$0xff] }
 0x30e   :  { %4599 = vmatpush1.bf16.msra.mxu1 %v17184_v45  ;;  %4436 = vmatprep.subr.bf16.mxu0 %v17191_v46  ;;  %v1315_v45 = vld [vmem:[#allocation7 + $0xd18] sm:$0xff]  ;;  %v17247_v26 = vcombine.high %v1314_v42, %v1318_v52 }
 0x30f   :  { %4600 = vmatprep.subr.bf16.mxu1 %v17193_v47  ;;  %v1319_v46 = vld [vmem:[#allocation7 + $0xd38] sm:$0xff]  ;;  %v17240_v47 = vcombine.low %v1307_v37, %v1311_v38  ;;  %v1354_v37 = vld [vmem:[#allocation7 + $0xe50] sm:$0xff] }
 0x310   :  { %v17249_v31 = vcombine.high %v1315_v45, %v1319_v46  ;;  %v1358_v38 = vld [vmem:[#allocation7 + $0xe70] sm:$0xff] }
 0x311   :  { %4437 = vmatpush1.bf16.msra.mxu0 %v17190_v8  ;;  %v1323_v8 = vld [vmem:[#allocation7 + $0xd58] sm:$0xff] }
 0x312   :  { %4601 = vmatpush1.bf16.msra.mxu1 %v17192_v48  ;;  %4438 = vmatprep.subr.bf16.mxu0 %v17199_v49  ;;  %v1327_v48 = vld [vmem:[#allocation7 + $0xd78] sm:$0xff]  ;;  %v17246_v49 = vcombine.low %v1314_v42, %v1318_v52  ;;  %v17287_v42 = vcombine.high %v1354_v37, %v1358_v38 }
 0x313   :  { %4602 = vmatprep.subr.bf16.mxu1 %v17201_v50  ;;  %v17248_v50 = vcombine.low %v1315_v45, %v1319_v46  ;;  %v17257_v24 = vcombine.high %v1323_v8, %v1327_v48  ;;  %v1362_v45 = vld [vmem:[#allocation7 + $0xe90] sm:$0xff] }
 0x314   :  { %v1366_v46 = vld [vmem:[#allocation7 + $0xeb0] sm:$0xff] }
 0x315   :  { %4439 = vmatpush1.bf16.msra.mxu0 %v17198_v58  ;;  %v1331_v58 = vld [vmem:[#allocation7 + $0xd98] sm:$0xff] }
 0x316   :  { %4603 = vmatpush1.bf16.msra.mxu1 %v17200_v59  ;;  %4440 = vmatprep.subr.bf16.mxu0 %v17207_v25  ;;  %v1335_v59 = vld [vmem:[#allocation7 + $0xdb8] sm:$0xff]  ;;  %v17254_v25 = vcombine.low %v1322_v27, %v1326_v30  ;;  %v17295_v27 = vcombine.high %v1362_v45, %v1366_v46 }
 0x317   :  { %4604 = vmatprep.subr.bf16.mxu1 %v17209_v53  ;;  %v17256_v53 = vcombine.low %v1323_v8, %v1327_v48  ;;  %v17265_v2 = vcombine.high %v1331_v58, %v1335_v59  ;;  %v17264_v16 = vcombine.low %v1331_v58, %v1335_v59  ;;  %v1370_v8 = vld [vmem:[#allocation7 + $0xed0] sm:$0xff] }
 0x318   :  { %v1374_v48 = vld [vmem:[#allocation7 + $0xef0] sm:$0xff] }
 0x319   :  { %4441 = vmatpush1.bf16.msra.mxu0 %v17206_v43  ;;  %v1338_v43 = vld [vmem:[#allocation7 + $0xdd0] sm:$0xff]  ;;  %v17303_v55 = vcombine.high %v1370_v8, %v1374_v48 }
 0x31a   :  { %4605 = vmatpush1.bf16.msra.mxu1 %v17208_v61  ;;  %4451 = vmatprep.subr.bf16.mxu0 %v17215_v3  ;;  %v1342_v61 = vld [vmem:[#allocation7 + $0xdf0] sm:$0xff] }
 0x31b   :  { %4615 = vmatprep.subr.bf16.mxu1 %v17217_v4  ;;  %v17271_v18 = vcombine.high %v1338_v43, %v1342_v61  ;;  %v1378_v58 = vld [vmem:[#allocation7 + $0xf10] sm:$0xff] }
 0x31c   :  { %4443 = vmatmul.mubr.bf16.vlgmr.msra.gmra.mrb[12].mxu0 %v19769_v36  ;;  %v1382_v59 = vld [vmem:[#allocation7 + $0xf30] sm:$0xff] }
 0x31d   :  { %4607 = vmatmul.mubr.bf16.vlgmr.msra.gmra.mrb[12].mxu1 %v19769_v36  ;;  %4452 = vmatpush1.bf16.msra.mxu0 %v17214_v10  ;;  %v17232_v36 = vcombine.low %v1299_v21, %v1303_v22  ;;  %v1346_v21 = vld [vmem:[#allocation7 + $0xe10] sm:$0xff] }
 0x31e   :  { %4483 = vmatprep.mubr.bf16.mxu0 %v19773_v57  ;;  %4616 = vmatpush1.bf16.msra.mxu1 %v17216_v14  ;;  %v1350_v22 = vld [vmem:[#allocation7 + $0xe30] sm:$0xff] }
 0x31f   :  { %4647 = vmatprep.mubr.bf16.mxu1 %v19773_v57  ;;  %4453 = vmatprep.subr.bf16.mxu0 %v17223_v15  ;;  %v17238_v57 = vcombine.low %v1306_v34, %v1310_v5  ;;  %v17279_v34 = vcombine.high %v1346_v21, %v1350_v22 }
 0x320   :  { %4617 = vmatprep.subr.bf16.mxu1 %v17225_v0  ;;  %v17273_v0 = vcombine.high %v1339_v6, %v1343_v17 }
 0x321   :  { %4454 = vmatpush1.bf16.msra.mxu0 %v17222_v23  ;;  %v1347_v23 = vld [vmem:[#allocation7 + $0xe18] sm:$0xff] }
 0x322   :  { %4618 = vmatpush1.bf16.msra.mxu1 %v17224_v28  ;;  %4455 = vmatprep.subr.bf16.mxu0 %v17231_v32  ;;  %v1351_v28 = vld [vmem:[#allocation7 + $0xe38] sm:$0xff]  ;;  %v17270_v32 = vcombine.low %v1338_v43, %v1342_v61  ;;  %v17311_v43 = vcombine.high %v1378_v58, %v1382_v59 }
 0x323   :  { %4619 = vmatprep.subr.bf16.mxu1 %v17233_v33  ;;  %v17272_v33 = vcombine.low %v1339_v6, %v1343_v17  ;;  %v17281_v5 = vcombine.high %v1347_v23, %v1351_v28  ;;  %v1386_v6 = vld [vmem:[#allocation7 + $0xf50] sm:$0xff] }
 0x324   :  { %v1390_v17 = vld [vmem:[#allocation7 + $0xf70] sm:$0xff] }
 0x325   :  { %4456 = vmatpush1.bf16.msra.mxu0 %v17230_v39  ;;  %v1355_v39 = vld [vmem:[#allocation7 + $0xe58] sm:$0xff] }
 0x326   :  { %4620 = vmatpush1.bf16.msra.mxu1 %v17232_v36  ;;  %4457 = vmatprep.subr.bf16.mxu0 %v17239_v20  ;;  %v1359_v36 = vld [vmem:[#allocation7 + $0xe78] sm:$0xff]  ;;  %v17278_v20 = vcombine.low %v1346_v21, %v1350_v22  ;;  %v19812_v21 = vsub.s32 1, %v19691_v63 }
 0x327   :  { %4621 = vmatprep.subr.bf16.mxu1 %v17241_v41  ;;  %v17280_v41 = vcombine.low %v1347_v23, %v1351_v28  ;;  %v17289_v52 = vcombine.high %v1355_v39, %v1359_v36  ;;  %v1395_v22 = vld [vmem:[#allocation7 + $0xf98] sm:$0xff]  ;;  %v17318_v28 = vcombine.low %v1386_v6, %v1390_v17 }
 0x328   :  { %v1399_v23 = vld [vmem:[#allocation7 + $0xfb8] sm:$0xff] }
 0x329   :  { %4458 = vmatpush1.bf16.msra.mxu0 %v17238_v57  ;;  %v1363_v57 = vld [vmem:[#allocation7 + $0xe98] sm:$0xff] }
 0x32a   :  { %4622 = vmatpush1.bf16.msra.mxu1 %v17240_v47  ;;  %4459 = vmatprep.subr.bf16.mxu0 %v17247_v26  ;;  %v1367_v47 = vld [vmem:[#allocation7 + $0xeb8] sm:$0xff]  ;;  %v17286_v26 = vcombine.low %v1354_v37, %v1358_v38  ;;  %v1406_v37 = vld [vmem:[#allocation7 + $0xff0] sm:$0xff]  ;;  %v19225_v38 = vld [vmem:[#allocation14 + $0x8] sm:$0xff] }
 0x32b   :  { %4623 = vmatprep.subr.bf16.mxu1 %v17249_v31  ;;  %v17288_v31 = vcombine.low %v1355_v39, %v1359_v36  ;;  %v17297_v30 = vcombine.high %v1363_v57, %v1367_v47  ;;  %v1415_v39 = vrot.slane %v19225_v38, %v19812_v21  ;;  %v1403_v36 = vld [vmem:[#allocation7 + $0xfd8] sm:$0xff] }
 0x32d   :  { %4460 = vmatpush1.bf16.msra.mxu0 %v17246_v49  ;;  %v1371_v49 = vld [vmem:[#allocation7 + $0xed8] sm:$0xff] }
 0x32e   :  { %4624 = vmatpush1.bf16.msra.mxu1 %v17248_v50  ;;  %4461 = vmatprep.subr.bf16.mxu0 %v17255_v54  ;;  %v1375_v50 = vld [vmem:[#allocation7 + $0xef8] sm:$0xff]  ;;  %v17294_v54 = vcombine.low %v1362_v45, %v1366_v46  ;;  %v17328_v45 = vcombine.low %v1395_v22, %v1399_v23 }
 0x32f   :  { %v19803_v62 = vpop.f32.mrb[8].mxu0  ;;  %v19805_v1 = vpop.f32.mrb[8].mxu1  ;;  %4625 = vmatprep.subr.bf16.mxu1 %v17257_v24  ;;  %v17296_v24 = vcombine.low %v1363_v57, %v1367_v47  ;;  %v17305_v56 = vcombine.high %v1371_v49, %v1375_v50  ;;  %v4672_v47 = vld [vmem:[#allocation8] sm:$0xff] }
 0x330   :  { %v19807_v3 = vpop.f32.mrb[9].mxu0  ;;  %v19809_v4 = vpop.f32.mrb[9].mxu1 }
 0x331   :  { %v4161_v10 = vpop.f32.mrb[10].mxu0  ;;  %v4325_v11 = vpop.f32.mrb[10].mxu1  ;;  %4462 = vmatpush1.bf16.msra.mxu0 %v17254_v25  ;;  %v1379_v25 = vld [vmem:[#allocation7 + $0xf18] sm:$0xff] }
 0x332   :  { %4626 = vmatpush1.bf16.msra.mxu1 %v17256_v53  ;;  %v4162_v14 = vpop.f32.mrb[11].mxu0  ;;  %v4326_v15 = vpop.f32.mrb[11].mxu1  ;;  %4463 = vmatprep.subr.bf16.mxu0 %v17263_v19  ;;  %v1383_v53 = vld [vmem:[#allocation7 + $0xf38] sm:$0xff]  ;;  %v17302_v19 = vcombine.low %v1370_v8, %v1374_v48 }
 0x333   :  { %4627 = vmatprep.subr.bf16.mxu1 %v17265_v2  ;;  %v17304_v2 = vcombine.low %v1371_v49, %v1375_v50  ;;  %v17313_v61 = vcombine.high %v1379_v25, %v1383_v53  ;;  %v1387_v10 = vld [vmem:[#allocation7 + $0xf58] sm:$0xff]  ;;  %v17312_v14 = vcombine.low %v1379_v25, %v1383_v53  ;;  %v17319_v15 = vcombine.high %v1386_v6, %v1390_v17  ;;  %v4808_v25 = vld [vmem:[#allocation8 + $0x440] sm:$0xff] }
 0x334   :  { %v1391_v11 = vld [vmem:[#allocation7 + $0xf78] sm:$0xff]  ;;  %v4816_v6 = vld [vmem:[#allocation8 + $0x480] sm:$0xff] }
 0x335   :  { %4464 = vmatpush1.bf16.msra.mxu0 %v17262_v7  ;;  %v17310_v7 = vcombine.low %v1378_v58, %v1382_v59  ;;  %v4820_v17 = vld [vmem:[#allocation8 + $0x4a0] sm:$0xff] }
 0x336   :  { %4628 = vmatpush1.bf16.msra.mxu1 %v17264_v16  ;;  %4465 = vmatprep.subr.bf16.mxu0 %v17271_v18  ;;  %v17321_v16 = vcombine.high %v1387_v10, %v1391_v11  ;;  %v1394_v18 = vld [vmem:[#allocation7 + $0xf90] sm:$0xff] }
 0x337   :  { %4629 = vmatprep.subr.bf16.mxu1 %v17273_v0  ;;  %v1398_v0 = vld [vmem:[#allocation7 + $0xfb0] sm:$0xff] }
 0x339   :  { %4466 = vmatpush1.bf16.msra.mxu0 %v17270_v32  ;;  %v17320_v32 = vcombine.low %v1387_v10, %v1391_v11 }
 0x33a   :  { %4630 = vmatpush1.bf16.msra.mxu1 %v17272_v33  ;;  %4467 = vmatprep.subr.bf16.mxu0 %v17279_v34  ;;  %v17327_v33 = vcombine.high %v1394_v18, %v1398_v0  ;;  %v17329_v34 = vcombine.high %v1395_v22, %v1399_v23  ;;  %v4828_v22 = vld [vmem:[#allocation8 + $0x4e0] sm:$0xff] }
 0x33b   :  { %4631 = vmatprep.subr.bf16.mxu1 %v17281_v5  ;;  %v1402_v5 = vld [vmem:[#allocation7 + $0xfd0] sm:$0xff] }
 0x33c   :  { %v17335_v46 = vcombine.high %v1402_v5, %v1406_v37  ;;  %v17334_v48 = vcombine.low %v1402_v5, %v1406_v37  ;;  %v4832_v5 = vld [vmem:[#allocation8 + $0x500] sm:$0xff] }
 0x33d   :  { %4468 = vmatpush1.bf16.msra.mxu0 %v17278_v20  ;;  %v1407_v20 = vld [vmem:[#allocation7 + $0xff8] sm:$0xff]  ;;  %v4836_v37 = vld [vmem:[#allocation8 + $0x520] sm:$0xff] }
 0x33e   :  { %4632 = vmatpush1.bf16.msra.mxu1 %v17280_v41  ;;  %4469 = vmatprep.subr.bf16.mxu0 %v17287_v42  ;;  %v19226_v41 = vld [vmem:[#allocation14 + $0x18] sm:$0xff]  ;;  %v17337_v57 = vcombine.high %v1403_v36, %v1407_v20  ;;  %v17336_v49 = vcombine.low %v1403_v36, %v1407_v20  ;;  %v17499_v20 = vcombine.high %v4832_v5, %v4836_v37 }
 0x33f   :  { %4633 = vmatprep.subr.bf16.mxu1 %v17289_v52  ;;  %v1423_v42 = vrot.slane %v19226_v41, %v19812_v21  ;;  %v17326_v52 = vcombine.low %v1394_v18, %v1398_v0  ;;  %v4700_v18 = vld [vmem:[#allocation8 + $0xe0] sm:$0xff] }
 0x340   :  { %v4824_v0 = vld [vmem:[#allocation8 + $0x4c0] sm:$0xff] }
 0x341   :  { %4470 = vmatpush1.bf16.msra.mxu0 %v17286_v26  ;;  %v4676_v26 = vld [vmem:[#allocation8 + $0x20] sm:$0xff]  ;;  %v19029_v8 = vadd.f32 %v19809_v4, %v1423_v42 }
 0x342   :  { %4634 = vmatpush1.bf16.msra.mxu1 %v17288_v31  ;;  %4471 = vmatprep.subr.bf16.mxu0 %v17295_v27  ;;  %v19027_v31 = vadd.f32 %v19807_v3, %v1415_v39  ;;  %v4800_v27 = vld [vmem:[#allocation8 + $0x400] sm:$0xff]  ;;  %v17339_v50 = vcombine.high %v4672_v47, %v4676_v26  ;;  %v17338_v59 = vcombine.low %v4672_v47, %v4676_v26 }
 0x343   :  { %4635 = vmatprep.subr.bf16.mxu1 %v17297_v30  ;;  %v4804_v30 = vld [vmem:[#allocation8 + $0x420] sm:$0xff]  ;;  %v4659_v58 = vmax.f32 %v19029_v8, 0.0  ;;  %v17490_v39 = vcombine.low %v4824_v0, %v4828_v22 }
 0x344   :  { %v4812_v3 = vld [vmem:[#allocation8 + $0x460] sm:$0xff]  ;;  %v17466_v53 = vcombine.low %v4800_v27, %v4804_v30 }
 0x345   :  { %4472 = vmatpush1.bf16.msra.mxu0 %v17294_v54  ;;  %v17467_v54 = vcombine.high %v4800_v27, %v4804_v30  ;;  %v19821_v10 = vpack.c.bf16 %v4659_v58, %v4659_v58  ;;  %v4712_v41 = vld [vmem:[#allocation8 + $0x140] sm:$0xff] }
 0x346   :  { %4636 = vmatpush1.bf16.msra.mxu1 %v17296_v24  ;;  %4473 = vmatprep.subr.bf16.mxu0 %v17303_v55  ;;  %v4657_v24 = vmax.f32 %v19027_v31, 0.0  ;;  %v4680_v55 = vld [vmem:[#allocation8 + $0x40] sm:$0xff] }
 0x347   :  { %4637 = vmatprep.subr.bf16.mxu1 %v17305_v56  ;;  %v4684_v56 = vld [vmem:[#allocation8 + $0x60] sm:$0xff] }
 0x348   :  { %v17347_v4 = vcombine.high %v4680_v55, %v4684_v56  ;;  %v17346_v11 = vcombine.low %v4680_v55, %v4684_v56  ;;  %v4716_v42 = vld [vmem:[#allocation8 + $0x160] sm:$0xff] }
 0x349   :  { %4474 = vmatpush1.bf16.msra.mxu0 %v17302_v19  ;;  %v4688_v19 = vld [vmem:[#allocation8 + $0x80] sm:$0xff]  ;;  %v17379_v47 = vcombine.high %v4712_v41, %v4716_v42 }
 0x34a   :  { %4638 = vmatpush1.bf16.msra.mxu1 %v17304_v2  ;;  %4475 = vmatprep.subr.bf16.mxu0 %v17311_v43  ;;  %v4692_v2 = vld [vmem:[#allocation8 + $0xa0] sm:$0xff]  ;;  %v19818_v43 = vpack.c.bf16 %v4657_v24, %v4657_v24 }
 0x34b   :  { %4639 = vmatprep.subr.bf16.mxu1 %v17313_v61  ;;  %v17475_v61 = vcombine.high %v4808_v25, %v4812_v3  ;;  %v17354_v23 = vcombine.low %v4688_v19, %v4692_v2  ;;  %v4720_v31 = vld [vmem:[#allocation8 + $0x180] sm:$0xff] }
 0x34c   :  { %v4724_v27 = vld [vmem:[#allocation8 + $0x1a0] sm:$0xff] }
 0x34d   :  { %4476 = vmatpush1.bf16.msra.mxu0 %v17310_v7  ;;  %v17474_v7 = vcombine.low %v4808_v25, %v4812_v3  ;;  %v4848_v30 = vld [vmem:[#allocation8 + $0x580] sm:$0xff] }
 0x34e   :  { %4640 = vmatpush1.bf16.msra.mxu1 %v17312_v14  ;;  %4477 = vmatprep.subr.bf16.mxu0 %v17319_v15  ;;  %v17355_v14 = vcombine.high %v4688_v19, %v4692_v2  ;;  %v17483_v15 = vcombine.high %v4816_v6, %v4820_v17  ;;  %v4852_v8 = vld [vmem:[#allocation8 + $0x5a0] sm:$0xff] }
 0x34f   :  { %4641 = vmatprep.subr.bf16.mxu1 %v17321_v16  ;;  %v4696_v16 = vld [vmem:[#allocation8 + $0xc0] sm:$0xff]  ;;  %v17514_v25 = vcombine.low %v4848_v30, %v4852_v8 }
 0x350   :  { %v17362_v38 = vcombine.low %v4696_v16, %v4700_v18  ;;  %v4728_v24 = vld [vmem:[#allocation8 + $0x1c0] sm:$0xff] }
 0x351   :  { %4478 = vmatpush1.bf16.msra.mxu0 %v17318_v28  ;;  %v17363_v28 = vcombine.high %v4696_v16, %v4700_v18  ;;  %v4732_v55 = vld [vmem:[#allocation8 + $0x1e0] sm:$0xff] }
 0x352   :  { %4642 = vmatpush1.bf16.msra.mxu1 %v17320_v32  ;;  %4479 = vmatprep.subr.bf16.mxu0 %v17327_v33  ;;  %v17491_v32 = vcombine.high %v4824_v0, %v4828_v22  ;;  %v4704_v33 = vld [vmem:[#allocation8 + $0x100] sm:$0xff]  ;;  %v17395_v3 = vcombine.high %v4728_v24, %v4732_v55 }
 0x353   :  { %4643 = vmatprep.subr.bf16.mxu1 %v17329_v34  ;;  %v4708_v34 = vld [vmem:[#allocation8 + $0x120] sm:$0xff] }
 0x354   :  { %v17371_v36 = vcombine.high %v4704_v33, %v4708_v34  ;;  %v4856_v56 = vld [vmem:[#allocation8 + $0x5c0] sm:$0xff] }
 0x355   :  { %4480 = vmatpush1.bf16.msra.mxu0 %v17326_v52  ;;  %v4840_v52 = vld [vmem:[#allocation8 + $0x540] sm:$0xff] }
 0x356   :  { %4644 = vmatpush1.bf16.msra.mxu1 %v17328_v45  ;;  %4481 = vmatprep.subr.bf16.mxu0 %v17335_v46  ;;  %v4844_v45 = vld [vmem:[#allocation8 + $0x560] sm:$0xff]  ;;  %v17370_v46 = vcombine.low %v4704_v33, %v4708_v34 }
 0x357   :  { %4645 = vmatprep.subr.bf16.mxu1 %v17337_v57  ;;  %v17498_v57 = vcombine.low %v4832_v5, %v4836_v37  ;;  %v17507_v26 = vcombine.high %v4840_v52, %v4844_v45  ;;  %v4860_v58 = vld [vmem:[#allocation8 + $0x5e0] sm:$0xff] }
 0x358   :  { %v4740_v19 = vld [vmem:[#allocation8 + $0x220] sm:$0xff] }
 0x359   :  { %4482 = vmatpush1.bf16.msra.mxu0 %v17334_v48  ;;  %v17378_v48 = vcombine.low %v4712_v41, %v4716_v42  ;;  %v4864_v2 = vld [vmem:[#allocation8 + $0x600] sm:$0xff] }
 0x35a   :  { %4646 = vmatpush1.bf16.msra.mxu1 %v17336_v49  ;;  %7744 = vmatprep.subr.bf16.mxu0 %v17339_v50  ;;  %v17506_v49 = vcombine.low %v4840_v52, %v4844_v45  ;;  %v17387_v50 = vcombine.high %v4720_v31, %v4724_v27  ;;  %v4872_v16 = vld [vmem:[#allocation8 + $0x640] sm:$0xff] }
 0x35b   :  { %7785 = vmatprep.subr.bf16.mxu1 %v17467_v54  ;;  %v17515_v54 = vcombine.high %v4848_v30, %v4852_v8  ;;  %v4876_v18 = vld [vmem:[#allocation8 + $0x660] sm:$0xff] }
 0x35c   :  { %4484 = vmatmul.mubr.bf16.vlgmr.msra.gmra.mrb[12].mxu0 %v19785_v40  ;;  %v4880_v33 = vld [vmem:[#allocation8 + $0x680] sm:$0xff]  ;;  %v17538_v37 = vcombine.low %v4872_v16, %v4876_v18 }
 0x35d   :  { %4648 = vmatmul.mubr.bf16.vlgmr.msra.gmra.mrb[12].mxu1 %v19785_v40  ;;  %7745 = vmatpush1.bf16.msra.mxu0 %v17338_v59  ;;  %v17482_v40 = vcombine.low %v4816_v6, %v4820_v17  ;;  %v17386_v59 = vcombine.low %v4720_v31, %v4724_v27  ;;  %v17394_v6 = vcombine.low %v4728_v24, %v4732_v55  ;;  %v4884_v34 = vld [vmem:[#allocation8 + $0x6a0] sm:$0xff] }
 0x35e   :  { %7776 = vmatprep.mubr.bf16.mxu0 %v19818_v43  ;;  %7786 = vmatpush1.bf16.msra.mxu1 %v17466_v53  ;;  %v17523_v53 = vcombine.high %v4856_v56, %v4860_v58  ;;  %v17522_v17 = vcombine.low %v4856_v56, %v4860_v58  ;;  %v4888_v41 = vld [vmem:[#allocation8 + $0x6c0] sm:$0xff]  ;;  %v17546_v45 = vcombine.low %v4880_v33, %v4884_v34 }
 0x35f   :  { %7817 = vmatprep.mubr.bf16.mxu1 %v19821_v10  ;;  %7746 = vmatprep.subr.bf16.mxu0 %v17347_v4  ;;  %v4736_v4 = vld [vmem:[#allocation8 + $0x200] sm:$0xff] }
 0x360   :  { %7787 = vmatprep.subr.bf16.mxu1 %v17475_v61  ;;  %v4868_v61 = vld [vmem:[#allocation8 + $0x620] sm:$0xff]  ;;  %v17402_v0 = vcombine.low %v4736_v4, %v4740_v19 }
 0x361   :  { %7747 = vmatpush1.bf16.msra.mxu0 %v17346_v11  ;;  %v17403_v11 = vcombine.high %v4736_v4, %v4740_v19  ;;  %v17530_v22 = vcombine.low %v4864_v2, %v4868_v61  ;;  %v4892_v42 = vld [vmem:[#allocation8 + $0x6e0] sm:$0xff] }
 0x362   :  { %7788 = vmatpush1.bf16.msra.mxu1 %v17474_v7  ;;  %7748 = vmatprep.subr.bf16.mxu0 %v17355_v14  ;;  %v17531_v7 = vcombine.high %v4864_v2, %v4868_v61  ;;  %v4744_v14 = vld [vmem:[#allocation8 + $0x240] sm:$0xff]  ;;  %v17554_v8 = vcombine.low %v4888_v41, %v4892_v42 }
 0x363   :  { %7789 = vmatprep.subr.bf16.mxu1 %v17483_v15  ;;  %v4748_v15 = vld [vmem:[#allocation8 + $0x260] sm:$0xff] }
 0x364   :  { %v17410_v5 = vcombine.low %v4744_v14, %v4748_v15  ;;  %v4896_v31 = vld [vmem:[#allocation8 + $0x700] sm:$0xff] }
 0x365   :  { %7749 = vmatpush1.bf16.msra.mxu0 %v17354_v23  ;;  %v17411_v23 = vcombine.high %v4744_v14, %v4748_v15  ;;  %v4900_v27 = vld [vmem:[#allocation8 + $0x720] sm:$0xff] }
 0x366   :  { %7790 = vmatpush1.bf16.msra.mxu1 %v17482_v40  ;;  %7750 = vmatprep.subr.bf16.mxu0 %v17363_v28  ;;  %v17539_v40 = vcombine.high %v4872_v16, %v4876_v18  ;;  %v4752_v28 = vld [vmem:[#allocation8 + $0x280] sm:$0xff]  ;;  %v17562_v58 = vcombine.low %v4896_v31, %v4900_v27 }
 0x367   :  { %7791 = vmatprep.subr.bf16.mxu1 %v17491_v32  ;;  %v4756_v32 = vld [vmem:[#allocation8 + $0x2a0] sm:$0xff] }
 0x368   :  { %v17418_v52 = vcombine.low %v4752_v28, %v4756_v32  ;;  %v4904_v24 = vld [vmem:[#allocation8 + $0x740] sm:$0xff] }
 0x369   :  { %7751 = vmatpush1.bf16.msra.mxu0 %v17362_v38  ;;  %v17419_v38 = vcombine.high %v4752_v28, %v4756_v32  ;;  %v4908_v55 = vld [vmem:[#allocation8 + $0x760] sm:$0xff] }
 0x36a   :  { %7792 = vmatpush1.bf16.msra.mxu1 %v17490_v39  ;;  %7752 = vmatprep.subr.bf16.mxu0 %v17371_v36  ;;  %v17547_v39 = vcombine.high %v4880_v33, %v4884_v34  ;;  %v4760_v36 = vld [vmem:[#allocation8 + $0x2c0] sm:$0xff] }
 0x36b   :  { %7793 = vmatprep.subr.bf16.mxu1 %v17499_v20  ;;  %v4764_v20 = vld [vmem:[#allocation8 + $0x2e0] sm:$0xff] }
 0x36c   :  { %v17426_v30 = vcombine.low %v4760_v36, %v4764_v20  ;;  %v4912_v4 = vld [vmem:[#allocation8 + $0x780] sm:$0xff] }
 0x36d   :  { %7753 = vmatpush1.bf16.msra.mxu0 %v17370_v46  ;;  %v17427_v46 = vcombine.high %v4760_v36, %v4764_v20  ;;  %v4916_v19 = vld [vmem:[#allocation8 + $0x7a0] sm:$0xff] }
 0x36e   :  { %7794 = vmatpush1.bf16.msra.mxu1 %v17498_v57  ;;  %7754 = vmatprep.subr.bf16.mxu0 %v17379_v47  ;;  %v17555_v57 = vcombine.high %v4888_v41, %v4892_v42  ;;  %v4768_v47 = vld [vmem:[#allocation8 + $0x300] sm:$0xff]  ;;  %v17579_v15 = vcombine.high %v4912_v4, %v4916_v19  ;;  %v17578_v28 = vcombine.low %v4912_v4, %v4916_v19 }
 0x36f   :  { %7795 = vmatprep.subr.bf16.mxu1 %v17507_v26  ;;  %v4772_v26 = vld [vmem:[#allocation8 + $0x320] sm:$0xff] }
 0x370   :  { %v17434_v56 = vcombine.low %v4768_v47, %v4772_v26  ;;  %v19227_v61 = vld [vmem:[#allocation14] sm:$0xff] }
 0x371   :  { %7755 = vmatpush1.bf16.msra.mxu0 %v17378_v48  ;;  %v17435_v48 = vcombine.high %v4768_v47, %v4772_v26  ;;  %v4792_v16 = vld [vmem:[#allocation8 + $0x3c0] sm:$0xff] }
 0x372   :  { %7796 = vmatpush1.bf16.msra.mxu1 %v17506_v49  ;;  %7756 = vmatprep.subr.bf16.mxu0 %v17387_v50  ;;  %v17563_v49 = vcombine.high %v4896_v31, %v4900_v27  ;;  %v4776_v50 = vld [vmem:[#allocation8 + $0x340] sm:$0xff] }
 0x373   :  { %7797 = vmatprep.subr.bf16.mxu1 %v17515_v54  ;;  %v4780_v54 = vld [vmem:[#allocation8 + $0x360] sm:$0xff] }
 0x374   :  { %v17442_v2 = vcombine.low %v4776_v50, %v4780_v54  ;;  %v4796_v18 = vld [vmem:[#allocation8 + $0x3e0] sm:$0xff] }
 0x375   :  { %7757 = vmatpush1.bf16.msra.mxu0 %v17386_v59  ;;  %v17443_v59 = vcombine.high %v4776_v50, %v4780_v54  ;;  %v17459_v32 = vcombine.high %v4792_v16, %v4796_v18  ;;  %v17458_v36 = vcombine.low %v4792_v16, %v4796_v18  ;;  %v5072_v50 = vld [vmem:[#allocation8 + $0xc80] sm:$0xff] }
 0x376   :  { %7798 = vmatpush1.bf16.msra.mxu1 %v17514_v25  ;;  %7758 = vmatprep.subr.bf16.mxu0 %v17395_v3  ;;  %v17571_v25 = vcombine.high %v4904_v24, %v4908_v55  ;;  %v4784_v3 = vld [vmem:[#allocation8 + $0x380] sm:$0xff] }
 0x377   :  { %7799 = vmatprep.subr.bf16.mxu1 %v17523_v53  ;;  %v4788_v53 = vld [vmem:[#allocation8 + $0x3a0] sm:$0xff] }
 0x378   :  { %v5076_v54 = vld [vmem:[#allocation8 + $0xca0] sm:$0xff] }
 0x379   :  { %7759 = vmatpush1.bf16.msra.mxu0 %v17394_v6  ;;  %v1411_v6 = vrot.slane %v19227_v61, %v19812_v21  ;;  %v17738_v19 = vcombine.low %v5072_v50, %v5076_v54 }
 0x37a   :  { %7800 = vmatpush1.bf16.msra.mxu1 %v17522_v17  ;;  %7760 = vmatprep.subr.bf16.mxu0 %v17403_v11  ;;  %v17570_v17 = vcombine.low %v4904_v24, %v4908_v55  ;;  %v17451_v11 = vcombine.high %v4784_v3, %v4788_v53 }
 0x37b   :  { %7801 = vmatprep.subr.bf16.mxu1 %v17531_v7  ;;  %v19228_v7 = vld [vmem:[#allocation14 + $0x10] sm:$0xff] }
 0x37c   :  { %v1419_v14 = vrot.slane %v19228_v7, %v19812_v21  ;;  %v5092_v7 = vld [vmem:[#allocation8 + $0xd20] sm:$0xff] }
 0x37d   :  { %7761 = vmatpush1.bf16.msra.mxu0 %v17402_v0  ;;  %v4920_v0 = vld [vmem:[#allocation8 + $0x7c0] sm:$0xff] }
 0x37e   :  { %7802 = vmatpush1.bf16.msra.mxu1 %v17530_v22  ;;  %7762 = vmatprep.subr.bf16.mxu0 %v17411_v23  ;;  %v4924_v22 = vld [vmem:[#allocation8 + $0x7e0] sm:$0xff]  ;;  %v17450_v23 = vcombine.low %v4784_v3, %v4788_v53  ;;  %v19028_v33 = vadd.f32 %v19805_v1, %v1419_v14 }
 0x37f   :  { %7803 = vmatprep.subr.bf16.mxu1 %v17539_v40  ;;  %v19026_v40 = vadd.f32 %v19803_v62, %v1411_v6  ;;  %v17587_v34 = vcombine.high %v4920_v0, %v4924_v22  ;;  %v17586_v41 = vcombine.low %v4920_v0, %v4924_v22  ;;  %v5068_v1 = vld [vmem:[#allocation8 + $0xc60] sm:$0xff] }
 0x380   :  { %v4658_v62 = vmax.f32 %v19028_v33, 0.0  ;;  %v5080_v3 = vld [vmem:[#allocation8 + $0xcc0] sm:$0xff] }
 0x381   :  { %7763 = vmatpush1.bf16.msra.mxu0 %v17410_v5  ;;  %v4928_v5 = vld [vmem:[#allocation8 + $0x800] sm:$0xff]  ;;  %v4656_v20 = vmax.f32 %v19026_v40, 0.0 }
 0x382   :  { %7804 = vmatpush1.bf16.msra.mxu1 %v17538_v37  ;;  %7764 = vmatprep.subr.bf16.mxu0 %v17419_v38  ;;  %v4932_v37 = vld [vmem:[#allocation8 + $0x820] sm:$0xff] }
 0x383   :  { %7805 = vmatprep.subr.bf16.mxu1 %v17547_v39  ;;  %v5056_v38 = vld [vmem:[#allocation8 + $0xc00] sm:$0xff]  ;;  %v17595_v42 = vcombine.high %v4928_v5, %v4932_v37  ;;  %v17594_v47 = vcombine.low %v4928_v5, %v4932_v37  ;;  %v19830_v26 = vpack.c.bf16 %v4656_v20, %v4656_v20 }
 0x384   :  { %v5060_v39 = vld [vmem:[#allocation8 + $0xc20] sm:$0xff] }
 0x385   :  { %7765 = vmatpush1.bf16.msra.mxu0 %v17418_v52  ;;  %v17723_v52 = vcombine.high %v5056_v38, %v5060_v39  ;;  %v17722_v31 = vcombine.low %v5056_v38, %v5060_v39  ;;  %v5084_v53 = vld [vmem:[#allocation8 + $0xce0] sm:$0xff] }
 0x386   :  { %7806 = vmatpush1.bf16.msra.mxu1 %v17546_v45  ;;  %7766 = vmatprep.subr.bf16.mxu0 %v17427_v46  ;;  %v4936_v45 = vld [vmem:[#allocation8 + $0x840] sm:$0xff]  ;;  %v17747_v61 = vcombine.high %v5080_v3, %v5084_v53 }
 0x387   :  { %7807 = vmatprep.subr.bf16.mxu1 %v17555_v57  ;;  %v4940_v46 = vld [vmem:[#allocation8 + $0x860] sm:$0xff] }
 0x388   :  { %v5064_v57 = vld [vmem:[#allocation8 + $0xc40] sm:$0xff]  ;;  %v17603_v27 = vcombine.high %v4936_v45, %v4940_v46  ;;  %v17602_v24 = vcombine.low %v4936_v45, %v4940_v46 }
 0x389   :  { %7767 = vmatpush1.bf16.msra.mxu0 %v17426_v30  ;;  %v19832_v30 = vpack.c.bf16 %v4658_v62, %v4658_v62  ;;  %v17730_v55 = vcombine.low %v5064_v57, %v5068_v1  ;;  %v4960_v6 = vld [vmem:[#allocation8 + $0x900] sm:$0xff] }
 0x38a   :  { %7808 = vmatpush1.bf16.msra.mxu1 %v17554_v8  ;;  %7768 = vmatprep.subr.bf16.mxu0 %v17435_v48  ;;  %v17731_v8 = vcombine.high %v5064_v57, %v5068_v1  ;;  %v4944_v48 = vld [vmem:[#allocation8 + $0x880] sm:$0xff] }
 0x38b   :  { %7809 = vmatprep.subr.bf16.mxu1 %v17563_v49  ;;  %v4948_v49 = vld [vmem:[#allocation8 + $0x8a0] sm:$0xff] }
 0x38c   :  { %v17610_v4 = vcombine.low %v4944_v48, %v4948_v49  ;;  %v4968_v0 = vld [vmem:[#allocation8 + $0x940] sm:$0xff] }
 0x38d   :  { %7769 = vmatpush1.bf16.msra.mxu0 %v17434_v56  ;;  %v17611_v56 = vcombine.high %v4944_v48, %v4948_v49  ;;  %v4972_v22 = vld [vmem:[#allocation8 + $0x960] sm:$0xff] }
 0x38e   :  { %7810 = vmatpush1.bf16.msra.mxu1 %v17562_v58  ;;  %7770 = vmatprep.subr.bf16.mxu0 %v17443_v59  ;;  %v17739_v58 = vcombine.high %v5072_v50, %v5076_v54  ;;  %v4952_v59 = vld [vmem:[#allocation8 + $0x8c0] sm:$0xff]  ;;  %v17635_v33 = vcombine.high %v4968_v0, %v4972_v22 }
 0x38f   :  { %7811 = vmatprep.subr.bf16.mxu1 %v17571_v25  ;;  %v4956_v25 = vld [vmem:[#allocation8 + $0x8e0] sm:$0xff] }
 0x390   :  { %v17618_v14 = vcombine.low %v4952_v59, %v4956_v25  ;;  %v5100_v40 = vld [vmem:[#allocation8 + $0xd60] sm:$0xff] }
 0x391   :  { %7771 = vmatpush1.bf16.msra.mxu0 %v17442_v2  ;;  %v17619_v2 = vcombine.high %v4952_v59, %v4956_v25  ;;  %v4976_v5 = vld [vmem:[#allocation8 + $0x980] sm:$0xff] }
 0x392   :  { %7812 = vmatpush1.bf16.msra.mxu1 %v17570_v17  ;;  %7772 = vmatprep.subr.bf16.mxu0 %v17451_v11  ;;  %v4964_v17 = vld [vmem:[#allocation8 + $0x920] sm:$0xff] }
 0x393   :  { %7813 = vmatprep.subr.bf16.mxu1 %v17579_v15  ;;  %v5088_v11 = vld [vmem:[#allocation8 + $0xd00] sm:$0xff]  ;;  %v17746_v15 = vcombine.low %v5080_v3, %v5084_v53  ;;  %v17627_v16 = vcombine.high %v4960_v6, %v4964_v17  ;;  %v19842_v53 = vld [vmem:[#allocation8 + $0x428] sm:$0xff] }
 0x394   :  { %v17755_v18 = vcombine.high %v5088_v11, %v5092_v7  ;;  %v4980_v37 = vld [vmem:[#allocation8 + $0x9a0] sm:$0xff] }
 0x395   :  { %7773 = vmatpush1.bf16.msra.mxu0 %v17450_v23  ;;  %v5096_v23 = vld [vmem:[#allocation8 + $0xd40] sm:$0xff]  ;;  %v17642_v57 = vcombine.low %v4976_v5, %v4980_v37 }
 0x396   :  { %7814 = vmatpush1.bf16.msra.mxu1 %v17578_v28  ;;  %7774 = vmatprep.subr.bf16.mxu0 %v17459_v32  ;;  %v17626_v28 = vcombine.low %v4960_v6, %v4964_v17  ;;  %v17754_v32 = vcombine.low %v5088_v11, %v5092_v7  ;;  %v5104_v38 = vld [vmem:[#allocation8 + $0xd80] sm:$0xff]  ;;  %v17762_v20 = vcombine.low %v5096_v23, %v5100_v40 }
 0x397   :  { %7815 = vmatprep.subr.bf16.mxu1 %v17587_v34  ;;  %v17763_v34 = vcombine.high %v5096_v23, %v5100_v40  ;;  %v5108_v39 = vld [vmem:[#allocation8 + $0xda0] sm:$0xff] }
 0x398   :  { %v4984_v62 = vld [vmem:[#allocation8 + $0x9c0] sm:$0xff]  ;;  %v17770_v1 = vcombine.low %v5104_v38, %v5108_v39 }
 0x399   :  { %7775 = vmatpush1.bf16.msra.mxu0 %v17458_v36  ;;  %v17634_v36 = vcombine.low %v4968_v0, %v4972_v22  ;;  %v5112_v45 = vld [vmem:[#allocation8 + $0xdc0] sm:$0xff] }
 0x39a   :  { %7816 = vmatpush1.bf16.msra.mxu1 %v17586_v41  ;;  %7826 = vmatprep.subr.bf16.mxu0 %v17595_v42  ;;  %v17643_v41 = vcombine.high %v4976_v5, %v4980_v37  ;;  %v17771_v42 = vcombine.high %v5104_v38, %v5108_v39  ;;  %v5116_v46 = vld [vmem:[#allocation8 + $0xde0] sm:$0xff] }
 0x39b   :  { %7867 = vmatprep.subr.bf16.mxu1 %v17723_v52  ;;  %v4988_v52 = vld [vmem:[#allocation8 + $0x9e0] sm:$0xff]  ;;  %v17778_v54 = vcombine.low %v5112_v45, %v5116_v46 }
 0x39c   :  { %7777 = vmatmul.mubr.bf16.vlgmr.msra.gmra.mrb[16].mxu0 %v19830_v26  ;;  %v5120_v48 = vld [vmem:[#allocation8 + $0xe00] sm:$0xff]  ;;  %v17650_v50 = vcombine.low %v4984_v62, %v4988_v52 }
 0x39d   :  { %7818 = vmatmul.mubr.bf16.vlgmr.msra.gmra.mrb[16].mxu1 %v19832_v30  ;;  %7827 = vmatpush1.bf16.msra.mxu0 %v17594_v47  ;;  %v17651_v47 = vcombine.high %v4984_v62, %v4988_v52  ;;  %v5124_v49 = vld [vmem:[#allocation8 + $0xe20] sm:$0xff] }
 0x39e   :  { %7868 = vmatpush1.bf16.msra.mxu1 %v17722_v31  ;;  %7828 = vmatprep.subr.bf16.mxu0 %v17603_v27  ;;  %v17779_v31 = vcombine.high %v5112_v45, %v5116_v46  ;;  %v4992_v27 = vld [vmem:[#allocation8 + $0xa00] sm:$0xff]  ;;  %v17787_v59 = vcombine.high %v5120_v48, %v5124_v49  ;;  %v17786_v17 = vcombine.low %v5120_v48, %v5124_v49 }
 0x39f   :  { %7869 = vmatprep.subr.bf16.mxu1 %v17731_v8  ;;  %v4996_v8 = vld [vmem:[#allocation8 + $0xa20] sm:$0xff] }
 0x3a0   :  { %v5000_v25 = vld [vmem:[#allocation8 + $0xa40] sm:$0xff]  ;;  %v17658_v6 = vcombine.low %v4992_v27, %v4996_v8 }
 0x3a1   :  { %7829 = vmatpush1.bf16.msra.mxu0 %v17602_v24  ;;  %v17659_v24 = vcombine.high %v4992_v27, %v4996_v8  ;;  %v5004_v3 = vld [vmem:[#allocation8 + $0xa60] sm:$0xff] }
 0x3a2   :  { %7870 = vmatpush1.bf16.msra.mxu1 %v17730_v55  ;;  %7830 = vmatprep.subr.bf16.mxu0 %v17611_v56  ;;  %v19836_v55 = vld [vmem:[#allocation8 + $0x8] sm:$0xff]  ;;  %v17667_v11 = vcombine.high %v5000_v25, %v5004_v3  ;;  %v17666_v0 = vcombine.low %v5000_v25, %v5004_v3 }
 0x3a3   :  { %7871 = vmatprep.subr.bf16.mxu1 %v17739_v58  ;;  %v19838_v56 = vld [vmem:[#allocation8 + $0x28] sm:$0xff] }
 0x3a4   :  { %v19840_v58 = vld [vmem:[#allocation8 + $0x408] sm:$0xff] }
 0x3a5   :  { %7831 = vmatpush1.bf16.msra.mxu0 %v17610_v4  ;;  %v5128_v4 = vld [vmem:[#allocation8 + $0xe40] sm:$0xff] }
 0x3a6   :  { %7872 = vmatpush1.bf16.msra.mxu1 %v17738_v19  ;;  %7832 = vmatprep.subr.bf16.mxu0 %v17619_v2  ;;  %v5132_v19 = vld [vmem:[#allocation8 + $0xe60] sm:$0xff]  ;;  %v17340_v2 = vcombine.low %v19836_v55, %v19838_v56 }
 0x3a7   :  { %7873 = vmatprep.subr.bf16.mxu1 %v17747_v61  ;;  %v17468_v61 = vcombine.low %v19840_v58, %v19842_v53  ;;  %v17795_v7 = vcombine.high %v5128_v4, %v5132_v19  ;;  %v17794_v22 = vcombine.low %v5128_v4, %v5132_v19 }
 0x3a9   :  { %7833 = vmatpush1.bf16.msra.mxu0 %v17618_v14  ;;  %v5008_v14 = vld [vmem:[#allocation8 + $0xa80] sm:$0xff] }
 0x3aa   :  { %7874 = vmatpush1.bf16.msra.mxu1 %v17746_v15  ;;  %7834 = vmatprep.subr.bf16.mxu0 %v17627_v16  ;;  %v5012_v15 = vld [vmem:[#allocation8 + $0xaa0] sm:$0xff] }
 0x3ab   :  { %7875 = vmatprep.subr.bf16.mxu1 %v17755_v18  ;;  %v5136_v16 = vld [vmem:[#allocation8 + $0xe80] sm:$0xff]  ;;  %v17675_v23 = vcombine.high %v5008_v14, %v5012_v15  ;;  %v17674_v5 = vcombine.low %v5008_v14, %v5012_v15 }
 0x3ac   :  { %v5140_v18 = vld [vmem:[#allocation8 + $0xea0] sm:$0xff] }
 0x3ad   :  { %7835 = vmatpush1.bf16.msra.mxu0 %v17626_v28  ;;  %v17803_v40 = vcombine.high %v5136_v16, %v5140_v18  ;;  %v5016_v28 = vld [vmem:[#allocation8 + $0xac0] sm:$0xff]  ;;  %v17802_v37 = vcombine.low %v5136_v16, %v5140_v18 }
 0x3ae   :  { %7876 = vmatpush1.bf16.msra.mxu1 %v17754_v32  ;;  %7836 = vmatprep.subr.bf16.mxu0 %v17635_v33  ;;  %v5020_v32 = vld [vmem:[#allocation8 + $0xae0] sm:$0xff] }
 0x3af   :  { %7877 = vmatprep.subr.bf16.mxu1 %v17763_v34  ;;  %v5144_v33 = vld [vmem:[#allocation8 + $0xec0] sm:$0xff]  ;;  %v17683_v38 = vcombine.high %v5016_v28, %v5020_v32  ;;  %v17682_v62 = vcombine.low %v5016_v28, %v5020_v32 }
 0x3b0   :  { %v5148_v34 = vld [vmem:[#allocation8 + $0xee0] sm:$0xff] }
 0x3b1   :  { %7837 = vmatpush1.bf16.msra.mxu0 %v17634_v36  ;;  %v17811_v39 = vcombine.high %v5144_v33, %v5148_v34  ;;  %v5024_v36 = vld [vmem:[#allocation8 + $0xb00] sm:$0xff]  ;;  %v17810_v52 = vcombine.low %v5144_v33, %v5148_v34  ;;  %v19230_v33 = vld [vmem:[#allocation14 + $0x30] sm:$0xff] }
 0x3b2   :  { %7878 = vmatpush1.bf16.msra.mxu1 %v17762_v20  ;;  %7838 = vmatprep.subr.bf16.mxu0 %v17643_v41  ;;  %v5028_v20 = vld [vmem:[#allocation8 + $0xb20] sm:$0xff]  ;;  %v1435_v34 = vrot.slane %v19230_v33, %v19812_v21  ;;  %v4837_v33 = vld [vmem:[#allocation8 + $0x528] sm:$0xff] }
 0x3b3   :  { %7879 = vmatprep.subr.bf16.mxu1 %v17771_v42  ;;  %v5152_v41 = vld [vmem:[#allocation8 + $0xf00] sm:$0xff]  ;;  %v17691_v45 = vcombine.high %v5024_v36, %v5028_v20  ;;  %v17690_v27 = vcombine.low %v5024_v36, %v5028_v20 }
 0x3b4   :  { %v5156_v42 = vld [vmem:[#allocation8 + $0xf20] sm:$0xff] }
 0x3b5   :  { %7839 = vmatpush1.bf16.msra.mxu0 %v17642_v57  ;;  %v17819_v46 = vcombine.high %v5152_v41, %v5156_v42  ;;  %v5032_v57 = vld [vmem:[#allocation8 + $0xb40] sm:$0xff]  ;;  %v17818_v8 = vcombine.low %v5152_v41, %v5156_v42 }
 0x3b6   :  { %7880 = vmatpush1.bf16.msra.mxu1 %v17770_v1  ;;  %7840 = vmatprep.subr.bf16.mxu0 %v17651_v47  ;;  %v5036_v1 = vld [vmem:[#allocation8 + $0xb60] sm:$0xff] }
 0x3b7   :  { %7881 = vmatprep.subr.bf16.mxu1 %v17779_v31  ;;  %v5160_v47 = vld [vmem:[#allocation8 + $0xf40] sm:$0xff]  ;;  %v17699_v48 = vcombine.high %v5032_v57, %v5036_v1  ;;  %v17698_v25 = vcombine.low %v5032_v57, %v5036_v1 }
 0x3b8   :  { %v5164_v31 = vld [vmem:[#allocation8 + $0xf60] sm:$0xff] }
 0x3b9   :  { %7841 = vmatpush1.bf16.msra.mxu0 %v17650_v50  ;;  %v17827_v49 = vcombine.high %v5160_v47, %v5164_v31  ;;  %v5040_v50 = vld [vmem:[#allocation8 + $0xb80] sm:$0xff]  ;;  %v17826_v3 = vcombine.low %v5160_v47, %v5164_v31 }
 0x3ba   :  { %7882 = vmatpush1.bf16.msra.mxu1 %v17778_v54  ;;  %7842 = vmatprep.subr.bf16.mxu0 %v17659_v24  ;;  %v5044_v54 = vld [vmem:[#allocation8 + $0xba0] sm:$0xff] }
 0x3bb   :  { %7883 = vmatprep.subr.bf16.mxu1 %v17787_v59  ;;  %v5168_v24 = vld [vmem:[#allocation8 + $0xf80] sm:$0xff]  ;;  %v17707_v4 = vcombine.high %v5040_v50, %v5044_v54  ;;  %v17706_v14 = vcombine.low %v5040_v50, %v5044_v54  ;;  %v4681_v50 = vld [vmem:[#allocation8 + $0x48] sm:$0xff] }
 0x3bc   :  { %v5172_v59 = vld [vmem:[#allocation8 + $0xfa0] sm:$0xff]  ;;  %v4685_v54 = vld [vmem:[#allocation8 + $0x68] sm:$0xff] }
 0x3bd   :  { %7843 = vmatpush1.bf16.msra.mxu0 %v17658_v6  ;;  %v17835_v19 = vcombine.high %v5168_v24, %v5172_v59  ;;  %v5048_v6 = vld [vmem:[#allocation8 + $0xbc0] sm:$0xff]  ;;  %v17834_v15 = vcombine.low %v5168_v24, %v5172_v59  ;;  %v4813_v59 = vld [vmem:[#allocation8 + $0x468] sm:$0xff] }
 0x3be   :  { %7884 = vmatpush1.bf16.msra.mxu1 %v17786_v17  ;;  %7844 = vmatprep.subr.bf16.mxu0 %v17667_v11  ;;  %v5052_v17 = vld [vmem:[#allocation8 + $0xbe0] sm:$0xff] }
 0x3bf   :  { %7885 = vmatprep.subr.bf16.mxu1 %v17795_v7  ;;  %v5176_v11 = vld [vmem:[#allocation8 + $0xfc0] sm:$0xff]  ;;  %v17715_v16 = vcombine.high %v5048_v6, %v5052_v17 }
 0x3c0   :  { %v5180_v7 = vld [vmem:[#allocation8 + $0xfe0] sm:$0xff] }
 0x3c1   :  { %7845 = vmatpush1.bf16.msra.mxu0 %v17666_v0  ;;  %v17843_v18 = vcombine.high %v5176_v11, %v5180_v7  ;;  %v17714_v0 = vcombine.low %v5048_v6, %v5052_v17  ;;  %v19229_v28 = vld [vmem:[#allocation14 + $0x20] sm:$0xff]  ;;  %v4689_v6 = vld [vmem:[#allocation8 + $0x88] sm:$0xff] }
 0x3c2   :  { %7886 = vmatpush1.bf16.msra.mxu1 %v17794_v22  ;;  %7846 = vmatprep.subr.bf16.mxu0 %v17675_v23  ;;  %v17842_v22 = vcombine.low %v5176_v11, %v5180_v7  ;;  %v17341_v23 = vcombine.high %v19836_v55, %v19838_v56  ;;  %v1427_v32 = vrot.slane %v19229_v28, %v19812_v21  ;;  %v4693_v17 = vld [vmem:[#allocation8 + $0xa8] sm:$0xff] }
 0x3c3   :  { %7887 = vmatprep.subr.bf16.mxu1 %v17803_v40  ;;  %v17469_v40 = vcombine.high %v19840_v58, %v19842_v53  ;;  %v4817_v7 = vld [vmem:[#allocation8 + $0x488] sm:$0xff]  ;;  %v17356_v55 = vcombine.low %v4689_v6, %v4693_v17 }
 0x3c4   :  { %v4829_v28 = vld [vmem:[#allocation8 + $0x4e8] sm:$0xff] }
 0x3c5   :  { %7847 = vmatpush1.bf16.msra.mxu0 %v17674_v5  ;;  %v19231_v5 = vld [vmem:[#allocation14 + $0x28] sm:$0xff] }
 0x3c6   :  { %7888 = vmatpush1.bf16.msra.mxu1 %v17802_v37  ;;  %7848 = vmatprep.subr.bf16.mxu0 %v17683_v38  ;;  %v1431_v37 = vrot.slane %v19231_v5, %v19812_v21  ;;  %v19232_v38 = vld [vmem:[#allocation14 + $0x38] sm:$0xff] }
 0x3c7   :  { %7889 = vmatprep.subr.bf16.mxu1 %v17811_v39  ;;  %v1439_v39 = vrot.slane %v19232_v38, %v19812_v21  ;;  %v4809_v21 = vld [vmem:[#allocation8 + $0x448] sm:$0xff] }
 0x3c8   :  { %v17477_v11 = vcombine.high %v4809_v21, %v4813_v59 }
 0x3c9   :  { %7849 = vmatpush1.bf16.msra.mxu0 %v17682_v62 }
 0x3ca   :  { %7890 = vmatpush1.bf16.msra.mxu1 %v17810_v52  ;;  %7850 = vmatprep.subr.bf16.mxu0 %v17691_v45 }
 0x3cb   :  { %7891 = vmatprep.subr.bf16.mxu1 %v17819_v46 }
 0x3cd   :  { %7851 = vmatpush1.bf16.msra.mxu0 %v17690_v27 }
 0x3ce   :  { %7892 = vmatpush1.bf16.msra.mxu1 %v17818_v8  ;;  %7852 = vmatprep.subr.bf16.mxu0 %v17699_v48 }
 0x3cf   :  { %7893 = vmatprep.subr.bf16.mxu1 %v17827_v49 }
 0x3d1   :  { %7853 = vmatpush1.bf16.msra.mxu0 %v17698_v25 }
 0x3d2   :  { %7894 = vmatpush1.bf16.msra.mxu1 %v17826_v3  ;;  %7854 = vmatprep.subr.bf16.mxu0 %v17707_v4 }
 0x3d3   :  { %7895 = vmatprep.subr.bf16.mxu1 %v17835_v19  ;;  %v17349_v19 = vcombine.high %v4681_v50, %v4685_v54 }
 0x3d5   :  { %7855 = vmatpush1.bf16.msra.mxu0 %v17706_v14  ;;  %v4821_v14 = vld [vmem:[#allocation8 + $0x4a8] sm:$0xff] }
 0x3d6   :  { %7896 = vmatpush1.bf16.msra.mxu1 %v17834_v15  ;;  %7856 = vmatprep.subr.bf16.mxu0 %v17715_v16  ;;  %v17348_v15 = vcombine.low %v4681_v50, %v4685_v54  ;;  %v17476_v16 = vcombine.low %v4809_v21, %v4813_v59  ;;  %v17484_v56 = vcombine.low %v4817_v7, %v4821_v14  ;;  %v4733_v50 = vld [vmem:[#allocation8 + $0x1e8] sm:$0xff] }
 0x3d7   :  { %7897 = vmatprep.subr.bf16.mxu1 %v17843_v18  ;;  %v17357_v18 = vcombine.high %v4689_v6, %v4693_v17  ;;  %v4857_v54 = vld [vmem:[#allocation8 + $0x5c8] sm:$0xff] }
 0x3d8   :  { %v4861_v21 = vld [vmem:[#allocation8 + $0x5e8] sm:$0xff] }
 0x3d9   :  { %7857 = vmatpush1.bf16.msra.mxu0 %v17714_v0  ;;  %v17485_v0 = vcombine.high %v4817_v7, %v4821_v14  ;;  %v17525_v17 = vcombine.high %v4857_v54, %v4861_v21  ;;  %v4741_v7 = vld [vmem:[#allocation8 + $0x228] sm:$0xff] }
 0x3da   :  { %7898 = vmatpush1.bf16.msra.mxu1 %v17842_v22  ;;  %7908 = vmatprep.subr.bf16.mxu0 %v17341_v23  ;;  %v4697_v22 = vld [vmem:[#allocation8 + $0xc8] sm:$0xff] }
 0x3db   :  { %7949 = vmatprep.subr.bf16.mxu1 %v17469_v40  ;;  %v4701_v23 = vld [vmem:[#allocation8 + $0xe8] sm:$0xff] }
 0x3dc   :  { %v4825_v40 = vld [vmem:[#allocation8 + $0x4c8] sm:$0xff]  ;;  %v17365_v58 = vcombine.high %v4697_v22, %v4701_v23 }
 0x3dd   :  { %v17493_v53 = vcombine.high %v4825_v40, %v4829_v28  ;;  %v17492_v5 = vcombine.low %v4825_v40, %v4829_v28  ;;  %v4865_v14 = vld [vmem:[#allocation8 + $0x608] sm:$0xff] }
 0x3de   :  { %v4749_v40 = vld [vmem:[#allocation8 + $0x268] sm:$0xff] }
 0x3df   :  { %v4873_v28 = vld [vmem:[#allocation8 + $0x648] sm:$0xff] }
 0x42f   :  { %v4485_v36 = vpop.f32.mrb[12].mxu0 }
 0x430   :  { %v19030_v20 = vadd.f32 %v4485_v36, %v1427_v32  ;;  %v4649_v41 = vpop.f32.mrb[12].mxu1  ;;  %v4487_v42 = vpop.f32.mrb[13].mxu0  ;;  %v4833_v32 = vld [vmem:[#allocation8 + $0x508] sm:$0xff] }
 0x431   :  { %v19032_v62 = vadd.f32 %v4649_v41, %v1435_v34  ;;  %v19031_v52 = vadd.f32 %v4487_v42, %v1431_v37  ;;  %v4651_v45 = vpop.f32.mrb[13].mxu1  ;;  %v4489_v46 = vpop.f32.mrb[14].mxu0  ;;  %v17364_v34 = vcombine.low %v4697_v22, %v4701_v23  ;;  %v17501_v38 = vcombine.high %v4833_v32, %v4837_v33  ;;  %v4717_v36 = vld [vmem:[#allocation8 + $0x168] sm:$0xff] }
 0x432   :  { %v4660_v57 = vmax.f32 %v19030_v20, 0.0  ;;  %v19033_v1 = vadd.f32 %v4651_v45, %v1439_v39  ;;  %v4653_v47 = vpop.f32.mrb[14].mxu1  ;;  %v4490_v31 = vpop.f32.mrb[15].mxu0  ;;  %v4713_v39 = vld [vmem:[#allocation8 + $0x148] sm:$0xff] }
 0x433   :  { %v4662_v27 = vmax.f32 %v19032_v62, 0.0  ;;  %v4661_v8 = vmax.f32 %v19031_v52, 0.0  ;;  %v4654_v48 = vpop.f32.mrb[15].mxu1  ;;  %v4841_v20 = vld [vmem:[#allocation8 + $0x548] sm:$0xff]  ;;  %v17500_v62 = vcombine.low %v4833_v32, %v4837_v33  ;;  %v17381_v52 = vcombine.high %v4713_v39, %v4717_v36 }
 0x434   :  { %v4663_v49 = vmax.f32 %v19033_v1, 0.0  ;;  %v19858_v25 = vpack.c.bf16 %v4660_v57, %v4660_v57  ;;  %v4845_v41 = vld [vmem:[#allocation8 + $0x568] sm:$0xff]  ;;  %v17380_v31 = vcombine.low %v4713_v39, %v4717_v36 }
 0x435   :  { %v19856_v24 = vpack.c.bf16 %v4661_v8, %v4661_v8  ;;  %v19862_v4 = vpack.c.bf16 %v4662_v27, %v4662_v27  ;;  %v17509_v45 = vcombine.high %v4841_v20, %v4845_v41  ;;  %v4721_v46 = vld [vmem:[#allocation8 + $0x188] sm:$0xff]  ;;  %v17508_v27 = vcombine.low %v4841_v20, %v4845_v41 }
 0x436   :  { %v19860_v3 = vpack.c.bf16 %v4663_v49, %v4663_v49  ;;  %v4725_v57 = vld [vmem:[#allocation8 + $0x1a8] sm:$0xff] }
 0x437   :  { %7858 = vmatprep.mubr.bf16.mxu0 %v19856_v24  ;;  %v4849_v1 = vld [vmem:[#allocation8 + $0x588] sm:$0xff]  ;;  %v17389_v8 = vcombine.high %v4721_v46, %v4725_v57  ;;  %v17388_v59 = vcombine.low %v4721_v46, %v4725_v57 }
 0x438   :  { %7899 = vmatprep.mubr.bf16.mxu1 %v19860_v3  ;;  %7859 = vmatmul.mubr.bf16.vlgmr.msra.gmra.mrb[20].mxu0 %v19858_v25  ;;  %v4853_v47 = vld [vmem:[#allocation8 + $0x5a8] sm:$0xff] }
 0x439   :  { %7900 = vmatmul.mubr.bf16.vlgmr.msra.gmra.mrb[20].mxu1 %v19862_v4  ;;  %7909 = vmatpush1.bf16.msra.mxu0 %v17340_v2  ;;  %v4705_v2 = vld [vmem:[#allocation8 + $0x108] sm:$0xff]  ;;  %v17517_v48 = vcombine.high %v4849_v1, %v4853_v47 }
 0x43a   :  { %7950 = vmatpush1.bf16.msra.mxu1 %v17468_v61  ;;  %7940 = vmatprep.mubr.bf16.mxu0 %v19818_v43  ;;  %v4709_v61 = vld [vmem:[#allocation8 + $0x128] sm:$0xff] }
 0x43b   :  { %7981 = vmatprep.mubr.bf16.mxu1 %v19821_v10  ;;  %7910 = vmatprep.subr.bf16.mxu0 %v17349_v19  ;;  %v17373_v37 = vcombine.high %v4705_v2, %v4709_v61  ;;  %v17372_v42 = vcombine.low %v4705_v2, %v4709_v61  ;;  %v4729_v49 = vld [vmem:[#allocation8 + $0x1c8] sm:$0xff]  ;;  %v17516_v19 = vcombine.low %v4849_v1, %v4853_v47 }
 0x43c   :  { %7951 = vmatprep.subr.bf16.mxu1 %v17477_v11  ;;  %v17397_v6 = vcombine.high %v4729_v49, %v4733_v50  ;;  %v4737_v11 = vld [vmem:[#allocation8 + $0x208] sm:$0xff] }
 0x43d   :  { %7911 = vmatpush1.bf16.msra.mxu0 %v17348_v15  ;;  %v4869_v15 = vld [vmem:[#allocation8 + $0x628] sm:$0xff] }
 0x43e   :  { %7952 = vmatpush1.bf16.msra.mxu1 %v17476_v16  ;;  %7912 = vmatprep.subr.bf16.mxu0 %v17357_v18  ;;  %v17396_v16 = vcombine.low %v4729_v49, %v4733_v50  ;;  %v17524_v18 = vcombine.low %v4857_v54, %v4861_v21  ;;  %v17533_v22 = vcombine.high %v4865_v14, %v4869_v15  ;;  %v4745_v23 = vld [vmem:[#allocation8 + $0x248] sm:$0xff] }
 0x43f   :  { %7953 = vmatprep.subr.bf16.mxu1 %v17485_v0  ;;  %v17405_v0 = vcombine.high %v4737_v11, %v4741_v7  ;;  %v4753_v61 = vld [vmem:[#allocation8 + $0x288] sm:$0xff] }
 0x440   :  { %v4757_v32 = vld [vmem:[#allocation8 + $0x2a8] sm:$0xff] }
 0x441   :  { %7913 = vmatpush1.bf16.msra.mxu0 %v17356_v55  ;;  %v4877_v55 = vld [vmem:[#allocation8 + $0x668] sm:$0xff] }
 0x442   :  { %7954 = vmatpush1.bf16.msra.mxu1 %v17484_v56  ;;  %7914 = vmatprep.subr.bf16.mxu0 %v17365_v58  ;;  %v17404_v56 = vcombine.low %v4737_v11, %v4741_v7  ;;  %v17532_v58 = vcombine.low %v4865_v14, %v4869_v15  ;;  %v17541_v2 = vcombine.high %v4873_v28, %v4877_v55  ;;  %v4881_v33 = vld [vmem:[#allocation8 + $0x688] sm:$0xff] }
 0x443   :  { %7955 = vmatprep.subr.bf16.mxu1 %v17493_v53  ;;  %v17413_v53 = vcombine.high %v4745_v23, %v4749_v40  ;;  %v4761_v36 = vld [vmem:[#allocation8 + $0x2c8] sm:$0xff] }
 0x444   :  { %v4765_v20 = vld [vmem:[#allocation8 + $0x2e8] sm:$0xff] }
 0x445   :  { %7915 = vmatpush1.bf16.msra.mxu0 %v17364_v34  ;;  %v4885_v34 = vld [vmem:[#allocation8 + $0x6a8] sm:$0xff] }
 0x446   :  { %7956 = vmatpush1.bf16.msra.mxu1 %v17492_v5  ;;  %7916 = vmatprep.subr.bf16.mxu0 %v17373_v37  ;;  %v17412_v5 = vcombine.low %v4745_v23, %v4749_v40  ;;  %v17540_v37 = vcombine.low %v4873_v28, %v4877_v55  ;;  %v17549_v39 = vcombine.high %v4881_v33, %v4885_v34  ;;  %v4889_v41 = vld [vmem:[#allocation8 + $0x6c8] sm:$0xff] }
 0x447   :  { %7957 = vmatprep.subr.bf16.mxu1 %v17501_v38  ;;  %v17421_v38 = vcombine.high %v4753_v61, %v4757_v32  ;;  %v4769_v57 = vld [vmem:[#allocation8 + $0x308] sm:$0xff] }
 0x448   :  { %v4773_v1 = vld [vmem:[#allocation8 + $0x328] sm:$0xff] }
 0x449   :  { %7917 = vmatpush1.bf16.msra.mxu0 %v17372_v42  ;;  %v4893_v42 = vld [vmem:[#allocation8 + $0x6e8] sm:$0xff] }
 0x44a   :  { %7958 = vmatpush1.bf16.msra.mxu1 %v17500_v62  ;;  %7918 = vmatprep.subr.bf16.mxu0 %v17381_v52  ;;  %v17420_v62 = vcombine.low %v4753_v61, %v4757_v32  ;;  %v17548_v52 = vcombine.low %v4881_v33, %v4885_v34  ;;  %v17557_v46 = vcombine.high %v4889_v41, %v4893_v42  ;;  %v4897_v47 = vld [vmem:[#allocation8 + $0x708] sm:$0xff] }
 0x44b   :  { %7959 = vmatprep.subr.bf16.mxu1 %v17509_v45  ;;  %v17429_v45 = vcombine.high %v4761_v36, %v4765_v20  ;;  %v4777_v50 = vld [vmem:[#allocation8 + $0x348] sm:$0xff] }
 0x44c   :  { %v4781_v54 = vld [vmem:[#allocation8 + $0x368] sm:$0xff] }
 0x44d   :  { %7919 = vmatpush1.bf16.msra.mxu0 %v17380_v31  ;;  %v4901_v31 = vld [vmem:[#allocation8 + $0x728] sm:$0xff] }
 0x44e   :  { %7960 = vmatpush1.bf16.msra.mxu1 %v17508_v27  ;;  %7920 = vmatprep.subr.bf16.mxu0 %v17389_v8  ;;  %v17428_v27 = vcombine.low %v4761_v36, %v4765_v20  ;;  %v17556_v8 = vcombine.low %v4889_v41, %v4893_v42  ;;  %v17565_v49 = vcombine.high %v4897_v47, %v4901_v31  ;;  %v4905_v21 = vld [vmem:[#allocation8 + $0x748] sm:$0xff] }
 0x44f   :  { %7961 = vmatprep.subr.bf16.mxu1 %v17517_v48  ;;  %v17437_v48 = vcombine.high %v4769_v57, %v4773_v1  ;;  %v4785_v7 = vld [vmem:[#allocation8 + $0x388] sm:$0xff] }
 0x450   :  { %v4789_v14 = vld [vmem:[#allocation8 + $0x3a8] sm:$0xff] }
 0x451   :  { %7921 = vmatpush1.bf16.msra.mxu0 %v17388_v59  ;;  %v4909_v59 = vld [vmem:[#allocation8 + $0x768] sm:$0xff] }
 0x452   :  { %7962 = vmatpush1.bf16.msra.mxu1 %v17516_v19  ;;  %7922 = vmatprep.subr.bf16.mxu0 %v17397_v6  ;;  %v17436_v19 = vcombine.low %v4769_v57, %v4773_v1  ;;  %v17564_v6 = vcombine.low %v4897_v47, %v4901_v31  ;;  %v17573_v11 = vcombine.high %v4905_v21, %v4909_v59  ;;  %v4913_v15 = vld [vmem:[#allocation8 + $0x788] sm:$0xff] }
 0x453   :  { %7963 = vmatprep.subr.bf16.mxu1 %v17525_v17  ;;  %v17445_v17 = vcombine.high %v4777_v50, %v4781_v54  ;;  %v4793_v40 = vld [vmem:[#allocation8 + $0x3c8] sm:$0xff] }
 0x454   :  { %v4797_v28 = vld [vmem:[#allocation8 + $0x3e8] sm:$0xff] }
 0x455   :  { %7923 = vmatpush1.bf16.msra.mxu0 %v17396_v16  ;;  %v4917_v16 = vld [vmem:[#allocation8 + $0x7a8] sm:$0xff]  ;;  %v17460_v42 = vcombine.low %v4793_v40, %v4797_v28 }
 0x456   :  { %7964 = vmatpush1.bf16.msra.mxu1 %v17524_v18  ;;  %7924 = vmatprep.subr.bf16.mxu0 %v17405_v0  ;;  %v17444_v18 = vcombine.low %v4777_v50, %v4781_v54  ;;  %v17572_v0 = vcombine.low %v4905_v21, %v4909_v59  ;;  %v17581_v23 = vcombine.high %v4913_v15, %v4917_v16  ;;  %v4921_v55 = vld [vmem:[#allocation8 + $0x7c8] sm:$0xff] }
 0x457   :  { %7965 = vmatprep.subr.bf16.mxu1 %v17533_v22  ;;  %v17453_v22 = vcombine.high %v4785_v7, %v4789_v14  ;;  %v4929_v33 = vld [vmem:[#allocation8 + $0x808] sm:$0xff] }
 0x458   :  { %v4933_v34 = vld [vmem:[#allocation8 + $0x828] sm:$0xff] }
 0x459   :  { %7925 = vmatpush1.bf16.msra.mxu0 %v17404_v56  ;;  %v4925_v56 = vld [vmem:[#allocation8 + $0x7e8] sm:$0xff]  ;;  %v17597_v57 = vcombine.high %v4929_v33, %v4933_v34 }
 0x45a   :  { %7966 = vmatpush1.bf16.msra.mxu1 %v17532_v58  ;;  %7926 = vmatprep.subr.bf16.mxu0 %v17413_v53  ;;  %v17452_v58 = vcombine.low %v4785_v7, %v4789_v14  ;;  %v17580_v53 = vcombine.low %v4913_v15, %v4917_v16  ;;  %v17589_v32 = vcombine.high %v4921_v55, %v4925_v56  ;;  %v4937_v31 = vld [vmem:[#allocation8 + $0x848] sm:$0xff] }
 0x45b   :  { %7967 = vmatprep.subr.bf16.mxu1 %v17541_v2  ;;  %v17461_v2 = vcombine.high %v4793_v40, %v4797_v28  ;;  %v4945_v21 = vld [vmem:[#allocation8 + $0x888] sm:$0xff] }
 0x45c   :  { %v4949_v59 = vld [vmem:[#allocation8 + $0x8a8] sm:$0xff] }
 0x45d   :  { %7927 = vmatpush1.bf16.msra.mxu0 %v17412_v5  ;;  %v17613_v14 = vcombine.high %v4945_v21, %v4949_v59  ;;  %v4953_v16 = vld [vmem:[#allocation8 + $0x8c8] sm:$0xff] }
 0x45e   :  { %7968 = vmatpush1.bf16.msra.mxu1 %v17540_v37  ;;  %7928 = vmatprep.subr.bf16.mxu0 %v17421_v38  ;;  %v5057_v38 = vld [vmem:[#allocation8 + $0xc08] sm:$0xff] }
 0x45f   :  { %7969 = vmatprep.subr.bf16.mxu1 %v17549_v39  ;;  %v5061_v39 = vld [vmem:[#allocation8 + $0xc28] sm:$0xff] }
 0x460   :  { %v17725_v47 = vcombine.high %v5057_v38, %v5061_v39  ;;  %v17724_v50 = vcombine.low %v5057_v38, %v5061_v39  ;;  %v5097_v38 = vld [vmem:[#allocation8 + $0xd48] sm:$0xff] }
 0x461   :  { %7929 = vmatpush1.bf16.msra.mxu0 %v17420_v62  ;;  %v5101_v39 = vld [vmem:[#allocation8 + $0xd68] sm:$0xff] }
 0x462   :  { %7970 = vmatpush1.bf16.msra.mxu1 %v17548_v52  ;;  %7930 = vmatprep.subr.bf16.mxu0 %v17429_v45 }
 0x463   :  { %7971 = vmatprep.subr.bf16.mxu1 %v17557_v46  ;;  %v17588_v46 = vcombine.low %v4921_v55, %v4925_v56  ;;  %v4961_v56 = vld [vmem:[#allocation8 + $0x908] sm:$0xff] }
 0x465   :  { %7931 = vmatpush1.bf16.msra.mxu0 %v17428_v27  ;;  %v4941_v27 = vld [vmem:[#allocation8 + $0x868] sm:$0xff] }
 0x466   :  { %7972 = vmatpush1.bf16.msra.mxu1 %v17556_v8  ;;  %7932 = vmatprep.subr.bf16.mxu0 %v17437_v48  ;;  %v17596_v8 = vcombine.low %v4929_v33, %v4933_v34  ;;  %v5065_v48 = vld [vmem:[#allocation8 + $0xc48] sm:$0xff]  ;;  %v17605_v54 = vcombine.high %v4937_v31, %v4941_v27 }
 0x467   :  { %7973 = vmatprep.subr.bf16.mxu1 %v17565_v49  ;;  %v5069_v49 = vld [vmem:[#allocation8 + $0xc68] sm:$0xff] }
 0x468   :  { %v17732_v7 = vcombine.low %v5065_v48, %v5069_v49 }
 0x469   :  { %7933 = vmatpush1.bf16.msra.mxu0 %v17436_v19  ;;  %v17733_v19 = vcombine.high %v5065_v48, %v5069_v49  ;;  %v4985_v48 = vld [vmem:[#allocation8 + $0x9c8] sm:$0xff] }
 0x46a   :  { %7974 = vmatpush1.bf16.msra.mxu1 %v17564_v6  ;;  %7934 = vmatprep.subr.bf16.mxu0 %v17445_v17  ;;  %v5073_v6 = vld [vmem:[#allocation8 + $0xc88] sm:$0xff] }
 0x46b   :  { %7975 = vmatprep.subr.bf16.mxu1 %v17573_v11  ;;  %v5077_v17 = vld [vmem:[#allocation8 + $0xca8] sm:$0xff]  ;;  %v17604_v11 = vcombine.low %v4937_v31, %v4941_v27  ;;  %v17764_v31 = vcombine.low %v5097_v38, %v5101_v39 }
 0x46c   :  { %v17741_v15 = vcombine.high %v5073_v6, %v5077_v17  ;;  %v17740_v40 = vcombine.low %v5073_v6, %v5077_v17  ;;  %v4989_v49 = vld [vmem:[#allocation8 + $0x9e8] sm:$0xff] }
 0x46d   :  { %7935 = vmatpush1.bf16.msra.mxu0 %v17444_v18  ;;  %v4957_v18 = vld [vmem:[#allocation8 + $0x8e8] sm:$0xff] }
 0x46e   :  { %7976 = vmatpush1.bf16.msra.mxu1 %v17572_v0  ;;  %7936 = vmatprep.subr.bf16.mxu0 %v17453_v22  ;;  %v5081_v0 = vld [vmem:[#allocation8 + $0xcc8] sm:$0xff]  ;;  %v17621_v28 = vcombine.high %v4953_v16, %v4957_v18 }
 0x46f   :  { %v7778_v61 = vpop.f32.mrb[16].mxu0  ;;  %7977 = vmatprep.subr.bf16.mxu1 %v17581_v23  ;;  %v5085_v22 = vld [vmem:[#allocation8 + $0xce8] sm:$0xff]  ;;  %v17612_v23 = vcombine.low %v4945_v21, %v4949_v59 }
 0x470   :  { %v7819_v5 = vpop.f32.mrb[16].mxu1  ;;  %v7780_v37 = vpop.f32.mrb[17].mxu0  ;;  %v17749_v55 = vcombine.high %v5081_v0, %v5085_v22  ;;  %v4993_v17 = vld [vmem:[#allocation8 + $0xa08] sm:$0xff] }
 0x471   :  { %v19876_v36 = vadd.f32 %v7819_v5, %v7778_v61  ;;  %v7821_v20 = vpop.f32.mrb[17].mxu1  ;;  %7937 = vmatpush1.bf16.msra.mxu0 %v17452_v58  ;;  %v7782_v41 = vpop.f32.mrb[18].mxu0  ;;  %v4965_v58 = vld [vmem:[#allocation8 + $0x928] sm:$0xff]  ;;  %v17620_v61 = vcombine.low %v4953_v16, %v4957_v18 }
 0x472   :  { %v19878_v62 = vadd.f32 %v7821_v20, %v7780_v37  ;;  %7978 = vmatpush1.bf16.msra.mxu1 %v17580_v53  ;;  %v7823_v52 = vpop.f32.mrb[18].mxu1  ;;  %v7783_v45 = vpop.f32.mrb[19].mxu0  ;;  %7938 = vmatprep.subr.bf16.mxu0 %v17461_v2  ;;  %v5089_v53 = vld [vmem:[#allocation8 + $0xd08] sm:$0xff]  ;;  %v17629_v33 = vcombine.high %v4961_v56, %v4965_v58  ;;  %v17628_v20 = vcombine.low %v4961_v56, %v4965_v58 }
 0x473   :  { %v7824_v1 = vpop.f32.mrb[19].mxu1  ;;  %7979 = vmatprep.subr.bf16.mxu1 %v17589_v32  ;;  %v5093_v2 = vld [vmem:[#allocation8 + $0xd28] sm:$0xff]  ;;  %v17748_v32 = vcombine.low %v5081_v0, %v5085_v22  ;;  %v17765_v52 = vcombine.high %v5097_v38, %v5101_v39 }
 0x474   :  { %v17757_v34 = vcombine.high %v5089_v53, %v5093_v2  ;;  %v4969_v5 = vld [vmem:[#allocation8 + $0x948] sm:$0xff]  ;;  %v17756_v41 = vcombine.low %v5089_v53, %v5093_v2 }
 0x475   :  { %7939 = vmatpush1.bf16.msra.mxu0 %v17460_v42  ;;  %v4973_v37 = vld [vmem:[#allocation8 + $0x968] sm:$0xff] }
 0x476   :  { %7980 = vmatpush1.bf16.msra.mxu1 %v17588_v46  ;;  %7990 = vmatprep.subr.bf16.mxu0 %v17597_v57  ;;  %v17637_v42 = vcombine.high %v4969_v5, %v4973_v37  ;;  %v4977_v45 = vld [vmem:[#allocation8 + $0x988] sm:$0xff] }
 0x477   :  { %8031 = vmatprep.subr.bf16.mxu1 %v17725_v47  ;;  %v4981_v46 = vld [vmem:[#allocation8 + $0x9a8] sm:$0xff]  ;;  %v17636_v47 = vcombine.low %v4969_v5, %v4973_v37 }
 0x478   :  { %7941 = vmatmul.mubr.bf16.vlgmr.msra.gmra.mrb[24].mxu0 %v19830_v26  ;;  %v5105_v57 = vld [vmem:[#allocation8 + $0xd88] sm:$0xff]  ;;  %v17645_v27 = vcombine.high %v4977_v45, %v4981_v46  ;;  %v17644_v21 = vcombine.low %v4977_v45, %v4981_v46 }
 0x479   :  { %7982 = vmatmul.mubr.bf16.vlgmr.msra.gmra.mrb[24].mxu1 %v19832_v30  ;;  %7991 = vmatpush1.bf16.msra.mxu0 %v17596_v8  ;;  %v5109_v1 = vld [vmem:[#allocation8 + $0xda8] sm:$0xff] }
 0x47a   :  { %8022 = vmatprep.mubr.bf16.mxu0 %v19856_v24  ;;  %8032 = vmatpush1.bf16.msra.mxu1 %v17724_v50  ;;  %v17773_v8 = vcombine.high %v5105_v57, %v5109_v1  ;;  %v5113_v50 = vld [vmem:[#allocation8 + $0xdc8] sm:$0xff]  ;;  %v17772_v59 = vcombine.low %v5105_v57, %v5109_v1 }
 0x47b   :  { %8063 = vmatprep.mubr.bf16.mxu1 %v19860_v3  ;;  %7992 = vmatprep.subr.bf16.mxu0 %v17605_v54  ;;  %v5117_v54 = vld [vmem:[#allocation8 + $0xde8] sm:$0xff] }
 0x47c   :  { %8033 = vmatprep.subr.bf16.mxu1 %v17733_v19  ;;  %v17653_v19 = vcombine.high %v4985_v48, %v4989_v49  ;;  %v17781_v6 = vcombine.high %v5113_v50, %v5117_v54  ;;  %v17780_v16 = vcombine.low %v5113_v50, %v5117_v54  ;;  %v5001_v22 = vld [vmem:[#allocation8 + $0xa48] sm:$0xff] }
 0x47d   :  { %7993 = vmatpush1.bf16.msra.mxu0 %v17604_v11  ;;  %v4997_v11 = vld [vmem:[#allocation8 + $0xa28] sm:$0xff] }
 0x47e   :  { %8034 = vmatpush1.bf16.msra.mxu1 %v17732_v7  ;;  %7994 = vmatprep.subr.bf16.mxu0 %v17613_v14  ;;  %v5121_v7 = vld [vmem:[#allocation8 + $0xe08] sm:$0xff]  ;;  %v17661_v18 = vcombine.high %v4993_v17, %v4997_v11 }
 0x47f   :  { %8035 = vmatprep.subr.bf16.mxu1 %v17741_v15  ;;  %v5125_v14 = vld [vmem:[#allocation8 + $0xe28] sm:$0xff]  ;;  %v17652_v15 = vcombine.low %v4985_v48, %v4989_v49 }
 0x480   :  { %v17789_v0 = vcombine.high %v5121_v7, %v5125_v14  ;;  %v17788_v56 = vcombine.low %v5121_v7, %v5125_v14  ;;  %v5009_v2 = vld [vmem:[#allocation8 + $0xa88] sm:$0xff] }
 0x481   :  { %7995 = vmatpush1.bf16.msra.mxu0 %v17612_v23  ;;  %v5005_v23 = vld [vmem:[#allocation8 + $0xa68] sm:$0xff] }
 0x482   :  { %8036 = vmatpush1.bf16.msra.mxu1 %v17740_v40  ;;  %7996 = vmatprep.subr.bf16.mxu0 %v17621_v28  ;;  %v5129_v40 = vld [vmem:[#allocation8 + $0xe48] sm:$0xff]  ;;  %v17669_v58 = vcombine.high %v5001_v22, %v5005_v23 }
 0x483   :  { %8037 = vmatprep.subr.bf16.mxu1 %v17749_v55  ;;  %v5133_v28 = vld [vmem:[#allocation8 + $0xe68] sm:$0xff]  ;;  %v17660_v55 = vcombine.low %v4993_v17, %v4997_v11 }
 0x484   :  { %v17797_v53 = vcombine.high %v5129_v40, %v5133_v28  ;;  %v17796_v5 = vcombine.low %v5129_v40, %v5133_v28  ;;  %v5017_v39 = vld [vmem:[#allocation8 + $0xac8] sm:$0xff] }
 0x485   :  { %7997 = vmatpush1.bf16.msra.mxu0 %v17620_v61  ;;  %v5013_v61 = vld [vmem:[#allocation8 + $0xaa8] sm:$0xff] }
 0x486   :  { %8038 = vmatpush1.bf16.msra.mxu1 %v17748_v32  ;;  %7998 = vmatprep.subr.bf16.mxu0 %v17629_v33  ;;  %v5137_v32 = vld [vmem:[#allocation8 + $0xe88] sm:$0xff]  ;;  %v17677_v37 = vcombine.high %v5009_v2, %v5013_v61 }
 0x487   :  { %8039 = vmatprep.subr.bf16.mxu1 %v17757_v34  ;;  %v5141_v33 = vld [vmem:[#allocation8 + $0xea8] sm:$0xff]  ;;  %v17668_v34 = vcombine.low %v5001_v22, %v5005_v23 }
 0x488   :  { %v17805_v38 = vcombine.high %v5137_v32, %v5141_v33  ;;  %v17804_v45 = vcombine.low %v5137_v32, %v5141_v33  ;;  %v5025_v1 = vld [vmem:[#allocation8 + $0xb08] sm:$0xff]  ;;  %v4674_v33 = vld [vmem:[#allocation8 + $0x10] sm:$0xff] }
 0x489   :  { %7999 = vmatpush1.bf16.msra.mxu0 %v17628_v20  ;;  %v5021_v20 = vld [vmem:[#allocation8 + $0xae8] sm:$0xff] }
 0x48a   :  { %8040 = vmatpush1.bf16.msra.mxu1 %v17756_v41  ;;  %8000 = vmatprep.subr.bf16.mxu0 %v17637_v42  ;;  %v5145_v41 = vld [vmem:[#allocation8 + $0xec8] sm:$0xff]  ;;  %v17685_v46 = vcombine.high %v5017_v39, %v5021_v20 }
 0x48b   :  { %8041 = vmatprep.subr.bf16.mxu1 %v17765_v52  ;;  %v5149_v42 = vld [vmem:[#allocation8 + $0xee8] sm:$0xff]  ;;  %v17676_v52 = vcombine.low %v5009_v2, %v5013_v61 }
 0x48c   :  { %v17813_v57 = vcombine.high %v5145_v41, %v5149_v42  ;;  %v17812_v48 = vcombine.low %v5145_v41, %v5149_v42  ;;  %v5033_v54 = vld [vmem:[#allocation8 + $0xb48] sm:$0xff]  ;;  %v4682_v42 = vld [vmem:[#allocation8 + $0x50] sm:$0xff] }
 0x48d   :  { %8001 = vmatpush1.bf16.msra.mxu0 %v17636_v47  ;;  %v5029_v47 = vld [vmem:[#allocation8 + $0xb28] sm:$0xff] }
 0x48e   :  { %8042 = vmatpush1.bf16.msra.mxu1 %v17764_v31  ;;  %8002 = vmatprep.subr.bf16.mxu0 %v17645_v27  ;;  %v5153_v31 = vld [vmem:[#allocation8 + $0xf08] sm:$0xff]  ;;  %v17693_v49 = vcombine.high %v5025_v1, %v5029_v47 }
 0x48f   :  { %8043 = vmatprep.subr.bf16.mxu1 %v17773_v8  ;;  %v5157_v27 = vld [vmem:[#allocation8 + $0xf28] sm:$0xff]  ;;  %v17684_v8 = vcombine.low %v5017_v39, %v5021_v20 }
 0x490   :  { %v17821_v50 = vcombine.high %v5153_v31, %v5157_v27  ;;  %v17820_v17 = vcombine.low %v5153_v31, %v5157_v27  ;;  %v5041_v14 = vld [vmem:[#allocation8 + $0xb88] sm:$0xff]  ;;  %v4690_v31 = vld [vmem:[#allocation8 + $0x90] sm:$0xff] }
 0x491   :  { %8003 = vmatpush1.bf16.msra.mxu0 %v17644_v21  ;;  %v5037_v21 = vld [vmem:[#allocation8 + $0xb68] sm:$0xff]  ;;  %v4694_v27 = vld [vmem:[#allocation8 + $0xb0] sm:$0xff] }
 0x492   :  { %8044 = vmatpush1.bf16.msra.mxu1 %v17772_v59  ;;  %8004 = vmatprep.subr.bf16.mxu0 %v17653_v19  ;;  %v5161_v59 = vld [vmem:[#allocation8 + $0xf48] sm:$0xff]  ;;  %v17701_v11 = vcombine.high %v5033_v54, %v5037_v21 }
 0x493   :  { %8045 = vmatprep.subr.bf16.mxu1 %v17781_v6  ;;  %v5165_v19 = vld [vmem:[#allocation8 + $0xf68] sm:$0xff]  ;;  %v17692_v6 = vcombine.low %v5025_v1, %v5029_v47 }
 0x494   :  { %v17829_v7 = vcombine.high %v5161_v59, %v5165_v19  ;;  %v17828_v22 = vcombine.low %v5161_v59, %v5165_v19  ;;  %v5049_v28 = vld [vmem:[#allocation8 + $0xbc8] sm:$0xff]  ;;  %v4698_v19 = vld [vmem:[#allocation8 + $0xd0] sm:$0xff] }
 0x495   :  { %8005 = vmatpush1.bf16.msra.mxu0 %v17652_v15  ;;  %v5045_v15 = vld [vmem:[#allocation8 + $0xba8] sm:$0xff] }
 0x496   :  { %8046 = vmatpush1.bf16.msra.mxu1 %v17780_v16  ;;  %8006 = vmatprep.subr.bf16.mxu0 %v17661_v18  ;;  %v5169_v16 = vld [vmem:[#allocation8 + $0xf88] sm:$0xff]  ;;  %v17709_v23 = vcombine.high %v5041_v14, %v5045_v15 }
 0x497   :  { %8047 = vmatprep.subr.bf16.mxu1 %v17789_v0  ;;  %v5173_v18 = vld [vmem:[#allocation8 + $0xfa8] sm:$0xff]  ;;  %v17700_v0 = vcombine.low %v5033_v54, %v5037_v21  ;;  %v17359_v21 = vcombine.high %v4690_v31, %v4694_v27 }
 0x498   :  { %v17837_v40 = vcombine.high %v5169_v16, %v5173_v18  ;;  %v17836_v2 = vcombine.low %v5169_v16, %v5173_v18  ;;  %v4706_v18 = vld [vmem:[#allocation8 + $0x110] sm:$0xff] }
 0x499   :  { %8007 = vmatpush1.bf16.msra.mxu0 %v17660_v55  ;;  %v5053_v55 = vld [vmem:[#allocation8 + $0xbe8] sm:$0xff] }
 0x49a   :  { %8048 = vmatpush1.bf16.msra.mxu1 %v17788_v56  ;;  %8008 = vmatprep.subr.bf16.mxu0 %v17669_v58  ;;  %v5177_v56 = vld [vmem:[#allocation8 + $0xfc8] sm:$0xff]  ;;  %v17717_v61 = vcombine.high %v5049_v28, %v5053_v55 }
 0x49b   :  { %8049 = vmatprep.subr.bf16.mxu1 %v17797_v53  ;;  %v5181_v58 = vld [vmem:[#allocation8 + $0xfe8] sm:$0xff]  ;;  %v17708_v53 = vcombine.low %v5041_v14, %v5045_v15 }
 0x49c   :  { %v17845_v32 = vcombine.high %v5177_v56, %v5181_v58  ;;  %v17844_v39 = vcombine.low %v5177_v56, %v5181_v58  ;;  %v4714_v58 = vld [vmem:[#allocation8 + $0x150] sm:$0xff] }
 0x49d   :  { %8009 = vmatpush1.bf16.msra.mxu0 %v17668_v34  ;;  %v4678_v34 = vld [vmem:[#allocation8 + $0x30] sm:$0xff] }
 0x49e   :  { %8050 = vmatpush1.bf16.msra.mxu1 %v17796_v5  ;;  %8010 = vmatprep.subr.bf16.mxu0 %v17677_v37  ;;  %v4802_v5 = vld [vmem:[#allocation8 + $0x410] sm:$0xff]  ;;  %v17343_v20 = vcombine.high %v4674_v33, %v4678_v34 }
 0x49f   :  { %8051 = vmatprep.subr.bf16.mxu1 %v17805_v38  ;;  %v4806_v37 = vld [vmem:[#allocation8 + $0x430] sm:$0xff]  ;;  %v17716_v38 = vcombine.low %v5049_v28, %v5053_v55 }
 0x4a0   :  { %v17471_v41 = vcombine.high %v4802_v5, %v4806_v37  ;;  %v17470_v1 = vcombine.low %v4802_v5, %v4806_v37  ;;  %v4722_v37 = vld [vmem:[#allocation8 + $0x190] sm:$0xff] }
 0x4a1   :  { %8011 = vmatpush1.bf16.msra.mxu0 %v17676_v52  ;;  %v4686_v52 = vld [vmem:[#allocation8 + $0x70] sm:$0xff] }
 0x4a2   :  { %8052 = vmatpush1.bf16.msra.mxu1 %v17804_v45  ;;  %8012 = vmatprep.subr.bf16.mxu0 %v17685_v46  ;;  %v17342_v45 = vcombine.low %v4674_v33, %v4678_v34  ;;  %v4810_v46 = vld [vmem:[#allocation8 + $0x450] sm:$0xff]  ;;  %v17351_v47 = vcombine.high %v4682_v42, %v4686_v52 }
 0x4a3   :  { %8053 = vmatprep.subr.bf16.mxu1 %v17813_v57  ;;  %v4814_v57 = vld [vmem:[#allocation8 + $0x470] sm:$0xff] }
 0x4a4   :  { %v17478_v54 = vcombine.low %v4810_v46, %v4814_v57 }
 0x4a5   :  { %8013 = vmatpush1.bf16.msra.mxu0 %v17684_v8  ;;  %v17479_v8 = vcombine.high %v4810_v46, %v4814_v57  ;;  %v4730_v46 = vld [vmem:[#allocation8 + $0x1d0] sm:$0xff] }
 0x4a6   :  { %8054 = vmatpush1.bf16.msra.mxu1 %v17812_v48  ;;  %8014 = vmatprep.subr.bf16.mxu0 %v17693_v49  ;;  %v4818_v48 = vld [vmem:[#allocation8 + $0x490] sm:$0xff] }
 0x4a7   :  { %8055 = vmatprep.subr.bf16.mxu1 %v17821_v50  ;;  %v4822_v49 = vld [vmem:[#allocation8 + $0x4b0] sm:$0xff]  ;;  %v17350_v50 = vcombine.low %v4682_v42, %v4686_v52 }
 0x4a8   :  { %v17487_v59 = vcombine.high %v4818_v48, %v4822_v49  ;;  %v17486_v14 = vcombine.low %v4818_v48, %v4822_v49  ;;  %v4734_v57 = vld [vmem:[#allocation8 + $0x1f0] sm:$0xff] }
 0x4a9   :  { %8015 = vmatpush1.bf16.msra.mxu0 %v17692_v6  ;;  %v4702_v6 = vld [vmem:[#allocation8 + $0xf0] sm:$0xff] }
 0x4aa   :  { %8056 = vmatpush1.bf16.msra.mxu1 %v17820_v17  ;;  %8016 = vmatprep.subr.bf16.mxu0 %v17701_v11  ;;  %v4826_v17 = vld [vmem:[#allocation8 + $0x4d0] sm:$0xff]  ;;  %v17367_v15 = vcombine.high %v4698_v19, %v4702_v6 }
 0x4ab   :  { %8057 = vmatprep.subr.bf16.mxu1 %v17829_v7  ;;  %v4830_v11 = vld [vmem:[#allocation8 + $0x4f0] sm:$0xff]  ;;  %v17358_v7 = vcombine.low %v4690_v31, %v4694_v27 }
 0x4ac   :  { %v17495_v16 = vcombine.high %v4826_v17, %v4830_v11  ;;  %v17494_v28 = vcombine.low %v4826_v17, %v4830_v11  ;;  %v4738_v49 = vld [vmem:[#allocation8 + $0x210] sm:$0xff] }
 0x4ad   :  { %8017 = vmatpush1.bf16.msra.mxu0 %v17700_v0  ;;  %v4710_v0 = vld [vmem:[#allocation8 + $0x130] sm:$0xff] }
 0x4ae   :  { %8058 = vmatpush1.bf16.msra.mxu1 %v17828_v22  ;;  %8018 = vmatprep.subr.bf16.mxu0 %v17709_v23  ;;  %v4834_v22 = vld [vmem:[#allocation8 + $0x510] sm:$0xff]  ;;  %v17375_v55 = vcombine.high %v4706_v18, %v4710_v0 }
 0x4af   :  { %8059 = vmatprep.subr.bf16.mxu1 %v17837_v40  ;;  %v4838_v23 = vld [vmem:[#allocation8 + $0x530] sm:$0xff]  ;;  %v17366_v40 = vcombine.low %v4698_v19, %v4702_v6 }
 0x4b0   :  { %v17503_v56 = vcombine.high %v4834_v22, %v4838_v23  ;;  %v17502_v33 = vcombine.low %v4834_v22, %v4838_v23  ;;  %v4746_v11 = vld [vmem:[#allocation8 + $0x250] sm:$0xff] }
 0x4b1   :  { %8019 = vmatpush1.bf16.msra.mxu0 %v17708_v53  ;;  %v4718_v53 = vld [vmem:[#allocation8 + $0x170] sm:$0xff] }
 0x4b2   :  { %8060 = vmatpush1.bf16.msra.mxu1 %v17836_v2  ;;  %8020 = vmatprep.subr.bf16.mxu0 %v17717_v61  ;;  %v4842_v2 = vld [vmem:[#allocation8 + $0x550] sm:$0xff]  ;;  %v17383_v34 = vcombine.high %v4714_v58, %v4718_v53 }
 0x4b3   :  { %8061 = vmatprep.subr.bf16.mxu1 %v17845_v32  ;;  %v4846_v61 = vld [vmem:[#allocation8 + $0x570] sm:$0xff]  ;;  %v17374_v32 = vcombine.low %v4706_v18, %v4710_v0 }
 0x4b4   :  { %v17511_v5 = vcombine.high %v4842_v2, %v4846_v61  ;;  %v17510_v42 = vcombine.low %v4842_v2, %v4846_v61  ;;  %v4754_v23 = vld [vmem:[#allocation8 + $0x290] sm:$0xff] }
 0x4b5   :  { %8021 = vmatpush1.bf16.msra.mxu0 %v17716_v38  ;;  %v4726_v38 = vld [vmem:[#allocation8 + $0x1b0] sm:$0xff] }
 0x4b6   :  { %8062 = vmatpush1.bf16.msra.mxu1 %v17844_v39  ;;  %8072 = vmatprep.subr.bf16.mxu0 %v17343_v20  ;;  %v4850_v39 = vld [vmem:[#allocation8 + $0x590] sm:$0xff]  ;;  %v17391_v52 = vcombine.high %v4722_v37, %v4726_v38  ;;  %v17390_v31 = vcombine.low %v4722_v37, %v4726_v38 }
 0x4b7   :  { %8113 = vmatprep.subr.bf16.mxu1 %v17471_v41  ;;  %v4854_v20 = vld [vmem:[#allocation8 + $0x5b0] sm:$0xff]  ;;  %v17382_v41 = vcombine.low %v4714_v58, %v4718_v53 }
 0x4b8   :  { %8023 = vmatmul.mubr.bf16.vlgmr.msra.gmra.mrb[28].mxu0 %v19858_v25  ;;  %v17518_v27 = vcombine.low %v4850_v39, %v4854_v20  ;;  %v4762_v61 = vld [vmem:[#allocation8 + $0x2d0] sm:$0xff] }
 0x4b9   :  { %8064 = vmatmul.mubr.bf16.vlgmr.msra.gmra.mrb[28].mxu1 %v19862_v4  ;;  %8073 = vmatpush1.bf16.msra.mxu0 %v17342_v45  ;;  %v17519_v45 = vcombine.high %v4850_v39, %v4854_v20  ;;  %v4770_v20 = vld [vmem:[#allocation8 + $0x310] sm:$0xff] }
 0x4ba   :  { %8104 = vmatprep.mubr.bf16.mxu0 %v19818_v43  ;;  %8114 = vmatpush1.bf16.msra.mxu1 %v17470_v1  ;;  %v4858_v1 = vld [vmem:[#allocation8 + $0x5d0] sm:$0xff] }
 0x4bb   :  { %8145 = vmatprep.mubr.bf16.mxu1 %v19821_v10  ;;  %8074 = vmatprep.subr.bf16.mxu0 %v17351_v47  ;;  %v4862_v47 = vld [vmem:[#allocation8 + $0x5f0] sm:$0xff] }
 0x4bc   :  { %8115 = vmatprep.subr.bf16.mxu1 %v17479_v8  ;;  %v17399_v8 = vcombine.high %v4730_v46, %v4734_v57  ;;  %v17527_v48 = vcombine.high %v4858_v1, %v4862_v47  ;;  %v17526_v19 = vcombine.low %v4858_v1, %v4862_v47  ;;  %v4778_v47 = vld [vmem:[#allocation8 + $0x350] sm:$0xff] }
 0x4bd   :  { %8075 = vmatpush1.bf16.msra.mxu0 %v17350_v50  ;;  %v4742_v50 = vld [vmem:[#allocation8 + $0x230] sm:$0xff] }
 0x4be   :  { %8116 = vmatpush1.bf16.msra.mxu1 %v17478_v54  ;;  %8076 = vmatprep.subr.bf16.mxu0 %v17359_v21  ;;  %v4866_v54 = vld [vmem:[#allocation8 + $0x610] sm:$0xff]  ;;  %v17407_v6 = vcombine.high %v4738_v49, %v4742_v50 }
 0x4bf   :  { %8117 = vmatprep.subr.bf16.mxu1 %v17487_v59  ;;  %v4870_v21 = vld [vmem:[#allocation8 + $0x630] sm:$0xff]  ;;  %v17398_v59 = vcombine.low %v4730_v46, %v4734_v57 }
 0x4c0   :  { %v17535_v17 = vcombine.high %v4866_v54, %v4870_v21  ;;  %v17534_v18 = vcombine.low %v4866_v54, %v4870_v21  ;;  %v4786_v21 = vld [vmem:[#allocation8 + $0x390] sm:$0xff] }
 0x4c1   :  { %8077 = vmatpush1.bf16.msra.mxu0 %v17358_v7  ;;  %v4750_v7 = vld [vmem:[#allocation8 + $0x270] sm:$0xff] }
 0x4c2   :  { %8118 = vmatpush1.bf16.msra.mxu1 %v17486_v14  ;;  %8078 = vmatprep.subr.bf16.mxu0 %v17367_v15  ;;  %v4874_v14 = vld [vmem:[#allocation8 + $0x650] sm:$0xff]  ;;  %v17415_v0 = vcombine.high %v4746_v11, %v4750_v7 }
 0x4c3   :  { %8119 = vmatprep.subr.bf16.mxu1 %v17495_v16  ;;  %v4878_v15 = vld [vmem:[#allocation8 + $0x670] sm:$0xff]  ;;  %v17406_v16 = vcombine.low %v4738_v49, %v4742_v50 }
 0x4c4   :  { %v17543_v22 = vcombine.high %v4874_v14, %v4878_v15  ;;  %v17542_v58 = vcombine.low %v4874_v14, %v4878_v15  ;;  %v4794_v15 = vld [vmem:[#allocation8 + $0x3d0] sm:$0xff] }
 0x4c5   :  { %8079 = vmatpush1.bf16.msra.mxu0 %v17366_v40  ;;  %v4758_v40 = vld [vmem:[#allocation8 + $0x2b0] sm:$0xff] }
 0x4c6   :  { %8120 = vmatpush1.bf16.msra.mxu1 %v17494_v28  ;;  %8080 = vmatprep.subr.bf16.mxu0 %v17375_v55  ;;  %v4882_v28 = vld [vmem:[#allocation8 + $0x690] sm:$0xff]  ;;  %v17423_v53 = vcombine.high %v4754_v23, %v4758_v40 }
 0x4c7   :  { %8121 = vmatprep.subr.bf16.mxu1 %v17503_v56  ;;  %v4886_v55 = vld [vmem:[#allocation8 + $0x6b0] sm:$0xff]  ;;  %v17414_v56 = vcombine.low %v4746_v11, %v4750_v7 }
 0x4c8   :  { %v17551_v2 = vcombine.high %v4882_v28, %v4886_v55  ;;  %v17550_v37 = vcombine.low %v4882_v28, %v4886_v55  ;;  %v4930_v55 = vld [vmem:[#allocation8 + $0x810] sm:$0xff] }
 0x4c9   :  { %8081 = vmatpush1.bf16.msra.mxu0 %v17374_v32  ;;  %v4766_v32 = vld [vmem:[#allocation8 + $0x2f0] sm:$0xff] }
 0x4ca   :  { %8122 = vmatpush1.bf16.msra.mxu1 %v17502_v33  ;;  %8082 = vmatprep.subr.bf16.mxu0 %v17383_v34  ;;  %v4890_v33 = vld [vmem:[#allocation8 + $0x6d0] sm:$0xff]  ;;  %v17431_v38 = vcombine.high %v4762_v61, %v4766_v32 }
 0x4cb   :  { %8123 = vmatprep.subr.bf16.mxu1 %v17511_v5  ;;  %v4894_v34 = vld [vmem:[#allocation8 + $0x6f0] sm:$0xff]  ;;  %v17422_v5 = vcombine.low %v4754_v23, %v4758_v40 }
 0x4cc   :  { %v17559_v39 = vcombine.high %v4890_v33, %v4894_v34  ;;  %v17558_v46 = vcombine.low %v4890_v33, %v4894_v34  ;;  %v4938_v34 = vld [vmem:[#allocation8 + $0x850] sm:$0xff] }
 0x4cd   :  { %8083 = vmatpush1.bf16.msra.mxu0 %v17382_v41  ;;  %v4774_v41 = vld [vmem:[#allocation8 + $0x330] sm:$0xff] }
 0x4ce   :  { %8124 = vmatpush1.bf16.msra.mxu1 %v17510_v42  ;;  %8084 = vmatprep.subr.bf16.mxu0 %v17391_v52  ;;  %v4898_v42 = vld [vmem:[#allocation8 + $0x710] sm:$0xff]  ;;  %v17439_v57 = vcombine.high %v4770_v20, %v4774_v41 }
 0x4cf   :  { %8125 = vmatprep.subr.bf16.mxu1 %v17519_v45  ;;  %v4902_v52 = vld [vmem:[#allocation8 + $0x730] sm:$0xff]  ;;  %v17430_v45 = vcombine.low %v4762_v61, %v4766_v32 }
 0x4d0   :  { %v17567_v1 = vcombine.high %v4898_v42, %v4902_v52  ;;  %v17566_v49 = vcombine.low %v4898_v42, %v4902_v52  ;;  %v4946_v42 = vld [vmem:[#allocation8 + $0x890] sm:$0xff] }
 0x4d1   :  { %8085 = vmatpush1.bf16.msra.mxu0 %v17390_v31  ;;  %v4782_v31 = vld [vmem:[#allocation8 + $0x370] sm:$0xff] }
 0x4d2   :  { %8126 = vmatpush1.bf16.msra.mxu1 %v17518_v27  ;;  %8086 = vmatprep.subr.bf16.mxu0 %v17399_v8  ;;  %v4906_v27 = vld [vmem:[#allocation8 + $0x750] sm:$0xff]  ;;  %v17447_v50 = vcombine.high %v4778_v47, %v4782_v31 }
 0x4d3   :  { %8127 = vmatprep.subr.bf16.mxu1 %v17527_v48  ;;  %v4910_v8 = vld [vmem:[#allocation8 + $0x770] sm:$0xff]  ;;  %v17438_v48 = vcombine.low %v4770_v20, %v4774_v41 }
 0x4d4   :  { %v17575_v54 = vcombine.high %v4906_v27, %v4910_v8  ;;  %v17574_v11 = vcombine.low %v4906_v27, %v4910_v8  ;;  %v4950_v52 = vld [vmem:[#allocation8 + $0x8b0] sm:$0xff] }
 0x4d5   :  { %8087 = vmatpush1.bf16.msra.mxu0 %v17398_v59  ;;  %v4790_v59 = vld [vmem:[#allocation8 + $0x3b0] sm:$0xff] }
 0x4d6   :  { %8128 = vmatpush1.bf16.msra.mxu1 %v17526_v19  ;;  %8088 = vmatprep.subr.bf16.mxu0 %v17407_v6  ;;  %v4914_v19 = vld [vmem:[#allocation8 + $0x790] sm:$0xff]  ;;  %v17455_v7 = vcombine.high %v4786_v21, %v4790_v59 }
 0x4d7   :  { %8129 = vmatprep.subr.bf16.mxu1 %v17535_v17  ;;  %v4918_v6 = vld [vmem:[#allocation8 + $0x7b0] sm:$0xff]  ;;  %v17446_v17 = vcombine.low %v4778_v47, %v4782_v31  ;;  %v17615_v31 = vcombine.high %v4946_v42, %v4950_v52 }
 0x4d8   :  { %v17583_v14 = vcombine.high %v4914_v19, %v4918_v6  ;;  %v17582_v23 = vcombine.low %v4914_v19, %v4918_v6  ;;  %v4954_v8 = vld [vmem:[#allocation8 + $0x8d0] sm:$0xff] }
 0x4d9   :  { %8089 = vmatpush1.bf16.msra.mxu0 %v17406_v16  ;;  %v4798_v16 = vld [vmem:[#allocation8 + $0x3f0] sm:$0xff] }
 0x4da   :  { %8130 = vmatpush1.bf16.msra.mxu1 %v17534_v18  ;;  %8090 = vmatprep.subr.bf16.mxu0 %v17415_v0  ;;  %v4922_v18 = vld [vmem:[#allocation8 + $0x7d0] sm:$0xff]  ;;  %v17463_v40 = vcombine.high %v4794_v15, %v4798_v16 }
 0x4db   :  { %8131 = vmatprep.subr.bf16.mxu1 %v17543_v22  ;;  %v4926_v0 = vld [vmem:[#allocation8 + $0x7f0] sm:$0xff]  ;;  %v17454_v22 = vcombine.low %v4786_v21, %v4790_v59 }
 0x4dc   :  { %v17591_v28 = vcombine.high %v4922_v18, %v4926_v0  ;;  %v17590_v61 = vcombine.low %v4922_v18, %v4926_v0  ;;  %v4962_v6 = vld [vmem:[#allocation8 + $0x910] sm:$0xff] }
 0x4dd   :  { %8091 = vmatpush1.bf16.msra.mxu0 %v17414_v56  ;;  %v4934_v56 = vld [vmem:[#allocation8 + $0x830] sm:$0xff] }
 0x4de   :  { %8132 = vmatpush1.bf16.msra.mxu1 %v17542_v58  ;;  %8092 = vmatprep.subr.bf16.mxu0 %v17423_v53  ;;  %v5058_v58 = vld [vmem:[#allocation8 + $0xc10] sm:$0xff]  ;;  %v17599_v32 = vcombine.high %v4930_v55, %v4934_v56 }
 0x4df   :  { %8133 = vmatprep.subr.bf16.mxu1 %v17551_v2  ;;  %v5062_v53 = vld [vmem:[#allocation8 + $0xc30] sm:$0xff]  ;;  %v17462_v2 = vcombine.low %v4794_v15, %v4798_v16 }
 0x4e0   :  { %v17727_v33 = vcombine.high %v5058_v58, %v5062_v53  ;;  %v17726_v20 = vcombine.low %v5058_v58, %v5062_v53  ;;  %v4970_v0 = vld [vmem:[#allocation8 + $0x950] sm:$0xff] }
 0x4e1   :  { %8093 = vmatpush1.bf16.msra.mxu0 %v17422_v5  ;;  %v4942_v5 = vld [vmem:[#allocation8 + $0x870] sm:$0xff] }
 0x4e2   :  { %8134 = vmatpush1.bf16.msra.mxu1 %v17550_v37  ;;  %8094 = vmatprep.subr.bf16.mxu0 %v17431_v38  ;;  %v17598_v37 = vcombine.low %v4930_v55, %v4934_v56  ;;  %v5066_v38 = vld [vmem:[#allocation8 + $0xc50] sm:$0xff]  ;;  %v17607_v41 = vcombine.high %v4938_v34, %v4942_v5 }
 0x4e3   :  { %8135 = vmatprep.subr.bf16.mxu1 %v17559_v39  ;;  %v5070_v39 = vld [vmem:[#allocation8 + $0xc70] sm:$0xff] }
 0x4e4   :  { %v17734_v47 = vcombine.low %v5066_v38, %v5070_v39  ;;  %v4978_v53 = vld [vmem:[#allocation8 + $0x990] sm:$0xff] }
 0x4e5   :  { %8095 = vmatpush1.bf16.msra.mxu0 %v17430_v45  ;;  %v17735_v45 = vcombine.high %v5066_v38, %v5070_v39  ;;  %v4986_v39 = vld [vmem:[#allocation8 + $0x9d0] sm:$0xff] }
 0x4e6   :  { %8136 = vmatpush1.bf16.msra.mxu1 %v17558_v46  ;;  %8096 = vmatprep.subr.bf16.mxu0 %v17439_v57  ;;  %v5074_v46 = vld [vmem:[#allocation8 + $0xc90] sm:$0xff] }
 0x4e7   :  { %8137 = vmatprep.subr.bf16.mxu1 %v17567_v1  ;;  %v5078_v57 = vld [vmem:[#allocation8 + $0xcb0] sm:$0xff]  ;;  %v17606_v1 = vcombine.low %v4938_v34, %v4942_v5 }
 0x4e8   :  { %v17743_v27 = vcombine.high %v5074_v46, %v5078_v57  ;;  %v17742_v21 = vcombine.low %v5074_v46, %v5078_v57  ;;  %v5118_v46 = vld [vmem:[#allocation8 + $0xdf0] sm:$0xff] }
 0x4e9   :  { %8097 = vmatpush1.bf16.msra.mxu0 %v17438_v48  ;;  %v4958_v48 = vld [vmem:[#allocation8 + $0x8f0] sm:$0xff] }
 0x4ea   :  { %8138 = vmatpush1.bf16.msra.mxu1 %v17566_v49  ;;  %8098 = vmatprep.subr.bf16.mxu0 %v17447_v50  ;;  %v5082_v49 = vld [vmem:[#allocation8 + $0xcd0] sm:$0xff]  ;;  %v17623_v59 = vcombine.high %v4954_v8, %v4958_v48 }
 0x4eb   :  { %8139 = vmatprep.subr.bf16.mxu1 %v17575_v54  ;;  %v5086_v50 = vld [vmem:[#allocation8 + $0xcf0] sm:$0xff]  ;;  %v17614_v54 = vcombine.low %v4946_v42, %v4950_v52 }
 0x4ec   :  { %v17751_v19 = vcombine.high %v5082_v49, %v5086_v50  ;;  %v17750_v15 = vcombine.low %v5082_v49, %v5086_v50 }
 0x4ed   :  { %8099 = vmatpush1.bf16.msra.mxu0 %v17446_v17  ;;  %v4966_v17 = vld [vmem:[#allocation8 + $0x930] sm:$0xff] }
 0x4ee   :  { %8140 = vmatpush1.bf16.msra.mxu1 %v17574_v11  ;;  %8100 = vmatprep.subr.bf16.mxu0 %v17455_v7  ;;  %v5090_v11 = vld [vmem:[#allocation8 + $0xd10] sm:$0xff]  ;;  %v17631_v16 = vcombine.high %v4962_v6, %v4966_v17 }
 0x4ef   :  { %8141 = vmatprep.subr.bf16.mxu1 %v17583_v14  ;;  %v5094_v7 = vld [vmem:[#allocation8 + $0xd30] sm:$0xff]  ;;  %v17622_v14 = vcombine.low %v4954_v8, %v4958_v48 }
 0x4f0   :  { %v17759_v18 = vcombine.high %v5090_v11, %v5094_v7  ;;  %v17758_v55 = vcombine.low %v5090_v11, %v5094_v7 }
 0x4f1   :  { %8101 = vmatpush1.bf16.msra.mxu0 %v17454_v22  ;;  %v4974_v22 = vld [vmem:[#allocation8 + $0x970] sm:$0xff] }
 0x4f2   :  { %8142 = vmatpush1.bf16.msra.mxu1 %v17582_v23  ;;  %8102 = vmatprep.subr.bf16.mxu0 %v17463_v40  ;;  %v5098_v23 = vld [vmem:[#allocation8 + $0xd50] sm:$0xff]  ;;  %v17639_v56 = vcombine.high %v4970_v0, %v4974_v22 }
 0x4f3   :  { %8143 = vmatprep.subr.bf16.mxu1 %v17591_v28  ;;  %v5102_v40 = vld [vmem:[#allocation8 + $0xd70] sm:$0xff]  ;;  %v17630_v28 = vcombine.low %v4962_v6, %v4966_v17 }
 0x4f4   :  { %v17767_v58 = vcombine.high %v5098_v23, %v5102_v40  ;;  %v17766_v34 = vcombine.low %v5098_v23, %v5102_v40  ;;  %v5126_v6 = vld [vmem:[#allocation8 + $0xe30] sm:$0xff] }
 0x4f5   :  { %8103 = vmatpush1.bf16.msra.mxu0 %v17462_v2  ;;  %v4982_v2 = vld [vmem:[#allocation8 + $0x9b0] sm:$0xff] }
 0x4f6   :  { %8144 = vmatpush1.bf16.msra.mxu1 %v17590_v61  ;;  %8154 = vmatprep.subr.bf16.mxu0 %v17599_v32  ;;  %v5106_v61 = vld [vmem:[#allocation8 + $0xd90] sm:$0xff]  ;;  %v17647_v5 = vcombine.high %v4978_v53, %v4982_v2 }
 0x4f7   :  { %8195 = vmatprep.subr.bf16.mxu1 %v17727_v33  ;;  %v5110_v32 = vld [vmem:[#allocation8 + $0xdb0] sm:$0xff]  ;;  %v17638_v33 = vcombine.low %v4970_v0, %v4974_v22 }
 0x4f8   :  { %8105 = vmatmul.mubr.bf16.vlgmr.msra.gmra.mrb[32].mxu0 %v19830_v26  ;;  %v17775_v38 = vcombine.high %v5106_v61, %v5110_v32  ;;  %v17774_v49 = vcombine.low %v5106_v61, %v5110_v32  ;;  %v5134_v0 = vld [vmem:[#allocation8 + $0xe70] sm:$0xff] }
 0x4f9   :  { %8146 = vmatmul.mubr.bf16.vlgmr.msra.gmra.mrb[32].mxu1 %v19832_v30  ;;  %8155 = vmatpush1.bf16.msra.mxu0 %v17598_v37 }
 0x4fa   :  { %8186 = vmatprep.mubr.bf16.mxu0 %v19856_v24  ;;  %8196 = vmatpush1.bf16.msra.mxu1 %v17726_v20  ;;  %v4990_v20 = vld [vmem:[#allocation8 + $0x9f0] sm:$0xff] }
 0x4fb   :  { %8227 = vmatprep.mubr.bf16.mxu1 %v19860_v3  ;;  %8156 = vmatprep.subr.bf16.mxu0 %v17607_v41  ;;  %v17655_v50 = vcombine.high %v4986_v39, %v4990_v20  ;;  %v17654_v17 = vcombine.low %v4986_v39, %v4990_v20 }
 0x4fc   :  { %8197 = vmatprep.subr.bf16.mxu1 %v17735_v45  ;;  %v5114_v45 = vld [vmem:[#allocation8 + $0xdd0] sm:$0xff] }
 0x4fd   :  { %8157 = vmatpush1.bf16.msra.mxu0 %v17606_v1  ;;  %v17782_v11 = vcombine.low %v5114_v45, %v5118_v46 }
 0x4fe   :  { %8198 = vmatpush1.bf16.msra.mxu1 %v17734_v47  ;;  %8158 = vmatprep.subr.bf16.mxu0 %v17615_v31  ;;  %v17646_v31 = vcombine.low %v4978_v53, %v4982_v2  ;;  %v5142_v53 = vld [vmem:[#allocation8 + $0xeb0] sm:$0xff] }
 0x4ff   :  { %8199 = vmatprep.subr.bf16.mxu1 %v17743_v27 }
 0x501   :  { %8159 = vmatpush1.bf16.msra.mxu0 %v17614_v54 }
 0x502   :  { %8200 = vmatpush1.bf16.msra.mxu1 %v17742_v21  ;;  %8160 = vmatprep.subr.bf16.mxu0 %v17623_v59  ;;  %v17783_v21 = vcombine.high %v5114_v45, %v5118_v46  ;;  %v4994_v59 = vld [vmem:[#allocation8 + $0xa10] sm:$0xff] }
 0x503   :  { %8201 = vmatprep.subr.bf16.mxu1 %v17751_v19  ;;  %v4998_v19 = vld [vmem:[#allocation8 + $0xa30] sm:$0xff] }
 0x504   :  { %v17663_v7 = vcombine.high %v4994_v59, %v4998_v19  ;;  %v17662_v22 = vcombine.low %v4994_v59, %v4998_v19  ;;  %v5030_v45 = vld [vmem:[#allocation8 + $0xb30] sm:$0xff] }
 0x505   :  { %8161 = vmatpush1.bf16.msra.mxu0 %v17622_v14  ;;  %v5154_v46 = vld [vmem:[#allocation8 + $0xf10] sm:$0xff] }
 0x506   :  { %8202 = vmatpush1.bf16.msra.mxu1 %v17750_v15  ;;  %8162 = vmatprep.subr.bf16.mxu0 %v17631_v16  ;;  %v5002_v15 = vld [vmem:[#allocation8 + $0xa50] sm:$0xff] }
 0x507   :  { %8203 = vmatprep.subr.bf16.mxu1 %v17759_v18  ;;  %v5006_v16 = vld [vmem:[#allocation8 + $0xa70] sm:$0xff] }
 0x508   :  { %v5130_v18 = vld [vmem:[#allocation8 + $0xe50] sm:$0xff]  ;;  %v17671_v40 = vcombine.high %v5002_v15, %v5006_v16  ;;  %v17670_v2 = vcombine.low %v5002_v15, %v5006_v16 }
 0x509   :  { %8163 = vmatpush1.bf16.msra.mxu0 %v17630_v28  ;;  %v17799_v28 = vcombine.high %v5130_v18, %v5134_v0  ;;  %v17798_v61 = vcombine.low %v5130_v18, %v5134_v0  ;;  %v5050_v0 = vld [vmem:[#allocation8 + $0xbd0] sm:$0xff] }
 0x50a   :  { %8204 = vmatpush1.bf16.msra.mxu1 %v17758_v55  ;;  %8164 = vmatprep.subr.bf16.mxu0 %v17639_v56  ;;  %v5010_v55 = vld [vmem:[#allocation8 + $0xa90] sm:$0xff] }
 0x50b   :  { %v7860_v37 = vpop.f32.mrb[20].mxu0  ;;  %8205 = vmatprep.subr.bf16.mxu1 %v17767_v58  ;;  %v5014_v56 = vld [vmem:[#allocation8 + $0xab0] sm:$0xff] }
 0x50c   :  { %v7861_v41 = vadd.f32 %v7860_v37, %v19876_v36  ;;  %v7901_v42 = vpop.f32.mrb[20].mxu1  ;;  %v7862_v52 = vpop.f32.mrb[21].mxu0  ;;  %v5138_v58 = vld [vmem:[#allocation8 + $0xe90] sm:$0xff]  ;;  %v17679_v32 = vcombine.high %v5010_v55, %v5014_v56  ;;  %v17678_v39 = vcombine.low %v5010_v55, %v5014_v56 }
 0x50d   :  { %v7863_v57 = vadd.f32 %v7862_v52, %v19878_v62  ;;  %v7903_v1 = vpop.f32.mrb[21].mxu1  ;;  %8165 = vmatpush1.bf16.msra.mxu0 %v17638_v33  ;;  %v7864_v47 = vpop.f32.mrb[22].mxu0  ;;  %v5122_v62 = vld [vmem:[#allocation8 + $0xe10] sm:$0xff]  ;;  %v17807_v33 = vcombine.high %v5138_v58, %v5142_v53  ;;  %v17806_v20 = vcombine.low %v5138_v58, %v5142_v53  ;;  %v4675_v53 = vld [vmem:[#allocation8 + $0x18] sm:$0xff] }
 0x50e   :  { %v19894_v27 = vadd.f32 %v7901_v42, %v7861_v41  ;;  %8206 = vmatpush1.bf16.msra.mxu1 %v17766_v34  ;;  %v7905_v8 = vpop.f32.mrb[22].mxu1  ;;  %v7865_v48 = vpop.f32.mrb[23].mxu0  ;;  %8166 = vmatprep.subr.bf16.mxu0 %v17647_v5  ;;  %v17791_v14 = vcombine.high %v5122_v62, %v5126_v6  ;;  %v17790_v23 = vcombine.low %v5122_v62, %v5126_v6  ;;  %v5018_v34 = vld [vmem:[#allocation8 + $0xad0] sm:$0xff] }
 0x50f   :  { %v19896_v54 = vadd.f32 %v7903_v1, %v7863_v57  ;;  %v7906_v36 = vpop.f32.mrb[23].mxu1  ;;  %8207 = vmatprep.subr.bf16.mxu1 %v17775_v38  ;;  %v5022_v5 = vld [vmem:[#allocation8 + $0xaf0] sm:$0xff] }
 0x510   :  { %v5146_v37 = vld [vmem:[#allocation8 + $0xed0] sm:$0xff]  ;;  %v17687_v41 = vcombine.high %v5018_v34, %v5022_v5  ;;  %v17686_v1 = vcombine.low %v5018_v34, %v5022_v5 }
 0x511   :  { %8167 = vmatpush1.bf16.msra.mxu0 %v17646_v31  ;;  %v5150_v38 = vld [vmem:[#allocation8 + $0xef0] sm:$0xff] }
 0x512   :  { %8208 = vmatpush1.bf16.msra.mxu1 %v17774_v49  ;;  %8168 = vmatprep.subr.bf16.mxu0 %v17655_v50  ;;  %v17815_v42 = vcombine.high %v5146_v37, %v5150_v38  ;;  %v5026_v52 = vld [vmem:[#allocation8 + $0xb10] sm:$0xff]  ;;  %v17814_v47 = vcombine.low %v5146_v37, %v5150_v38  ;;  %v4683_v38 = vld [vmem:[#allocation8 + $0x58] sm:$0xff] }
 0x513   :  { %8209 = vmatprep.subr.bf16.mxu1 %v17783_v21  ;;  %v5158_v57 = vld [vmem:[#allocation8 + $0xf30] sm:$0xff]  ;;  %v17695_v31 = vcombine.high %v5026_v52, %v5030_v45  ;;  %v17694_v21 = vcombine.low %v5026_v52, %v5030_v45 }
 0x514   :  { %v17823_v8 = vcombine.high %v5154_v46, %v5158_v57  ;;  %v5034_v48 = vld [vmem:[#allocation8 + $0xb50] sm:$0xff]  ;;  %v17822_v59 = vcombine.low %v5154_v46, %v5158_v57  ;;  %v4691_v46 = vld [vmem:[#allocation8 + $0x98] sm:$0xff] }
 0x515   :  { %8169 = vmatpush1.bf16.msra.mxu0 %v17654_v17  ;;  %v5038_v49 = vld [vmem:[#allocation8 + $0xb70] sm:$0xff]  ;;  %v4695_v57 = vld [vmem:[#allocation8 + $0xb8] sm:$0xff] }
 0x516   :  { %8210 = vmatpush1.bf16.msra.mxu1 %v17782_v11  ;;  %8170 = vmatprep.subr.bf16.mxu0 %v17663_v7  ;;  %v5162_v50 = vld [vmem:[#allocation8 + $0xf50] sm:$0xff]  ;;  %v17703_v19 = vcombine.high %v5034_v48, %v5038_v49 }
 0x517   :  { %8211 = vmatprep.subr.bf16.mxu1 %v17791_v14  ;;  %v5166_v36 = vld [vmem:[#allocation8 + $0xf70] sm:$0xff]  ;;  %v17702_v14 = vcombine.low %v5034_v48, %v5038_v49  ;;  %v17361_v49 = vcombine.high %v4691_v46, %v4695_v57 }
 0x518   :  { %v17831_v62 = vcombine.high %v5162_v50, %v5166_v36  ;;  %v5042_v6 = vld [vmem:[#allocation8 + $0xb90] sm:$0xff]  ;;  %v17830_v15 = vcombine.low %v5162_v50, %v5166_v36  ;;  %v4699_v36 = vld [vmem:[#allocation8 + $0xd8] sm:$0xff] }
 0x519   :  { %8171 = vmatpush1.bf16.msra.mxu0 %v17662_v22  ;;  %v5046_v17 = vld [vmem:[#allocation8 + $0xbb0] sm:$0xff] }
 0x51a   :  { %8212 = vmatpush1.bf16.msra.mxu1 %v17790_v23  ;;  %8172 = vmatprep.subr.bf16.mxu0 %v17671_v40  ;;  %v5170_v11 = vld [vmem:[#allocation8 + $0xf90] sm:$0xff]  ;;  %v17711_v16 = vcombine.high %v5042_v6, %v5046_v17 }
 0x51b   :  { %8213 = vmatprep.subr.bf16.mxu1 %v17799_v28  ;;  %v5174_v7 = vld [vmem:[#allocation8 + $0xfb0] sm:$0xff]  ;;  %v17710_v28 = vcombine.low %v5042_v6, %v5046_v17 }
 0x51c   :  { %v17839_v18 = vcombine.high %v5170_v11, %v5174_v7  ;;  %v5054_v22 = vld [vmem:[#allocation8 + $0xbf0] sm:$0xff]  ;;  %v17838_v55 = vcombine.low %v5170_v11, %v5174_v7  ;;  %v4707_v11 = vld [vmem:[#allocation8 + $0x118] sm:$0xff] }
 0x51d   :  { %8173 = vmatpush1.bf16.msra.mxu0 %v17670_v2  ;;  %v5178_v23 = vld [vmem:[#allocation8 + $0xfd0] sm:$0xff]  ;;  %v17719_v56 = vcombine.high %v5050_v0, %v5054_v22  ;;  %v4679_v2 = vld [vmem:[#allocation8 + $0x38] sm:$0xff] }
 0x51e   :  { %8214 = vmatpush1.bf16.msra.mxu1 %v17798_v61  ;;  %8174 = vmatprep.subr.bf16.mxu0 %v17679_v32  ;;  %v5182_v40 = vld [vmem:[#allocation8 + $0xff0] sm:$0xff]  ;;  %v4803_v61 = vld [vmem:[#allocation8 + $0x418] sm:$0xff]  ;;  %v17345_v5 = vcombine.high %v4675_v53, %v4679_v2 }
 0x51f   :  { %8215 = vmatprep.subr.bf16.mxu1 %v17807_v33  ;;  %v17847_v58 = vcombine.high %v5178_v23, %v5182_v40  ;;  %v4807_v32 = vld [vmem:[#allocation8 + $0x438] sm:$0xff]  ;;  %v17718_v33 = vcombine.low %v5050_v0, %v5054_v22  ;;  %v17846_v34 = vcombine.low %v5178_v23, %v5182_v40 }
 0x520   :  { %v17473_v37 = vcombine.high %v4803_v61, %v4807_v32  ;;  %v17472_v52 = vcombine.low %v4803_v61, %v4807_v32  ;;  %v4711_v7 = vld [vmem:[#allocation8 + $0x138] sm:$0xff] }
 0x521   :  { %8175 = vmatpush1.bf16.msra.mxu0 %v17678_v39  ;;  %v4687_v39 = vld [vmem:[#allocation8 + $0x78] sm:$0xff] }
 0x522   :  { %8216 = vmatpush1.bf16.msra.mxu1 %v17806_v20  ;;  %8176 = vmatprep.subr.bf16.mxu0 %v17687_v41  ;;  %v17344_v20 = vcombine.low %v4675_v53, %v4679_v2  ;;  %v4811_v41 = vld [vmem:[#allocation8 + $0x458] sm:$0xff]  ;;  %v17353_v45 = vcombine.high %v4683_v38, %v4687_v39 }
 0x523   :  { %8217 = vmatprep.subr.bf16.mxu1 %v17815_v42  ;;  %v4815_v42 = vld [vmem:[#allocation8 + $0x478] sm:$0xff] }
 0x524   :  { %v17480_v48 = vcombine.low %v4811_v41, %v4815_v42  ;;  %v4715_v22 = vld [vmem:[#allocation8 + $0x158] sm:$0xff] }
 0x525   :  { %8177 = vmatpush1.bf16.msra.mxu0 %v17686_v1  ;;  %v17481_v1 = vcombine.high %v4811_v41, %v4815_v42  ;;  %v4719_v23 = vld [vmem:[#allocation8 + $0x178] sm:$0xff] }
 0x526   :  { %8218 = vmatpush1.bf16.msra.mxu1 %v17814_v47  ;;  %8178 = vmatprep.subr.bf16.mxu0 %v17695_v31  ;;  %v4819_v47 = vld [vmem:[#allocation8 + $0x498] sm:$0xff] }
 0x527   :  { %8219 = vmatprep.subr.bf16.mxu1 %v17823_v8  ;;  %v4823_v31 = vld [vmem:[#allocation8 + $0x4b8] sm:$0xff]  ;;  %v17352_v8 = vcombine.low %v4683_v38, %v4687_v39 }
 0x528   :  { %v17489_v50 = vcombine.high %v4819_v47, %v4823_v31  ;;  %v17488_v6 = vcombine.low %v4819_v47, %v4823_v31  ;;  %v4843_v40 = vld [vmem:[#allocation8 + $0x558] sm:$0xff] }
 0x529   :  { %8179 = vmatpush1.bf16.msra.mxu0 %v17694_v21  ;;  %v4703_v21 = vld [vmem:[#allocation8 + $0xf8] sm:$0xff] }
 0x52a   :  { %8220 = vmatpush1.bf16.msra.mxu1 %v17822_v59  ;;  %8180 = vmatprep.subr.bf16.mxu0 %v17703_v19  ;;  %v4827_v59 = vld [vmem:[#allocation8 + $0x4d8] sm:$0xff]  ;;  %v17369_v17 = vcombine.high %v4699_v36, %v4703_v21 }
 0x52b   :  { %8221 = vmatprep.subr.bf16.mxu1 %v17831_v62  ;;  %v4831_v19 = vld [vmem:[#allocation8 + $0x4f8] sm:$0xff]  ;;  %v17360_v62 = vcombine.low %v4691_v46, %v4695_v57 }
 0x52c   :  { %v4723_v2 = vld [vmem:[#allocation8 + $0x198] sm:$0xff] }
 0x52d   :  { %8181 = vmatpush1.bf16.msra.mxu0 %v17702_v14  ;;  %v4835_v14 = vld [vmem:[#allocation8 + $0x518] sm:$0xff] }
 0x52e   :  { %8222 = vmatpush1.bf16.msra.mxu1 %v17830_v15  ;;  %8182 = vmatprep.subr.bf16.mxu0 %v17711_v16  ;;  %v4839_v15 = vld [vmem:[#allocation8 + $0x538] sm:$0xff]  ;;  %v17496_v16 = vcombine.low %v4827_v59, %v4831_v19 }
 0x52f   :  { %8223 = vmatprep.subr.bf16.mxu1 %v17839_v18  ;;  %v17377_v18 = vcombine.high %v4707_v11, %v4711_v7  ;;  %v17505_v0 = vcombine.high %v4835_v14, %v4839_v15  ;;  %v4727_v61 = vld [vmem:[#allocation8 + $0x1b8] sm:$0xff] }
 0x530   :  { %v4851_v32 = vld [vmem:[#allocation8 + $0x598] sm:$0xff]  ;;  %v17392_v31 = vcombine.low %v4723_v2, %v4727_v61 }
 0x531   :  { %8183 = vmatpush1.bf16.msra.mxu0 %v17710_v28  ;;  %v4847_v28 = vld [vmem:[#allocation8 + $0x578] sm:$0xff] }
 0x532   :  { %8224 = vmatpush1.bf16.msra.mxu1 %v17838_v55  ;;  %8184 = vmatprep.subr.bf16.mxu0 %v17719_v56  ;;  %v17376_v55 = vcombine.low %v4707_v11, %v4711_v7  ;;  %v17504_v56 = vcombine.low %v4835_v14, %v4839_v15  ;;  %v17513_v53 = vcombine.high %v4843_v40, %v4847_v28  ;;  %v4735_v41 = vld [vmem:[#allocation8 + $0x1f8] sm:$0xff] }
 0x533   :  { %8225 = vmatprep.subr.bf16.mxu1 %v17847_v58  ;;  %v17385_v58 = vcombine.high %v4715_v22, %v4719_v23  ;;  %v4863_v46 = vld [vmem:[#allocation8 + $0x5f8] sm:$0xff] }
 0x534   :  { %v4747_v15 = vld [vmem:[#allocation8 + $0x258] sm:$0xff] }
 0x535   :  { %8185 = vmatpush1.bf16.msra.mxu0 %v17718_v33  ;;  %v4855_v33 = vld [vmem:[#allocation8 + $0x5b8] sm:$0xff] }
 0x536   :  { %8226 = vmatpush1.bf16.msra.mxu1 %v17846_v34  ;;  %8236 = vmatprep.subr.bf16.mxu0 %v17345_v5  ;;  %v17384_v34 = vcombine.low %v4715_v22, %v4719_v23  ;;  %v17512_v5 = vcombine.low %v4843_v40, %v4847_v28  ;;  %v17521_v39 = vcombine.high %v4851_v32, %v4855_v33  ;;  %v4755_v28 = vld [vmem:[#allocation8 + $0x298] sm:$0xff] }
 0x537   :  { %8277 = vmatprep.subr.bf16.mxu1 %v17473_v37  ;;  %v17393_v37 = vcombine.high %v4723_v2, %v4727_v61 }
 0x538   :  { %8187 = vmatmul.mubr.bf16.vlgmr.msra.gmra.mrb[36].mxu0 %v19858_v25 }
 0x539   :  { %8228 = vmatmul.mubr.bf16.vlgmr.msra.gmra.mrb[36].mxu1 %v19862_v4  ;;  %8237 = vmatpush1.bf16.msra.mxu0 %v17344_v20  ;;  %v4731_v20 = vld [vmem:[#allocation8 + $0x1d8] sm:$0xff] }
 0x53a   :  { %8268 = vmatprep.mubr.bf16.mxu0 %v19818_v43  ;;  %8278 = vmatpush1.bf16.msra.mxu1 %v17472_v52  ;;  %v17497_v43 = vcombine.high %v4827_v59, %v4831_v19  ;;  %v4739_v19 = vld [vmem:[#allocation8 + $0x218] sm:$0xff] }
 0x53b   :  { %8309 = vmatprep.mubr.bf16.mxu1 %v19821_v10  ;;  %8238 = vmatprep.subr.bf16.mxu0 %v17353_v45  ;;  %v17368_v10 = vcombine.low %v4699_v36, %v4703_v21  ;;  %v4859_v45 = vld [vmem:[#allocation8 + $0x5d8] sm:$0xff]  ;;  %v17401_v36 = vcombine.high %v4731_v20, %v4735_v41 }
 0x53c   :  { %8279 = vmatprep.subr.bf16.mxu1 %v17481_v1  ;;  %v17529_v59 = vcombine.high %v4859_v45, %v4863_v46  ;;  %v17528_v11 = vcombine.low %v4859_v45, %v4863_v46  ;;  %v4899_v45 = vld [vmem:[#allocation8 + $0x718] sm:$0xff] }
 0x53d   :  { %8239 = vmatpush1.bf16.msra.mxu0 %v17352_v8  ;;  %v4903_v46 = vld [vmem:[#allocation8 + $0x738] sm:$0xff] }
 0x53e   :  { %8280 = vmatpush1.bf16.msra.mxu1 %v17480_v48  ;;  %8240 = vmatprep.subr.bf16.mxu0 %v17361_v49 }
 0x53f   :  { %8281 = vmatprep.subr.bf16.mxu1 %v17489_v50  ;;  %v17520_v50 = vcombine.low %v4851_v32, %v4855_v33  ;;  %v4763_v33 = vld [vmem:[#allocation8 + $0x2d8] sm:$0xff] }
 0x541   :  { %8241 = vmatpush1.bf16.msra.mxu0 %v17360_v62  ;;  %v4743_v62 = vld [vmem:[#allocation8 + $0x238] sm:$0xff] }
 0x542   :  { %8282 = vmatpush1.bf16.msra.mxu1 %v17488_v6  ;;  %8242 = vmatprep.subr.bf16.mxu0 %v17369_v17  ;;  %v4867_v6 = vld [vmem:[#allocation8 + $0x618] sm:$0xff]  ;;  %v17409_v7 = vcombine.high %v4739_v19, %v4743_v62 }
 0x543   :  { %8283 = vmatprep.subr.bf16.mxu1 %v17497_v43  ;;  %v4871_v17 = vld [vmem:[#allocation8 + $0x638] sm:$0xff]  ;;  %v17400_v43 = vcombine.low %v4731_v20, %v4735_v41 }
 0x544   :  { %v17537_v14 = vcombine.high %v4867_v6, %v4871_v17  ;;  %v17536_v22 = vcombine.low %v4867_v6, %v4871_v17  ;;  %v4787_v17 = vld [vmem:[#allocation8 + $0x398] sm:$0xff] }
 0x545   :  { %8243 = vmatpush1.bf16.msra.mxu0 %v17368_v10  ;;  %v4751_v10 = vld [vmem:[#allocation8 + $0x278] sm:$0xff] }
 0x546   :  { %8284 = vmatpush1.bf16.msra.mxu1 %v17496_v16  ;;  %8244 = vmatprep.subr.bf16.mxu0 %v17377_v18  ;;  %v4875_v16 = vld [vmem:[#allocation8 + $0x658] sm:$0xff]  ;;  %v17417_v23 = vcombine.high %v4747_v15, %v4751_v10 }
 0x547   :  { %8285 = vmatprep.subr.bf16.mxu1 %v17505_v0  ;;  %v4879_v18 = vld [vmem:[#allocation8 + $0x678] sm:$0xff]  ;;  %v17408_v0 = vcombine.low %v4739_v19, %v4743_v62  ;;  %v17568_v19 = vcombine.low %v4899_v45, %v4903_v46 }
 0x548   :  { %v17545_v40 = vcombine.high %v4875_v16, %v4879_v18  ;;  %v17544_v2 = vcombine.low %v4875_v16, %v4879_v18  ;;  %v4795_v18 = vld [vmem:[#allocation8 + $0x3d8] sm:$0xff] }
 0x549   :  { %8245 = vmatpush1.bf16.msra.mxu0 %v17376_v55  ;;  %v4759_v55 = vld [vmem:[#allocation8 + $0x2b8] sm:$0xff] }
 0x54a   :  { %8286 = vmatpush1.bf16.msra.mxu1 %v17504_v56  ;;  %8246 = vmatprep.subr.bf16.mxu0 %v17385_v58  ;;  %v4883_v56 = vld [vmem:[#allocation8 + $0x698] sm:$0xff]  ;;  %v17425_v61 = vcombine.high %v4755_v28, %v4759_v55 }
 0x54b   :  { %v7942_v38 = vpop.f32.mrb[24].mxu0  ;;  %8287 = vmatprep.subr.bf16.mxu1 %v17513_v53  ;;  %v4887_v58 = vld [vmem:[#allocation8 + $0x6b8] sm:$0xff]  ;;  %v17416_v53 = vcombine.low %v4747_v15, %v4751_v10 }
 0x54c   :  { %v7983_v42 = vpop.f32.mrb[24].mxu1  ;;  %v7944_v52 = vpop.f32.mrb[25].mxu0  ;;  %v17553_v32 = vcombine.high %v4883_v56, %v4887_v58 }
 0x54d   :  { %v19902_v57 = vadd.f32 %v7983_v42, %v7942_v38  ;;  %v7985_v1 = vpop.f32.mrb[25].mxu1  ;;  %v7946_v47 = vpop.f32.mrb[26].mxu0  ;;  %8247 = vmatpush1.bf16.msra.mxu0 %v17384_v34  ;;  %v4767_v34 = vld [vmem:[#allocation8 + $0x2f8] sm:$0xff]  ;;  %v17424_v38 = vcombine.low %v4755_v28, %v4759_v55 }
 0x54e   :  { %v19904_v8 = vadd.f32 %v7985_v1, %v7944_v52  ;;  %v7987_v48 = vpop.f32.mrb[26].mxu1  ;;  %8288 = vmatpush1.bf16.msra.mxu1 %v17512_v5  ;;  %v7947_v49 = vpop.f32.mrb[27].mxu0  ;;  %8248 = vmatprep.subr.bf16.mxu0 %v17393_v37  ;;  %v4891_v5 = vld [vmem:[#allocation8 + $0x6d8] sm:$0xff]  ;;  %v17433_v20 = vcombine.high %v4763_v33, %v4767_v34  ;;  %v17432_v1 = vcombine.low %v4763_v33, %v4767_v34 }
 0x54f   :  { %v7988_v21 = vpop.f32.mrb[27].mxu1  ;;  %8289 = vmatprep.subr.bf16.mxu1 %v17521_v39  ;;  %v4895_v37 = vld [vmem:[#allocation8 + $0x6f8] sm:$0xff]  ;;  %v17552_v39 = vcombine.low %v4883_v56, %v4887_v58  ;;  %v17569_v48 = vcombine.high %v4899_v45, %v4903_v46 }
 0x550   :  { %v17561_v41 = vcombine.high %v4891_v5, %v4895_v37  ;;  %v4771_v42 = vld [vmem:[#allocation8 + $0x318] sm:$0xff]  ;;  %v17560_v47 = vcombine.low %v4891_v5, %v4895_v37 }
 0x551   :  { %8249 = vmatpush1.bf16.msra.mxu0 %v17392_v31  ;;  %v4775_v52 = vld [vmem:[#allocation8 + $0x338] sm:$0xff] }
 0x552   :  { %8290 = vmatpush1.bf16.msra.mxu1 %v17520_v50  ;;  %8250 = vmatprep.subr.bf16.mxu0 %v17401_v36  ;;  %v17441_v31 = vcombine.high %v4771_v42, %v4775_v52  ;;  %v4779_v49 = vld [vmem:[#allocation8 + $0x358] sm:$0xff] }
 0x553   :  { %8291 = vmatprep.subr.bf16.mxu1 %v17529_v59  ;;  %v4783_v50 = vld [vmem:[#allocation8 + $0x378] sm:$0xff]  ;;  %v17440_v59 = vcombine.low %v4771_v42, %v4775_v52 }
 0x554   :  { %v4907_v36 = vld [vmem:[#allocation8 + $0x758] sm:$0xff]  ;;  %v17449_v62 = vcombine.high %v4779_v49, %v4783_v50 }
 0x555   :  { %8251 = vmatpush1.bf16.msra.mxu0 %v17400_v43  ;;  %v4911_v21 = vld [vmem:[#allocation8 + $0x778] sm:$0xff] }
 0x556   :  { %8292 = vmatpush1.bf16.msra.mxu1 %v17528_v11  ;;  %8252 = vmatprep.subr.bf16.mxu0 %v17409_v7  ;;  %v17577_v6 = vcombine.high %v4907_v36, %v4911_v21  ;;  %v4791_v43 = vld [vmem:[#allocation8 + $0x3b8] sm:$0xff]  ;;  %v17576_v15 = vcombine.low %v4907_v36, %v4911_v21 }
 0x557   :  { %8293 = vmatprep.subr.bf16.mxu1 %v17537_v14  ;;  %v4915_v11 = vld [vmem:[#allocation8 + $0x798] sm:$0xff]  ;;  %v17448_v14 = vcombine.low %v4779_v49, %v4783_v50  ;;  %v17457_v10 = vcombine.high %v4787_v17, %v4791_v43 }
 0x558   :  { %v4919_v7 = vld [vmem:[#allocation8 + $0x7b8] sm:$0xff] }
 0x559   :  { %8253 = vmatpush1.bf16.msra.mxu0 %v17408_v0  ;;  %v17585_v16 = vcombine.high %v4915_v11, %v4919_v7  ;;  %v4799_v0 = vld [vmem:[#allocation8 + $0x3f8] sm:$0xff]  ;;  %v17584_v28 = vcombine.low %v4915_v11, %v4919_v7 }
 0x55a   :  { %8294 = vmatpush1.bf16.msra.mxu1 %v17536_v22  ;;  %8254 = vmatprep.subr.bf16.mxu0 %v17417_v23  ;;  %v4923_v22 = vld [vmem:[#allocation8 + $0x7d8] sm:$0xff]  ;;  %v17465_v55 = vcombine.high %v4795_v18, %v4799_v0 }
 0x55b   :  { %8295 = vmatprep.subr.bf16.mxu1 %v17545_v40  ;;  %v4927_v23 = vld [vmem:[#allocation8 + $0x7f8] sm:$0xff]  ;;  %v17456_v40 = vcombine.low %v4787_v17, %v4791_v43 }
 0x55c   :  { %v17593_v56 = vcombine.high %v4923_v22, %v4927_v23  ;;  %v4931_v58 = vld [vmem:[#allocation8 + $0x818] sm:$0xff]  ;;  %v17592_v33 = vcombine.low %v4923_v22, %v4927_v23 }
 0x55d   :  { %8255 = vmatpush1.bf16.msra.mxu0 %v17416_v53  ;;  %v4935_v53 = vld [vmem:[#allocation8 + $0x838] sm:$0xff] }
 0x55e   :  { %8296 = vmatpush1.bf16.msra.mxu1 %v17544_v2  ;;  %8256 = vmatprep.subr.bf16.mxu0 %v17425_v61  ;;  %v5059_v2 = vld [vmem:[#allocation8 + $0xc18] sm:$0xff]  ;;  %v17601_v34 = vcombine.high %v4931_v58, %v4935_v53 }
 0x55f   :  { %8297 = vmatprep.subr.bf16.mxu1 %v17553_v32  ;;  %v5063_v61 = vld [vmem:[#allocation8 + $0xc38] sm:$0xff]  ;;  %v17464_v32 = vcombine.low %v4795_v18, %v4799_v0 }
 0x560   :  { %v17729_v5 = vcombine.high %v5059_v2, %v5063_v61  ;;  %v4939_v37 = vld [vmem:[#allocation8 + $0x858] sm:$0xff]  ;;  %v17728_v42 = vcombine.low %v5059_v2, %v5063_v61 }
 0x561   :  { %8257 = vmatpush1.bf16.msra.mxu0 %v17424_v38  ;;  %v4943_v38 = vld [vmem:[#allocation8 + $0x878] sm:$0xff] }
 0x562   :  { %8298 = vmatpush1.bf16.msra.mxu1 %v17552_v39  ;;  %8258 = vmatprep.subr.bf16.mxu0 %v17433_v20  ;;  %v17600_v39 = vcombine.low %v4931_v58, %v4935_v53  ;;  %v5067_v20 = vld [vmem:[#allocation8 + $0xc58] sm:$0xff]  ;;  %v17609_v52 = vcombine.high %v4939_v37, %v4943_v38 }
 0x563   :  { %8299 = vmatprep.subr.bf16.mxu1 %v17561_v41  ;;  %v5071_v41 = vld [vmem:[#allocation8 + $0xc78] sm:$0xff] }
 0x564   :  { %v4947_v45 = vld [vmem:[#allocation8 + $0x898] sm:$0xff]  ;;  %v17736_v49 = vcombine.low %v5067_v20, %v5071_v41 }
 0x565   :  { %8259 = vmatpush1.bf16.msra.mxu0 %v17432_v1  ;;  %v4951_v46 = vld [vmem:[#allocation8 + $0x8b8] sm:$0xff]  ;;  %v17737_v1 = vcombine.high %v5067_v20, %v5071_v41 }
 0x566   :  { %8300 = vmatpush1.bf16.msra.mxu1 %v17560_v47  ;;  %8260 = vmatprep.subr.bf16.mxu0 %v17441_v31  ;;  %v5075_v47 = vld [vmem:[#allocation8 + $0xc98] sm:$0xff]  ;;  %v17617_v50 = vcombine.high %v4947_v45, %v4951_v46 }
 0x567   :  { %8301 = vmatprep.subr.bf16.mxu1 %v17569_v48  ;;  %v5079_v31 = vld [vmem:[#allocation8 + $0xcb8] sm:$0xff]  ;;  %v17608_v48 = vcombine.low %v4939_v37, %v4943_v38 }
 0x568   :  { %v17745_v36 = vcombine.high %v5075_v47, %v5079_v31  ;;  %v4955_v21 = vld [vmem:[#allocation8 + $0x8d8] sm:$0xff] }
 0x569   :  { %8261 = vmatpush1.bf16.msra.mxu0 %v17440_v59  ;;  %v4959_v59 = vld [vmem:[#allocation8 + $0x8f8] sm:$0xff] }
 0x56a   :  { %8302 = vmatpush1.bf16.msra.mxu1 %v17568_v19  ;;  %8262 = vmatprep.subr.bf16.mxu0 %v17449_v62  ;;  %v5087_v19 = vld [vmem:[#allocation8 + $0xcf8] sm:$0xff]  ;;  %v17616_v62 = vcombine.low %v4947_v45, %v4951_v46 }
 0x56b   :  { %8303 = vmatprep.subr.bf16.mxu1 %v17577_v6  ;;  %v17625_v6 = vcombine.high %v4955_v21, %v4959_v59  ;;  %v4963_v17 = vld [vmem:[#allocation8 + $0x918] sm:$0xff] }
 0x56c   :  { %v4967_v43 = vld [vmem:[#allocation8 + $0x938] sm:$0xff] }
 0x56d   :  { %8263 = vmatpush1.bf16.msra.mxu0 %v17448_v14  ;;  %v5091_v11 = vld [vmem:[#allocation8 + $0xd18] sm:$0xff]  ;;  %v17632_v23 = vcombine.low %v4963_v17, %v4967_v43 }
 0x56e   :  { %8304 = vmatpush1.bf16.msra.mxu1 %v17576_v15  ;;  %8264 = vmatprep.subr.bf16.mxu0 %v17457_v10  ;;  %v5095_v7 = vld [vmem:[#allocation8 + $0xd38] sm:$0xff]  ;;  %v17633_v15 = vcombine.high %v4963_v17, %v4967_v43 }
 0x56f   :  { %8305 = vmatprep.subr.bf16.mxu1 %v17585_v16  ;;  %v17761_v10 = vcombine.high %v5091_v11, %v5095_v7  ;;  %v4971_v16 = vld [vmem:[#allocation8 + $0x958] sm:$0xff] }
 0x570   :  { %v4975_v18 = vld [vmem:[#allocation8 + $0x978] sm:$0xff] }
 0x571   :  { %8265 = vmatpush1.bf16.msra.mxu0 %v17456_v40  ;;  %v5099_v0 = vld [vmem:[#allocation8 + $0xd58] sm:$0xff]  ;;  %v17760_v40 = vcombine.low %v5091_v11, %v5095_v7  ;;  %v17640_v61 = vcombine.low %v4971_v16, %v4975_v18 }
 0x572   :  { %8306 = vmatpush1.bf16.msra.mxu1 %v17584_v28  ;;  %8266 = vmatprep.subr.bf16.mxu0 %v17465_v55  ;;  %v5103_v22 = vld [vmem:[#allocation8 + $0xd78] sm:$0xff]  ;;  %v17641_v28 = vcombine.high %v4971_v16, %v4975_v18 }
 0x573   :  { %8307 = vmatprep.subr.bf16.mxu1 %v17593_v56  ;;  %v17769_v55 = vcombine.high %v5099_v0, %v5103_v22  ;;  %v4979_v56 = vld [vmem:[#allocation8 + $0x998] sm:$0xff] }
 0x574   :  { %v4983_v58 = vld [vmem:[#allocation8 + $0x9b8] sm:$0xff] }
 0x575   :  { %8267 = vmatpush1.bf16.msra.mxu0 %v17464_v32  ;;  %v5107_v53 = vld [vmem:[#allocation8 + $0xd98] sm:$0xff]  ;;  %v17768_v32 = vcombine.low %v5099_v0, %v5103_v22 }
 0x576   :  { %8308 = vmatpush1.bf16.msra.mxu1 %v17592_v33  ;;  %8318 = vmatprep.subr.bf16.mxu0 %v17601_v34  ;;  %v5111_v2 = vld [vmem:[#allocation8 + $0xdb8] sm:$0xff]  ;;  %v17649_v33 = vcombine.high %v4979_v56, %v4983_v58 }
 0x577   :  { %8359 = vmatprep.subr.bf16.mxu1 %v17729_v5  ;;  %v17777_v5 = vcombine.high %v5107_v53, %v5111_v2  ;;  %v4987_v37 = vld [vmem:[#allocation8 + $0x9d8] sm:$0xff] }
 0x578   :  { %8269 = vmatmul.mubr.bf16.vlgmr.msra.gmra.mrb[40].mxu0 %v19830_v26  ;;  %v5083_v26 = vld [vmem:[#allocation8 + $0xcd8] sm:$0xff] }
 0x579   :  { %8310 = vmatmul.mubr.bf16.vlgmr.msra.gmra.mrb[40].mxu1 %v19832_v30  ;;  %8319 = vmatpush1.bf16.msra.mxu0 %v17600_v39  ;;  %v17744_v30 = vcombine.low %v5075_v47, %v5079_v31  ;;  %v17752_v14 = vcombine.low %v5083_v26, %v5087_v19  ;;  %v4991_v38 = vld [vmem:[#allocation8 + $0x9f8] sm:$0xff]  ;;  %v17648_v47 = vcombine.low %v4979_v56, %v4983_v58 }
 0x57a   :  { %8350 = vmatprep.mubr.bf16.mxu0 %v19856_v24  ;;  %8360 = vmatpush1.bf16.msra.mxu1 %v17728_v42  ;;  %v17753_v24 = vcombine.high %v5083_v26, %v5087_v19  ;;  %v5115_v42 = vld [vmem:[#allocation8 + $0xdd8] sm:$0xff] }
 0x57b   :  { %8391 = vmatprep.mubr.bf16.mxu1 %v19860_v3  ;;  %8320 = vmatprep.subr.bf16.mxu0 %v17609_v52  ;;  %v17624_v3 = vcombine.low %v4955_v21, %v4959_v59  ;;  %v5119_v52 = vld [vmem:[#allocation8 + $0xdf8] sm:$0xff] }
 0x57c   :  { %8361 = vmatprep.subr.bf16.mxu1 %v17737_v1  ;;  %v17785_v59 = vcombine.high %v5115_v42, %v5119_v52  ;;  %v4995_v26 = vld [vmem:[#allocation8 + $0xa18] sm:$0xff] }
 0x57d   :  { %8321 = vmatpush1.bf16.msra.mxu0 %v17608_v48  ;;  %v4999_v19 = vld [vmem:[#allocation8 + $0xa38] sm:$0xff] }
 0x57e   :  { %8362 = vmatpush1.bf16.msra.mxu1 %v17736_v49  ;;  %8322 = vmatprep.subr.bf16.mxu0 %v17617_v50  ;;  %v17776_v50 = vcombine.low %v5107_v53, %v5111_v2  ;;  %v5003_v43 = vld [vmem:[#allocation8 + $0xa58] sm:$0xff] }
 0x57f   :  { %8363 = vmatprep.subr.bf16.mxu1 %v17745_v36  ;;  %v17657_v36 = vcombine.high %v4987_v37, %v4991_v38  ;;  %v5007_v11 = vld [vmem:[#allocation8 + $0xa78] sm:$0xff] }
 0x580   :  { %v5131_v7 = vld [vmem:[#allocation8 + $0xe58] sm:$0xff] }
 0x581   :  { %8323 = vmatpush1.bf16.msra.mxu0 %v17616_v62  ;;  %v5127_v62 = vld [vmem:[#allocation8 + $0xe38] sm:$0xff] }
 0x582   :  { %8364 = vmatpush1.bf16.msra.mxu1 %v17744_v30  ;;  %8324 = vmatprep.subr.bf16.mxu0 %v17625_v6  ;;  %v17656_v30 = vcombine.low %v4987_v37, %v4991_v38  ;;  %v17784_v6 = vcombine.low %v5115_v42, %v5119_v52  ;;  %v5011_v18 = vld [vmem:[#allocation8 + $0xa98] sm:$0xff] }
 0x583   :  { %8365 = vmatprep.subr.bf16.mxu1 %v17753_v24  ;;  %v17665_v24 = vcombine.high %v4995_v26, %v4999_v19  ;;  %v5015_v0 = vld [vmem:[#allocation8 + $0xab8] sm:$0xff] }
 0x584   :  { %v5139_v22 = vld [vmem:[#allocation8 + $0xe98] sm:$0xff] }
 0x585   :  { %8325 = vmatpush1.bf16.msra.mxu0 %v17624_v3  ;;  %v5135_v3 = vld [vmem:[#allocation8 + $0xe78] sm:$0xff] }
 0x586   :  { %8366 = vmatpush1.bf16.msra.mxu1 %v17752_v14  ;;  %8326 = vmatprep.subr.bf16.mxu0 %v17633_v15  ;;  %v17664_v14 = vcombine.low %v4995_v26, %v4999_v19  ;;  %v17801_v16 = vcombine.high %v5131_v7, %v5135_v3  ;;  %v5019_v58 = vld [vmem:[#allocation8 + $0xad8] sm:$0xff]  ;;  %v19917_v19 = vsub.s32 2, %v19691_v63 }
 0x587   :  { %8367 = vmatprep.subr.bf16.mxu1 %v17761_v10  ;;  %v17673_v10 = vcombine.high %v5003_v43, %v5007_v11  ;;  %v5023_v53 = vld [vmem:[#allocation8 + $0xaf8] sm:$0xff] }
 0x588   :  { %v5147_v2 = vld [vmem:[#allocation8 + $0xed8] sm:$0xff] }
 0x589   :  { %8327 = vmatpush1.bf16.msra.mxu0 %v17632_v23  ;;  %v5143_v23 = vld [vmem:[#allocation8 + $0xeb8] sm:$0xff] }
 0x58a   :  { %8368 = vmatpush1.bf16.msra.mxu1 %v17760_v40  ;;  %8328 = vmatprep.subr.bf16.mxu0 %v17641_v28  ;;  %v17672_v40 = vcombine.low %v5003_v43, %v5007_v11  ;;  %v17800_v28 = vcombine.low %v5131_v7, %v5135_v3  ;;  %v17809_v56 = vcombine.high %v5139_v22, %v5143_v23  ;;  %v5027_v37 = vld [vmem:[#allocation8 + $0xb18] sm:$0xff]  ;;  %v19233_v3 = vld [vmem:[#allocation14 + $0x8] sm:$0xff] }
 0x58b   :  { %v8024_v34 = vpop.f32.mrb[28].mxu0  ;;  %8369 = vmatprep.subr.bf16.mxu1 %v17769_v55  ;;  %v17681_v55 = vcombine.high %v5011_v18, %v5015_v0  ;;  %v5031_v38 = vld [vmem:[#allocation8 + $0xb38] sm:$0xff]  ;;  %v8401_v7 = vadd.f32 %v19896_v54, %v19700_v12 }
 0x58c   :  { %v8025_v39 = vadd.f32 %v8024_v34, %v19902_v57  ;;  %v8065_v20 = vpop.f32.mrb[28].mxu1  ;;  %v8026_v41 = vpop.f32.mrb[29].mxu0  ;;  %v17689_v34 = vcombine.high %v5019_v58, %v5023_v53  ;;  %v17697_v52 = vcombine.high %v5027_v37, %v5031_v38  ;;  %v5047_v26 = vld [vmem:[#allocation8 + $0xbb8] sm:$0xff] }
 0x58d   :  { %v8027_v45 = vadd.f32 %v8026_v41, %v19904_v8  ;;  %v8067_v46 = vpop.f32.mrb[29].mxu1  ;;  %v8028_v1 = vpop.f32.mrb[30].mxu0  ;;  %8329 = vmatpush1.bf16.msra.mxu0 %v17640_v61  ;;  %v5123_v8 = vld [vmem:[#allocation8 + $0xe18] sm:$0xff]  ;;  %v17688_v41 = vcombine.low %v5019_v58, %v5023_v53 }
 0x58e   :  { %v19912_v31 = vadd.f32 %v8065_v20, %v8025_v39  ;;  %v8069_v48 = vpop.f32.mrb[30].mxu1  ;;  %8370 = vmatpush1.bf16.msra.mxu1 %v17768_v32  ;;  %v8029_v49 = vpop.f32.mrb[31].mxu0  ;;  %8330 = vmatprep.subr.bf16.mxu0 %v17649_v33  ;;  %v17793_v17 = vcombine.high %v5123_v8, %v5127_v62  ;;  %v17792_v15 = vcombine.low %v5123_v8, %v5127_v62  ;;  %v5151_v61 = vld [vmem:[#allocation8 + $0xef8] sm:$0xff] }
 0x58f   :  { %v19914_v21 = vadd.f32 %v8067_v46, %v8027_v45  ;;  %v8070_v57 = vpop.f32.mrb[31].mxu1  ;;  %8371 = vmatprep.subr.bf16.mxu1 %v17777_v5  ;;  %v17680_v32 = vcombine.low %v5011_v18, %v5015_v0  ;;  %v17808_v33 = vcombine.low %v5139_v22, %v5143_v23  ;;  %v17817_v5 = vcombine.high %v5147_v2, %v5151_v61  ;;  %v5155_v39 = vld [vmem:[#allocation8 + $0xf18] sm:$0xff]  ;;  %v8464_v23 = vld [vmem:[#allocation10] sm:$0xff] }
 0x590   :  { %v5159_v20 = vld [vmem:[#allocation8 + $0xf38] sm:$0xff]  ;;  %v17816_v42 = vcombine.low %v5147_v2, %v5151_v61  ;;  %v17696_v49 = vcombine.low %v5027_v37, %v5031_v38  ;;  %v8472_v61 = vld [vmem:[#allocation10 + $0x40] sm:$0xff] }
 0x591   :  { %8331 = vmatpush1.bf16.msra.mxu0 %v17648_v47  ;;  %v17825_v45 = vcombine.high %v5155_v39, %v5159_v20  ;;  %v5035_v46 = vld [vmem:[#allocation8 + $0xb58] sm:$0xff] }
 0x592   :  { %8372 = vmatpush1.bf16.msra.mxu1 %v17776_v50  ;;  %8332 = vmatprep.subr.bf16.mxu0 %v17657_v36  ;;  %v5039_v1 = vld [vmem:[#allocation8 + $0xb78] sm:$0xff]  ;;  %v17824_v50 = vcombine.low %v5155_v39, %v5159_v20  ;;  %v8480_v39 = vld [vmem:[#allocation10 + $0x80] sm:$0xff] }
 0x593   :  { %8373 = vmatprep.subr.bf16.mxu1 %v17785_v59  ;;  %v5163_v47 = vld [vmem:[#allocation8 + $0xf58] sm:$0xff]  ;;  %v17705_v36 = vcombine.high %v5035_v46, %v5039_v1  ;;  %v8484_v20 = vld [vmem:[#allocation10 + $0xa0] sm:$0xff] }
 0x594   :  { %v5167_v48 = vld [vmem:[#allocation8 + $0xf78] sm:$0xff] }
 0x595   :  { %8333 = vmatpush1.bf16.msra.mxu0 %v17656_v30  ;;  %v17833_v57 = vcombine.high %v5163_v47, %v5167_v48  ;;  %v5043_v59 = vld [vmem:[#allocation8 + $0xb98] sm:$0xff]  ;;  %v17704_v30 = vcombine.low %v5035_v46, %v5039_v1 }
 0x596   :  { %8374 = vmatpush1.bf16.msra.mxu1 %v17784_v6  ;;  %8334 = vmatprep.subr.bf16.mxu0 %v17665_v24  ;;  %v5171_v8 = vld [vmem:[#allocation8 + $0xf98] sm:$0xff]  ;;  %v17832_v6 = vcombine.low %v5163_v47, %v5167_v48  ;;  %v17713_v24 = vcombine.high %v5043_v59, %v5047_v26  ;;  %v17867_v47 = vcombine.high %v8480_v39, %v8484_v20 }
 0x597   :  { %8375 = vmatprep.subr.bf16.mxu1 %v17793_v17  ;;  %v5175_v62 = vld [vmem:[#allocation8 + $0xfb8] sm:$0xff] }
 0x598   :  { %v17841_v17 = vcombine.high %v5171_v8, %v5175_v62  ;;  %v5051_v43 = vld [vmem:[#allocation8 + $0xbd8] sm:$0xff]  ;;  %v17840_v18 = vcombine.low %v5171_v8, %v5175_v62  ;;  %v8496_v8 = vld [vmem:[#allocation10 + $0x100] sm:$0xff] }
 0x599   :  { %8335 = vmatpush1.bf16.msra.mxu0 %v17664_v14  ;;  %v5055_v11 = vld [vmem:[#allocation8 + $0xbf8] sm:$0xff]  ;;  %v8415_v14 = vrot.slane %v19233_v3, %v19917_v19  ;;  %v8500_v62 = vld [vmem:[#allocation10 + $0x120] sm:$0xff] }
 0x59a   :  { %8376 = vmatpush1.bf16.msra.mxu1 %v17792_v15  ;;  %8336 = vmatprep.subr.bf16.mxu0 %v17673_v10  ;;  %v5179_v15 = vld [vmem:[#allocation8 + $0xfd8] sm:$0xff]  ;;  %v17721_v0 = vcombine.high %v5051_v43, %v5055_v11  ;;  %v17720_v12 = vcombine.low %v5051_v43, %v5055_v11  ;;  %v17883_v43 = vcombine.high %v8496_v8, %v8500_v62  ;;  %v8508_v3 = vld [vmem:[#allocation10 + $0x160] sm:$0xff] }
 0x59b   :  { %8377 = vmatprep.subr.bf16.mxu1 %v17801_v16  ;;  %v5183_v10 = vld [vmem:[#allocation8 + $0xff8] sm:$0xff]  ;;  %v17712_v16 = vcombine.low %v5043_v59, %v5047_v26 }
 0x59c   :  { %v17849_v22 = vcombine.high %v5179_v15, %v5183_v10  ;;  %v17848_v54 = vcombine.low %v5179_v15, %v5183_v10  ;;  %v8509_v15 = vld [vmem:[#allocation10 + $0x168] sm:$0xff]  ;;  %v17882_v10 = vcombine.low %v8496_v8, %v8500_v62  ;;  %v8536_v8 = vld [vmem:[#allocation10 + $0x240] sm:$0xff] }
 0x59d   :  { %8337 = vmatpush1.bf16.msra.mxu0 %v17672_v40  ;;  %v8468_v40 = vld [vmem:[#allocation10 + $0x20] sm:$0xff] }
 0x59e   :  { %8378 = vmatpush1.bf16.msra.mxu1 %v17800_v28  ;;  %8338 = vmatprep.subr.bf16.mxu0 %v17681_v55  ;;  %v8441_v28 = vadd.f32 %v8415_v14, %v8401_v7  ;;  %v8465_v55 = vld [vmem:[#allocation10 + $0x8] sm:$0xff]  ;;  %v17851_v58 = vcombine.high %v8464_v23, %v8468_v40  ;;  %v8504_v7 = vld [vmem:[#allocation10 + $0x140] sm:$0xff] }
 0x59f   :  { %8379 = vmatprep.subr.bf16.mxu1 %v17809_v56  ;;  %v8469_v56 = vld [vmem:[#allocation10 + $0x28] sm:$0xff]  ;;  %v8540_v62 = vld [vmem:[#allocation10 + $0x260] sm:$0xff] }
 0x5a0   :  { %v17853_v53 = vcombine.high %v8465_v55, %v8469_v56  ;;  %v19922_v2 = vmax.f32 %v8441_v28, 0.0  ;;  %v17852_v37 = vcombine.low %v8465_v55, %v8469_v56  ;;  %v8505_v14 = vld [vmem:[#allocation10 + $0x148] sm:$0xff]  ;;  %v17890_v55 = vcombine.low %v8504_v7, %v8508_v3 }
 0x5a1   :  { %8339 = vmatpush1.bf16.msra.mxu0 %v17680_v32  ;;  %v8476_v32 = vld [vmem:[#allocation10 + $0x60] sm:$0xff]  ;;  %v8517_v28 = vld [vmem:[#allocation10 + $0x1a8] sm:$0xff]  ;;  %v17892_v56 = vcombine.low %v8505_v14, %v8509_v15 }
 0x5a2   :  { %8380 = vmatpush1.bf16.msra.mxu1 %v17808_v33  ;;  %8340 = vmatprep.subr.bf16.mxu0 %v17689_v34  ;;  %v17850_v33 = vcombine.low %v8464_v23, %v8468_v40  ;;  %v8473_v34 = vld [vmem:[#allocation10 + $0x48] sm:$0xff]  ;;  %v17859_v38 = vcombine.high %v8472_v61, %v8476_v32  ;;  %v17858_v46 = vcombine.low %v8472_v61, %v8476_v32  ;;  %v8516_v23 = vld [vmem:[#allocation10 + $0x1a0] sm:$0xff] }
 0x5a3   :  { %8381 = vmatprep.subr.bf16.mxu1 %v17817_v5  ;;  %v8477_v5 = vld [vmem:[#allocation10 + $0x68] sm:$0xff]  ;;  %v8524_v61 = vld [vmem:[#allocation10 + $0x1e0] sm:$0xff] }
 0x5a4   :  { %v17860_v1 = vcombine.low %v8473_v34, %v8477_v5  ;;  %v8513_v40 = vld [vmem:[#allocation10 + $0x188] sm:$0xff] }
 0x5a5   :  { %8341 = vmatpush1.bf16.msra.mxu0 %v17688_v41  ;;  %v19926_v41 = vpack.c.bf16 %v19922_v2, %v19922_v2 }
 0x5a6   :  { %8382 = vmatpush1.bf16.msra.mxu1 %v17816_v42  ;;  %8342 = vmatprep.subr.bf16.mxu0 %v17697_v52  ;;  %v17861_v42 = vcombine.high %v8473_v34, %v8477_v5  ;;  %v8481_v52 = vld [vmem:[#allocation10 + $0x88] sm:$0xff] }
 0x5a7   :  { %8383 = vmatprep.subr.bf16.mxu1 %v17825_v45  ;;  %v8485_v45 = vld [vmem:[#allocation10 + $0xa8] sm:$0xff] }
 0x5a8   :  { %v17869_v48 = vcombine.high %v8481_v52, %v8485_v45  ;;  %v8521_v34 = vld [vmem:[#allocation10 + $0x1c8] sm:$0xff] }
 0x5a9   :  { %8343 = vmatpush1.bf16.msra.mxu0 %v17696_v49  ;;  %v8488_v49 = vld [vmem:[#allocation10 + $0xc0] sm:$0xff]  ;;  %v8525_v5 = vld [vmem:[#allocation10 + $0x1e8] sm:$0xff] }
 0x5aa   :  { %8384 = vmatpush1.bf16.msra.mxu1 %v17824_v50  ;;  %8344 = vmatprep.subr.bf16.mxu0 %v17705_v36  ;;  %v8492_v50 = vld [vmem:[#allocation10 + $0xe0] sm:$0xff]  ;;  %v8493_v36 = vld [vmem:[#allocation10 + $0xe8] sm:$0xff] }
 0x5ab   :  { %8385 = vmatprep.subr.bf16.mxu1 %v17833_v57  ;;  %v17866_v57 = vcombine.low %v8480_v39, %v8484_v20  ;;  %v17875_v59 = vcombine.high %v8488_v49, %v8492_v50 }
 0x5ad   :  { %8345 = vmatpush1.bf16.msra.mxu0 %v17704_v30  ;;  %v8497_v30 = vld [vmem:[#allocation10 + $0x108] sm:$0xff] }
 0x5ae   :  { %8386 = vmatpush1.bf16.msra.mxu1 %v17832_v6  ;;  %8346 = vmatprep.subr.bf16.mxu0 %v17713_v24  ;;  %v8501_v6 = vld [vmem:[#allocation10 + $0x128] sm:$0xff]  ;;  %v17874_v24 = vcombine.low %v8488_v49, %v8492_v50  ;;  %v8528_v49 = vld [vmem:[#allocation10 + $0x200] sm:$0xff] }
 0x5af   :  { %8387 = vmatprep.subr.bf16.mxu1 %v17841_v17  ;;  %v17885_v11 = vcombine.high %v8497_v30, %v8501_v6  ;;  %v8532_v50 = vld [vmem:[#allocation10 + $0x220] sm:$0xff] }
 0x5b1   :  { %8347 = vmatpush1.bf16.msra.mxu0 %v17712_v16  ;;  %v17884_v16 = vcombine.low %v8497_v30, %v8501_v6  ;;  %v8537_v30 = vld [vmem:[#allocation10 + $0x248] sm:$0xff] }
 0x5b2   :  { %8388 = vmatpush1.bf16.msra.mxu1 %v17840_v18  ;;  %8348 = vmatprep.subr.bf16.mxu0 %v17721_v0  ;;  %v17891_v18 = vcombine.high %v8504_v7, %v8508_v3  ;;  %v17893_v0 = vcombine.high %v8505_v14, %v8509_v15  ;;  %v8541_v6 = vld [vmem:[#allocation10 + $0x268] sm:$0xff]  ;;  %v8544_v7 = vld [vmem:[#allocation10 + $0x280] sm:$0xff] }
 0x5b3   :  { %8389 = vmatprep.subr.bf16.mxu1 %v17849_v22  ;;  %v8512_v22 = vld [vmem:[#allocation10 + $0x180] sm:$0xff]  ;;  %v8545_v14 = vld [vmem:[#allocation10 + $0x288] sm:$0xff] }
 0x5b4   :  { %v17898_v20 = vcombine.low %v8512_v22, %v8516_v23  ;;  %v8548_v3 = vld [vmem:[#allocation10 + $0x2a0] sm:$0xff]  ;;  %v8549_v15 = vld [vmem:[#allocation10 + $0x2a8] sm:$0xff] }
 0x5b5   :  { %8349 = vmatpush1.bf16.msra.mxu0 %v17720_v12  ;;  %v17899_v12 = vcombine.high %v8512_v22, %v8516_v23  ;;  %v8552_v22 = vld [vmem:[#allocation10 + $0x2c0] sm:$0xff] }
 0x5b6   :  { %8390 = vmatpush1.bf16.msra.mxu1 %v17848_v54  ;;  %11568 = vmatprep.subr.bf16.mxu0 %v17851_v58  ;;  %v17901_v58 = vcombine.high %v8513_v40, %v8517_v28  ;;  %v8556_v23 = vld [vmem:[#allocation10 + $0x2e0] sm:$0xff] }
 0x5b7   :  { %11732 = vmatprep.subr.bf16.mxu1 %v17853_v53  ;;  %v8520_v53 = vld [vmem:[#allocation10 + $0x1c0] sm:$0xff] }
 0x5b8   :  { %8351 = vmatmul.mubr.bf16.vlgmr.msra.gmra.mrb[44].mxu0 %v19858_v25  ;;  %v8489_v25 = vld [vmem:[#allocation10 + $0xc8] sm:$0xff] }
 0x5b9   :  { %8392 = vmatmul.mubr.bf16.vlgmr.msra.gmra.mrb[44].mxu1 %v19862_v4  ;;  %11569 = vmatpush1.bf16.msra.mxu0 %v17850_v33  ;;  %v17868_v4 = vcombine.low %v8481_v52, %v8485_v45  ;;  %v17877_v26 = vcombine.high %v8489_v25, %v8493_v36  ;;  %v17876_v17 = vcombine.low %v8489_v25, %v8493_v36  ;;  %v8529_v25 = vld [vmem:[#allocation10 + $0x208] sm:$0xff] }
 0x5ba   :  { %11600 = vmatprep.mubr.bf16.mxu0 %v19926_v41  ;;  %11733 = vmatpush1.bf16.msra.mxu1 %v17852_v37  ;;  %v8533_v36 = vld [vmem:[#allocation10 + $0x228] sm:$0xff] }
 0x5bb   :  { %11764 = vmatprep.mubr.bf16.mxu1 %v19926_v41  ;;  %11570 = vmatprep.subr.bf16.mxu0 %v17859_v38 }
 0x5bc   :  { %11734 = vmatprep.subr.bf16.mxu1 %v17861_v42 }
 0x5bd   :  { %11571 = vmatpush1.bf16.msra.mxu0 %v17858_v46  ;;  %v17900_v46 = vcombine.low %v8513_v40, %v8517_v28  ;;  %v8553_v40 = vld [vmem:[#allocation10 + $0x2c8] sm:$0xff] }
 0x5be   :  { %11735 = vmatpush1.bf16.msra.mxu1 %v17860_v1  ;;  %11572 = vmatprep.subr.bf16.mxu0 %v17867_v47  ;;  %v17907_v1 = vcombine.high %v8520_v53, %v8524_v61  ;;  %v8557_v28 = vld [vmem:[#allocation10 + $0x2e8] sm:$0xff] }
 0x5bf   :  { %11736 = vmatprep.subr.bf16.mxu1 %v17869_v48  ;;  %v17909_v48 = vcombine.high %v8521_v34, %v8525_v5 }
 0x5c1   :  { %11573 = vmatpush1.bf16.msra.mxu0 %v17866_v57  ;;  %v17906_v57 = vcombine.low %v8520_v53, %v8524_v61  ;;  %v8564_v53 = vld [vmem:[#allocation10 + $0x320] sm:$0xff]  ;;  %v8561_v61 = vld [vmem:[#allocation10 + $0x308] sm:$0xff] }
 0x5c2   :  { %11737 = vmatpush1.bf16.msra.mxu1 %v17868_v4  ;;  %11574 = vmatprep.subr.bf16.mxu0 %v17875_v59  ;;  %v17908_v4 = vcombine.low %v8521_v34, %v8525_v5  ;;  %v17915_v59 = vcombine.high %v8528_v49, %v8532_v50  ;;  %v17940_v34 = vcombine.low %v8553_v40, %v8557_v28 }
 0x5c3   :  { %11738 = vmatprep.subr.bf16.mxu1 %v17877_v26  ;;  %v17917_v26 = vcombine.high %v8529_v25, %v8533_v36 }
 0x5c5   :  { %11575 = vmatpush1.bf16.msra.mxu0 %v17874_v24  ;;  %v17914_v24 = vcombine.low %v8528_v49, %v8532_v50  ;;  %v8576_v49 = vld [vmem:[#allocation10 + $0x380] sm:$0xff] }
 0x5c6   :  { %11739 = vmatpush1.bf16.msra.mxu1 %v17876_v17  ;;  %11576 = vmatprep.subr.bf16.mxu0 %v17883_v43  ;;  %v17916_v17 = vcombine.low %v8529_v25, %v8533_v36  ;;  %v17923_v43 = vcombine.high %v8536_v8, %v8540_v62  ;;  %v8580_v50 = vld [vmem:[#allocation10 + $0x3a0] sm:$0xff]  ;;  %v8577_v25 = vld [vmem:[#allocation10 + $0x388] sm:$0xff] }
 0x5c7   :  { %11740 = vmatprep.subr.bf16.mxu1 %v17885_v11  ;;  %v17925_v11 = vcombine.high %v8537_v30, %v8541_v6  ;;  %v8581_v36 = vld [vmem:[#allocation10 + $0x3a8] sm:$0xff] }
 0x5c9   :  { %11577 = vmatpush1.bf16.msra.mxu0 %v17882_v10  ;;  %v17922_v10 = vcombine.low %v8536_v8, %v8540_v62  ;;  %v17963_v62 = vcombine.high %v8576_v49, %v8580_v50 }
 0x5ca   :  { %11741 = vmatpush1.bf16.msra.mxu1 %v17884_v16  ;;  %11578 = vmatprep.subr.bf16.mxu0 %v17891_v18  ;;  %v17924_v16 = vcombine.low %v8537_v30, %v8541_v6  ;;  %v17931_v18 = vcombine.high %v8544_v7, %v8548_v3  ;;  %v17965_v30 = vcombine.high %v8577_v25, %v8581_v36  ;;  %v8584_v6 = vld [vmem:[#allocation10 + $0x3c0] sm:$0xff] }
 0x5cb   :  { %v8106_v54 = vpop.f32.mrb[32].mxu0  ;;  %11742 = vmatprep.subr.bf16.mxu1 %v17893_v0  ;;  %v17933_v0 = vcombine.high %v8545_v14, %v8549_v15 }
 0x5cc   :  { %v8147_v32 = vpop.f32.mrb[32].mxu1  ;;  %v8108_v33 = vpop.f32.mrb[33].mxu0 }
 0x5cd   :  { %v19932_v37 = vadd.f32 %v8147_v32, %v8106_v54  ;;  %v8149_v38 = vpop.f32.mrb[33].mxu1  ;;  %v8110_v39 = vpop.f32.mrb[34].mxu0  ;;  %11579 = vmatpush1.bf16.msra.mxu0 %v17890_v55  ;;  %v17930_v55 = vcombine.low %v8544_v7, %v8548_v3  ;;  %v17941_v54 = vcombine.high %v8553_v40, %v8557_v28  ;;  %v8565_v32 = vld [vmem:[#allocation10 + $0x328] sm:$0xff] }
 0x5ce   :  { %v19934_v42 = vadd.f32 %v8149_v38, %v8108_v33  ;;  %v8151_v52 = vpop.f32.mrb[34].mxu1  ;;  %11743 = vmatpush1.bf16.msra.mxu1 %v17892_v56  ;;  %v8111_v45 = vpop.f32.mrb[35].mxu0  ;;  %11580 = vmatprep.subr.bf16.mxu0 %v17899_v12  ;;  %v17932_v56 = vcombine.low %v8545_v14, %v8549_v15  ;;  %v17939_v12 = vcombine.high %v8552_v22, %v8556_v23  ;;  %v8568_v39 = vld [vmem:[#allocation10 + $0x340] sm:$0xff]  ;;  %v8585_v7 = vld [vmem:[#allocation10 + $0x3c8] sm:$0xff] }
 0x5cf   :  { %v8152_v47 = vpop.f32.mrb[35].mxu1  ;;  %11744 = vmatprep.subr.bf16.mxu1 %v17901_v58  ;;  %v8560_v58 = vld [vmem:[#allocation10 + $0x300] sm:$0xff]  ;;  %v17938_v33 = vcombine.low %v8552_v22, %v8556_v23  ;;  %v17949_v38 = vcombine.high %v8561_v61, %v8565_v32  ;;  %v8569_v52 = vld [vmem:[#allocation10 + $0x348] sm:$0xff]  ;;  %v17962_v14 = vcombine.low %v8576_v49, %v8580_v50 }
 0x5d0   :  { %v17947_v5 = vcombine.high %v8560_v58, %v8564_v53  ;;  %v8573_v45 = vld [vmem:[#allocation10 + $0x368] sm:$0xff]  ;;  %v8616_v49 = vld [vmem:[#allocation10 + $0x4c0] sm:$0xff] }
 0x5d1   :  { %11581 = vmatpush1.bf16.msra.mxu0 %v17898_v20  ;;  %v8572_v20 = vld [vmem:[#allocation10 + $0x360] sm:$0xff]  ;;  %v17956_v8 = vcombine.low %v8569_v52, %v8573_v45  ;;  %v8589_v3 = vld [vmem:[#allocation10 + $0x3e8] sm:$0xff] }
 0x5d2   :  { %11745 = vmatpush1.bf16.msra.mxu1 %v17900_v46  ;;  %11582 = vmatprep.subr.bf16.mxu0 %v17907_v1  ;;  %v17946_v46 = vcombine.low %v8560_v58, %v8564_v53  ;;  %v17948_v1 = vcombine.low %v8561_v61, %v8565_v32  ;;  %v17955_v47 = vcombine.high %v8568_v39, %v8572_v20  ;;  %v8593_v22 = vld [vmem:[#allocation10 + $0x408] sm:$0xff]  ;;  %v8620_v50 = vld [vmem:[#allocation10 + $0x4e0] sm:$0xff] }
 0x5d3   :  { %11746 = vmatprep.subr.bf16.mxu1 %v17909_v48  ;;  %v17957_v48 = vcombine.high %v8569_v52, %v8573_v45  ;;  %v8597_v23 = vld [vmem:[#allocation10 + $0x428] sm:$0xff]  ;;  %v17972_v40 = vcombine.low %v8585_v7, %v8589_v3 }
 0x5d4   :  { %v8601_v53 = vld [vmem:[#allocation10 + $0x448] sm:$0xff] }
 0x5d5   :  { %11583 = vmatpush1.bf16.msra.mxu0 %v17906_v57  ;;  %v19234_v57 = vld [vmem:[#allocation14] sm:$0xff]  ;;  %v8605_v61 = vld [vmem:[#allocation10 + $0x468] sm:$0xff] }
 0x5d6   :  { %11747 = vmatpush1.bf16.msra.mxu1 %v17908_v4  ;;  %11584 = vmatprep.subr.bf16.mxu0 %v17915_v59  ;;  %v8411_v4 = vrot.slane %v19234_v57, %v19917_v19  ;;  %v17954_v59 = vcombine.low %v8568_v39, %v8572_v20  ;;  %v17989_v20 = vcombine.high %v8601_v53, %v8605_v61  ;;  %v8609_v52 = vld [vmem:[#allocation10 + $0x488] sm:$0xff] }
 0x5d7   :  { %11748 = vmatprep.subr.bf16.mxu1 %v17917_v26  ;;  %v8400_v26 = vadd.f32 %v19894_v27, %v19698_v9  ;;  %v17964_v9 = vcombine.low %v8577_v25, %v8581_v36  ;;  %v8613_v45 = vld [vmem:[#allocation10 + $0x4a8] sm:$0xff] }
 0x5d8   :  { %v8617_v25 = vld [vmem:[#allocation10 + $0x4c8] sm:$0xff] }
 0x5d9   :  { %11585 = vmatpush1.bf16.msra.mxu0 %v17914_v24  ;;  %v8588_v24 = vld [vmem:[#allocation10 + $0x3e0] sm:$0xff]  ;;  %v8440_v15 = vadd.f32 %v8411_v4, %v8400_v26  ;;  %v8621_v36 = vld [vmem:[#allocation10 + $0x4e8] sm:$0xff]  ;;  %v17996_v4 = vcombine.low %v8609_v52, %v8613_v45 }
 0x5da   :  { %11749 = vmatpush1.bf16.msra.mxu1 %v17916_v17  ;;  %11586 = vmatprep.subr.bf16.mxu0 %v17923_v43  ;;  %v8403_v17 = vadd.f32 %v19914_v21, %v19723_v44  ;;  %v19235_v43 = vld [vmem:[#allocation14 + $0x18] sm:$0xff]  ;;  %v17971_v27 = vcombine.high %v8584_v6, %v8588_v24  ;;  %v17970_v44 = vcombine.low %v8584_v6, %v8588_v24  ;;  %v8629_v6 = vld [vmem:[#allocation10 + $0x528] sm:$0xff] }
 0x5db   :  { %11750 = vmatprep.subr.bf16.mxu1 %v17925_v11  ;;  %v8423_v11 = vrot.slane %v19235_v43, %v19917_v19  ;;  %v19942_v21 = vmax.f32 %v8440_v15, 0.0  ;;  %v18005_v26 = vcombine.high %v8617_v25, %v8621_v36  ;;  %v18002_v24 = vcombine.low %v8616_v49, %v8620_v50  ;;  %v8637_v15 = vld [vmem:[#allocation10 + $0x568] sm:$0xff] }
 0x5dd   :  { %11587 = vmatpush1.bf16.msra.mxu0 %v17922_v10  ;;  %v17973_v10 = vcombine.high %v8585_v7, %v8589_v3  ;;  %v19948_v32 = vpack.c.bf16 %v19942_v21, %v19942_v21  ;;  %v8632_v7 = vld [vmem:[#allocation10 + $0x540] sm:$0xff] }
 0x5de   :  { %11751 = vmatpush1.bf16.msra.mxu1 %v17924_v16  ;;  %11588 = vmatprep.subr.bf16.mxu0 %v17931_v18  ;;  %v8592_v16 = vld [vmem:[#allocation10 + $0x400] sm:$0xff] }
 0x5df   :  { %11752 = vmatprep.subr.bf16.mxu1 %v17933_v0  ;;  %v8596_v18 = vld [vmem:[#allocation10 + $0x420] sm:$0xff]  ;;  %v8443_v0 = vadd.f32 %v8423_v11, %v8403_v17  ;;  %v18004_v17 = vcombine.low %v8617_v25, %v8621_v36 }
 0x5e0   :  { %v17979_v28 = vcombine.high %v8592_v16, %v8596_v18  ;;  %v17978_v58 = vcombine.low %v8592_v16, %v8596_v18  ;;  %v8636_v3 = vld [vmem:[#allocation10 + $0x560] sm:$0xff] }
 0x5e1   :  { %11589 = vmatpush1.bf16.msra.mxu0 %v17930_v55  ;;  %v17981_v55 = vcombine.high %v8593_v22, %v8597_v23  ;;  %v8640_v18 = vld [vmem:[#allocation10 + $0x580] sm:$0xff] }
 0x5e2   :  { %11753 = vmatpush1.bf16.msra.mxu1 %v17932_v56  ;;  %11590 = vmatprep.subr.bf16.mxu0 %v17939_v12  ;;  %v19944_v56 = vmax.f32 %v8443_v0, 0.0  ;;  %v8600_v12 = vld [vmem:[#allocation10 + $0x440] sm:$0xff] }
 0x5e3   :  { %11754 = vmatprep.subr.bf16.mxu1 %v17941_v54  ;;  %v8604_v54 = vld [vmem:[#allocation10 + $0x460] sm:$0xff] }
 0x5e4   :  { %v19952_v39 = vpack.c.bf16 %v19944_v56, %v19944_v56  ;;  %v8644_v0 = vld [vmem:[#allocation10 + $0x5a0] sm:$0xff] }
 0x5e5   :  { %11591 = vmatpush1.bf16.msra.mxu0 %v17938_v33  ;;  %v17980_v33 = vcombine.low %v8593_v22, %v8597_v23  ;;  %v8641_v22 = vld [vmem:[#allocation10 + $0x588] sm:$0xff]  ;;  %v8656_v36 = vld [vmem:[#allocation10 + $0x600] sm:$0xff] }
 0x5e6   :  { %11755 = vmatpush1.bf16.msra.mxu1 %v17940_v34  ;;  %11592 = vmatprep.subr.bf16.mxu0 %v17947_v5  ;;  %v17987_v34 = vcombine.high %v8600_v12, %v8604_v54  ;;  %v8608_v5 = vld [vmem:[#allocation10 + $0x480] sm:$0xff]  ;;  %v8645_v23 = vld [vmem:[#allocation10 + $0x5a8] sm:$0xff] }
 0x5e7   :  { %11756 = vmatprep.subr.bf16.mxu1 %v17949_v38  ;;  %v8612_v38 = vld [vmem:[#allocation10 + $0x4a0] sm:$0xff] }
 0x5e8   :  { %v17994_v57 = vcombine.low %v8608_v5, %v8612_v38 }
 0x5e9   :  { %11593 = vmatpush1.bf16.msra.mxu0 %v17946_v46  ;;  %v17986_v46 = vcombine.low %v8600_v12, %v8604_v54  ;;  %v18029_v12 = vcombine.high %v8641_v22, %v8645_v23  ;;  %v8648_v54 = vld [vmem:[#allocation10 + $0x5c0] sm:$0xff] }
 0x5ea   :  { %11757 = vmatpush1.bf16.msra.mxu1 %v17948_v1  ;;  %11594 = vmatprep.subr.bf16.mxu0 %v17955_v47  ;;  %v17988_v1 = vcombine.low %v8601_v53, %v8605_v61  ;;  %v17995_v47 = vcombine.high %v8608_v5, %v8612_v38  ;;  %v8653_v5 = vld [vmem:[#allocation10 + $0x5e8] sm:$0xff] }
 0x5eb   :  { %11758 = vmatprep.subr.bf16.mxu1 %v17957_v48  ;;  %v17997_v48 = vcombine.high %v8609_v52, %v8613_v45  ;;  %v18026_v45 = vcombine.low %v8640_v18, %v8644_v0 }
 0x5ed   :  { %11595 = vmatpush1.bf16.msra.mxu0 %v17954_v59  ;;  %v18003_v59 = vcombine.high %v8616_v49, %v8620_v50 }
 0x5ee   :  { %11759 = vmatpush1.bf16.msra.mxu1 %v17956_v8  ;;  %11596 = vmatprep.subr.bf16.mxu0 %v17963_v62  ;;  %v8624_v8 = vld [vmem:[#allocation10 + $0x500] sm:$0xff] }
 0x5ef   :  { %11760 = vmatprep.subr.bf16.mxu1 %v17965_v30  ;;  %v8628_v62 = vld [vmem:[#allocation10 + $0x520] sm:$0xff]  ;;  %v8625_v30 = vld [vmem:[#allocation10 + $0x508] sm:$0xff] }
 0x5f0   :  { %v18011_v43 = vcombine.high %v8624_v8, %v8628_v62  ;;  %v18013_v11 = vcombine.high %v8625_v30, %v8629_v6 }
 0x5f1   :  { %11597 = vmatpush1.bf16.msra.mxu0 %v17962_v14  ;;  %v8633_v14 = vld [vmem:[#allocation10 + $0x548] sm:$0xff] }
 0x5f2   :  { %11761 = vmatpush1.bf16.msra.mxu1 %v17964_v9  ;;  %11598 = vmatprep.subr.bf16.mxu0 %v17971_v27  ;;  %v18010_v9 = vcombine.low %v8624_v8, %v8628_v62  ;;  %v18012_v27 = vcombine.low %v8625_v30, %v8629_v6  ;;  %v18021_v16 = vcombine.high %v8633_v14, %v8637_v15  ;;  %v8664_v30 = vld [vmem:[#allocation10 + $0x640] sm:$0xff] }
 0x5f3   :  { %11762 = vmatprep.subr.bf16.mxu1 %v17973_v10  ;;  %v18019_v10 = vcombine.high %v8632_v7, %v8636_v3  ;;  %v8668_v6 = vld [vmem:[#allocation10 + $0x660] sm:$0xff] }
 0x5f5   :  { %11599 = vmatpush1.bf16.msra.mxu0 %v17970_v44  ;;  %v18018_v44 = vcombine.low %v8632_v7, %v8636_v3  ;;  %v18051_v7 = vcombine.high %v8664_v30, %v8668_v6 }
 0x5f6   :  { %11763 = vmatpush1.bf16.msra.mxu1 %v17972_v40  ;;  %11609 = vmatprep.subr.bf16.mxu0 %v17979_v28  ;;  %v18020_v40 = vcombine.low %v8633_v14, %v8637_v15  ;;  %v18027_v28 = vcombine.high %v8640_v18, %v8644_v0  ;;  %v8672_v14 = vld [vmem:[#allocation10 + $0x680] sm:$0xff] }
 0x5f7   :  { %11773 = vmatprep.subr.bf16.mxu1 %v17981_v55  ;;  %v8676_v15 = vld [vmem:[#allocation10 + $0x6a0] sm:$0xff] }
 0x5f8   :  { %11601 = vmatmul.mubr.bf16.vlgmr.msra.gmra.mrb[48].mxu0 %v19948_v32  ;;  %v18059_v18 = vcombine.high %v8672_v14, %v8676_v15 }
 0x5f9   :  { %11765 = vmatmul.mubr.bf16.vlgmr.msra.gmra.mrb[48].mxu1 %v19948_v32  ;;  %11610 = vmatpush1.bf16.msra.mxu0 %v17978_v58  ;;  %v8652_v58 = vld [vmem:[#allocation10 + $0x5e0] sm:$0xff] }
 0x5fa   :  { %11641 = vmatprep.mubr.bf16.mxu0 %v19952_v39  ;;  %11774 = vmatpush1.bf16.msra.mxu1 %v17980_v33  ;;  %v18035_v49 = vcombine.high %v8648_v54, %v8652_v58 }
 0x5fb   :  { %11805 = vmatprep.mubr.bf16.mxu1 %v19952_v39  ;;  %11611 = vmatprep.subr.bf16.mxu0 %v17987_v34  ;;  %v8649_v34 = vld [vmem:[#allocation10 + $0x5c8] sm:$0xff] }
 0x5fc   :  { %11775 = vmatprep.subr.bf16.mxu1 %v17989_v20  ;;  %v18037_v25 = vcombine.high %v8649_v34, %v8653_v5 }
 0x5fd   :  { %11612 = vmatpush1.bf16.msra.mxu0 %v17986_v46 }
 0x5fe   :  { %11776 = vmatpush1.bf16.msra.mxu1 %v17988_v1  ;;  %11613 = vmatprep.subr.bf16.mxu0 %v17995_v47 }
 0x5ff   :  { %11777 = vmatprep.subr.bf16.mxu1 %v17997_v48  ;;  %v18028_v48 = vcombine.low %v8641_v22, %v8645_v23  ;;  %v8680_v22 = vld [vmem:[#allocation10 + $0x6c0] sm:$0xff] }
 0x600   :  { %v8684_v23 = vld [vmem:[#allocation10 + $0x6e0] sm:$0xff] }
 0x601   :  { %11614 = vmatpush1.bf16.msra.mxu0 %v17994_v57  ;;  %v8660_v57 = vld [vmem:[#allocation10 + $0x620] sm:$0xff] }
 0x602   :  { %11778 = vmatpush1.bf16.msra.mxu1 %v17996_v4  ;;  %11615 = vmatprep.subr.bf16.mxu0 %v18003_v59  ;;  %v8661_v4 = vld [vmem:[#allocation10 + $0x628] sm:$0xff]  ;;  %v18034_v59 = vcombine.low %v8648_v54, %v8652_v58  ;;  %v18043_v8 = vcombine.high %v8656_v36, %v8660_v57  ;;  %v8688_v58 = vld [vmem:[#allocation10 + $0x700] sm:$0xff] }
 0x603   :  { %11779 = vmatprep.subr.bf16.mxu1 %v18005_v26  ;;  %v18036_v26 = vcombine.low %v8649_v34, %v8653_v5  ;;  %v18066_v34 = vcombine.low %v8680_v22, %v8684_v23 }
 0x605   :  { %11616 = vmatpush1.bf16.msra.mxu0 %v18002_v24  ;;  %v8665_v24 = vld [vmem:[#allocation10 + $0x648] sm:$0xff] }
 0x606   :  { %11780 = vmatpush1.bf16.msra.mxu1 %v18004_v17  ;;  %11617 = vmatprep.subr.bf16.mxu0 %v18011_v43  ;;  %v8669_v17 = vld [vmem:[#allocation10 + $0x668] sm:$0xff]  ;;  %v18042_v43 = vcombine.low %v8656_v36, %v8660_v57  ;;  %v8704_v36 = vld [vmem:[#allocation10 + $0x780] sm:$0xff] }
 0x607   :  { %11781 = vmatprep.subr.bf16.mxu1 %v18013_v11  ;;  %v18053_v3 = vcombine.high %v8665_v24, %v8669_v17  ;;  %v8708_v57 = vld [vmem:[#allocation10 + $0x7a0] sm:$0xff] }
 0x609   :  { %11618 = vmatpush1.bf16.msra.mxu0 %v18010_v9  ;;  %v8673_v9 = vld [vmem:[#allocation10 + $0x688] sm:$0xff] }
 0x60a   :  { %11782 = vmatpush1.bf16.msra.mxu1 %v18012_v27  ;;  %11619 = vmatprep.subr.bf16.mxu0 %v18019_v10  ;;  %v8677_v27 = vld [vmem:[#allocation10 + $0x6a8] sm:$0xff]  ;;  %v18050_v10 = vcombine.low %v8664_v30, %v8668_v6  ;;  %v18091_v6 = vcombine.high %v8704_v36, %v8708_v57 }
 0x60b   :  { %v8188_v55 = vpop.f32.mrb[36].mxu0  ;;  %11783 = vmatprep.subr.bf16.mxu1 %v18021_v16  ;;  %v18052_v16 = vcombine.low %v8665_v24, %v8669_v17  ;;  %v18061_v0 = vcombine.high %v8673_v9, %v8677_v27  ;;  %v8712_v17 = vld [vmem:[#allocation10 + $0x7c0] sm:$0xff] }
 0x60c   :  { %v8189_v53 = vadd.f32 %v8188_v55, %v19932_v37  ;;  %v8229_v61 = vpop.f32.mrb[36].mxu1  ;;  %v8190_v33 = vpop.f32.mrb[37].mxu0  ;;  %v18060_v55 = vcombine.low %v8673_v9, %v8677_v27  ;;  %v18090_v9 = vcombine.low %v8704_v36, %v8708_v57  ;;  %v8744_v36 = vld [vmem:[#allocation10 + $0x8c0] sm:$0xff] }
 0x60d   :  { %v8191_v38 = vadd.f32 %v8190_v33, %v19934_v42  ;;  %v8231_v20 = vpop.f32.mrb[37].mxu1  ;;  %v8192_v52 = vpop.f32.mrb[38].mxu0  ;;  %11620 = vmatpush1.bf16.msra.mxu0 %v18018_v44  ;;  %v8657_v42 = vld [vmem:[#allocation10 + $0x608] sm:$0xff]  ;;  %v8748_v57 = vld [vmem:[#allocation10 + $0x8e0] sm:$0xff] }
 0x60e   :  { %v19960_v46 = vadd.f32 %v8229_v61, %v8189_v53  ;;  %v8233_v1 = vpop.f32.mrb[38].mxu1  ;;  %11784 = vmatpush1.bf16.msra.mxu1 %v18020_v40  ;;  %v8193_v47 = vpop.f32.mrb[39].mxu0  ;;  %11621 = vmatprep.subr.bf16.mxu0 %v18027_v28  ;;  %v18045_v62 = vcombine.high %v8657_v42, %v8661_v4  ;;  %v18044_v11 = vcombine.low %v8657_v42, %v8661_v4  ;;  %v8681_v44 = vld [vmem:[#allocation10 + $0x6c8] sm:$0xff]  ;;  %v8692_v53 = vld [vmem:[#allocation10 + $0x720] sm:$0xff] }
 0x60f   :  { %v19962_v50 = vadd.f32 %v8231_v20, %v8191_v38  ;;  %v8234_v37 = vpop.f32.mrb[39].mxu1  ;;  %11785 = vmatprep.subr.bf16.mxu1 %v18029_v12  ;;  %v8685_v40 = vld [vmem:[#allocation10 + $0x6e8] sm:$0xff]  ;;  %v18058_v28 = vcombine.low %v8672_v14, %v8676_v15  ;;  %v18067_v12 = vcombine.high %v8680_v22, %v8684_v23  ;;  %v18075_v38 = vcombine.high %v8688_v58, %v8692_v53  ;;  %v8696_v52 = vld [vmem:[#allocation10 + $0x740] sm:$0xff] }
 0x610   :  { %v18069_v54 = vcombine.high %v8681_v44, %v8685_v40  ;;  %v8689_v61 = vld [vmem:[#allocation10 + $0x708] sm:$0xff]  ;;  %v18068_v5 = vcombine.low %v8681_v44, %v8685_v40 }
 0x611   :  { %11622 = vmatpush1.bf16.msra.mxu0 %v18026_v45  ;;  %v8693_v33 = vld [vmem:[#allocation10 + $0x728] sm:$0xff]  ;;  %v8700_v45 = vld [vmem:[#allocation10 + $0x760] sm:$0xff] }
 0x612   :  { %11786 = vmatpush1.bf16.msra.mxu1 %v18028_v48  ;;  %11623 = vmatprep.subr.bf16.mxu0 %v18035_v49  ;;  %v18077_v20 = vcombine.high %v8689_v61, %v8693_v33  ;;  %v8697_v1 = vld [vmem:[#allocation10 + $0x748] sm:$0xff]  ;;  %v18074_v48 = vcombine.low %v8688_v58, %v8692_v53  ;;  %v18076_v49 = vcombine.low %v8689_v61, %v8693_v33 }
 0x613   :  { %11787 = vmatprep.subr.bf16.mxu1 %v18037_v25  ;;  %v8701_v47 = vld [vmem:[#allocation10 + $0x768] sm:$0xff]  ;;  %v18083_v37 = vcombine.high %v8696_v52, %v8700_v45 }
 0x614   :  { %v18085_v25 = vcombine.high %v8697_v1, %v8701_v47  ;;  %v8705_v42 = vld [vmem:[#allocation10 + $0x788] sm:$0xff]  ;;  %v18084_v30 = vcombine.low %v8697_v1, %v8701_v47 }
 0x615   :  { %11624 = vmatpush1.bf16.msra.mxu0 %v18034_v59  ;;  %v8709_v4 = vld [vmem:[#allocation10 + $0x7a8] sm:$0xff]  ;;  %v19236_v59 = vld [vmem:[#allocation14 + $0x10] sm:$0xff] }
 0x616   :  { %11788 = vmatpush1.bf16.msra.mxu1 %v18036_v26  ;;  %11625 = vmatprep.subr.bf16.mxu0 %v18043_v8  ;;  %v8419_v26 = vrot.slane %v19236_v59, %v19917_v19  ;;  %v18082_v8 = vcombine.low %v8696_v52, %v8700_v45  ;;  %v18093_v24 = vcombine.high %v8705_v42, %v8709_v4  ;;  %v8713_v14 = vld [vmem:[#allocation10 + $0x7c8] sm:$0xff] }
 0x617   :  { %11789 = vmatprep.subr.bf16.mxu1 %v18045_v62  ;;  %v8402_v62 = vadd.f32 %v19912_v31, %v19743_v51  ;;  %v8717_v15 = vld [vmem:[#allocation10 + $0x7e8] sm:$0xff]  ;;  %v18092_v51 = vcombine.low %v8705_v42, %v8709_v4 }
 0x618   :  { %v8721_v22 = vld [vmem:[#allocation10 + $0x808] sm:$0xff]  ;;  %v18100_v44 = vcombine.low %v8713_v14, %v8717_v15 }
 0x619   :  { %11626 = vmatpush1.bf16.msra.mxu0 %v18042_v43  ;;  %v8716_v43 = vld [vmem:[#allocation10 + $0x7e0] sm:$0xff]  ;;  %v8442_v27 = vadd.f32 %v8419_v26, %v8402_v62  ;;  %v8725_v23 = vld [vmem:[#allocation10 + $0x828] sm:$0xff] }
 0x61a   :  { %11790 = vmatpush1.bf16.msra.mxu1 %v18044_v11  ;;  %11627 = vmatprep.subr.bf16.mxu0 %v18051_v7  ;;  %v8405_v11 = vadd.f32 %v19962_v50, %v19745_v60  ;;  %v19237_v7 = vld [vmem:[#allocation14 + $0x28] sm:$0xff]  ;;  %v18099_v31 = vcombine.high %v8712_v17, %v8716_v43  ;;  %v18098_v60 = vcombine.low %v8712_v17, %v8716_v43 }
 0x61b   :  { %11791 = vmatprep.subr.bf16.mxu1 %v18053_v3  ;;  %v8431_v3 = vrot.slane %v19237_v7, %v19917_v19  ;;  %v19970_v50 = vmax.f32 %v8442_v27, 0.0  ;;  %v8729_v53 = vld [vmem:[#allocation10 + $0x848] sm:$0xff]  ;;  %v18130_v43 = vcombine.low %v8744_v36, %v8748_v57 }
 0x61c   :  { %v8733_v61 = vld [vmem:[#allocation10 + $0x868] sm:$0xff] }
 0x61d   :  { %11628 = vmatpush1.bf16.msra.mxu0 %v18050_v10  ;;  %v18101_v10 = vcombine.high %v8713_v14, %v8717_v15  ;;  %v19976_v33 = vpack.c.bf16 %v19970_v50, %v19970_v50  ;;  %v18117_v45 = vcombine.high %v8729_v53, %v8733_v61  ;;  %v8737_v1 = vld [vmem:[#allocation10 + $0x888] sm:$0xff]  ;;  %v8760_v14 = vld [vmem:[#allocation10 + $0x940] sm:$0xff] }
 0x61e   :  { %11792 = vmatpush1.bf16.msra.mxu1 %v18052_v16  ;;  %11629 = vmatprep.subr.bf16.mxu0 %v18059_v18  ;;  %v8720_v16 = vld [vmem:[#allocation10 + $0x800] sm:$0xff]  ;;  %v8741_v47 = vld [vmem:[#allocation10 + $0x8a8] sm:$0xff] }
 0x61f   :  { %11793 = vmatprep.subr.bf16.mxu1 %v18061_v0  ;;  %v8724_v18 = vld [vmem:[#allocation10 + $0x820] sm:$0xff]  ;;  %v8445_v0 = vadd.f32 %v8431_v3, %v8405_v11  ;;  %v8745_v42 = vld [vmem:[#allocation10 + $0x8c8] sm:$0xff]  ;;  %v18124_v26 = vcombine.low %v8737_v1, %v8741_v47 }
 0x620   :  { %v18107_v40 = vcombine.high %v8720_v16, %v8724_v18  ;;  %v18106_v58 = vcombine.low %v8720_v16, %v8724_v18  ;;  %v8749_v4 = vld [vmem:[#allocation10 + $0x8e8] sm:$0xff]  ;;  %v8764_v15 = vld [vmem:[#allocation10 + $0x960] sm:$0xff] }
 0x621   :  { %11630 = vmatpush1.bf16.msra.mxu0 %v18058_v28  ;;  %v18109_v28 = vcombine.high %v8721_v22, %v8725_v23  ;;  %v18133_v62 = vcombine.high %v8745_v42, %v8749_v4  ;;  %v8757_v17 = vld [vmem:[#allocation10 + $0x928] sm:$0xff]  ;;  %v18132_v11 = vcombine.low %v8745_v42, %v8749_v4  ;;  %v8768_v18 = vld [vmem:[#allocation10 + $0x980] sm:$0xff] }
 0x622   :  { %11794 = vmatpush1.bf16.msra.mxu1 %v18060_v55  ;;  %11631 = vmatprep.subr.bf16.mxu0 %v18067_v12  ;;  %v19972_v55 = vmax.f32 %v8445_v0, 0.0  ;;  %v8728_v12 = vld [vmem:[#allocation10 + $0x840] sm:$0xff]  ;;  %v8765_v27 = vld [vmem:[#allocation10 + $0x968] sm:$0xff] }
 0x623   :  { %11795 = vmatprep.subr.bf16.mxu1 %v18069_v54  ;;  %v8732_v54 = vld [vmem:[#allocation10 + $0x860] sm:$0xff] }
 0x624   :  { %v19980_v52 = vpack.c.bf16 %v19972_v55, %v19972_v55  ;;  %v8772_v0 = vld [vmem:[#allocation10 + $0x9a0] sm:$0xff] }
 0x625   :  { %11632 = vmatpush1.bf16.msra.mxu0 %v18066_v34  ;;  %v18108_v34 = vcombine.low %v8721_v22, %v8725_v23  ;;  %v8769_v22 = vld [vmem:[#allocation10 + $0x988] sm:$0xff]  ;;  %v8784_v42 = vld [vmem:[#allocation10 + $0xa00] sm:$0xff] }
 0x626   :  { %11796 = vmatpush1.bf16.msra.mxu1 %v18068_v5  ;;  %11633 = vmatprep.subr.bf16.mxu0 %v18075_v38  ;;  %v18115_v5 = vcombine.high %v8728_v12, %v8732_v54  ;;  %v8736_v38 = vld [vmem:[#allocation10 + $0x880] sm:$0xff]  ;;  %v8773_v23 = vld [vmem:[#allocation10 + $0x9a8] sm:$0xff] }
 0x627   :  { %11797 = vmatprep.subr.bf16.mxu1 %v18077_v20  ;;  %v8740_v20 = vld [vmem:[#allocation10 + $0x8a0] sm:$0xff] }
 0x628   :  { %v18122_v59 = vcombine.low %v8736_v38, %v8740_v20  ;;  %v8788_v4 = vld [vmem:[#allocation10 + $0xa20] sm:$0xff] }
 0x629   :  { %11634 = vmatpush1.bf16.msra.mxu0 %v18074_v48  ;;  %v18114_v48 = vcombine.low %v8728_v12, %v8732_v54  ;;  %v18157_v12 = vcombine.high %v8769_v22, %v8773_v23  ;;  %v8776_v54 = vld [vmem:[#allocation10 + $0x9c0] sm:$0xff] }
 0x62a   :  { %11798 = vmatpush1.bf16.msra.mxu1 %v18076_v49  ;;  %11635 = vmatprep.subr.bf16.mxu0 %v18083_v37  ;;  %v18116_v49 = vcombine.low %v8729_v53, %v8733_v61  ;;  %v18123_v37 = vcombine.high %v8736_v38, %v8740_v20 }
 0x62b   :  { %11799 = vmatprep.subr.bf16.mxu1 %v18085_v25  ;;  %v18125_v25 = vcombine.high %v8737_v1, %v8741_v47  ;;  %v18154_v1 = vcombine.low %v8768_v18, %v8772_v0 }
 0x62d   :  { %11636 = vmatpush1.bf16.msra.mxu0 %v18082_v8  ;;  %v18131_v8 = vcombine.high %v8744_v36, %v8748_v57 }
 0x62e   :  { %11800 = vmatpush1.bf16.msra.mxu1 %v18084_v30  ;;  %11637 = vmatprep.subr.bf16.mxu0 %v18091_v6  ;;  %v8752_v30 = vld [vmem:[#allocation10 + $0x900] sm:$0xff] }
 0x62f   :  { %11801 = vmatprep.subr.bf16.mxu1 %v18093_v24  ;;  %v8756_v6 = vld [vmem:[#allocation10 + $0x920] sm:$0xff]  ;;  %v8753_v24 = vld [vmem:[#allocation10 + $0x908] sm:$0xff] }
 0x630   :  { %v18139_v7 = vcombine.high %v8752_v30, %v8756_v6  ;;  %v18141_v3 = vcombine.high %v8753_v24, %v8757_v17 }
 0x631   :  { %11638 = vmatpush1.bf16.msra.mxu0 %v18090_v9  ;;  %v8761_v9 = vld [vmem:[#allocation10 + $0x948] sm:$0xff] }
 0x632   :  { %11802 = vmatpush1.bf16.msra.mxu1 %v18092_v51  ;;  %11639 = vmatprep.subr.bf16.mxu0 %v18099_v31  ;;  %v18138_v51 = vcombine.low %v8752_v30, %v8756_v6  ;;  %v18140_v31 = vcombine.low %v8753_v24, %v8757_v17  ;;  %v18149_v16 = vcombine.high %v8761_v9, %v8765_v27  ;;  %v8792_v24 = vld [vmem:[#allocation10 + $0xa40] sm:$0xff] }
 0x633   :  { %11803 = vmatprep.subr.bf16.mxu1 %v18101_v10  ;;  %v18147_v10 = vcombine.high %v8760_v14, %v8764_v15  ;;  %v18171_v30 = vcombine.high %v8784_v42, %v8788_v4  ;;  %v8796_v17 = vld [vmem:[#allocation10 + $0xa60] sm:$0xff] }
 0x635   :  { %11640 = vmatpush1.bf16.msra.mxu0 %v18098_v60  ;;  %v18146_v60 = vcombine.low %v8760_v14, %v8764_v15  ;;  %v18179_v14 = vcombine.high %v8792_v24, %v8796_v17 }
 0x636   :  { %11804 = vmatpush1.bf16.msra.mxu1 %v18100_v44  ;;  %11650 = vmatprep.subr.bf16.mxu0 %v18107_v40  ;;  %v18148_v44 = vcombine.low %v8761_v9, %v8765_v27  ;;  %v18155_v40 = vcombine.high %v8768_v18, %v8772_v0  ;;  %v8800_v9 = vld [vmem:[#allocation10 + $0xa80] sm:$0xff] }
 0x637   :  { %11814 = vmatprep.subr.bf16.mxu1 %v18109_v28  ;;  %v8804_v27 = vld [vmem:[#allocation10 + $0xaa0] sm:$0xff] }
 0x638   :  { %11642 = vmatmul.mubr.bf16.vlgmr.msra.gmra.mrb[48].mxu0 %v19976_v33  ;;  %v18187_v18 = vcombine.high %v8800_v9, %v8804_v27 }
 0x639   :  { %11806 = vmatmul.mubr.bf16.vlgmr.msra.gmra.mrb[48].mxu1 %v19976_v33  ;;  %11651 = vmatpush1.bf16.msra.mxu0 %v18106_v58  ;;  %v8780_v58 = vld [vmem:[#allocation10 + $0x9e0] sm:$0xff] }
 0x63a   :  { %11682 = vmatprep.mubr.bf16.mxu0 %v19980_v52  ;;  %11815 = vmatpush1.bf16.msra.mxu1 %v18108_v34  ;;  %v8777_v34 = vld [vmem:[#allocation10 + $0x9c8] sm:$0xff] }
 0x63b   :  { %11846 = vmatprep.mubr.bf16.mxu1 %v19980_v52  ;;  %11652 = vmatprep.subr.bf16.mxu0 %v18115_v5  ;;  %v8781_v5 = vld [vmem:[#allocation10 + $0x9e8] sm:$0xff] }
 0x63c   :  { %11816 = vmatprep.subr.bf16.mxu1 %v18117_v45  ;;  %v18165_v57 = vcombine.high %v8777_v34, %v8781_v5 }
 0x63d   :  { %11653 = vmatpush1.bf16.msra.mxu0 %v18114_v48 }
 0x63e   :  { %11817 = vmatpush1.bf16.msra.mxu1 %v18116_v49  ;;  %11654 = vmatprep.subr.bf16.mxu0 %v18123_v37  ;;  %v18156_v37 = vcombine.low %v8769_v22, %v8773_v23  ;;  %v8808_v22 = vld [vmem:[#allocation10 + $0xac0] sm:$0xff] }
 0x63f   :  { %11818 = vmatprep.subr.bf16.mxu1 %v18125_v25  ;;  %v18163_v25 = vcombine.high %v8776_v54, %v8780_v58  ;;  %v8812_v23 = vld [vmem:[#allocation10 + $0xae0] sm:$0xff] }
 0x641   :  { %11655 = vmatpush1.bf16.msra.mxu0 %v18122_v59  ;;  %v8785_v59 = vld [vmem:[#allocation10 + $0xa08] sm:$0xff] }
 0x642   :  { %11819 = vmatpush1.bf16.msra.mxu1 %v18124_v26  ;;  %11656 = vmatprep.subr.bf16.mxu0 %v18131_v8  ;;  %v8789_v26 = vld [vmem:[#allocation10 + $0xa28] sm:$0xff]  ;;  %v18162_v8 = vcombine.low %v8776_v54, %v8780_v58  ;;  %v8816_v58 = vld [vmem:[#allocation10 + $0xb00] sm:$0xff] }
 0x643   :  { %11820 = vmatprep.subr.bf16.mxu1 %v18133_v62  ;;  %v18164_v62 = vcombine.low %v8777_v34, %v8781_v5  ;;  %v18173_v6 = vcombine.high %v8785_v59, %v8789_v26  ;;  %v8821_v34 = vld [vmem:[#allocation10 + $0xb28] sm:$0xff]  ;;  %v18194_v5 = vcombine.low %v8808_v22, %v8812_v23 }
 0x645   :  { %11657 = vmatpush1.bf16.msra.mxu0 %v18130_v43  ;;  %v8793_v43 = vld [vmem:[#allocation10 + $0xa48] sm:$0xff] }
 0x646   :  { %11821 = vmatpush1.bf16.msra.mxu1 %v18132_v11  ;;  %11658 = vmatprep.subr.bf16.mxu0 %v18139_v7  ;;  %v8797_v11 = vld [vmem:[#allocation10 + $0xa68] sm:$0xff]  ;;  %v18170_v7 = vcombine.low %v8784_v42, %v8788_v4 }
 0x647   :  { %11822 = vmatprep.subr.bf16.mxu1 %v18141_v3  ;;  %v18172_v3 = vcombine.low %v8785_v59, %v8789_v26  ;;  %v18181_v15 = vcombine.high %v8793_v43, %v8797_v11  ;;  %v8832_v59 = vld [vmem:[#allocation10 + $0xb80] sm:$0xff] }
 0x648   :  { %v8836_v26 = vld [vmem:[#allocation10 + $0xba0] sm:$0xff] }
 0x649   :  { %11659 = vmatpush1.bf16.msra.mxu0 %v18138_v51  ;;  %v8801_v51 = vld [vmem:[#allocation10 + $0xa88] sm:$0xff] }
 0x64a   :  { %11823 = vmatpush1.bf16.msra.mxu1 %v18140_v31  ;;  %11660 = vmatprep.subr.bf16.mxu0 %v18147_v10  ;;  %v8805_v31 = vld [vmem:[#allocation10 + $0xaa8] sm:$0xff]  ;;  %v18178_v10 = vcombine.low %v8792_v24, %v8796_v17  ;;  %v8404_v17 = vadd.f32 %v19960_v46, %v19763_v13  ;;  %v8848_v13 = vld [vmem:[#allocation10 + $0xc00] sm:$0xff] }
 0x64b   :  { %v8270_v28 = vpop.f32.mrb[40].mxu0  ;;  %11824 = vmatprep.subr.bf16.mxu1 %v18149_v16  ;;  %v18180_v16 = vcombine.low %v8793_v43, %v8797_v11  ;;  %v18189_v0 = vcombine.high %v8801_v51, %v8805_v31  ;;  %v18219_v11 = vcombine.high %v8832_v59, %v8836_v26  ;;  %v8852_v46 = vld [vmem:[#allocation10 + $0xc20] sm:$0xff] }
 0x64c   :  { %v8311_v53 = vpop.f32.mrb[40].mxu1  ;;  %v8272_v61 = vpop.f32.mrb[41].mxu0 }
 0x64d   :  { %v19986_v38 = vadd.f32 %v8311_v53, %v8270_v28  ;;  %v8313_v20 = vpop.f32.mrb[41].mxu1  ;;  %v8274_v45 = vpop.f32.mrb[42].mxu0  ;;  %11661 = vmatpush1.bf16.msra.mxu0 %v18146_v60  ;;  %v8809_v60 = vld [vmem:[#allocation10 + $0xac8] sm:$0xff]  ;;  %v18188_v28 = vcombine.low %v8801_v51, %v8805_v31  ;;  %v8820_v53 = vld [vmem:[#allocation10 + $0xb20] sm:$0xff] }
 0x64e   :  { %v19988_v47 = vadd.f32 %v8313_v20, %v8272_v61  ;;  %v8315_v48 = vpop.f32.mrb[42].mxu1  ;;  %11825 = vmatpush1.bf16.msra.mxu1 %v18148_v44  ;;  %v8275_v49 = vpop.f32.mrb[43].mxu0  ;;  %11662 = vmatprep.subr.bf16.mxu0 %v18155_v40  ;;  %v8813_v44 = vld [vmem:[#allocation10 + $0xae8] sm:$0xff]  ;;  %v18186_v40 = vcombine.low %v8800_v9, %v8804_v27  ;;  %v18203_v45 = vcombine.high %v8816_v58, %v8820_v53 }
 0x64f   :  { %v8316_v36 = vpop.f32.mrb[43].mxu1  ;;  %11826 = vmatprep.subr.bf16.mxu1 %v18157_v12  ;;  %v18195_v12 = vcombine.high %v8808_v22, %v8812_v23  ;;  %v18197_v54 = vcombine.high %v8809_v60, %v8813_v44  ;;  %v8817_v61 = vld [vmem:[#allocation10 + $0xb08] sm:$0xff]  ;;  %v18196_v20 = vcombine.low %v8809_v60, %v8813_v44  ;;  %v8824_v48 = vld [vmem:[#allocation10 + $0xb40] sm:$0xff]  ;;  %v18218_v27 = vcombine.low %v8832_v59, %v8836_v26 }
 0x650   :  { %v8828_v49 = vld [vmem:[#allocation10 + $0xb60] sm:$0xff]  ;;  %v18202_v36 = vcombine.low %v8816_v58, %v8820_v53  ;;  %v8845_v9 = vld [vmem:[#allocation10 + $0xbe8] sm:$0xff]  ;;  %v18235_v44 = vcombine.high %v8848_v13, %v8852_v46  ;;  %v18234_v53 = vcombine.low %v8848_v13, %v8852_v46 }
 0x651   :  { %11663 = vmatpush1.bf16.msra.mxu0 %v18154_v1  ;;  %v18205_v1 = vcombine.high %v8817_v61, %v8821_v34  ;;  %v18211_v42 = vcombine.high %v8824_v48, %v8828_v49  ;;  %v18210_v24 = vcombine.low %v8824_v48, %v8828_v49  ;;  %v8861_v58 = vld [vmem:[#allocation10 + $0xc68] sm:$0xff] }
 0x652   :  { %11827 = vmatpush1.bf16.msra.mxu1 %v18156_v37  ;;  %11664 = vmatprep.subr.bf16.mxu0 %v18163_v25  ;;  %v8825_v37 = vld [vmem:[#allocation10 + $0xb48] sm:$0xff] }
 0x653   :  { %11828 = vmatprep.subr.bf16.mxu1 %v18165_v57  ;;  %v8829_v25 = vld [vmem:[#allocation10 + $0xb68] sm:$0xff]  ;;  %v18204_v57 = vcombine.low %v8817_v61, %v8821_v34 }
 0x654   :  { %v18213_v4 = vcombine.high %v8825_v37, %v8829_v25  ;;  %v18212_v43 = vcombine.low %v8825_v37, %v8829_v25  ;;  %v8865_v48 = vld [vmem:[#allocation10 + $0xc88] sm:$0xff] }
 0x655   :  { %11665 = vmatpush1.bf16.msra.mxu0 %v18162_v8  ;;  %v8833_v8 = vld [vmem:[#allocation10 + $0xb88] sm:$0xff] }
 0x656   :  { %11829 = vmatpush1.bf16.msra.mxu1 %v18164_v62  ;;  %11666 = vmatprep.subr.bf16.mxu0 %v18171_v30  ;;  %v8837_v62 = vld [vmem:[#allocation10 + $0xba8] sm:$0xff]  ;;  %v19238_v30 = vld [vmem:[#allocation14 + $0x20] sm:$0xff] }
 0x657   :  { %11830 = vmatprep.subr.bf16.mxu1 %v18173_v6  ;;  %v8427_v6 = vrot.slane %v19238_v30, %v19917_v19  ;;  %v18220_v31 = vcombine.low %v8833_v8, %v8837_v62  ;;  %v8869_v49 = vld [vmem:[#allocation10 + $0xca8] sm:$0xff] }
 0x658   :  { %v8873_v59 = vld [vmem:[#allocation10 + $0xcc8] sm:$0xff] }
 0x659   :  { %11667 = vmatpush1.bf16.msra.mxu0 %v18170_v7  ;;  %v18221_v7 = vcombine.high %v8833_v8, %v8837_v62  ;;  %v8444_v51 = vadd.f32 %v8427_v6, %v8404_v17  ;;  %v8877_v26 = vld [vmem:[#allocation10 + $0xce8] sm:$0xff]  ;;  %v18252_v62 = vcombine.low %v8865_v48, %v8869_v49  ;;  %v8884_v17 = vld [vmem:[#allocation10 + $0xd20] sm:$0xff] }
 0x65a   :  { %11831 = vmatpush1.bf16.msra.mxu1 %v18172_v3  ;;  %11668 = vmatprep.subr.bf16.mxu0 %v18179_v14  ;;  %v8840_v3 = vld [vmem:[#allocation10 + $0xbc0] sm:$0xff]  ;;  %v18261_v6 = vcombine.high %v8873_v59, %v8877_v26 }
 0x65b   :  { %11832 = vmatprep.subr.bf16.mxu1 %v18181_v15  ;;  %v8844_v14 = vld [vmem:[#allocation10 + $0xbe0] sm:$0xff]  ;;  %v8841_v15 = vld [vmem:[#allocation10 + $0xbc8] sm:$0xff]  ;;  %v19993_v23 = vmax.f32 %v8444_v51, 0.0 }
 0x65c   :  { %v18226_v22 = vcombine.low %v8840_v3, %v8844_v14  ;;  %v18228_v60 = vcombine.low %v8841_v15, %v8845_v9  ;;  %v8889_v51 = vld [vmem:[#allocation10 + $0xd48] sm:$0xff] }
 0x65d   :  { %11669 = vmatpush1.bf16.msra.mxu0 %v18178_v10  ;;  %v18227_v10 = vcombine.high %v8840_v3, %v8844_v14  ;;  %v19997_v61 = vpack.c.bf16 %v19993_v23, %v19993_v23  ;;  %v18260_v3 = vcombine.low %v8873_v59, %v8877_v26 }
 0x65e   :  { %11833 = vmatpush1.bf16.msra.mxu1 %v18180_v16  ;;  %11670 = vmatprep.subr.bf16.mxu0 %v18187_v18  ;;  %v18229_v16 = vcombine.high %v8841_v15, %v8845_v9  ;;  %v8849_v18 = vld [vmem:[#allocation10 + $0xc08] sm:$0xff]  ;;  %v8888_v9 = vld [vmem:[#allocation10 + $0xd40] sm:$0xff] }
 0x65f   :  { %11834 = vmatprep.subr.bf16.mxu1 %v18189_v0  ;;  %v8853_v0 = vld [vmem:[#allocation10 + $0xc28] sm:$0xff] }
 0x660   :  { %v18236_v34 = vcombine.low %v8849_v18, %v8853_v0 }
 0x661   :  { %11671 = vmatpush1.bf16.msra.mxu0 %v18186_v40  ;;  %v18237_v40 = vcombine.high %v8849_v18, %v8853_v0  ;;  %v8896_v18 = vld [vmem:[#allocation10 + $0xd80] sm:$0xff] }
 0x662   :  { %11835 = vmatpush1.bf16.msra.mxu1 %v18188_v28  ;;  %11672 = vmatprep.subr.bf16.mxu0 %v18195_v12  ;;  %v8856_v28 = vld [vmem:[#allocation10 + $0xc40] sm:$0xff] }
 0x663   :  { %11836 = vmatprep.subr.bf16.mxu1 %v18197_v54  ;;  %v8860_v12 = vld [vmem:[#allocation10 + $0xc60] sm:$0xff]  ;;  %v8857_v54 = vld [vmem:[#allocation10 + $0xc48] sm:$0xff] }
 0x664   :  { %v18242_v37 = vcombine.low %v8856_v28, %v8860_v12  ;;  %v18244_v25 = vcombine.low %v8857_v54, %v8861_v58  ;;  %v8900_v0 = vld [vmem:[#allocation10 + $0xda0] sm:$0xff] }
 0x665   :  { %11673 = vmatpush1.bf16.msra.mxu0 %v18194_v5  ;;  %v18243_v5 = vcombine.high %v8856_v28, %v8860_v12  ;;  %v18283_v28 = vcombine.high %v8896_v18, %v8900_v0 }
 0x666   :  { %11837 = vmatpush1.bf16.msra.mxu1 %v18196_v20  ;;  %11674 = vmatprep.subr.bf16.mxu0 %v18203_v45  ;;  %v18245_v20 = vcombine.high %v8857_v54, %v8861_v58  ;;  %v8864_v45 = vld [vmem:[#allocation10 + $0xc80] sm:$0xff] }
 0x667   :  { %11838 = vmatprep.subr.bf16.mxu1 %v18205_v1  ;;  %v8868_v1 = vld [vmem:[#allocation10 + $0xca0] sm:$0xff] }
 0x668   :  { %v18250_v8 = vcombine.low %v8864_v45, %v8868_v1  ;;  %v8904_v58 = vld [vmem:[#allocation10 + $0xdc0] sm:$0xff] }
 0x669   :  { %11675 = vmatpush1.bf16.msra.mxu0 %v18202_v36  ;;  %v18251_v36 = vcombine.high %v8864_v45, %v8868_v1  ;;  %v8905_v45 = vld [vmem:[#allocation10 + $0xdc8] sm:$0xff] }
 0x66a   :  { %11839 = vmatpush1.bf16.msra.mxu1 %v18204_v57  ;;  %11676 = vmatprep.subr.bf16.mxu0 %v18211_v42  ;;  %v18253_v57 = vcombine.high %v8865_v48, %v8869_v49  ;;  %v8872_v42 = vld [vmem:[#allocation10 + $0xcc0] sm:$0xff]  ;;  %v8909_v1 = vld [vmem:[#allocation10 + $0xde8] sm:$0xff] }
 0x66b   :  { %11840 = vmatprep.subr.bf16.mxu1 %v18213_v4  ;;  %v8876_v4 = vld [vmem:[#allocation10 + $0xce0] sm:$0xff] }
 0x66c   :  { %v18259_v30 = vcombine.high %v8872_v42, %v8876_v4 }
 0x66d   :  { %11677 = vmatpush1.bf16.msra.mxu0 %v18210_v24  ;;  %v8880_v24 = vld [vmem:[#allocation10 + $0xd00] sm:$0xff] }
 0x66e   :  { %11841 = vmatpush1.bf16.msra.mxu1 %v18212_v43  ;;  %11678 = vmatprep.subr.bf16.mxu0 %v18219_v11  ;;  %v8881_v43 = vld [vmem:[#allocation10 + $0xd08] sm:$0xff]  ;;  %v18267_v14 = vcombine.high %v8880_v24, %v8884_v17 }
 0x66f   :  { %11842 = vmatprep.subr.bf16.mxu1 %v18221_v7  ;;  %v8885_v11 = vld [vmem:[#allocation10 + $0xd28] sm:$0xff]  ;;  %v18258_v7 = vcombine.low %v8872_v42, %v8876_v4 }
 0x670   :  { %v18269_v15 = vcombine.high %v8881_v43, %v8885_v11 }
 0x671   :  { %11679 = vmatpush1.bf16.msra.mxu0 %v18218_v27  ;;  %v8892_v27 = vld [vmem:[#allocation10 + $0xd60] sm:$0xff] }
 0x672   :  { %11843 = vmatpush1.bf16.msra.mxu1 %v18220_v31  ;;  %11680 = vmatprep.subr.bf16.mxu0 %v18227_v10  ;;  %v8893_v31 = vld [vmem:[#allocation10 + $0xd68] sm:$0xff]  ;;  %v18266_v10 = vcombine.low %v8880_v24, %v8884_v17  ;;  %v18275_v13 = vcombine.high %v8888_v9, %v8892_v27 }
 0x673   :  { %11844 = vmatprep.subr.bf16.mxu1 %v18229_v16  ;;  %v18268_v16 = vcombine.low %v8881_v43, %v8885_v11  ;;  %v18277_v46 = vcombine.high %v8889_v51, %v8893_v31  ;;  %v8913_v24 = vld [vmem:[#allocation10 + $0xe08] sm:$0xff] }
 0x674   :  { %v8917_v17 = vld [vmem:[#allocation10 + $0xe28] sm:$0xff] }
 0x675   :  { %11681 = vmatpush1.bf16.msra.mxu0 %v18226_v22  ;;  %v8897_v22 = vld [vmem:[#allocation10 + $0xd88] sm:$0xff] }
 0x676   :  { %11845 = vmatpush1.bf16.msra.mxu1 %v18228_v60  ;;  %11691 = vmatprep.subr.bf16.mxu0 %v18235_v44  ;;  %v8901_v60 = vld [vmem:[#allocation10 + $0xda8] sm:$0xff]  ;;  %v18274_v44 = vcombine.low %v8888_v9, %v8892_v27  ;;  %v8920_v9 = vld [vmem:[#allocation10 + $0xe40] sm:$0xff] }
 0x677   :  { %11855 = vmatprep.subr.bf16.mxu1 %v18237_v40  ;;  %v18276_v40 = vcombine.low %v8889_v51, %v8893_v31  ;;  %v18285_v54 = vcombine.high %v8897_v22, %v8901_v60  ;;  %v18284_v4 = vcombine.low %v8897_v22, %v8901_v60  ;;  %v8924_v27 = vld [vmem:[#allocation10 + $0xe60] sm:$0xff]  ;;  %v8921_v51 = vld [vmem:[#allocation10 + $0xe48] sm:$0xff] }
 0x678   :  { %11683 = vmatmul.mubr.bf16.vlgmr.msra.gmra.mrb[48].mxu0 %v19997_v61  ;;  %v8925_v31 = vld [vmem:[#allocation10 + $0xe68] sm:$0xff]  ;;  %v8932_v22 = vld [vmem:[#allocation10 + $0xea0] sm:$0xff] }
 0x679   :  { %11847 = vmatmul.mubr.bf16.vlgmr.msra.gmra.mrb[48].mxu1 %v19997_v61  ;;  %11692 = vmatpush1.bf16.msra.mxu0 %v18234_v53  ;;  %v8908_v53 = vld [vmem:[#allocation10 + $0xde0] sm:$0xff]  ;;  %v8929_v60 = vld [vmem:[#allocation10 + $0xe88] sm:$0xff] }
 0x67a   :  { %11856 = vmatpush1.bf16.msra.mxu1 %v18236_v34  ;;  %11693 = vmatprep.subr.bf16.mxu0 %v18243_v5  ;;  %v18291_v59 = vcombine.high %v8904_v58, %v8908_v53  ;;  %v18290_v11 = vcombine.low %v8904_v58, %v8908_v53  ;;  %v8936_v58 = vld [vmem:[#allocation10 + $0xec0] sm:$0xff] }
 0x67b   :  { %11857 = vmatprep.subr.bf16.mxu1 %v18245_v20  ;;  %v8940_v53 = vld [vmem:[#allocation10 + $0xee0] sm:$0xff] }
 0x67d   :  { %11694 = vmatpush1.bf16.msra.mxu0 %v18242_v37 }
 0x67e   :  { %11858 = vmatpush1.bf16.msra.mxu1 %v18244_v25  ;;  %11695 = vmatprep.subr.bf16.mxu0 %v18251_v36  ;;  %v18282_v25 = vcombine.low %v8896_v18, %v8900_v0  ;;  %v18309_v18 = vcombine.high %v8921_v51, %v8925_v31  ;;  %v8928_v0 = vld [vmem:[#allocation10 + $0xe80] sm:$0xff] }
 0x67f   :  { %11859 = vmatprep.subr.bf16.mxu1 %v18253_v57 }
 0x681   :  { %11696 = vmatpush1.bf16.msra.mxu0 %v18250_v8 }
 0x682   :  { %11860 = vmatpush1.bf16.msra.mxu1 %v18252_v62  ;;  %11697 = vmatprep.subr.bf16.mxu0 %v18259_v30  ;;  %v18293_v30 = vcombine.high %v8905_v45, %v8909_v1 }
 0x683   :  { %11861 = vmatprep.subr.bf16.mxu1 %v18261_v6  ;;  %v8916_v6 = vld [vmem:[#allocation10 + $0xe20] sm:$0xff] }
 0x685   :  { %11698 = vmatpush1.bf16.msra.mxu0 %v18258_v7  ;;  %v18292_v7 = vcombine.low %v8905_v45, %v8909_v1  ;;  %v18323_v1 = vcombine.high %v8936_v58, %v8940_v53 }
 0x686   :  { %11862 = vmatpush1.bf16.msra.mxu1 %v18260_v3  ;;  %11699 = vmatprep.subr.bf16.mxu0 %v18267_v14 }
 0x687   :  { %11863 = vmatprep.subr.bf16.mxu1 %v18269_v15  ;;  %v18301_v15 = vcombine.high %v8913_v24, %v8917_v17 }
 0x689   :  { %11700 = vmatpush1.bf16.msra.mxu0 %v18266_v10 }
 0x68a   :  { %11864 = vmatpush1.bf16.msra.mxu1 %v18268_v16  ;;  %11701 = vmatprep.subr.bf16.mxu0 %v18275_v13 }
 0x68b   :  { %v8352_v12 = vpop.f32.mrb[44].mxu0  ;;  %11865 = vmatprep.subr.bf16.mxu1 %v18277_v46  ;;  %v18307_v46 = vcombine.high %v8920_v9, %v8924_v27 }
 0x68c   :  { %v8353_v34 = vadd.f32 %v8352_v12, %v19986_v38  ;;  %v8393_v5 = vpop.f32.mrb[44].mxu1  ;;  %v8354_v20 = vpop.f32.mrb[45].mxu0  ;;  %v19239_v38 = vld [vmem:[#allocation14 + $0x38] sm:$0xff]  ;;  %v18315_v12 = vcombine.high %v8928_v0, %v8932_v22 }
 0x68d   :  { %v8355_v48 = vadd.f32 %v8354_v20, %v19988_v47  ;;  %v8395_v49 = vpop.f32.mrb[45].mxu1  ;;  %v8356_v37 = vpop.f32.mrb[46].mxu0  ;;  %11702 = vmatpush1.bf16.msra.mxu0 %v18274_v44  ;;  %v8439_v8 = vrot.slane %v19239_v38, %v19917_v19  ;;  %v8912_v47 = vld [vmem:[#allocation10 + $0xe00] sm:$0xff]  ;;  %v8933_v44 = vld [vmem:[#allocation10 + $0xea8] sm:$0xff]  ;;  %v18314_v20 = vcombine.low %v8928_v0, %v8932_v22 }
 0x68e   :  { %v20003_v36 = vadd.f32 %v8393_v5, %v8353_v34  ;;  %v8397_v57 = vpop.f32.mrb[46].mxu1  ;;  %11866 = vmatpush1.bf16.msra.mxu1 %v18276_v40  ;;  %v8357_v42 = vpop.f32.mrb[47].mxu0  ;;  %11703 = vmatprep.subr.bf16.mxu0 %v18283_v28  ;;  %v18299_v3 = vcombine.high %v8912_v47, %v8916_v6  ;;  %v18298_v16 = vcombine.low %v8912_v47, %v8916_v6  ;;  %v8937_v34 = vld [vmem:[#allocation10 + $0xec8] sm:$0xff]  ;;  %v8948_v37 = vld [vmem:[#allocation10 + $0xf20] sm:$0xff] }
 0x68f   :  { %v8396_v26 = vadd.f32 %v8395_v49, %v8355_v48  ;;  %v8398_v62 = vpop.f32.mrb[47].mxu1  ;;  %11867 = vmatprep.subr.bf16.mxu1 %v18285_v54  ;;  %v18306_v40 = vcombine.low %v8920_v9, %v8924_v27  ;;  %v18308_v28 = vcombine.low %v8921_v51, %v8925_v31  ;;  %v18317_v54 = vcombine.high %v8929_v60, %v8933_v44  ;;  %v8941_v5 = vld [vmem:[#allocation10 + $0xee8] sm:$0xff]  ;;  %v8944_v49 = vld [vmem:[#allocation10 + $0xf00] sm:$0xff] }
 0x690   :  { %v18316_v45 = vcombine.low %v8929_v60, %v8933_v44  ;;  %v18325_v48 = vcombine.high %v8937_v34, %v8941_v5  ;;  %v8949_v57 = vld [vmem:[#allocation10 + $0xf28] sm:$0xff]  ;;  %v18322_v42 = vcombine.low %v8936_v58, %v8940_v53  ;;  %v8952_v38 = vld [vmem:[#allocation10 + $0xf40] sm:$0xff]  ;;  %v18330_v47 = vcombine.low %v8944_v49, %v8948_v37 }
 0x691   :  { %v8407_v43 = vadd.f32 %v8396_v26, %v19765_v35  ;;  %11704 = vmatpush1.bf16.msra.mxu0 %v18282_v25  ;;  %v18300_v35 = vcombine.low %v8913_v24, %v8917_v17  ;;  %v8945_v25 = vld [vmem:[#allocation10 + $0xf08] sm:$0xff]  ;;  %v8406_v27 = vadd.f32 %v20003_v36, %v19781_v29  ;;  %v8466_v29 = vld [vmem:[#allocation10 + $0x10] sm:$0xff] }
 0x692   :  { %11868 = vmatpush1.bf16.msra.mxu1 %v18284_v4  ;;  %11705 = vmatprep.subr.bf16.mxu0 %v18291_v59  ;;  %v18324_v4 = vcombine.low %v8937_v34, %v8941_v5  ;;  %v18331_v59 = vcombine.high %v8944_v49, %v8948_v37  ;;  %v18333_v26 = vcombine.high %v8945_v25, %v8949_v57  ;;  %v8953_v62 = vld [vmem:[#allocation10 + $0xf48] sm:$0xff]  ;;  %v8470_v36 = vld [vmem:[#allocation10 + $0x30] sm:$0xff]  ;;  %v8479_v49 = vld [vmem:[#allocation10 + $0x78] sm:$0xff] }
 0x693   :  { %v8447_v14 = vadd.f32 %v8439_v8, %v8407_v43  ;;  %11869 = vmatprep.subr.bf16.mxu1 %v18293_v30  ;;  %v8956_v8 = vld [vmem:[#allocation10 + $0xf60] sm:$0xff]  ;;  %v8957_v30 = vld [vmem:[#allocation10 + $0xf68] sm:$0xff]  ;;  %v18332_v6 = vcombine.low %v8945_v25, %v8949_v57  ;;  %v17855_v34 = vcombine.high %v8466_v29, %v8470_v36 }
 0x694   :  { %v18339_v24 = vcombine.high %v8952_v38, %v8956_v8  ;;  %v18341_v17 = vcombine.high %v8953_v62, %v8957_v30  ;;  %v8960_v43 = vld [vmem:[#allocation10 + $0xf80] sm:$0xff]  ;;  %v18338_v9 = vcombine.low %v8952_v38, %v8956_v8  ;;  %v18340_v51 = vcombine.low %v8953_v62, %v8957_v30  ;;  %v8973_v0 = vld [vmem:[#allocation10 + $0xfe8] sm:$0xff]  ;;  %v8487_v38 = vld [vmem:[#allocation10 + $0xb8] sm:$0xff] }
 0x695   :  { %v20007_v10 = vmax.f32 %v8447_v14, 0.0  ;;  %11706 = vmatpush1.bf16.msra.mxu0 %v18290_v11  ;;  %v8964_v11 = vld [vmem:[#allocation10 + $0xfa0] sm:$0xff]  ;;  %v19240_v14 = vld [vmem:[#allocation14 + $0x30] sm:$0xff] }
 0x696   :  { %11870 = vmatpush1.bf16.msra.mxu1 %v18292_v7  ;;  %11707 = vmatprep.subr.bf16.mxu0 %v18299_v3  ;;  %v8961_v7 = vld [vmem:[#allocation10 + $0xf88] sm:$0xff]  ;;  %v18347_v31 = vcombine.high %v8960_v43, %v8964_v11  ;;  %v18346_v22 = vcombine.low %v8960_v43, %v8964_v11  ;;  %v8495_v43 = vld [vmem:[#allocation10 + $0xf8] sm:$0xff] }
 0x697   :  { %v20011_v13 = vpack.c.bf16 %v20007_v10, %v20007_v10  ;;  %11871 = vmatprep.subr.bf16.mxu1 %v18301_v15  ;;  %v8965_v3 = vld [vmem:[#allocation10 + $0xfa8] sm:$0xff]  ;;  %v8435_v15 = vrot.slane %v19240_v14, %v19917_v19 }
 0x698   :  { %v18348_v19 = vcombine.low %v8961_v7, %v8965_v3 }
 0x699   :  { %11708 = vmatpush1.bf16.msra.mxu0 %v18298_v16  ;;  %11723 = vmatprep.mubr.bf16.mxu0 %v20011_v13  ;;  %v18349_v16 = vcombine.high %v8961_v7, %v8965_v3  ;;  %v8446_v60 = vadd.f32 %v8435_v15, %v8406_v27  ;;  %v8498_v15 = vld [vmem:[#allocation10 + $0x110] sm:$0xff]  ;;  %v8499_v27 = vld [vmem:[#allocation10 + $0x118] sm:$0xff] }
 0x69a   :  { %11872 = vmatpush1.bf16.msra.mxu1 %v18300_v35  ;;  %11887 = vmatprep.mubr.bf16.mxu1 %v20011_v13  ;;  %v8968_v35 = vld [vmem:[#allocation10 + $0xfc0] sm:$0xff] }
 0x69b   :  { %11709 = vmatprep.subr.bf16.mxu0 %v18307_v46  ;;  %11873 = vmatprep.subr.bf16.mxu1 %v18309_v18  ;;  %v8972_v46 = vld [vmem:[#allocation10 + $0xfe0] sm:$0xff]  ;;  %v8969_v18 = vld [vmem:[#allocation10 + $0xfc8] sm:$0xff]  ;;  %v20018_v58 = vmax.f32 %v8446_v60, 0.0 }
 0x69c   :  { %v18355_v44 = vcombine.high %v8968_v35, %v8972_v46  ;;  %v18356_v53 = vcombine.low %v8969_v18, %v8973_v0 }
 0x69d   :  { %11710 = vmatpush1.bf16.msra.mxu0 %v18306_v40  ;;  %v18357_v40 = vcombine.high %v8969_v18, %v8973_v0  ;;  %v20022_v37 = vpack.c.bf16 %v20018_v58, %v20018_v58  ;;  %v8510_v18 = vld [vmem:[#allocation10 + $0x170] sm:$0xff]  ;;  %v8507_v0 = vld [vmem:[#allocation10 + $0x158] sm:$0xff] }
 0x69e   :  { %11874 = vmatpush1.bf16.msra.mxu1 %v18308_v28  ;;  %11711 = vmatprep.subr.bf16.mxu0 %v18315_v12  ;;  %v8467_v28 = vld [vmem:[#allocation10 + $0x18] sm:$0xff] }
 0x69f   :  { %11875 = vmatprep.subr.bf16.mxu1 %v18317_v54  ;;  %v8471_v12 = vld [vmem:[#allocation10 + $0x38] sm:$0xff]  ;;  %v18354_v54 = vcombine.low %v8968_v35, %v8972_v46  ;;  %v8506_v46 = vld [vmem:[#allocation10 + $0x150] sm:$0xff] }
 0x6a0   :  { %v17857_v5 = vcombine.high %v8467_v28, %v8471_v12  ;;  %v17856_v25 = vcombine.low %v8467_v28, %v8471_v12  ;;  %v8515_v28 = vld [vmem:[#allocation10 + $0x198] sm:$0xff] }
 0x6a1   :  { %11712 = vmatpush1.bf16.msra.mxu0 %v18314_v20  ;;  %v8474_v20 = vld [vmem:[#allocation10 + $0x50] sm:$0xff]  ;;  %v8519_v12 = vld [vmem:[#allocation10 + $0x1b8] sm:$0xff] }
 0x6a2   :  { %11876 = vmatpush1.bf16.msra.mxu1 %v18316_v45  ;;  %11713 = vmatprep.subr.bf16.mxu0 %v18323_v1  ;;  %v8478_v45 = vld [vmem:[#allocation10 + $0x70] sm:$0xff]  ;;  %v17854_v1 = vcombine.low %v8466_v29, %v8470_v36 }
 0x6a3   :  { %11877 = vmatprep.subr.bf16.mxu1 %v18325_v48  ;;  %v8475_v48 = vld [vmem:[#allocation10 + $0x58] sm:$0xff]  ;;  %v17863_v57 = vcombine.high %v8474_v20, %v8478_v45  ;;  %v17862_v8 = vcombine.low %v8474_v20, %v8478_v45  ;;  %v8514_v29 = vld [vmem:[#allocation10 + $0x190] sm:$0xff] }
 0x6a4   :  { %v17864_v62 = vcombine.low %v8475_v48, %v8479_v49  ;;  %v8518_v36 = vld [vmem:[#allocation10 + $0x1b0] sm:$0xff] }
 0x6a5   :  { %11714 = vmatpush1.bf16.msra.mxu0 %v18322_v42  ;;  %v8482_v42 = vld [vmem:[#allocation10 + $0x90] sm:$0xff] }
 0x6a6   :  { %11878 = vmatpush1.bf16.msra.mxu1 %v18324_v4  ;;  %11715 = vmatprep.subr.bf16.mxu0 %v18331_v59  ;;  %v8486_v4 = vld [vmem:[#allocation10 + $0xb0] sm:$0xff]  ;;  %v17865_v59 = vcombine.high %v8475_v48, %v8479_v49  ;;  %v8527_v48 = vld [vmem:[#allocation10 + $0x1f8] sm:$0xff]  ;;  %v17902_v49 = vcombine.low %v8514_v29, %v8518_v36 }
 0x6a7   :  { %11879 = vmatprep.subr.bf16.mxu1 %v18333_v26  ;;  %v8483_v26 = vld [vmem:[#allocation10 + $0x98] sm:$0xff]  ;;  %v17871_v30 = vcombine.high %v8482_v42, %v8486_v4  ;;  %v17870_v11 = vcombine.low %v8482_v42, %v8486_v4  ;;  %v8522_v20 = vld [vmem:[#allocation10 + $0x1d0] sm:$0xff] }
 0x6a8   :  { %v17872_v7 = vcombine.low %v8483_v26, %v8487_v38  ;;  %v8526_v45 = vld [vmem:[#allocation10 + $0x1f0] sm:$0xff] }
 0x6a9   :  { %11716 = vmatpush1.bf16.msra.mxu0 %v18330_v47  ;;  %v17873_v47 = vcombine.high %v8483_v26, %v8487_v38  ;;  %v8530_v4 = vld [vmem:[#allocation10 + $0x210] sm:$0xff]  ;;  %v8531_v26 = vld [vmem:[#allocation10 + $0x218] sm:$0xff] }
 0x6aa   :  { %11880 = vmatpush1.bf16.msra.mxu1 %v18332_v6  ;;  %11717 = vmatprep.subr.bf16.mxu0 %v18339_v24  ;;  %v8490_v6 = vld [vmem:[#allocation10 + $0xd0] sm:$0xff]  ;;  %v8535_v38 = vld [vmem:[#allocation10 + $0x238] sm:$0xff] }
 0x6ab   :  { %11881 = vmatprep.subr.bf16.mxu1 %v18341_v17  ;;  %v8494_v24 = vld [vmem:[#allocation10 + $0xf0] sm:$0xff]  ;;  %v8491_v17 = vld [vmem:[#allocation10 + $0xd8] sm:$0xff] }
 0x6ac   :  { %v17879_v3 = vcombine.high %v8490_v6, %v8494_v24  ;;  %v17881_v14 = vcombine.high %v8491_v17, %v8495_v43 }
 0x6ad   :  { %11718 = vmatpush1.bf16.msra.mxu0 %v18338_v9  ;;  %v8502_v9 = vld [vmem:[#allocation10 + $0x130] sm:$0xff] }
 0x6ae   :  { %11882 = vmatpush1.bf16.msra.mxu1 %v18340_v51  ;;  %11719 = vmatprep.subr.bf16.mxu0 %v18347_v31  ;;  %v8503_v51 = vld [vmem:[#allocation10 + $0x138] sm:$0xff]  ;;  %v17880_v31 = vcombine.low %v8491_v17, %v8495_v43  ;;  %v17886_v60 = vcombine.low %v8498_v15, %v8502_v9 }
 0x6af   :  { %11883 = vmatprep.subr.bf16.mxu1 %v18349_v16  ;;  %v17887_v16 = vcombine.high %v8498_v15, %v8502_v9  ;;  %v17889_v35 = vcombine.high %v8499_v27, %v8503_v51  ;;  %v8539_v17 = vld [vmem:[#allocation10 + $0x258] sm:$0xff]  ;;  %v8546_v15 = vld [vmem:[#allocation10 + $0x290] sm:$0xff] }
 0x6b0   :  { %v8543_v43 = vld [vmem:[#allocation10 + $0x278] sm:$0xff]  ;;  %v8550_v9 = vld [vmem:[#allocation10 + $0x2b0] sm:$0xff] }
 0x6b1   :  { %11720 = vmatpush1.bf16.msra.mxu0 %v18346_v22  ;;  %v8511_v22 = vld [vmem:[#allocation10 + $0x178] sm:$0xff] }
 0x6b2   :  { %11884 = vmatpush1.bf16.msra.mxu1 %v18348_v19  ;;  %11721 = vmatprep.subr.bf16.mxu0 %v18355_v44  ;;  %v17888_v19 = vcombine.low %v8499_v27, %v8503_v51  ;;  %v17895_v44 = vcombine.high %v8506_v46, %v8510_v18  ;;  %v8547_v27 = vld [vmem:[#allocation10 + $0x298] sm:$0xff] }
 0x6b3   :  { %11885 = vmatprep.subr.bf16.mxu1 %v18357_v40  ;;  %v17897_v40 = vcombine.high %v8507_v0, %v8511_v22  ;;  %v8551_v51 = vld [vmem:[#allocation10 + $0x2b8] sm:$0xff] }
 0x6b5   :  { %11722 = vmatpush1.bf16.msra.mxu0 %v18354_v54  ;;  %v17894_v54 = vcombine.low %v8506_v46, %v8510_v18  ;;  %v8554_v46 = vld [vmem:[#allocation10 + $0x2d0] sm:$0xff] }
 0x6b6   :  { %11886 = vmatpush1.bf16.msra.mxu1 %v18356_v53  ;;  %11896 = vmatprep.subr.bf16.mxu0 %v17855_v34  ;;  %v17896_v53 = vcombine.low %v8507_v0, %v8511_v22  ;;  %v17903_v34 = vcombine.high %v8514_v29, %v8518_v36  ;;  %v8558_v18 = vld [vmem:[#allocation10 + $0x2f0] sm:$0xff]  ;;  %v8555_v0 = vld [vmem:[#allocation10 + $0x2d8] sm:$0xff] }
 0x6b7   :  { %12060 = vmatprep.subr.bf16.mxu1 %v17857_v5  ;;  %v17905_v5 = vcombine.high %v8515_v28, %v8519_v12  ;;  %v8559_v22 = vld [vmem:[#allocation10 + $0x2f8] sm:$0xff]  ;;  %v8562_v29 = vld [vmem:[#allocation10 + $0x310] sm:$0xff] }
 0x6b8   :  { %11724 = vmatmul.mubr.bf16.vlgmr.msra.gmra.mrb[48].mxu0 %v20022_v37  ;;  %v8566_v36 = vld [vmem:[#allocation10 + $0x330] sm:$0xff] }
 0x6b9   :  { %11888 = vmatmul.mubr.bf16.vlgmr.msra.gmra.mrb[48].mxu1 %v20022_v37  ;;  %11897 = vmatpush1.bf16.msra.mxu0 %v17854_v1  ;;  %v8523_v1 = vld [vmem:[#allocation10 + $0x1d8] sm:$0xff] }
 0x6ba   :  { %11928 = vmatprep.mubr.bf16.mxu0 %v19926_v41  ;;  %12061 = vmatpush1.bf16.msra.mxu1 %v17856_v25  ;;  %v17904_v25 = vcombine.low %v8515_v28, %v8519_v12  ;;  %v17913_v42 = vcombine.high %v8523_v1, %v8527_v48  ;;  %v8563_v28 = vld [vmem:[#allocation10 + $0x318] sm:$0xff] }
 0x6bb   :  { %12092 = vmatprep.mubr.bf16.mxu1 %v19926_v41  ;;  %11898 = vmatprep.subr.bf16.mxu0 %v17863_v57  ;;  %v17878_v41 = vcombine.low %v8490_v6, %v8494_v24  ;;  %v17911_v57 = vcombine.high %v8522_v20, %v8526_v45  ;;  %v8538_v6 = vld [vmem:[#allocation10 + $0x250] sm:$0xff]  ;;  %v8567_v12 = vld [vmem:[#allocation10 + $0x338] sm:$0xff] }
 0x6bc   :  { %12062 = vmatprep.subr.bf16.mxu1 %v17865_v59  ;;  %v8534_v59 = vld [vmem:[#allocation10 + $0x230] sm:$0xff] }
 0x6bd   :  { %11899 = vmatpush1.bf16.msra.mxu0 %v17862_v8  ;;  %v17910_v8 = vcombine.low %v8522_v20, %v8526_v45  ;;  %v8542_v24 = vld [vmem:[#allocation10 + $0x270] sm:$0xff] }
 0x6be   :  { %12063 = vmatpush1.bf16.msra.mxu1 %v17864_v62  ;;  %11900 = vmatprep.subr.bf16.mxu0 %v17871_v30  ;;  %v17912_v62 = vcombine.low %v8523_v1, %v8527_v48  ;;  %v17919_v30 = vcombine.high %v8530_v4, %v8534_v59  ;;  %v8570_v20 = vld [vmem:[#allocation10 + $0x350] sm:$0xff]  ;;  %v8571_v1 = vld [vmem:[#allocation10 + $0x358] sm:$0xff] }
 0x6bf   :  { %12064 = vmatprep.subr.bf16.mxu1 %v17873_v47  ;;  %v17921_v47 = vcombine.high %v8531_v26, %v8535_v38  ;;  %v8574_v45 = vld [vmem:[#allocation10 + $0x370] sm:$0xff]  ;;  %v8575_v48 = vld [vmem:[#allocation10 + $0x378] sm:$0xff] }
 0x6c1   :  { %11901 = vmatpush1.bf16.msra.mxu0 %v17870_v11  ;;  %v17918_v11 = vcombine.low %v8530_v4, %v8534_v59  ;;  %v8578_v4 = vld [vmem:[#allocation10 + $0x390] sm:$0xff] }
 0x6c2   :  { %12065 = vmatpush1.bf16.msra.mxu1 %v17872_v7  ;;  %11902 = vmatprep.subr.bf16.mxu0 %v17879_v3  ;;  %v17920_v7 = vcombine.low %v8531_v26, %v8535_v38  ;;  %v17927_v3 = vcombine.high %v8538_v6, %v8542_v24  ;;  %v8582_v59 = vld [vmem:[#allocation10 + $0x3b0] sm:$0xff]  ;;  %v8579_v26 = vld [vmem:[#allocation10 + $0x398] sm:$0xff] }
 0x6c3   :  { %12066 = vmatprep.subr.bf16.mxu1 %v17881_v14  ;;  %v17929_v14 = vcombine.high %v8539_v17, %v8543_v43  ;;  %v8583_v38 = vld [vmem:[#allocation10 + $0x3b8] sm:$0xff] }
 0x6c5   :  { %11903 = vmatpush1.bf16.msra.mxu0 %v17878_v41  ;;  %v17926_v41 = vcombine.low %v8538_v6, %v8542_v24  ;;  %v8586_v6 = vld [vmem:[#allocation10 + $0x3d0] sm:$0xff] }
 0x6c6   :  { %12067 = vmatpush1.bf16.msra.mxu1 %v17880_v31  ;;  %11904 = vmatprep.subr.bf16.mxu0 %v17887_v16  ;;  %v17928_v31 = vcombine.low %v8539_v17, %v8543_v43  ;;  %v17935_v16 = vcombine.high %v8546_v15, %v8550_v9  ;;  %v8590_v24 = vld [vmem:[#allocation10 + $0x3f0] sm:$0xff]  ;;  %v8587_v17 = vld [vmem:[#allocation10 + $0x3d8] sm:$0xff] }
 0x6c7   :  { %12068 = vmatprep.subr.bf16.mxu1 %v17889_v35  ;;  %v17937_v35 = vcombine.high %v8547_v27, %v8551_v51  ;;  %v8591_v43 = vld [vmem:[#allocation10 + $0x3f8] sm:$0xff] }
 0x6c9   :  { %11905 = vmatpush1.bf16.msra.mxu0 %v17886_v60  ;;  %v17934_v60 = vcombine.low %v8546_v15, %v8550_v9  ;;  %v8594_v15 = vld [vmem:[#allocation10 + $0x410] sm:$0xff] }
 0x6ca   :  { %12069 = vmatpush1.bf16.msra.mxu1 %v17888_v19  ;;  %11906 = vmatprep.subr.bf16.mxu0 %v17895_v44  ;;  %v17936_v19 = vcombine.low %v8547_v27, %v8551_v51  ;;  %v17943_v44 = vcombine.high %v8554_v46, %v8558_v18  ;;  %v8598_v9 = vld [vmem:[#allocation10 + $0x430] sm:$0xff]  ;;  %v8595_v27 = vld [vmem:[#allocation10 + $0x418] sm:$0xff] }
 0x6cb   :  { %12070 = vmatprep.subr.bf16.mxu1 %v17897_v40  ;;  %v17945_v40 = vcombine.high %v8555_v0, %v8559_v22  ;;  %v8599_v51 = vld [vmem:[#allocation10 + $0x438] sm:$0xff] }
 0x6cd   :  { %11907 = vmatpush1.bf16.msra.mxu0 %v17894_v54  ;;  %v17942_v54 = vcombine.low %v8554_v46, %v8558_v18  ;;  %v8602_v46 = vld [vmem:[#allocation10 + $0x450] sm:$0xff] }
 0x6ce   :  { %12071 = vmatpush1.bf16.msra.mxu1 %v17896_v53  ;;  %11908 = vmatprep.subr.bf16.mxu0 %v17903_v34  ;;  %v17944_v53 = vcombine.low %v8555_v0, %v8559_v22  ;;  %v17951_v34 = vcombine.high %v8562_v29, %v8566_v36  ;;  %v8606_v18 = vld [vmem:[#allocation10 + $0x470] sm:$0xff]  ;;  %v17982_v0 = vcombine.low %v8594_v15, %v8598_v9  ;;  %v8603_v22 = vld [vmem:[#allocation10 + $0x458] sm:$0xff] }
 0x6cf   :  { %12072 = vmatprep.subr.bf16.mxu1 %v17905_v5  ;;  %v17953_v5 = vcombine.high %v8563_v28, %v8567_v12 }
 0x6d1   :  { %11909 = vmatpush1.bf16.msra.mxu0 %v17902_v49  ;;  %v17950_v49 = vcombine.low %v8562_v29, %v8566_v36  ;;  %v8614_v29 = vld [vmem:[#allocation10 + $0x4b0] sm:$0xff] }
 0x6d2   :  { %12073 = vmatpush1.bf16.msra.mxu1 %v17904_v25  ;;  %11910 = vmatprep.subr.bf16.mxu0 %v17911_v57  ;;  %v17952_v25 = vcombine.low %v8563_v28, %v8567_v12  ;;  %v17959_v57 = vcombine.high %v8570_v20, %v8574_v45  ;;  %v8611_v28 = vld [vmem:[#allocation10 + $0x498] sm:$0xff] }
 0x6d3   :  { %12074 = vmatprep.subr.bf16.mxu1 %v17913_v42  ;;  %v17961_v42 = vcombine.high %v8571_v1, %v8575_v48  ;;  %v8615_v12 = vld [vmem:[#allocation10 + $0x4b8] sm:$0xff] }
 0x6d5   :  { %11911 = vmatpush1.bf16.msra.mxu0 %v17910_v8  ;;  %v17958_v8 = vcombine.low %v8570_v20, %v8574_v45  ;;  %v8618_v20 = vld [vmem:[#allocation10 + $0x4d0] sm:$0xff] }
 0x6d6   :  { %12075 = vmatpush1.bf16.msra.mxu1 %v17912_v62  ;;  %11912 = vmatprep.subr.bf16.mxu0 %v17919_v30  ;;  %v17960_v62 = vcombine.low %v8571_v1, %v8575_v48  ;;  %v17967_v30 = vcombine.high %v8578_v4, %v8582_v59  ;;  %v8622_v45 = vld [vmem:[#allocation10 + $0x4f0] sm:$0xff]  ;;  %v8619_v1 = vld [vmem:[#allocation10 + $0x4d8] sm:$0xff] }
 0x6d7   :  { %12076 = vmatprep.subr.bf16.mxu1 %v17921_v47  ;;  %v17969_v47 = vcombine.high %v8579_v26, %v8583_v38  ;;  %v8623_v48 = vld [vmem:[#allocation10 + $0x4f8] sm:$0xff] }
 0x6d9   :  { %11913 = vmatpush1.bf16.msra.mxu0 %v17918_v11  ;;  %v17966_v11 = vcombine.low %v8578_v4, %v8582_v59  ;;  %v8630_v4 = vld [vmem:[#allocation10 + $0x530] sm:$0xff]  ;;  %v8627_v59 = vld [vmem:[#allocation10 + $0x518] sm:$0xff] }
 0x6da   :  { %12077 = vmatpush1.bf16.msra.mxu1 %v17920_v7  ;;  %11914 = vmatprep.subr.bf16.mxu0 %v17927_v3  ;;  %v17968_v7 = vcombine.low %v8579_v26, %v8583_v38  ;;  %v17975_v3 = vcombine.high %v8586_v6, %v8590_v24  ;;  %v8631_v26 = vld [vmem:[#allocation10 + $0x538] sm:$0xff]  ;;  %v18008_v38 = vcombine.low %v8619_v1, %v8623_v48 }
 0x6db   :  { %12078 = vmatprep.subr.bf16.mxu1 %v17929_v14  ;;  %v17977_v14 = vcombine.high %v8587_v17, %v8591_v43 }
 0x6dd   :  { %11915 = vmatpush1.bf16.msra.mxu0 %v17926_v41  ;;  %v17974_v41 = vcombine.low %v8586_v6, %v8590_v24  ;;  %v8635_v6 = vld [vmem:[#allocation10 + $0x558] sm:$0xff] }
 0x6de   :  { %12079 = vmatpush1.bf16.msra.mxu1 %v17928_v31  ;;  %11916 = vmatprep.subr.bf16.mxu0 %v17935_v16  ;;  %v17976_v31 = vcombine.low %v8587_v17, %v8591_v43  ;;  %v17983_v16 = vcombine.high %v8594_v15, %v8598_v9  ;;  %v8639_v24 = vld [vmem:[#allocation10 + $0x578] sm:$0xff]  ;;  %v18016_v43 = vcombine.low %v8627_v59, %v8631_v26 }
 0x6df   :  { %12080 = vmatprep.subr.bf16.mxu1 %v17937_v35  ;;  %v17985_v35 = vcombine.high %v8595_v27, %v8599_v51  ;;  %v8643_v15 = vld [vmem:[#allocation10 + $0x598] sm:$0xff] }
 0x6e0   :  { %v8647_v9 = vld [vmem:[#allocation10 + $0x5b8] sm:$0xff] }
 0x6e1   :  { %11917 = vmatpush1.bf16.msra.mxu0 %v17934_v60  ;;  %v8607_v60 = vld [vmem:[#allocation10 + $0x478] sm:$0xff] }
 0x6e2   :  { %12081 = vmatpush1.bf16.msra.mxu1 %v17936_v19  ;;  %11918 = vmatprep.subr.bf16.mxu0 %v17943_v44  ;;  %v17984_v19 = vcombine.low %v8595_v27, %v8599_v51  ;;  %v17991_v44 = vcombine.high %v8602_v46, %v8606_v18  ;;  %v17993_v36 = vcombine.high %v8603_v22, %v8607_v60 }
 0x6e3   :  { %12082 = vmatprep.subr.bf16.mxu1 %v17945_v40  ;;  %v8610_v40 = vld [vmem:[#allocation10 + $0x490] sm:$0xff]  ;;  %v18024_v51 = vcombine.low %v8635_v6, %v8639_v24 }
 0x6e5   :  { %11919 = vmatpush1.bf16.msra.mxu0 %v17942_v54  ;;  %v17990_v54 = vcombine.low %v8602_v46, %v8606_v18  ;;  %v8651_v46 = vld [vmem:[#allocation10 + $0x5d8] sm:$0xff] }
 0x6e6   :  { %12083 = vmatpush1.bf16.msra.mxu1 %v17944_v53  ;;  %11920 = vmatprep.subr.bf16.mxu0 %v17951_v34  ;;  %v17992_v53 = vcombine.low %v8603_v22, %v8607_v60  ;;  %v17999_v34 = vcombine.high %v8610_v40, %v8614_v29  ;;  %v8655_v18 = vld [vmem:[#allocation10 + $0x5f8] sm:$0xff]  ;;  %v18032_v22 = vcombine.low %v8643_v15, %v8647_v9 }
 0x6e7   :  { %12084 = vmatprep.subr.bf16.mxu1 %v17953_v5  ;;  %v18001_v5 = vcombine.high %v8611_v28, %v8615_v12 }
 0x6e9   :  { %11921 = vmatpush1.bf16.msra.mxu0 %v17950_v49  ;;  %v17998_v49 = vcombine.low %v8610_v40, %v8614_v29  ;;  %v8662_v40 = vld [vmem:[#allocation10 + $0x630] sm:$0xff]  ;;  %v8659_v29 = vld [vmem:[#allocation10 + $0x618] sm:$0xff] }
 0x6ea   :  { %12085 = vmatpush1.bf16.msra.mxu1 %v17952_v25  ;;  %11922 = vmatprep.subr.bf16.mxu0 %v17959_v57  ;;  %v18007_v25 = vcombine.high %v8618_v20, %v8622_v45  ;;  %v18009_v57 = vcombine.high %v8619_v1, %v8623_v48 }
 0x6eb   :  { %12086 = vmatprep.subr.bf16.mxu1 %v17961_v42  ;;  %v8626_v42 = vld [vmem:[#allocation10 + $0x510] sm:$0xff] }
 0x6ec   :  { %v18014_v17 = vcombine.low %v8626_v42, %v8630_v4 }
 0x6ed   :  { %11923 = vmatpush1.bf16.msra.mxu0 %v17958_v8  ;;  %v18015_v8 = vcombine.high %v8626_v42, %v8630_v4  ;;  %v8675_v42 = vld [vmem:[#allocation10 + $0x698] sm:$0xff] }
 0x6ee   :  { %12087 = vmatpush1.bf16.msra.mxu1 %v17960_v62  ;;  %11924 = vmatprep.subr.bf16.mxu0 %v17967_v30  ;;  %v18017_v62 = vcombine.high %v8627_v59, %v8631_v26  ;;  %v8634_v30 = vld [vmem:[#allocation10 + $0x550] sm:$0xff]  ;;  %v8679_v4 = vld [vmem:[#allocation10 + $0x6b8] sm:$0xff] }
 0x6ef   :  { %12088 = vmatprep.subr.bf16.mxu1 %v17969_v47  ;;  %v8638_v47 = vld [vmem:[#allocation10 + $0x570] sm:$0xff] }
 0x6f0   :  { %v18022_v27 = vcombine.low %v8634_v30, %v8638_v47 }
 0x6f1   :  { %11925 = vmatpush1.bf16.msra.mxu0 %v17966_v11  ;;  %v18023_v11 = vcombine.high %v8634_v30, %v8638_v47  ;;  %v8683_v30 = vld [vmem:[#allocation10 + $0x6d8] sm:$0xff] }
 0x6f2   :  { %12089 = vmatpush1.bf16.msra.mxu1 %v17968_v7  ;;  %11926 = vmatprep.subr.bf16.mxu0 %v17975_v3  ;;  %v18025_v7 = vcombine.high %v8635_v6, %v8639_v24  ;;  %v8642_v3 = vld [vmem:[#allocation10 + $0x590] sm:$0xff]  ;;  %v8687_v47 = vld [vmem:[#allocation10 + $0x6f8] sm:$0xff]  ;;  %v18064_v24 = vcombine.low %v8675_v42, %v8679_v4 }
 0x6f3   :  { %12090 = vmatprep.subr.bf16.mxu1 %v17977_v14  ;;  %v8646_v14 = vld [vmem:[#allocation10 + $0x5b0] sm:$0xff] }
 0x6f5   :  { %11927 = vmatpush1.bf16.msra.mxu0 %v17974_v41  ;;  %v18031_v41 = vcombine.high %v8642_v3, %v8646_v14 }
 0x6f6   :  { %12091 = vmatpush1.bf16.msra.mxu1 %v17976_v31  ;;  %11937 = vmatprep.subr.bf16.mxu0 %v17983_v16  ;;  %v18033_v31 = vcombine.high %v8643_v15, %v8647_v9  ;;  %v8650_v16 = vld [vmem:[#allocation10 + $0x5d0] sm:$0xff]  ;;  %v18072_v9 = vcombine.low %v8683_v30, %v8687_v47 }
 0x6f7   :  { %12101 = vmatprep.subr.bf16.mxu1 %v17985_v35  ;;  %v8654_v35 = vld [vmem:[#allocation10 + $0x5f0] sm:$0xff] }
 0x6f8   :  { %11929 = vmatmul.mubr.bf16.vlgmr.msra.gmra.mrb[52].mxu0 %v19948_v32  ;;  %v18039_v60 = vcombine.high %v8650_v16, %v8654_v35 }
 0x6f9   :  { %12093 = vmatmul.mubr.bf16.vlgmr.msra.gmra.mrb[52].mxu1 %v19948_v32  ;;  %11938 = vmatpush1.bf16.msra.mxu0 %v17982_v0  ;;  %v18000_v32 = vcombine.low %v8611_v28, %v8615_v12  ;;  %v18030_v0 = vcombine.low %v8642_v3, %v8646_v14  ;;  %v18038_v28 = vcombine.low %v8650_v16, %v8654_v35  ;;  %v8691_v3 = vld [vmem:[#allocation10 + $0x718] sm:$0xff] }
 0x6fa   :  { %11969 = vmatprep.mubr.bf16.mxu0 %v19952_v39  ;;  %12102 = vmatpush1.bf16.msra.mxu1 %v17984_v19  ;;  %v18041_v19 = vcombine.high %v8651_v46, %v8655_v18  ;;  %v18040_v12 = vcombine.low %v8651_v46, %v8655_v18  ;;  %v8695_v14 = vld [vmem:[#allocation10 + $0x738] sm:$0xff] }
 0x6fb   :  { %12133 = vmatprep.mubr.bf16.mxu1 %v19952_v39  ;;  %11939 = vmatprep.subr.bf16.mxu0 %v17991_v44  ;;  %v18006_v39 = vcombine.low %v8618_v20, %v8622_v45  ;;  %v8658_v44 = vld [vmem:[#allocation10 + $0x610] sm:$0xff]  ;;  %v8667_v20 = vld [vmem:[#allocation10 + $0x658] sm:$0xff]  ;;  %v18080_v18 = vcombine.low %v8691_v3, %v8695_v14 }
 0x6fc   :  { %12103 = vmatprep.subr.bf16.mxu1 %v17993_v36  ;;  %v8663_v36 = vld [vmem:[#allocation10 + $0x638] sm:$0xff]  ;;  %v18046_v1 = vcombine.low %v8658_v44, %v8662_v40 }
 0x6fd   :  { %11940 = vmatpush1.bf16.msra.mxu0 %v17990_v54  ;;  %v18047_v54 = vcombine.high %v8658_v44, %v8662_v40  ;;  %v8671_v45 = vld [vmem:[#allocation10 + $0x678] sm:$0xff]  ;;  %v18048_v48 = vcombine.low %v8659_v29, %v8663_v36 }
 0x6fe   :  { %12104 = vmatpush1.bf16.msra.mxu1 %v17992_v53  ;;  %11941 = vmatprep.subr.bf16.mxu0 %v17999_v34  ;;  %v18049_v53 = vcombine.high %v8659_v29, %v8663_v36  ;;  %v8666_v34 = vld [vmem:[#allocation10 + $0x650] sm:$0xff]  ;;  %v18056_v26 = vcombine.low %v8667_v20, %v8671_v45  ;;  %v8699_v16 = vld [vmem:[#allocation10 + $0x758] sm:$0xff] }
 0x6ff   :  { %12105 = vmatprep.subr.bf16.mxu1 %v18001_v5  ;;  %v8670_v5 = vld [vmem:[#allocation10 + $0x670] sm:$0xff]  ;;  %v8703_v35 = vld [vmem:[#allocation10 + $0x778] sm:$0xff] }
 0x700   :  { %v18054_v59 = vcombine.low %v8666_v34, %v8670_v5  ;;  %v8707_v44 = vld [vmem:[#allocation10 + $0x798] sm:$0xff]  ;;  %v18088_v36 = vcombine.low %v8699_v16, %v8703_v35 }
 0x701   :  { %11942 = vmatpush1.bf16.msra.mxu0 %v17998_v49  ;;  %v18055_v49 = vcombine.high %v8666_v34, %v8670_v5  ;;  %v8711_v40 = vld [vmem:[#allocation10 + $0x7b8] sm:$0xff] }
 0x702   :  { %12106 = vmatpush1.bf16.msra.mxu1 %v18000_v32  ;;  %11943 = vmatprep.subr.bf16.mxu0 %v18007_v25  ;;  %v18057_v32 = vcombine.high %v8667_v20, %v8671_v45  ;;  %v8674_v25 = vld [vmem:[#allocation10 + $0x690] sm:$0xff]  ;;  %v8715_v34 = vld [vmem:[#allocation10 + $0x7d8] sm:$0xff]  ;;  %v18096_v45 = vcombine.low %v8707_v44, %v8711_v40 }
 0x703   :  { %12107 = vmatprep.subr.bf16.mxu1 %v18009_v57  ;;  %v8678_v57 = vld [vmem:[#allocation10 + $0x6b0] sm:$0xff]  ;;  %v8719_v5 = vld [vmem:[#allocation10 + $0x7f8] sm:$0xff] }
 0x704   :  { %v18062_v6 = vcombine.low %v8674_v25, %v8678_v57 }
 0x705   :  { %11944 = vmatpush1.bf16.msra.mxu0 %v18006_v39  ;;  %v18063_v39 = vcombine.high %v8674_v25, %v8678_v57  ;;  %v8723_v25 = vld [vmem:[#allocation10 + $0x818] sm:$0xff] }
 0x706   :  { %12108 = vmatpush1.bf16.msra.mxu1 %v18008_v38  ;;  %11945 = vmatprep.subr.bf16.mxu0 %v18015_v8  ;;  %v18065_v38 = vcombine.high %v8675_v42, %v8679_v4  ;;  %v8682_v8 = vld [vmem:[#allocation10 + $0x6d0] sm:$0xff]  ;;  %v8727_v57 = vld [vmem:[#allocation10 + $0x838] sm:$0xff]  ;;  %v18104_v4 = vcombine.low %v8715_v34, %v8719_v5 }
 0x707   :  { %12109 = vmatprep.subr.bf16.mxu1 %v18017_v62  ;;  %v8686_v62 = vld [vmem:[#allocation10 + $0x6f0] sm:$0xff] }
 0x708   :  { %v18070_v15 = vcombine.low %v8682_v8, %v8686_v62 }
 0x709   :  { %11946 = vmatpush1.bf16.msra.mxu0 %v18014_v17  ;;  %v18071_v17 = vcombine.high %v8682_v8, %v8686_v62  ;;  %v8731_v62 = vld [vmem:[#allocation10 + $0x858] sm:$0xff] }
 0x70a   :  { %12110 = vmatpush1.bf16.msra.mxu1 %v18016_v43  ;;  %11947 = vmatprep.subr.bf16.mxu0 %v18023_v11  ;;  %v18073_v43 = vcombine.high %v8683_v30, %v8687_v47  ;;  %v8690_v11 = vld [vmem:[#allocation10 + $0x710] sm:$0xff]  ;;  %v8735_v30 = vld [vmem:[#allocation10 + $0x878] sm:$0xff]  ;;  %v18112_v47 = vcombine.low %v8723_v25, %v8727_v57 }
 0x70b   :  { %12111 = vmatprep.subr.bf16.mxu1 %v18025_v7  ;;  %v8694_v7 = vld [vmem:[#allocation10 + $0x730] sm:$0xff] }
 0x70c   :  { %v18078_v46 = vcombine.low %v8690_v11, %v8694_v7 }
 0x70d   :  { %11948 = vmatpush1.bf16.msra.mxu0 %v18022_v27  ;;  %v18079_v27 = vcombine.high %v8690_v11, %v8694_v7  ;;  %v8739_v11 = vld [vmem:[#allocation10 + $0x898] sm:$0xff] }
 0x70e   :  { %12112 = vmatpush1.bf16.msra.mxu1 %v18024_v51  ;;  %11949 = vmatprep.subr.bf16.mxu0 %v18031_v41  ;;  %v18081_v51 = vcombine.high %v8691_v3, %v8695_v14  ;;  %v8698_v41 = vld [vmem:[#allocation10 + $0x750] sm:$0xff]  ;;  %v8743_v7 = vld [vmem:[#allocation10 + $0x8b8] sm:$0xff]  ;;  %v18120_v14 = vcombine.low %v8731_v62, %v8735_v30 }
 0x70f   :  { %12113 = vmatprep.subr.bf16.mxu1 %v18033_v31  ;;  %v8702_v31 = vld [vmem:[#allocation10 + $0x770] sm:$0xff] }
 0x710   :  { %v18086_v29 = vcombine.low %v8698_v41, %v8702_v31 }
 0x711   :  { %11950 = vmatpush1.bf16.msra.mxu0 %v18030_v0  ;;  %v18087_v0 = vcombine.high %v8698_v41, %v8702_v31  ;;  %v8747_v41 = vld [vmem:[#allocation10 + $0x8d8] sm:$0xff] }
 0x712   :  { %12114 = vmatpush1.bf16.msra.mxu1 %v18032_v22  ;;  %11951 = vmatprep.subr.bf16.mxu0 %v18039_v60  ;;  %v18089_v22 = vcombine.high %v8699_v16, %v8703_v35  ;;  %v8706_v60 = vld [vmem:[#allocation10 + $0x790] sm:$0xff]  ;;  %v8751_v31 = vld [vmem:[#allocation10 + $0x8f8] sm:$0xff] }
 0x713   :  { %12115 = vmatprep.subr.bf16.mxu1 %v18041_v19  ;;  %v8710_v19 = vld [vmem:[#allocation10 + $0x7b0] sm:$0xff] }
 0x714   :  { %v18094_v20 = vcombine.low %v8706_v60, %v8710_v19 }
 0x715   :  { %11952 = vmatpush1.bf16.msra.mxu0 %v18038_v28  ;;  %v18095_v28 = vcombine.high %v8706_v60, %v8710_v19  ;;  %v8759_v60 = vld [vmem:[#allocation10 + $0x938] sm:$0xff]  ;;  %v18136_v19 = vcombine.low %v8747_v41, %v8751_v31 }
 0x716   :  { %12116 = vmatpush1.bf16.msra.mxu1 %v18040_v12  ;;  %11953 = vmatprep.subr.bf16.mxu0 %v18047_v54  ;;  %v18097_v12 = vcombine.high %v8707_v44, %v8711_v40  ;;  %v8714_v54 = vld [vmem:[#allocation10 + $0x7d0] sm:$0xff] }
 0x717   :  { %12117 = vmatprep.subr.bf16.mxu1 %v18049_v53  ;;  %v8718_v53 = vld [vmem:[#allocation10 + $0x7f0] sm:$0xff] }
 0x718   :  { %v18102_v42 = vcombine.low %v8714_v54, %v8718_v53 }
 0x719   :  { %11954 = vmatpush1.bf16.msra.mxu0 %v18046_v1  ;;  %v18103_v1 = vcombine.high %v8714_v54, %v8718_v53 }
 0x71a   :  { %12118 = vmatpush1.bf16.msra.mxu1 %v18048_v48  ;;  %11955 = vmatprep.subr.bf16.mxu0 %v18055_v49  ;;  %v18105_v48 = vcombine.high %v8715_v34, %v8719_v5  ;;  %v8722_v49 = vld [vmem:[#allocation10 + $0x810] sm:$0xff] }
 0x71b   :  { %12119 = vmatprep.subr.bf16.mxu1 %v18057_v32  ;;  %v8726_v32 = vld [vmem:[#allocation10 + $0x830] sm:$0xff] }
 0x71c   :  { %v18110_v8 = vcombine.low %v8722_v49, %v8726_v32 }
 0x71d   :  { %11956 = vmatpush1.bf16.msra.mxu0 %v18054_v59  ;;  %v18111_v59 = vcombine.high %v8722_v49, %v8726_v32 }
 0x71e   :  { %12120 = vmatpush1.bf16.msra.mxu1 %v18056_v26  ;;  %11957 = vmatprep.subr.bf16.mxu0 %v18063_v39  ;;  %v18113_v26 = vcombine.high %v8723_v25, %v8727_v57  ;;  %v8730_v39 = vld [vmem:[#allocation10 + $0x850] sm:$0xff] }
 0x71f   :  { %12121 = vmatprep.subr.bf16.mxu1 %v18065_v38  ;;  %v8734_v38 = vld [vmem:[#allocation10 + $0x870] sm:$0xff] }
 0x720   :  { %v18118_v3 = vcombine.low %v8730_v39, %v8734_v38 }
 0x721   :  { %11958 = vmatpush1.bf16.msra.mxu0 %v18062_v6  ;;  %v18119_v6 = vcombine.high %v8730_v39, %v8734_v38 }
 0x722   :  { %12122 = vmatpush1.bf16.msra.mxu1 %v18064_v24  ;;  %11959 = vmatprep.subr.bf16.mxu0 %v18071_v17  ;;  %v8738_v24 = vld [vmem:[#allocation10 + $0x890] sm:$0xff] }
 0x723   :  { %12123 = vmatprep.subr.bf16.mxu1 %v18073_v43  ;;  %v8742_v17 = vld [vmem:[#allocation10 + $0x8b0] sm:$0xff]  ;;  %v18121_v43 = vcombine.high %v8731_v62, %v8735_v30 }
 0x724   :  { %v18126_v16 = vcombine.low %v8738_v24, %v8742_v17  ;;  %v8786_v30 = vld [vmem:[#allocation10 + $0xa10] sm:$0xff] }
 0x725   :  { %11960 = vmatpush1.bf16.msra.mxu0 %v18070_v15  ;;  %v18127_v15 = vcombine.high %v8738_v24, %v8742_v17  ;;  %v8791_v24 = vld [vmem:[#allocation10 + $0xa38] sm:$0xff] }
 0x726   :  { %12124 = vmatpush1.bf16.msra.mxu1 %v18072_v9  ;;  %11961 = vmatprep.subr.bf16.mxu0 %v18079_v27  ;;  %v18129_v9 = vcombine.high %v8739_v11, %v8743_v7  ;;  %v8746_v27 = vld [vmem:[#allocation10 + $0x8d0] sm:$0xff] }
 0x727   :  { %12125 = vmatprep.subr.bf16.mxu1 %v18081_v51  ;;  %v8750_v51 = vld [vmem:[#allocation10 + $0x8f0] sm:$0xff] }
 0x728   :  { %v18135_v35 = vcombine.high %v8746_v27, %v8750_v51 }
 0x729   :  { %11962 = vmatpush1.bf16.msra.mxu0 %v18078_v46  ;;  %v18137_v46 = vcombine.high %v8747_v41, %v8751_v31 }
 0x72a   :  { %12126 = vmatpush1.bf16.msra.mxu1 %v18080_v18  ;;  %11963 = vmatprep.subr.bf16.mxu0 %v18087_v0  ;;  %v8754_v18 = vld [vmem:[#allocation10 + $0x910] sm:$0xff] }
 0x72b   :  { %12127 = vmatprep.subr.bf16.mxu1 %v18089_v22  ;;  %v8758_v0 = vld [vmem:[#allocation10 + $0x930] sm:$0xff]  ;;  %v8755_v22 = vld [vmem:[#allocation10 + $0x918] sm:$0xff] }
 0x72c   :  { %v18143_v44 = vcombine.high %v8754_v18, %v8758_v0  ;;  %v18145_v40 = vcombine.high %v8755_v22, %v8759_v60  ;;  %v18142_v54 = vcombine.low %v8754_v18, %v8758_v0  ;;  %v18144_v53 = vcombine.low %v8755_v22, %v8759_v60 }
 0x72d   :  { %11964 = vmatpush1.bf16.msra.mxu0 %v18086_v29  ;;  %v8762_v29 = vld [vmem:[#allocation10 + $0x950] sm:$0xff] }
 0x72e   :  { %12128 = vmatpush1.bf16.msra.mxu1 %v18088_v36  ;;  %11965 = vmatprep.subr.bf16.mxu0 %v18095_v28  ;;  %v8766_v36 = vld [vmem:[#allocation10 + $0x970] sm:$0xff]  ;;  %v8763_v28 = vld [vmem:[#allocation10 + $0x958] sm:$0xff] }
 0x72f   :  { %12129 = vmatprep.subr.bf16.mxu1 %v18097_v12  ;;  %v8767_v12 = vld [vmem:[#allocation10 + $0x978] sm:$0xff]  ;;  %v18151_v34 = vcombine.high %v8762_v29, %v8766_v36  ;;  %v18150_v49 = vcombine.low %v8762_v29, %v8766_v36 }
 0x730   :  { %v18153_v5 = vcombine.high %v8763_v28, %v8767_v12  ;;  %v18152_v32 = vcombine.low %v8763_v28, %v8767_v12 }
 0x731   :  { %11966 = vmatpush1.bf16.msra.mxu0 %v18094_v20  ;;  %v8770_v20 = vld [vmem:[#allocation10 + $0x990] sm:$0xff] }
 0x732   :  { %12130 = vmatpush1.bf16.msra.mxu1 %v18096_v45  ;;  %11967 = vmatprep.subr.bf16.mxu0 %v18103_v1  ;;  %v8774_v45 = vld [vmem:[#allocation10 + $0x9b0] sm:$0xff]  ;;  %v8771_v1 = vld [vmem:[#allocation10 + $0x998] sm:$0xff] }
 0x733   :  { %12131 = vmatprep.subr.bf16.mxu1 %v18105_v48  ;;  %v8775_v48 = vld [vmem:[#allocation10 + $0x9b8] sm:$0xff]  ;;  %v18159_v25 = vcombine.high %v8770_v20, %v8774_v45  ;;  %v18158_v39 = vcombine.low %v8770_v20, %v8774_v45 }
 0x734   :  { %v18161_v57 = vcombine.high %v8771_v1, %v8775_v48  ;;  %v18160_v38 = vcombine.low %v8771_v1, %v8775_v48 }
 0x735   :  { %11968 = vmatpush1.bf16.msra.mxu0 %v18102_v42  ;;  %v8778_v42 = vld [vmem:[#allocation10 + $0x9d0] sm:$0xff] }
 0x736   :  { %12132 = vmatpush1.bf16.msra.mxu1 %v18104_v4  ;;  %11978 = vmatprep.subr.bf16.mxu0 %v18111_v59  ;;  %v8782_v4 = vld [vmem:[#allocation10 + $0x9f0] sm:$0xff]  ;;  %v8779_v59 = vld [vmem:[#allocation10 + $0x9d8] sm:$0xff] }
 0x737   :  { %12142 = vmatprep.subr.bf16.mxu1 %v18113_v26  ;;  %v8783_v26 = vld [vmem:[#allocation10 + $0x9f8] sm:$0xff]  ;;  %v18166_v17 = vcombine.low %v8778_v42, %v8782_v4 }
 0x738   :  { %11970 = vmatmul.mubr.bf16.vlgmr.msra.gmra.mrb[52].mxu0 %v19976_v33  ;;  %v18169_v62 = vcombine.high %v8779_v59, %v8783_v26 }
 0x739   :  { %12134 = vmatmul.mubr.bf16.vlgmr.msra.gmra.mrb[52].mxu1 %v19976_v33  ;;  %11979 = vmatpush1.bf16.msra.mxu0 %v18110_v8  ;;  %v18128_v33 = vcombine.low %v8739_v11, %v8743_v7  ;;  %v18167_v8 = vcombine.high %v8778_v42, %v8782_v4 }
 0x73a   :  { %12010 = vmatprep.mubr.bf16.mxu0 %v19980_v52  ;;  %12143 = vmatpush1.bf16.msra.mxu1 %v18112_v47  ;;  %v8790_v47 = vld [vmem:[#allocation10 + $0xa30] sm:$0xff] }
 0x73b   :  { %12174 = vmatprep.mubr.bf16.mxu1 %v19980_v52  ;;  %11980 = vmatprep.subr.bf16.mxu0 %v18119_v6  ;;  %v18134_v52 = vcombine.low %v8746_v27, %v8750_v51  ;;  %v8787_v6 = vld [vmem:[#allocation10 + $0xa18] sm:$0xff]  ;;  %v18175_v11 = vcombine.high %v8786_v30, %v8790_v47  ;;  %v18174_v27 = vcombine.low %v8786_v30, %v8790_v47 }
 0x73c   :  { %12144 = vmatprep.subr.bf16.mxu1 %v18121_v43  ;;  %v18168_v43 = vcombine.low %v8779_v59, %v8783_v26  ;;  %v18177_v7 = vcombine.high %v8787_v6, %v8791_v24  ;;  %v18176_v51 = vcombine.low %v8787_v6, %v8791_v24 }
 0x73d   :  { %11981 = vmatpush1.bf16.msra.mxu0 %v18118_v3  ;;  %v8794_v3 = vld [vmem:[#allocation10 + $0xa50] sm:$0xff] }
 0x73e   :  { %12145 = vmatpush1.bf16.msra.mxu1 %v18120_v14  ;;  %11982 = vmatprep.subr.bf16.mxu0 %v18127_v15  ;;  %v8798_v14 = vld [vmem:[#allocation10 + $0xa70] sm:$0xff]  ;;  %v8795_v15 = vld [vmem:[#allocation10 + $0xa58] sm:$0xff] }
 0x73f   :  { %12146 = vmatprep.subr.bf16.mxu1 %v18129_v9  ;;  %v8799_v9 = vld [vmem:[#allocation10 + $0xa78] sm:$0xff]  ;;  %v18183_v41 = vcombine.high %v8794_v3, %v8798_v14  ;;  %v18182_v18 = vcombine.low %v8794_v3, %v8798_v14 }
 0x740   :  { %v18185_v31 = vcombine.high %v8795_v15, %v8799_v9  ;;  %v18184_v0 = vcombine.low %v8795_v15, %v8799_v9 }
 0x741   :  { %11983 = vmatpush1.bf16.msra.mxu0 %v18126_v16  ;;  %v8802_v16 = vld [vmem:[#allocation10 + $0xa90] sm:$0xff] }
 0x742   :  { %12147 = vmatpush1.bf16.msra.mxu1 %v18128_v33  ;;  %11984 = vmatprep.subr.bf16.mxu0 %v18135_v35  ;;  %v8806_v33 = vld [vmem:[#allocation10 + $0xab0] sm:$0xff]  ;;  %v8803_v35 = vld [vmem:[#allocation10 + $0xa98] sm:$0xff] }
 0x743   :  { %12148 = vmatprep.subr.bf16.mxu1 %v18137_v46  ;;  %v8807_v46 = vld [vmem:[#allocation10 + $0xab8] sm:$0xff]  ;;  %v18191_v22 = vcombine.high %v8802_v16, %v8806_v33  ;;  %v18190_v29 = vcombine.low %v8802_v16, %v8806_v33 }
 0x744   :  { %v18193_v60 = vcombine.high %v8803_v35, %v8807_v46  ;;  %v18192_v36 = vcombine.low %v8803_v35, %v8807_v46 }
 0x745   :  { %11985 = vmatpush1.bf16.msra.mxu0 %v18134_v52  ;;  %v8810_v52 = vld [vmem:[#allocation10 + $0xad0] sm:$0xff] }
 0x746   :  { %12149 = vmatpush1.bf16.msra.mxu1 %v18136_v19  ;;  %11986 = vmatprep.subr.bf16.mxu0 %v18143_v44  ;;  %v8814_v19 = vld [vmem:[#allocation10 + $0xaf0] sm:$0xff]  ;;  %v8811_v44 = vld [vmem:[#allocation10 + $0xad8] sm:$0xff] }
 0x747   :  { %12150 = vmatprep.subr.bf16.mxu1 %v18145_v40  ;;  %v8815_v40 = vld [vmem:[#allocation10 + $0xaf8] sm:$0xff]  ;;  %v18199_v28 = vcombine.high %v8810_v52, %v8814_v19  ;;  %v18198_v20 = vcombine.low %v8810_v52, %v8814_v19 }
 0x748   :  { %v18201_v12 = vcombine.high %v8811_v44, %v8815_v40  ;;  %v18200_v45 = vcombine.low %v8811_v44, %v8815_v40  ;;  %v8863_v52 = vld [vmem:[#allocation10 + $0xc78] sm:$0xff]  ;;  %v8866_v40 = vld [vmem:[#allocation10 + $0xc90] sm:$0xff] }
 0x749   :  { %11987 = vmatpush1.bf16.msra.mxu0 %v18142_v54  ;;  %v8818_v54 = vld [vmem:[#allocation10 + $0xb10] sm:$0xff] }
 0x74a   :  { %12151 = vmatpush1.bf16.msra.mxu1 %v18144_v53  ;;  %11988 = vmatprep.subr.bf16.mxu0 %v18151_v34  ;;  %v8822_v53 = vld [vmem:[#allocation10 + $0xb30] sm:$0xff]  ;;  %v8819_v34 = vld [vmem:[#allocation10 + $0xb18] sm:$0xff] }
 0x74b   :  { %12152 = vmatprep.subr.bf16.mxu1 %v18153_v5  ;;  %v8823_v5 = vld [vmem:[#allocation10 + $0xb38] sm:$0xff]  ;;  %v18207_v1 = vcombine.high %v8818_v54, %v8822_v53  ;;  %v18206_v42 = vcombine.low %v8818_v54, %v8822_v53 }
 0x74c   :  { %v18209_v48 = vcombine.high %v8819_v34, %v8823_v5  ;;  %v18208_v4 = vcombine.low %v8819_v34, %v8823_v5 }
 0x74d   :  { %11989 = vmatpush1.bf16.msra.mxu0 %v18150_v49  ;;  %v8826_v49 = vld [vmem:[#allocation10 + $0xb50] sm:$0xff] }
 0x74e   :  { %12153 = vmatpush1.bf16.msra.mxu1 %v18152_v32  ;;  %11990 = vmatprep.subr.bf16.mxu0 %v18159_v25  ;;  %v8830_v32 = vld [vmem:[#allocation10 + $0xb70] sm:$0xff]  ;;  %v8827_v25 = vld [vmem:[#allocation10 + $0xb58] sm:$0xff] }
 0x74f   :  { %12154 = vmatprep.subr.bf16.mxu1 %v18161_v57  ;;  %v8831_v57 = vld [vmem:[#allocation10 + $0xb78] sm:$0xff]  ;;  %v18215_v59 = vcombine.high %v8826_v49, %v8830_v32  ;;  %v18214_v30 = vcombine.low %v8826_v49, %v8830_v32 }
 0x750   :  { %v18217_v26 = vcombine.high %v8827_v25, %v8831_v57  ;;  %v18216_v47 = vcombine.low %v8827_v25, %v8831_v57  ;;  %v8882_v57 = vld [vmem:[#allocation10 + $0xd10] sm:$0xff] }
 0x751   :  { %11991 = vmatpush1.bf16.msra.mxu0 %v18158_v39  ;;  %v8834_v39 = vld [vmem:[#allocation10 + $0xb90] sm:$0xff] }
 0x752   :  { %12155 = vmatpush1.bf16.msra.mxu1 %v18160_v38  ;;  %11992 = vmatprep.subr.bf16.mxu0 %v18167_v8  ;;  %v8838_v38 = vld [vmem:[#allocation10 + $0xbb0] sm:$0xff]  ;;  %v8835_v8 = vld [vmem:[#allocation10 + $0xb98] sm:$0xff] }
 0x753   :  { %12156 = vmatprep.subr.bf16.mxu1 %v18169_v62  ;;  %v8839_v62 = vld [vmem:[#allocation10 + $0xbb8] sm:$0xff]  ;;  %v18223_v6 = vcombine.high %v8834_v39, %v8838_v38  ;;  %v18222_v3 = vcombine.low %v8834_v39, %v8838_v38 }
 0x754   :  { %v18225_v24 = vcombine.high %v8835_v8, %v8839_v62  ;;  %v18224_v14 = vcombine.low %v8835_v8, %v8839_v62  ;;  %v8890_v8 = vld [vmem:[#allocation10 + $0xd50] sm:$0xff] }
 0x755   :  { %11993 = vmatpush1.bf16.msra.mxu0 %v18166_v17  ;;  %v8842_v17 = vld [vmem:[#allocation10 + $0xbd0] sm:$0xff] }
 0x756   :  { %12157 = vmatpush1.bf16.msra.mxu1 %v18168_v43  ;;  %11994 = vmatprep.subr.bf16.mxu0 %v18175_v11  ;;  %v8846_v43 = vld [vmem:[#allocation10 + $0xbf0] sm:$0xff]  ;;  %v8843_v11 = vld [vmem:[#allocation10 + $0xbd8] sm:$0xff] }
 0x757   :  { %12158 = vmatprep.subr.bf16.mxu1 %v18177_v7  ;;  %v8847_v7 = vld [vmem:[#allocation10 + $0xbf8] sm:$0xff]  ;;  %v18231_v15 = vcombine.high %v8842_v17, %v8846_v43  ;;  %v18230_v16 = vcombine.low %v8842_v17, %v8846_v43  ;;  %v8894_v62 = vld [vmem:[#allocation10 + $0xd70] sm:$0xff] }
 0x758   :  { %v18233_v9 = vcombine.high %v8843_v11, %v8847_v7  ;;  %v18232_v33 = vcombine.low %v8843_v11, %v8847_v7  ;;  %v18279_v17 = vcombine.high %v8890_v8, %v8894_v62  ;;  %v8898_v11 = vld [vmem:[#allocation10 + $0xd90] sm:$0xff] }
 0x759   :  { %11995 = vmatpush1.bf16.msra.mxu0 %v18174_v27  ;;  %v8850_v27 = vld [vmem:[#allocation10 + $0xc10] sm:$0xff] }
 0x75a   :  { %12159 = vmatpush1.bf16.msra.mxu1 %v18176_v51  ;;  %11996 = vmatprep.subr.bf16.mxu0 %v18183_v41  ;;  %v8854_v51 = vld [vmem:[#allocation10 + $0xc30] sm:$0xff]  ;;  %v8851_v41 = vld [vmem:[#allocation10 + $0xc18] sm:$0xff] }
 0x75b   :  { %12160 = vmatprep.subr.bf16.mxu1 %v18185_v31  ;;  %v8855_v31 = vld [vmem:[#allocation10 + $0xc38] sm:$0xff]  ;;  %v18239_v35 = vcombine.high %v8850_v27, %v8854_v51  ;;  %v8902_v7 = vld [vmem:[#allocation10 + $0xdb0] sm:$0xff] }
 0x75c   :  { %v18241_v46 = vcombine.high %v8851_v41, %v8855_v31  ;;  %v18240_v19 = vcombine.low %v8851_v41, %v8855_v31  ;;  %v8906_v31 = vld [vmem:[#allocation10 + $0xdd0] sm:$0xff] }
 0x75d   :  { %11997 = vmatpush1.bf16.msra.mxu0 %v18182_v18  ;;  %v8858_v18 = vld [vmem:[#allocation10 + $0xc50] sm:$0xff] }
 0x75e   :  { %12161 = vmatpush1.bf16.msra.mxu1 %v18184_v0  ;;  %11998 = vmatprep.subr.bf16.mxu0 %v18191_v22  ;;  %v8862_v0 = vld [vmem:[#allocation10 + $0xc70] sm:$0xff]  ;;  %v18238_v22 = vcombine.low %v8850_v27, %v8854_v51  ;;  %v18287_v27 = vcombine.high %v8898_v11, %v8902_v7 }
 0x75f   :  { %12162 = vmatprep.subr.bf16.mxu1 %v18193_v60  ;;  %v8859_v60 = vld [vmem:[#allocation10 + $0xc58] sm:$0xff]  ;;  %v18247_v44 = vcombine.high %v8858_v18, %v8862_v0  ;;  %v18246_v54 = vcombine.low %v8858_v18, %v8862_v0 }
 0x760   :  { %v18248_v53 = vcombine.low %v8859_v60, %v8863_v52  ;;  %v8911_v18 = vld [vmem:[#allocation10 + $0xdf8] sm:$0xff] }
 0x761   :  { %11999 = vmatpush1.bf16.msra.mxu0 %v18190_v29  ;;  %v8870_v29 = vld [vmem:[#allocation10 + $0xcb0] sm:$0xff] }
 0x762   :  { %12163 = vmatpush1.bf16.msra.mxu1 %v18192_v36  ;;  %12000 = vmatprep.subr.bf16.mxu0 %v18199_v28  ;;  %v18249_v36 = vcombine.high %v8859_v60, %v8863_v52  ;;  %v8867_v28 = vld [vmem:[#allocation10 + $0xc98] sm:$0xff]  ;;  %v18255_v34 = vcombine.high %v8866_v40, %v8870_v29  ;;  %v18254_v49 = vcombine.low %v8866_v40, %v8870_v29 }
 0x763   :  { %12164 = vmatprep.subr.bf16.mxu1 %v18201_v12  ;;  %v8871_v12 = vld [vmem:[#allocation10 + $0xcb8] sm:$0xff]  ;;  %v18286_v60 = vcombine.low %v8898_v11, %v8902_v7 }
 0x764   :  { %v18257_v5 = vcombine.high %v8867_v28, %v8871_v12 }
 0x765   :  { %12001 = vmatpush1.bf16.msra.mxu0 %v18198_v20  ;;  %v8874_v20 = vld [vmem:[#allocation10 + $0xcd0] sm:$0xff] }
 0x766   :  { %12165 = vmatpush1.bf16.msra.mxu1 %v18200_v45  ;;  %12002 = vmatprep.subr.bf16.mxu0 %v18207_v1  ;;  %v8878_v45 = vld [vmem:[#allocation10 + $0xcf0] sm:$0xff]  ;;  %v8875_v1 = vld [vmem:[#allocation10 + $0xcd8] sm:$0xff] }
 0x767   :  { %12166 = vmatprep.subr.bf16.mxu1 %v18209_v48  ;;  %v8879_v48 = vld [vmem:[#allocation10 + $0xcf8] sm:$0xff]  ;;  %v18263_v32 = vcombine.high %v8874_v20, %v8878_v45 }
 0x768   :  { %v18265_v25 = vcombine.high %v8875_v1, %v8879_v48 }
 0x769   :  { %12003 = vmatpush1.bf16.msra.mxu0 %v18206_v42  ;;  %v8886_v42 = vld [vmem:[#allocation10 + $0xd30] sm:$0xff] }
 0x76a   :  { %12167 = vmatpush1.bf16.msra.mxu1 %v18208_v4  ;;  %12004 = vmatprep.subr.bf16.mxu0 %v18215_v59  ;;  %v8883_v4 = vld [vmem:[#allocation10 + $0xd18] sm:$0xff]  ;;  %v18271_v39 = vcombine.high %v8882_v57, %v8886_v42 }
 0x76b   :  { %12168 = vmatprep.subr.bf16.mxu1 %v18217_v26  ;;  %v8887_v59 = vld [vmem:[#allocation10 + $0xd38] sm:$0xff]  ;;  %v18264_v26 = vcombine.low %v8875_v1, %v8879_v48  ;;  %v8922_v1 = vld [vmem:[#allocation10 + $0xe50] sm:$0xff] }
 0x76c   :  { %v18273_v38 = vcombine.high %v8883_v4, %v8887_v59  ;;  %v8926_v48 = vld [vmem:[#allocation10 + $0xe70] sm:$0xff] }
 0x76d   :  { %12005 = vmatpush1.bf16.msra.mxu0 %v18214_v30  ;;  %v8891_v30 = vld [vmem:[#allocation10 + $0xd58] sm:$0xff] }
 0x76e   :  { %12169 = vmatpush1.bf16.msra.mxu1 %v18216_v47  ;;  %12006 = vmatprep.subr.bf16.mxu0 %v18223_v6  ;;  %v8895_v47 = vld [vmem:[#allocation10 + $0xd78] sm:$0xff]  ;;  %v18270_v6 = vcombine.low %v8882_v57, %v8886_v42  ;;  %v18311_v57 = vcombine.high %v8922_v1, %v8926_v48 }
 0x76f   :  { %12170 = vmatprep.subr.bf16.mxu1 %v18225_v24  ;;  %v18272_v24 = vcombine.low %v8883_v4, %v8887_v59  ;;  %v18281_v43 = vcombine.high %v8891_v30, %v8895_v47  ;;  %v8930_v4 = vld [vmem:[#allocation10 + $0xe90] sm:$0xff] }
 0x770   :  { %v8934_v59 = vld [vmem:[#allocation10 + $0xeb0] sm:$0xff] }
 0x771   :  { %12007 = vmatpush1.bf16.msra.mxu0 %v18222_v3  ;;  %v8899_v3 = vld [vmem:[#allocation10 + $0xd98] sm:$0xff] }
 0x772   :  { %12171 = vmatpush1.bf16.msra.mxu1 %v18224_v14  ;;  %12008 = vmatprep.subr.bf16.mxu0 %v18231_v15  ;;  %v8903_v14 = vld [vmem:[#allocation10 + $0xdb8] sm:$0xff]  ;;  %v18278_v15 = vcombine.low %v8890_v8, %v8894_v62  ;;  %v18319_v8 = vcombine.high %v8930_v4, %v8934_v59 }
 0x773   :  { %12172 = vmatprep.subr.bf16.mxu1 %v18233_v9  ;;  %v18280_v9 = vcombine.low %v8891_v30, %v8895_v47  ;;  %v18289_v41 = vcombine.high %v8899_v3, %v8903_v14  ;;  %v8938_v30 = vld [vmem:[#allocation10 + $0xed0] sm:$0xff] }
 0x774   :  { %v8942_v47 = vld [vmem:[#allocation10 + $0xef0] sm:$0xff] }
 0x775   :  { %12009 = vmatpush1.bf16.msra.mxu0 %v18230_v16  ;;  %v8910_v16 = vld [vmem:[#allocation10 + $0xdf0] sm:$0xff]  ;;  %v18327_v11 = vcombine.high %v8938_v30, %v8942_v47 }
 0x776   :  { %12173 = vmatpush1.bf16.msra.mxu1 %v18232_v33  ;;  %12019 = vmatprep.subr.bf16.mxu0 %v18239_v35  ;;  %v18295_v40 = vcombine.high %v8906_v31, %v8910_v16 }
 0x777   :  { %12183 = vmatprep.subr.bf16.mxu1 %v18241_v46  ;;  %v8907_v46 = vld [vmem:[#allocation10 + $0xdd8] sm:$0xff] }
 0x778   :  { %12011 = vmatmul.mubr.bf16.vlgmr.msra.gmra.mrb[52].mxu0 %v19997_v61 }
 0x779   :  { %12175 = vmatmul.mubr.bf16.vlgmr.msra.gmra.mrb[52].mxu1 %v19997_v61  ;;  %12020 = vmatpush1.bf16.msra.mxu0 %v18238_v22  ;;  %v18256_v61 = vcombine.low %v8867_v28, %v8871_v12  ;;  %v8914_v28 = vld [vmem:[#allocation10 + $0xe10] sm:$0xff] }
 0x77a   :  { %12051 = vmatprep.mubr.bf16.mxu0 %v20011_v13  ;;  %12184 = vmatpush1.bf16.msra.mxu1 %v18240_v19  ;;  %v8918_v12 = vld [vmem:[#allocation10 + $0xe30] sm:$0xff] }
 0x77b   :  { %12215 = vmatprep.mubr.bf16.mxu1 %v20011_v13  ;;  %12021 = vmatprep.subr.bf16.mxu0 %v18247_v44  ;;  %v18262_v13 = vcombine.low %v8874_v20, %v8878_v45  ;;  %v18288_v44 = vcombine.low %v8899_v3, %v8903_v14  ;;  %v18303_v20 = vcombine.high %v8914_v28, %v8918_v12  ;;  %v8946_v3 = vld [vmem:[#allocation10 + $0xf10] sm:$0xff] }
 0x77c   :  { %12185 = vmatprep.subr.bf16.mxu1 %v18249_v36  ;;  %v18297_v36 = vcombine.high %v8907_v46, %v8911_v18  ;;  %v8950_v14 = vld [vmem:[#allocation10 + $0xf30] sm:$0xff] }
 0x77d   :  { %12022 = vmatpush1.bf16.msra.mxu0 %v18246_v54  ;;  %v8915_v54 = vld [vmem:[#allocation10 + $0xe18] sm:$0xff] }
 0x77e   :  { %12186 = vmatpush1.bf16.msra.mxu1 %v18248_v53  ;;  %12023 = vmatprep.subr.bf16.mxu0 %v18255_v34  ;;  %v8919_v53 = vld [vmem:[#allocation10 + $0xe38] sm:$0xff]  ;;  %v18294_v34 = vcombine.low %v8906_v31, %v8910_v16  ;;  %v18335_v31 = vcombine.high %v8946_v3, %v8950_v14 }
 0x77f   :  { %12187 = vmatprep.subr.bf16.mxu1 %v18257_v5  ;;  %v18296_v5 = vcombine.low %v8907_v46, %v8911_v18  ;;  %v18305_v45 = vcombine.high %v8915_v54, %v8919_v53  ;;  %v8954_v46 = vld [vmem:[#allocation10 + $0xf50] sm:$0xff] }
 0x780   :  { %v8958_v18 = vld [vmem:[#allocation10 + $0xf70] sm:$0xff] }
 0x781   :  { %12024 = vmatpush1.bf16.msra.mxu0 %v18254_v49  ;;  %v8923_v49 = vld [vmem:[#allocation10 + $0xe58] sm:$0xff] }
 0x782   :  { %12188 = vmatpush1.bf16.msra.mxu1 %v18256_v61  ;;  %12025 = vmatprep.subr.bf16.mxu0 %v18263_v32  ;;  %v8927_v61 = vld [vmem:[#allocation10 + $0xe78] sm:$0xff]  ;;  %v18302_v32 = vcombine.low %v8914_v28, %v8918_v12  ;;  %v20049_v28 = vsub.s32 3, %v19691_v63 }
 0x783   :  { %12189 = vmatprep.subr.bf16.mxu1 %v18265_v25  ;;  %v18304_v25 = vcombine.low %v8915_v54, %v8919_v53  ;;  %v18313_v42 = vcombine.high %v8923_v49, %v8927_v61  ;;  %v8963_v12 = vld [vmem:[#allocation10 + $0xf98] sm:$0xff]  ;;  %v18342_v53 = vcombine.low %v8954_v46, %v8958_v18 }
 0x784   :  { %v8967_v54 = vld [vmem:[#allocation10 + $0xfb8] sm:$0xff] }
 0x785   :  { %12026 = vmatpush1.bf16.msra.mxu0 %v18262_v13  ;;  %v8931_v13 = vld [vmem:[#allocation10 + $0xe98] sm:$0xff] }
 0x786   :  { %12190 = vmatpush1.bf16.msra.mxu1 %v18264_v26  ;;  %12027 = vmatprep.subr.bf16.mxu0 %v18271_v39  ;;  %v8935_v26 = vld [vmem:[#allocation10 + $0xeb8] sm:$0xff]  ;;  %v18310_v39 = vcombine.low %v8922_v1, %v8926_v48  ;;  %v8974_v1 = vld [vmem:[#allocation10 + $0xff0] sm:$0xff]  ;;  %v19241_v48 = vld [vmem:[#allocation14 + $0x8] sm:$0xff] }
 0x787   :  { %12191 = vmatprep.subr.bf16.mxu1 %v18273_v38  ;;  %v18312_v38 = vcombine.low %v8923_v49, %v8927_v61  ;;  %v18321_v62 = vcombine.high %v8931_v13, %v8935_v26  ;;  %v8983_v49 = vrot.slane %v19241_v48, %v20049_v28  ;;  %v8971_v61 = vld [vmem:[#allocation10 + $0xfd8] sm:$0xff] }
 0x789   :  { %12028 = vmatpush1.bf16.msra.mxu0 %v18270_v6  ;;  %v8939_v6 = vld [vmem:[#allocation10 + $0xed8] sm:$0xff] }
 0x78a   :  { %12192 = vmatpush1.bf16.msra.mxu1 %v18272_v24  ;;  %12029 = vmatprep.subr.bf16.mxu0 %v18279_v17  ;;  %v8943_v24 = vld [vmem:[#allocation10 + $0xef8] sm:$0xff]  ;;  %v18318_v17 = vcombine.low %v8930_v4, %v8934_v59  ;;  %v18352_v4 = vcombine.low %v8963_v12, %v8967_v54 }
 0x78b   :  { %v20040_v51 = vpop.f32.mrb[48].mxu0  ;;  %12193 = vmatprep.subr.bf16.mxu1 %v18281_v43  ;;  %v18320_v43 = vcombine.low %v8931_v13, %v8935_v26  ;;  %v18329_v7 = vcombine.high %v8939_v6, %v8943_v24  ;;  %v12240_v26 = vld [vmem:[#allocation11] sm:$0xff] }
 0x78c   :  { %v20042_v33 = vpop.f32.mrb[48].mxu1  ;;  %v20044_v35 = vpop.f32.mrb[49].mxu0 }
 0x78d   :  { %v20046_v0 = vpop.f32.mrb[49].mxu1  ;;  %v11729_v22 = vpop.f32.mrb[50].mxu0  ;;  %12030 = vmatpush1.bf16.msra.mxu0 %v18278_v15  ;;  %v8947_v15 = vld [vmem:[#allocation10 + $0xf18] sm:$0xff] }
 0x78e   :  { %v11893_v52 = vpop.f32.mrb[50].mxu1  ;;  %12194 = vmatpush1.bf16.msra.mxu1 %v18280_v9  ;;  %v11730_v19 = vpop.f32.mrb[51].mxu0  ;;  %12031 = vmatprep.subr.bf16.mxu0 %v18287_v27  ;;  %v8951_v9 = vld [vmem:[#allocation10 + $0xf38] sm:$0xff]  ;;  %v18326_v27 = vcombine.low %v8938_v30, %v8942_v47 }
 0x78f   :  { %v11894_v29 = vpop.f32.mrb[51].mxu1  ;;  %12195 = vmatprep.subr.bf16.mxu1 %v18289_v41  ;;  %v18328_v41 = vcombine.low %v8939_v6, %v8943_v24  ;;  %v18337_v16 = vcombine.high %v8947_v15, %v8951_v9  ;;  %v8955_v22 = vld [vmem:[#allocation10 + $0xf58] sm:$0xff]  ;;  %v18334_v52 = vcombine.low %v8946_v3, %v8950_v14  ;;  %v18336_v19 = vcombine.low %v8947_v15, %v8951_v9  ;;  %v12376_v15 = vld [vmem:[#allocation11 + $0x440] sm:$0xff] }
 0x790   :  { %v8962_v29 = vld [vmem:[#allocation10 + $0xf90] sm:$0xff] }
 0x791   :  { %12032 = vmatpush1.bf16.msra.mxu0 %v18286_v60  ;;  %v8959_v60 = vld [vmem:[#allocation10 + $0xf78] sm:$0xff] }
 0x792   :  { %12196 = vmatpush1.bf16.msra.mxu1 %v18288_v44  ;;  %12033 = vmatprep.subr.bf16.mxu0 %v18295_v40  ;;  %v18343_v44 = vcombine.high %v8954_v46, %v8958_v18  ;;  %v18345_v40 = vcombine.high %v8955_v22, %v8959_v60  ;;  %v12384_v46 = vld [vmem:[#allocation11 + $0x480] sm:$0xff] }
 0x793   :  { %12197 = vmatprep.subr.bf16.mxu1 %v18297_v36  ;;  %v8966_v36 = vld [vmem:[#allocation10 + $0xfb0] sm:$0xff]  ;;  %v12388_v18 = vld [vmem:[#allocation11 + $0x4a0] sm:$0xff] }
 0x795   :  { %12034 = vmatpush1.bf16.msra.mxu0 %v18294_v34  ;;  %v18344_v34 = vcombine.low %v8955_v22, %v8959_v60 }
 0x796   :  { %12198 = vmatpush1.bf16.msra.mxu1 %v18296_v5  ;;  %12035 = vmatprep.subr.bf16.mxu0 %v18303_v20  ;;  %v18351_v5 = vcombine.high %v8962_v29, %v8966_v36  ;;  %v18353_v20 = vcombine.high %v8963_v12, %v8967_v54  ;;  %v12396_v12 = vld [vmem:[#allocation11 + $0x4e0] sm:$0xff] }
 0x797   :  { %12199 = vmatprep.subr.bf16.mxu1 %v18305_v45  ;;  %v8970_v45 = vld [vmem:[#allocation10 + $0xfd0] sm:$0xff] }
 0x798   :  { %v18359_v59 = vcombine.high %v8970_v45, %v8974_v1  ;;  %v18358_v47 = vcombine.low %v8970_v45, %v8974_v1  ;;  %v12400_v45 = vld [vmem:[#allocation11 + $0x500] sm:$0xff] }
 0x799   :  { %12036 = vmatpush1.bf16.msra.mxu0 %v18302_v32  ;;  %v8975_v32 = vld [vmem:[#allocation10 + $0xff8] sm:$0xff]  ;;  %v12404_v1 = vld [vmem:[#allocation11 + $0x520] sm:$0xff] }
 0x79a   :  { %12200 = vmatpush1.bf16.msra.mxu1 %v18304_v25  ;;  %12037 = vmatprep.subr.bf16.mxu0 %v18311_v57  ;;  %v19242_v25 = vld [vmem:[#allocation14 + $0x18] sm:$0xff]  ;;  %v18361_v13 = vcombine.high %v8971_v61, %v8975_v32  ;;  %v18360_v6 = vcombine.low %v8971_v61, %v8975_v32  ;;  %v18523_v32 = vcombine.high %v12400_v45, %v12404_v1 }
 0x79b   :  { %12201 = vmatprep.subr.bf16.mxu1 %v18313_v42  ;;  %v8991_v57 = vrot.slane %v19242_v25, %v20049_v28  ;;  %v18350_v42 = vcombine.low %v8962_v29, %v8966_v36  ;;  %v12268_v29 = vld [vmem:[#allocation11 + $0xe0] sm:$0xff] }
 0x79c   :  { %v12392_v36 = vld [vmem:[#allocation11 + $0x4c0] sm:$0xff] }
 0x79d   :  { %12038 = vmatpush1.bf16.msra.mxu0 %v18310_v39  ;;  %v12244_v39 = vld [vmem:[#allocation11 + $0x20] sm:$0xff]  ;;  %v19037_v30 = vadd.f32 %v20046_v0, %v8991_v57 }
 0x79e   :  { %12202 = vmatpush1.bf16.msra.mxu1 %v18312_v38  ;;  %12039 = vmatprep.subr.bf16.mxu0 %v18319_v8  ;;  %v19035_v38 = vadd.f32 %v20044_v35, %v8983_v49  ;;  %v12368_v8 = vld [vmem:[#allocation11 + $0x400] sm:$0xff]  ;;  %v18363_v24 = vcombine.high %v12240_v26, %v12244_v39  ;;  %v18362_v14 = vcombine.low %v12240_v26, %v12244_v39 }
 0x79f   :  { %12203 = vmatprep.subr.bf16.mxu1 %v18321_v62  ;;  %v12372_v62 = vld [vmem:[#allocation11 + $0x420] sm:$0xff]  ;;  %v12227_v3 = vmax.f32 %v19037_v30, 0.0  ;;  %v18514_v49 = vcombine.low %v12392_v36, %v12396_v12 }
 0x7a0   :  { %v12380_v35 = vld [vmem:[#allocation11 + $0x460] sm:$0xff]  ;;  %v18490_v9 = vcombine.low %v12368_v8, %v12372_v62 }
 0x7a1   :  { %12040 = vmatpush1.bf16.msra.mxu0 %v18318_v17  ;;  %v18491_v17 = vcombine.high %v12368_v8, %v12372_v62  ;;  %v20058_v22 = vpack.c.bf16 %v12227_v3, %v12227_v3  ;;  %v12280_v25 = vld [vmem:[#allocation11 + $0x140] sm:$0xff] }
 0x7a2   :  { %12204 = vmatpush1.bf16.msra.mxu1 %v18320_v43  ;;  %12041 = vmatprep.subr.bf16.mxu0 %v18327_v11  ;;  %v12225_v43 = vmax.f32 %v19035_v38, 0.0  ;;  %v12248_v11 = vld [vmem:[#allocation11 + $0x40] sm:$0xff] }
 0x7a3   :  { %12205 = vmatprep.subr.bf16.mxu1 %v18329_v7  ;;  %v12252_v7 = vld [vmem:[#allocation11 + $0x60] sm:$0xff] }
 0x7a4   :  { %v18371_v0 = vcombine.high %v12248_v11, %v12252_v7  ;;  %v18370_v60 = vcombine.low %v12248_v11, %v12252_v7  ;;  %v12284_v57 = vld [vmem:[#allocation11 + $0x160] sm:$0xff] }
 0x7a5   :  { %12042 = vmatpush1.bf16.msra.mxu0 %v18326_v27  ;;  %v12256_v27 = vld [vmem:[#allocation11 + $0x80] sm:$0xff]  ;;  %v18403_v26 = vcombine.high %v12280_v25, %v12284_v57 }
 0x7a6   :  { %12206 = vmatpush1.bf16.msra.mxu1 %v18328_v41  ;;  %12043 = vmatprep.subr.bf16.mxu0 %v18335_v31  ;;  %v12260_v41 = vld [vmem:[#allocation11 + $0xa0] sm:$0xff]  ;;  %v20055_v31 = vpack.c.bf16 %v12225_v43, %v12225_v43 }
 0x7a7   :  { %12207 = vmatprep.subr.bf16.mxu1 %v18337_v16  ;;  %v18499_v16 = vcombine.high %v12376_v15, %v12380_v35  ;;  %v18378_v54 = vcombine.low %v12256_v27, %v12260_v41  ;;  %v12288_v38 = vld [vmem:[#allocation11 + $0x180] sm:$0xff] }
 0x7a8   :  { %v12292_v8 = vld [vmem:[#allocation11 + $0x1a0] sm:$0xff] }
 0x7a9   :  { %12044 = vmatpush1.bf16.msra.mxu0 %v18334_v52  ;;  %v18498_v52 = vcombine.low %v12376_v15, %v12380_v35  ;;  %v12416_v62 = vld [vmem:[#allocation11 + $0x580] sm:$0xff] }
 0x7aa   :  { %12208 = vmatpush1.bf16.msra.mxu1 %v18336_v19  ;;  %12045 = vmatprep.subr.bf16.mxu0 %v18343_v44  ;;  %v18379_v19 = vcombine.high %v12256_v27, %v12260_v41  ;;  %v18507_v44 = vcombine.high %v12384_v46, %v12388_v18  ;;  %v12420_v30 = vld [vmem:[#allocation11 + $0x5a0] sm:$0xff] }
 0x7ab   :  { %12209 = vmatprep.subr.bf16.mxu1 %v18345_v40  ;;  %v12264_v40 = vld [vmem:[#allocation11 + $0xc0] sm:$0xff]  ;;  %v18538_v15 = vcombine.low %v12416_v62, %v12420_v30 }
 0x7ac   :  { %v18386_v48 = vcombine.low %v12264_v40, %v12268_v29  ;;  %v12296_v43 = vld [vmem:[#allocation11 + $0x1c0] sm:$0xff] }
 0x7ad   :  { %12046 = vmatpush1.bf16.msra.mxu0 %v18342_v53  ;;  %v18387_v53 = vcombine.high %v12264_v40, %v12268_v29  ;;  %v12300_v11 = vld [vmem:[#allocation11 + $0x1e0] sm:$0xff] }
 0x7ae   :  { %12210 = vmatpush1.bf16.msra.mxu1 %v18344_v34  ;;  %12047 = vmatprep.subr.bf16.mxu0 %v18351_v5  ;;  %v18515_v34 = vcombine.high %v12392_v36, %v12396_v12  ;;  %v12272_v5 = vld [vmem:[#allocation11 + $0x100] sm:$0xff]  ;;  %v18419_v35 = vcombine.high %v12296_v43, %v12300_v11 }
 0x7af   :  { %12211 = vmatprep.subr.bf16.mxu1 %v18353_v20  ;;  %v12276_v20 = vld [vmem:[#allocation11 + $0x120] sm:$0xff] }
 0x7b0   :  { %v18395_v61 = vcombine.high %v12272_v5, %v12276_v20  ;;  %v12424_v7 = vld [vmem:[#allocation11 + $0x5c0] sm:$0xff] }
 0x7b1   :  { %12048 = vmatpush1.bf16.msra.mxu0 %v18350_v42  ;;  %v12408_v42 = vld [vmem:[#allocation11 + $0x540] sm:$0xff] }
 0x7b2   :  { %12212 = vmatpush1.bf16.msra.mxu1 %v18352_v4  ;;  %12049 = vmatprep.subr.bf16.mxu0 %v18359_v59  ;;  %v12412_v4 = vld [vmem:[#allocation11 + $0x560] sm:$0xff]  ;;  %v18394_v59 = vcombine.low %v12272_v5, %v12276_v20 }
 0x7b3   :  { %12213 = vmatprep.subr.bf16.mxu1 %v18361_v13  ;;  %v18522_v13 = vcombine.low %v12400_v45, %v12404_v1  ;;  %v18531_v39 = vcombine.high %v12408_v42, %v12412_v4  ;;  %v12428_v3 = vld [vmem:[#allocation11 + $0x5e0] sm:$0xff] }
 0x7b4   :  { %v12308_v27 = vld [vmem:[#allocation11 + $0x220] sm:$0xff] }
 0x7b5   :  { %12050 = vmatpush1.bf16.msra.mxu0 %v18358_v47  ;;  %v18402_v47 = vcombine.low %v12280_v25, %v12284_v57  ;;  %v12432_v41 = vld [vmem:[#allocation11 + $0x600] sm:$0xff] }
 0x7b6   :  { %12214 = vmatpush1.bf16.msra.mxu1 %v18360_v6  ;;  %15312 = vmatprep.subr.bf16.mxu0 %v18363_v24  ;;  %v18530_v6 = vcombine.low %v12408_v42, %v12412_v4  ;;  %v18411_v24 = vcombine.high %v12288_v38, %v12292_v8  ;;  %v12440_v40 = vld [vmem:[#allocation11 + $0x640] sm:$0xff] }
 0x7b7   :  { %15353 = vmatprep.subr.bf16.mxu1 %v18491_v17  ;;  %v18539_v17 = vcombine.high %v12416_v62, %v12420_v30  ;;  %v12444_v29 = vld [vmem:[#allocation11 + $0x660] sm:$0xff] }
 0x7b8   :  { %12052 = vmatmul.mubr.bf16.vlgmr.msra.gmra.mrb[52].mxu0 %v20022_v37  ;;  %v12448_v5 = vld [vmem:[#allocation11 + $0x680] sm:$0xff]  ;;  %v18562_v1 = vcombine.low %v12440_v40, %v12444_v29 }
 0x7b9   :  { %12216 = vmatmul.mubr.bf16.vlgmr.msra.gmra.mrb[52].mxu1 %v20022_v37  ;;  %15313 = vmatpush1.bf16.msra.mxu0 %v18362_v14  ;;  %v18506_v37 = vcombine.low %v12384_v46, %v12388_v18  ;;  %v18410_v14 = vcombine.low %v12288_v38, %v12292_v8  ;;  %v18418_v46 = vcombine.low %v12296_v43, %v12300_v11  ;;  %v12452_v20 = vld [vmem:[#allocation11 + $0x6a0] sm:$0xff] }
 0x7ba   :  { %15344 = vmatprep.mubr.bf16.mxu0 %v20055_v31  ;;  %15354 = vmatpush1.bf16.msra.mxu1 %v18490_v9  ;;  %v18547_v9 = vcombine.high %v12424_v7, %v12428_v3  ;;  %v18546_v18 = vcombine.low %v12424_v7, %v12428_v3  ;;  %v12456_v25 = vld [vmem:[#allocation11 + $0x6c0] sm:$0xff]  ;;  %v18570_v4 = vcombine.low %v12448_v5, %v12452_v20 }
 0x7bb   :  { %15385 = vmatprep.mubr.bf16.mxu1 %v20058_v22  ;;  %15314 = vmatprep.subr.bf16.mxu0 %v18371_v0  ;;  %v12304_v0 = vld [vmem:[#allocation11 + $0x200] sm:$0xff] }
 0x7bc   :  { %15355 = vmatprep.subr.bf16.mxu1 %v18499_v16  ;;  %v12436_v16 = vld [vmem:[#allocation11 + $0x620] sm:$0xff]  ;;  %v18426_v36 = vcombine.low %v12304_v0, %v12308_v27 }
 0x7bd   :  { %15315 = vmatpush1.bf16.msra.mxu0 %v18370_v60  ;;  %v18427_v60 = vcombine.high %v12304_v0, %v12308_v27  ;;  %v18554_v12 = vcombine.low %v12432_v41, %v12436_v16  ;;  %v12460_v57 = vld [vmem:[#allocation11 + $0x6e0] sm:$0xff] }
 0x7be   :  { %15356 = vmatpush1.bf16.msra.mxu1 %v18498_v52  ;;  %15316 = vmatprep.subr.bf16.mxu0 %v18379_v19  ;;  %v18555_v52 = vcombine.high %v12432_v41, %v12436_v16  ;;  %v12312_v19 = vld [vmem:[#allocation11 + $0x240] sm:$0xff]  ;;  %v18578_v30 = vcombine.low %v12456_v25, %v12460_v57 }
 0x7bf   :  { %15357 = vmatprep.subr.bf16.mxu1 %v18507_v44  ;;  %v12316_v44 = vld [vmem:[#allocation11 + $0x260] sm:$0xff] }
 0x7c0   :  { %v18434_v45 = vcombine.low %v12312_v19, %v12316_v44  ;;  %v12464_v38 = vld [vmem:[#allocation11 + $0x700] sm:$0xff] }
 0x7c1   :  { %15317 = vmatpush1.bf16.msra.mxu0 %v18378_v54  ;;  %v18435_v54 = vcombine.high %v12312_v19, %v12316_v44  ;;  %v12468_v8 = vld [vmem:[#allocation11 + $0x720] sm:$0xff] }
 0x7c2   :  { %15358 = vmatpush1.bf16.msra.mxu1 %v18506_v37  ;;  %15318 = vmatprep.subr.bf16.mxu0 %v18387_v53  ;;  %v18563_v37 = vcombine.high %v12440_v40, %v12444_v29  ;;  %v12320_v53 = vld [vmem:[#allocation11 + $0x280] sm:$0xff]  ;;  %v18586_v3 = vcombine.low %v12464_v38, %v12468_v8 }
 0x7c3   :  { %15359 = vmatprep.subr.bf16.mxu1 %v18515_v34  ;;  %v12324_v34 = vld [vmem:[#allocation11 + $0x2a0] sm:$0xff] }
 0x7c4   :  { %v18442_v42 = vcombine.low %v12320_v53, %v12324_v34  ;;  %v12472_v43 = vld [vmem:[#allocation11 + $0x740] sm:$0xff] }
 0x7c5   :  { %15319 = vmatpush1.bf16.msra.mxu0 %v18386_v48  ;;  %v18443_v48 = vcombine.high %v12320_v53, %v12324_v34  ;;  %v12476_v11 = vld [vmem:[#allocation11 + $0x760] sm:$0xff] }
 0x7c6   :  { %15360 = vmatpush1.bf16.msra.mxu1 %v18514_v49  ;;  %15320 = vmatprep.subr.bf16.mxu0 %v18395_v61  ;;  %v18571_v49 = vcombine.high %v12448_v5, %v12452_v20  ;;  %v12328_v61 = vld [vmem:[#allocation11 + $0x2c0] sm:$0xff] }
 0x7c7   :  { %15361 = vmatprep.subr.bf16.mxu1 %v18523_v32  ;;  %v12332_v32 = vld [vmem:[#allocation11 + $0x2e0] sm:$0xff] }
 0x7c8   :  { %v18450_v62 = vcombine.low %v12328_v61, %v12332_v32  ;;  %v12480_v0 = vld [vmem:[#allocation11 + $0x780] sm:$0xff] }
 0x7c9   :  { %15321 = vmatpush1.bf16.msra.mxu0 %v18394_v59  ;;  %v18451_v59 = vcombine.high %v12328_v61, %v12332_v32  ;;  %v12484_v27 = vld [vmem:[#allocation11 + $0x7a0] sm:$0xff] }
 0x7ca   :  { %15362 = vmatpush1.bf16.msra.mxu1 %v18522_v13  ;;  %15322 = vmatprep.subr.bf16.mxu0 %v18403_v26  ;;  %v18579_v13 = vcombine.high %v12456_v25, %v12460_v57  ;;  %v12336_v26 = vld [vmem:[#allocation11 + $0x300] sm:$0xff]  ;;  %v18603_v44 = vcombine.high %v12480_v0, %v12484_v27  ;;  %v18602_v53 = vcombine.low %v12480_v0, %v12484_v27 }
 0x7cb   :  { %15363 = vmatprep.subr.bf16.mxu1 %v18531_v39  ;;  %v12340_v39 = vld [vmem:[#allocation11 + $0x320] sm:$0xff] }
 0x7cc   :  { %v18458_v7 = vcombine.low %v12336_v26, %v12340_v39  ;;  %v19243_v16 = vld [vmem:[#allocation14] sm:$0xff] }
 0x7cd   :  { %15323 = vmatpush1.bf16.msra.mxu0 %v18402_v47  ;;  %v18459_v47 = vcombine.high %v12336_v26, %v12340_v39  ;;  %v12360_v40 = vld [vmem:[#allocation11 + $0x3c0] sm:$0xff] }
 0x7ce   :  { %15364 = vmatpush1.bf16.msra.mxu1 %v18530_v6  ;;  %15324 = vmatprep.subr.bf16.mxu0 %v18411_v24  ;;  %v18587_v6 = vcombine.high %v12464_v38, %v12468_v8  ;;  %v12344_v24 = vld [vmem:[#allocation11 + $0x340] sm:$0xff] }
 0x7cf   :  { %15365 = vmatprep.subr.bf16.mxu1 %v18539_v17  ;;  %v12348_v17 = vld [vmem:[#allocation11 + $0x360] sm:$0xff] }
 0x7d0   :  { %v18466_v41 = vcombine.low %v12344_v24, %v12348_v17  ;;  %v12364_v29 = vld [vmem:[#allocation11 + $0x3e0] sm:$0xff] }
 0x7d1   :  { %15325 = vmatpush1.bf16.msra.mxu0 %v18410_v14  ;;  %v18467_v14 = vcombine.high %v12344_v24, %v12348_v17  ;;  %v18483_v34 = vcombine.high %v12360_v40, %v12364_v29  ;;  %v18482_v61 = vcombine.low %v12360_v40, %v12364_v29  ;;  %v12640_v24 = vld [vmem:[#allocation11 + $0xc80] sm:$0xff] }
 0x7d2   :  { %15366 = vmatpush1.bf16.msra.mxu1 %v18538_v15  ;;  %15326 = vmatprep.subr.bf16.mxu0 %v18419_v35  ;;  %v18595_v15 = vcombine.high %v12472_v43, %v12476_v11  ;;  %v12352_v35 = vld [vmem:[#allocation11 + $0x380] sm:$0xff] }
 0x7d3   :  { %15367 = vmatprep.subr.bf16.mxu1 %v18547_v9  ;;  %v12356_v9 = vld [vmem:[#allocation11 + $0x3a0] sm:$0xff] }
 0x7d4   :  { %v12644_v17 = vld [vmem:[#allocation11 + $0xca0] sm:$0xff] }
 0x7d5   :  { %15327 = vmatpush1.bf16.msra.mxu0 %v18418_v46  ;;  %v8979_v46 = vrot.slane %v19243_v16, %v20049_v28  ;;  %v18762_v27 = vcombine.low %v12640_v24, %v12644_v17 }
 0x7d6   :  { %15368 = vmatpush1.bf16.msra.mxu1 %v18546_v18  ;;  %15328 = vmatprep.subr.bf16.mxu0 %v18427_v60  ;;  %v18594_v18 = vcombine.low %v12472_v43, %v12476_v11  ;;  %v18475_v60 = vcombine.high %v12352_v35, %v12356_v9 }
 0x7d7   :  { %15369 = vmatprep.subr.bf16.mxu1 %v18555_v52  ;;  %v19244_v52 = vld [vmem:[#allocation14 + $0x10] sm:$0xff] }
 0x7d8   :  { %v8987_v19 = vrot.slane %v19244_v52, %v20049_v28  ;;  %v12660_v52 = vld [vmem:[#allocation11 + $0xd20] sm:$0xff] }
 0x7d9   :  { %15329 = vmatpush1.bf16.msra.mxu0 %v18426_v36  ;;  %v12488_v36 = vld [vmem:[#allocation11 + $0x7c0] sm:$0xff] }
 0x7da   :  { %15370 = vmatpush1.bf16.msra.mxu1 %v18554_v12  ;;  %15330 = vmatprep.subr.bf16.mxu0 %v18435_v54  ;;  %v12492_v12 = vld [vmem:[#allocation11 + $0x7e0] sm:$0xff]  ;;  %v18474_v54 = vcombine.low %v12352_v35, %v12356_v9  ;;  %v19036_v5 = vadd.f32 %v20042_v33, %v8987_v19 }
 0x7db   :  { %15371 = vmatprep.subr.bf16.mxu1 %v18563_v37  ;;  %v19034_v37 = vadd.f32 %v20040_v51, %v8979_v46  ;;  %v18611_v20 = vcombine.high %v12488_v36, %v12492_v12  ;;  %v18610_v25 = vcombine.low %v12488_v36, %v12492_v12  ;;  %v12636_v33 = vld [vmem:[#allocation11 + $0xc60] sm:$0xff] }
 0x7dc   :  { %v12226_v51 = vmax.f32 %v19036_v5, 0.0  ;;  %v12648_v35 = vld [vmem:[#allocation11 + $0xcc0] sm:$0xff] }
 0x7dd   :  { %15331 = vmatpush1.bf16.msra.mxu0 %v18434_v45  ;;  %v12496_v45 = vld [vmem:[#allocation11 + $0x800] sm:$0xff]  ;;  %v12224_v32 = vmax.f32 %v19034_v37, 0.0 }
 0x7de   :  { %15372 = vmatpush1.bf16.msra.mxu1 %v18562_v1  ;;  %15332 = vmatprep.subr.bf16.mxu0 %v18443_v48  ;;  %v12500_v1 = vld [vmem:[#allocation11 + $0x820] sm:$0xff] }
 0x7df   :  { %15373 = vmatprep.subr.bf16.mxu1 %v18571_v49  ;;  %v12624_v48 = vld [vmem:[#allocation11 + $0xc00] sm:$0xff]  ;;  %v18619_v57 = vcombine.high %v12496_v45, %v12500_v1  ;;  %v18618_v26 = vcombine.low %v12496_v45, %v12500_v1  ;;  %v20067_v39 = vpack.c.bf16 %v12224_v32, %v12224_v32 }
 0x7e0   :  { %v12628_v49 = vld [vmem:[#allocation11 + $0xc20] sm:$0xff] }
 0x7e1   :  { %15333 = vmatpush1.bf16.msra.mxu0 %v18442_v42  ;;  %v18747_v42 = vcombine.high %v12624_v48, %v12628_v49  ;;  %v18746_v38 = vcombine.low %v12624_v48, %v12628_v49  ;;  %v12652_v9 = vld [vmem:[#allocation11 + $0xce0] sm:$0xff] }
 0x7e2   :  { %15374 = vmatpush1.bf16.msra.mxu1 %v18570_v4  ;;  %15334 = vmatprep.subr.bf16.mxu0 %v18451_v59  ;;  %v12504_v4 = vld [vmem:[#allocation11 + $0x840] sm:$0xff]  ;;  %v18771_v16 = vcombine.high %v12648_v35, %v12652_v9 }
 0x7e3   :  { %15375 = vmatprep.subr.bf16.mxu1 %v18579_v13  ;;  %v12508_v59 = vld [vmem:[#allocation11 + $0x860] sm:$0xff] }
 0x7e4   :  { %v12632_v13 = vld [vmem:[#allocation11 + $0xc40] sm:$0xff]  ;;  %v18627_v8 = vcombine.high %v12504_v4, %v12508_v59  ;;  %v18626_v43 = vcombine.low %v12504_v4, %v12508_v59 }
 0x7e5   :  { %15335 = vmatpush1.bf16.msra.mxu0 %v18450_v62  ;;  %v20069_v62 = vpack.c.bf16 %v12226_v51, %v12226_v51  ;;  %v18754_v11 = vcombine.low %v12632_v13, %v12636_v33  ;;  %v12528_v46 = vld [vmem:[#allocation11 + $0x900] sm:$0xff] }
 0x7e6   :  { %15376 = vmatpush1.bf16.msra.mxu1 %v18578_v30  ;;  %15336 = vmatprep.subr.bf16.mxu0 %v18459_v47  ;;  %v18755_v30 = vcombine.high %v12632_v13, %v12636_v33  ;;  %v12512_v47 = vld [vmem:[#allocation11 + $0x880] sm:$0xff] }
 0x7e7   :  { %15377 = vmatprep.subr.bf16.mxu1 %v18587_v6  ;;  %v12516_v6 = vld [vmem:[#allocation11 + $0x8a0] sm:$0xff] }
 0x7e8   :  { %v18634_v0 = vcombine.low %v12512_v47, %v12516_v6  ;;  %v12536_v36 = vld [vmem:[#allocation11 + $0x940] sm:$0xff] }
 0x7e9   :  { %15337 = vmatpush1.bf16.msra.mxu0 %v18458_v7  ;;  %v18635_v7 = vcombine.high %v12512_v47, %v12516_v6  ;;  %v12540_v12 = vld [vmem:[#allocation11 + $0x960] sm:$0xff] }
 0x7ea   :  { %15378 = vmatpush1.bf16.msra.mxu1 %v18586_v3  ;;  %15338 = vmatprep.subr.bf16.mxu0 %v18467_v14  ;;  %v18763_v3 = vcombine.high %v12640_v24, %v12644_v17  ;;  %v12520_v14 = vld [vmem:[#allocation11 + $0x8c0] sm:$0xff]  ;;  %v18659_v5 = vcombine.high %v12536_v36, %v12540_v12 }
 0x7eb   :  { %15379 = vmatprep.subr.bf16.mxu1 %v18595_v15  ;;  %v12524_v15 = vld [vmem:[#allocation11 + $0x8e0] sm:$0xff] }
 0x7ec   :  { %v18642_v19 = vcombine.low %v12520_v14, %v12524_v15  ;;  %v12668_v37 = vld [vmem:[#allocation11 + $0xd60] sm:$0xff] }
 0x7ed   :  { %15339 = vmatpush1.bf16.msra.mxu0 %v18466_v41  ;;  %v18643_v41 = vcombine.high %v12520_v14, %v12524_v15  ;;  %v12544_v45 = vld [vmem:[#allocation11 + $0x980] sm:$0xff] }
 0x7ee   :  { %15380 = vmatpush1.bf16.msra.mxu1 %v18594_v18  ;;  %15340 = vmatprep.subr.bf16.mxu0 %v18475_v60  ;;  %v12532_v18 = vld [vmem:[#allocation11 + $0x920] sm:$0xff] }
 0x7ef   :  { %15381 = vmatprep.subr.bf16.mxu1 %v18603_v44  ;;  %v12656_v60 = vld [vmem:[#allocation11 + $0xd00] sm:$0xff]  ;;  %v18770_v44 = vcombine.low %v12648_v35, %v12652_v9  ;;  %v18651_v40 = vcombine.high %v12528_v46, %v12532_v18  ;;  %v20079_v9 = vld [vmem:[#allocation11 + $0x428] sm:$0xff] }
 0x7f0   :  { %v18779_v29 = vcombine.high %v12656_v60, %v12660_v52  ;;  %v12548_v1 = vld [vmem:[#allocation11 + $0x9a0] sm:$0xff] }
 0x7f1   :  { %15341 = vmatpush1.bf16.msra.mxu0 %v18474_v54  ;;  %v12664_v54 = vld [vmem:[#allocation11 + $0xd40] sm:$0xff]  ;;  %v18666_v13 = vcombine.low %v12544_v45, %v12548_v1 }
 0x7f2   :  { %15382 = vmatpush1.bf16.msra.mxu1 %v18602_v53  ;;  %15342 = vmatprep.subr.bf16.mxu0 %v18483_v34  ;;  %v18650_v53 = vcombine.low %v12528_v46, %v12532_v18  ;;  %v18778_v34 = vcombine.low %v12656_v60, %v12660_v52  ;;  %v12672_v48 = vld [vmem:[#allocation11 + $0xd80] sm:$0xff]  ;;  %v18786_v32 = vcombine.low %v12664_v54, %v12668_v37 }
 0x7f3   :  { %15383 = vmatprep.subr.bf16.mxu1 %v18611_v20  ;;  %v18787_v20 = vcombine.high %v12664_v54, %v12668_v37  ;;  %v12676_v49 = vld [vmem:[#allocation11 + $0xda0] sm:$0xff] }
 0x7f4   :  { %v12552_v51 = vld [vmem:[#allocation11 + $0x9c0] sm:$0xff]  ;;  %v18794_v33 = vcombine.low %v12672_v48, %v12676_v49 }
 0x7f5   :  { %15343 = vmatpush1.bf16.msra.mxu0 %v18482_v61  ;;  %v18658_v61 = vcombine.low %v12536_v36, %v12540_v12  ;;  %v12680_v4 = vld [vmem:[#allocation11 + $0xdc0] sm:$0xff] }
 0x7f6   :  { %15384 = vmatpush1.bf16.msra.mxu1 %v18610_v25  ;;  %15394 = vmatprep.subr.bf16.mxu0 %v18619_v57  ;;  %v18667_v25 = vcombine.high %v12544_v45, %v12548_v1  ;;  %v18795_v57 = vcombine.high %v12672_v48, %v12676_v49  ;;  %v12684_v59 = vld [vmem:[#allocation11 + $0xde0] sm:$0xff] }
 0x7f7   :  { %15435 = vmatprep.subr.bf16.mxu1 %v18747_v42  ;;  %v12556_v42 = vld [vmem:[#allocation11 + $0x9e0] sm:$0xff]  ;;  %v18802_v17 = vcombine.low %v12680_v4, %v12684_v59 }
 0x7f8   :  { %15345 = vmatmul.mubr.bf16.vlgmr.msra.gmra.mrb[56].mxu0 %v20067_v39  ;;  %v12688_v47 = vld [vmem:[#allocation11 + $0xe00] sm:$0xff]  ;;  %v18674_v24 = vcombine.low %v12552_v51, %v12556_v42 }
 0x7f9   :  { %15386 = vmatmul.mubr.bf16.vlgmr.msra.gmra.mrb[56].mxu1 %v20069_v62  ;;  %15395 = vmatpush1.bf16.msra.mxu0 %v18618_v26  ;;  %v18675_v26 = vcombine.high %v12552_v51, %v12556_v42  ;;  %v12692_v6 = vld [vmem:[#allocation11 + $0xe20] sm:$0xff] }
 0x7fa   :  { %15436 = vmatpush1.bf16.msra.mxu1 %v18746_v38  ;;  %15396 = vmatprep.subr.bf16.mxu0 %v18627_v8  ;;  %v18803_v38 = vcombine.high %v12680_v4, %v12684_v59  ;;  %v12560_v8 = vld [vmem:[#allocation11 + $0xa00] sm:$0xff]  ;;  %v18811_v14 = vcombine.high %v12688_v47, %v12692_v6  ;;  %v18810_v18 = vcombine.low %v12688_v47, %v12692_v6 }
 0x7fb   :  { %15437 = vmatprep.subr.bf16.mxu1 %v18755_v30  ;;  %v12564_v30 = vld [vmem:[#allocation11 + $0xa20] sm:$0xff] }
 0x7fc   :  { %v12568_v15 = vld [vmem:[#allocation11 + $0xa40] sm:$0xff]  ;;  %v18682_v46 = vcombine.low %v12560_v8, %v12564_v30 }
 0x7fd   :  { %15397 = vmatpush1.bf16.msra.mxu0 %v18626_v43  ;;  %v18683_v43 = vcombine.high %v12560_v8, %v12564_v30  ;;  %v12572_v35 = vld [vmem:[#allocation11 + $0xa60] sm:$0xff] }
 0x7fe   :  { %15438 = vmatpush1.bf16.msra.mxu1 %v18754_v11  ;;  %15398 = vmatprep.subr.bf16.mxu0 %v18635_v7  ;;  %v20073_v11 = vld [vmem:[#allocation11 + $0x8] sm:$0xff]  ;;  %v18691_v60 = vcombine.high %v12568_v15, %v12572_v35  ;;  %v18690_v36 = vcombine.low %v12568_v15, %v12572_v35 }
 0x7ff   :  { %15439 = vmatprep.subr.bf16.mxu1 %v18763_v3  ;;  %v20075_v7 = vld [vmem:[#allocation11 + $0x28] sm:$0xff] }
 0x800   :  { %v20077_v3 = vld [vmem:[#allocation11 + $0x408] sm:$0xff] }
 0x801   :  { %15399 = vmatpush1.bf16.msra.mxu0 %v18634_v0  ;;  %v12696_v0 = vld [vmem:[#allocation11 + $0xe40] sm:$0xff] }
 0x802   :  { %15440 = vmatpush1.bf16.msra.mxu1 %v18762_v27  ;;  %15400 = vmatprep.subr.bf16.mxu0 %v18643_v41  ;;  %v12700_v27 = vld [vmem:[#allocation11 + $0xe60] sm:$0xff]  ;;  %v18364_v41 = vcombine.low %v20073_v11, %v20075_v7 }
 0x803   :  { %15441 = vmatprep.subr.bf16.mxu1 %v18771_v16  ;;  %v18492_v16 = vcombine.low %v20077_v3, %v20079_v9  ;;  %v18819_v52 = vcombine.high %v12696_v0, %v12700_v27  ;;  %v18818_v12 = vcombine.low %v12696_v0, %v12700_v27 }
 0x805   :  { %15401 = vmatpush1.bf16.msra.mxu0 %v18642_v19  ;;  %v12576_v19 = vld [vmem:[#allocation11 + $0xa80] sm:$0xff] }
 0x806   :  { %15442 = vmatpush1.bf16.msra.mxu1 %v18770_v44  ;;  %15402 = vmatprep.subr.bf16.mxu0 %v18651_v40  ;;  %v12580_v44 = vld [vmem:[#allocation11 + $0xaa0] sm:$0xff] }
 0x807   :  { %15443 = vmatprep.subr.bf16.mxu1 %v18779_v29  ;;  %v12704_v40 = vld [vmem:[#allocation11 + $0xe80] sm:$0xff]  ;;  %v18699_v54 = vcombine.high %v12576_v19, %v12580_v44  ;;  %v18698_v45 = vcombine.low %v12576_v19, %v12580_v44 }
 0x808   :  { %v12708_v29 = vld [vmem:[#allocation11 + $0xea0] sm:$0xff] }
 0x809   :  { %15403 = vmatpush1.bf16.msra.mxu0 %v18650_v53  ;;  %v18827_v37 = vcombine.high %v12704_v40, %v12708_v29  ;;  %v12584_v53 = vld [vmem:[#allocation11 + $0xac0] sm:$0xff]  ;;  %v18826_v1 = vcombine.low %v12704_v40, %v12708_v29 }
 0x80a   :  { %15444 = vmatpush1.bf16.msra.mxu1 %v18778_v34  ;;  %15404 = vmatprep.subr.bf16.mxu0 %v18659_v5  ;;  %v12588_v34 = vld [vmem:[#allocation11 + $0xae0] sm:$0xff] }
 0x80b   :  { %15445 = vmatprep.subr.bf16.mxu1 %v18787_v20  ;;  %v12712_v5 = vld [vmem:[#allocation11 + $0xec0] sm:$0xff]  ;;  %v18707_v48 = vcombine.high %v12584_v53, %v12588_v34  ;;  %v18706_v51 = vcombine.low %v12584_v53, %v12588_v34 }
 0x80c   :  { %v12716_v20 = vld [vmem:[#allocation11 + $0xee0] sm:$0xff] }
 0x80d   :  { %15405 = vmatpush1.bf16.msra.mxu0 %v18658_v61  ;;  %v18835_v49 = vcombine.high %v12712_v5, %v12716_v20  ;;  %v12592_v61 = vld [vmem:[#allocation11 + $0xb00] sm:$0xff]  ;;  %v18834_v42 = vcombine.low %v12712_v5, %v12716_v20  ;;  %v19246_v5 = vld [vmem:[#allocation14 + $0x30] sm:$0xff] }
 0x80e   :  { %15446 = vmatpush1.bf16.msra.mxu1 %v18786_v32  ;;  %15406 = vmatprep.subr.bf16.mxu0 %v18667_v25  ;;  %v12596_v32 = vld [vmem:[#allocation11 + $0xb20] sm:$0xff]  ;;  %v9003_v20 = vrot.slane %v19246_v5, %v20049_v28  ;;  %v12405_v5 = vld [vmem:[#allocation11 + $0x528] sm:$0xff] }
 0x80f   :  { %15447 = vmatprep.subr.bf16.mxu1 %v18795_v57  ;;  %v12720_v25 = vld [vmem:[#allocation11 + $0xf00] sm:$0xff]  ;;  %v18715_v4 = vcombine.high %v12592_v61, %v12596_v32  ;;  %v18714_v8 = vcombine.low %v12592_v61, %v12596_v32 }
 0x810   :  { %v12724_v57 = vld [vmem:[#allocation11 + $0xf20] sm:$0xff] }
 0x811   :  { %15407 = vmatpush1.bf16.msra.mxu0 %v18666_v13  ;;  %v18843_v59 = vcombine.high %v12720_v25, %v12724_v57  ;;  %v12600_v13 = vld [vmem:[#allocation11 + $0xb40] sm:$0xff]  ;;  %v18842_v30 = vcombine.low %v12720_v25, %v12724_v57 }
 0x812   :  { %15448 = vmatpush1.bf16.msra.mxu1 %v18794_v33  ;;  %15408 = vmatprep.subr.bf16.mxu0 %v18675_v26  ;;  %v12604_v33 = vld [vmem:[#allocation11 + $0xb60] sm:$0xff] }
 0x813   :  { %15449 = vmatprep.subr.bf16.mxu1 %v18803_v38  ;;  %v12728_v26 = vld [vmem:[#allocation11 + $0xf40] sm:$0xff]  ;;  %v18723_v47 = vcombine.high %v12600_v13, %v12604_v33  ;;  %v18722_v15 = vcombine.low %v12600_v13, %v12604_v33 }
 0x814   :  { %v12732_v38 = vld [vmem:[#allocation11 + $0xf60] sm:$0xff] }
 0x815   :  { %15409 = vmatpush1.bf16.msra.mxu0 %v18674_v24  ;;  %v18851_v6 = vcombine.high %v12728_v26, %v12732_v38  ;;  %v12608_v24 = vld [vmem:[#allocation11 + $0xb80] sm:$0xff]  ;;  %v18850_v35 = vcombine.low %v12728_v26, %v12732_v38 }
 0x816   :  { %15450 = vmatpush1.bf16.msra.mxu1 %v18802_v17  ;;  %15410 = vmatprep.subr.bf16.mxu0 %v18683_v43  ;;  %v12612_v17 = vld [vmem:[#allocation11 + $0xba0] sm:$0xff] }
 0x817   :  { %15451 = vmatprep.subr.bf16.mxu1 %v18811_v14  ;;  %v12736_v43 = vld [vmem:[#allocation11 + $0xf80] sm:$0xff]  ;;  %v18731_v0 = vcombine.high %v12608_v24, %v12612_v17  ;;  %v18730_v19 = vcombine.low %v12608_v24, %v12612_v17  ;;  %v12249_v24 = vld [vmem:[#allocation11 + $0x48] sm:$0xff] }
 0x818   :  { %v12740_v14 = vld [vmem:[#allocation11 + $0xfa0] sm:$0xff]  ;;  %v12253_v17 = vld [vmem:[#allocation11 + $0x68] sm:$0xff] }
 0x819   :  { %15411 = vmatpush1.bf16.msra.mxu0 %v18682_v46  ;;  %v18859_v27 = vcombine.high %v12736_v43, %v12740_v14  ;;  %v12616_v46 = vld [vmem:[#allocation11 + $0xbc0] sm:$0xff]  ;;  %v18858_v44 = vcombine.low %v12736_v43, %v12740_v14  ;;  %v12381_v14 = vld [vmem:[#allocation11 + $0x468] sm:$0xff] }
 0x81a   :  { %15452 = vmatpush1.bf16.msra.mxu1 %v18810_v18  ;;  %15412 = vmatprep.subr.bf16.mxu0 %v18691_v60  ;;  %v12620_v18 = vld [vmem:[#allocation11 + $0xbe0] sm:$0xff] }
 0x81b   :  { %15453 = vmatprep.subr.bf16.mxu1 %v18819_v52  ;;  %v12744_v60 = vld [vmem:[#allocation11 + $0xfc0] sm:$0xff]  ;;  %v18739_v40 = vcombine.high %v12616_v46, %v12620_v18 }
 0x81c   :  { %v12748_v52 = vld [vmem:[#allocation11 + $0xfe0] sm:$0xff] }
 0x81d   :  { %15413 = vmatpush1.bf16.msra.mxu0 %v18690_v36  ;;  %v18867_v29 = vcombine.high %v12744_v60, %v12748_v52  ;;  %v18738_v36 = vcombine.low %v12616_v46, %v12620_v18  ;;  %v19245_v53 = vld [vmem:[#allocation14 + $0x20] sm:$0xff]  ;;  %v12257_v46 = vld [vmem:[#allocation11 + $0x88] sm:$0xff] }
 0x81e   :  { %15454 = vmatpush1.bf16.msra.mxu1 %v18818_v12  ;;  %15414 = vmatprep.subr.bf16.mxu0 %v18699_v54  ;;  %v18866_v12 = vcombine.low %v12744_v60, %v12748_v52  ;;  %v18365_v54 = vcombine.high %v20073_v11, %v20075_v7  ;;  %v8995_v34 = vrot.slane %v19245_v53, %v20049_v28  ;;  %v12261_v18 = vld [vmem:[#allocation11 + $0xa8] sm:$0xff] }
 0x81f   :  { %15455 = vmatprep.subr.bf16.mxu1 %v18827_v37  ;;  %v18493_v37 = vcombine.high %v20077_v3, %v20079_v9  ;;  %v12385_v52 = vld [vmem:[#allocation11 + $0x488] sm:$0xff]  ;;  %v18380_v11 = vcombine.low %v12257_v46, %v12261_v18 }
 0x820   :  { %v12397_v53 = vld [vmem:[#allocation11 + $0x4e8] sm:$0xff] }
 0x821   :  { %15415 = vmatpush1.bf16.msra.mxu0 %v18698_v45  ;;  %v19247_v45 = vld [vmem:[#allocation14 + $0x28] sm:$0xff] }
 0x822   :  { %15456 = vmatpush1.bf16.msra.mxu1 %v18826_v1  ;;  %15416 = vmatprep.subr.bf16.mxu0 %v18707_v48  ;;  %v8999_v1 = vrot.slane %v19247_v45, %v20049_v28  ;;  %v19248_v48 = vld [vmem:[#allocation14 + $0x38] sm:$0xff] }
 0x823   :  { %15457 = vmatprep.subr.bf16.mxu1 %v18835_v49  ;;  %v9007_v49 = vrot.slane %v19248_v48, %v20049_v28  ;;  %v12377_v28 = vld [vmem:[#allocation11 + $0x448] sm:$0xff] }
 0x824   :  { %v18501_v60 = vcombine.high %v12377_v28, %v12381_v14 }
 0x825   :  { %15417 = vmatpush1.bf16.msra.mxu0 %v18706_v51 }
 0x826   :  { %15458 = vmatpush1.bf16.msra.mxu1 %v18834_v42  ;;  %15418 = vmatprep.subr.bf16.mxu0 %v18715_v4 }
 0x827   :  { %15459 = vmatprep.subr.bf16.mxu1 %v18843_v59 }
 0x829   :  { %15419 = vmatpush1.bf16.msra.mxu0 %v18714_v8 }
 0x82a   :  { %15460 = vmatpush1.bf16.msra.mxu1 %v18842_v30  ;;  %15420 = vmatprep.subr.bf16.mxu0 %v18723_v47 }
 0x82b   :  { %15461 = vmatprep.subr.bf16.mxu1 %v18851_v6 }
 0x82d   :  { %15421 = vmatpush1.bf16.msra.mxu0 %v18722_v15 }
 0x82e   :  { %15462 = vmatpush1.bf16.msra.mxu1 %v18850_v35  ;;  %15422 = vmatprep.subr.bf16.mxu0 %v18731_v0 }
 0x82f   :  { %15463 = vmatprep.subr.bf16.mxu1 %v18859_v27  ;;  %v18373_v27 = vcombine.high %v12249_v24, %v12253_v17 }
 0x831   :  { %15423 = vmatpush1.bf16.msra.mxu0 %v18730_v19  ;;  %v12389_v19 = vld [vmem:[#allocation11 + $0x4a8] sm:$0xff] }
 0x832   :  { %15464 = vmatpush1.bf16.msra.mxu1 %v18858_v44  ;;  %15424 = vmatprep.subr.bf16.mxu0 %v18739_v40  ;;  %v18372_v44 = vcombine.low %v12249_v24, %v12253_v17  ;;  %v18500_v40 = vcombine.low %v12377_v28, %v12381_v14  ;;  %v18508_v7 = vcombine.low %v12385_v52, %v12389_v19  ;;  %v12301_v24 = vld [vmem:[#allocation11 + $0x1e8] sm:$0xff] }
 0x833   :  { %15465 = vmatprep.subr.bf16.mxu1 %v18867_v29  ;;  %v18381_v29 = vcombine.high %v12257_v46, %v12261_v18  ;;  %v12425_v17 = vld [vmem:[#allocation11 + $0x5c8] sm:$0xff] }
 0x834   :  { %v12429_v28 = vld [vmem:[#allocation11 + $0x5e8] sm:$0xff] }
 0x835   :  { %15425 = vmatpush1.bf16.msra.mxu0 %v18738_v36  ;;  %v18509_v36 = vcombine.high %v12385_v52, %v12389_v19  ;;  %v18549_v18 = vcombine.high %v12425_v17, %v12429_v28  ;;  %v12309_v52 = vld [vmem:[#allocation11 + $0x228] sm:$0xff] }
 0x836   :  { %15466 = vmatpush1.bf16.msra.mxu1 %v18866_v12  ;;  %15476 = vmatprep.subr.bf16.mxu0 %v18365_v54  ;;  %v12265_v12 = vld [vmem:[#allocation11 + $0xc8] sm:$0xff] }
 0x837   :  { %15517 = vmatprep.subr.bf16.mxu1 %v18493_v37  ;;  %v12269_v54 = vld [vmem:[#allocation11 + $0xe8] sm:$0xff] }
 0x838   :  { %v12393_v37 = vld [vmem:[#allocation11 + $0x4c8] sm:$0xff]  ;;  %v18389_v3 = vcombine.high %v12265_v12, %v12269_v54 }
 0x839   :  { %v18517_v9 = vcombine.high %v12393_v37, %v12397_v53  ;;  %v18516_v45 = vcombine.low %v12393_v37, %v12397_v53  ;;  %v12433_v19 = vld [vmem:[#allocation11 + $0x608] sm:$0xff] }
 0x83a   :  { %v12317_v37 = vld [vmem:[#allocation11 + $0x268] sm:$0xff] }
 0x83b   :  { %v12441_v53 = vld [vmem:[#allocation11 + $0x648] sm:$0xff] }
 0x88b   :  { %v12053_v61 = vpop.f32.mrb[52].mxu0 }
 0x88c   :  { %v19038_v32 = vadd.f32 %v12053_v61, %v8995_v34  ;;  %v12217_v25 = vpop.f32.mrb[52].mxu1  ;;  %v12055_v57 = vpop.f32.mrb[53].mxu0  ;;  %v12401_v34 = vld [vmem:[#allocation11 + $0x508] sm:$0xff] }
 0x88d   :  { %v19040_v51 = vadd.f32 %v12217_v25, %v9003_v20  ;;  %v19039_v42 = vadd.f32 %v12055_v57, %v8999_v1  ;;  %v12219_v4 = vpop.f32.mrb[53].mxu1  ;;  %v12057_v59 = vpop.f32.mrb[54].mxu0  ;;  %v18388_v20 = vcombine.low %v12265_v12, %v12269_v54  ;;  %v18525_v48 = vcombine.high %v12401_v34, %v12405_v5  ;;  %v12285_v61 = vld [vmem:[#allocation11 + $0x168] sm:$0xff] }
 0x88e   :  { %v12228_v13 = vmax.f32 %v19038_v32, 0.0  ;;  %v19041_v33 = vadd.f32 %v12219_v4, %v9007_v49  ;;  %v12221_v26 = vpop.f32.mrb[54].mxu1  ;;  %v12058_v38 = vpop.f32.mrb[55].mxu0  ;;  %v12281_v49 = vld [vmem:[#allocation11 + $0x148] sm:$0xff] }
 0x88f   :  { %v12230_v8 = vmax.f32 %v19040_v51, 0.0  ;;  %v12229_v30 = vmax.f32 %v19039_v42, 0.0  ;;  %v12222_v47 = vpop.f32.mrb[55].mxu1  ;;  %v12409_v32 = vld [vmem:[#allocation11 + $0x548] sm:$0xff]  ;;  %v18524_v51 = vcombine.low %v12401_v34, %v12405_v5  ;;  %v18405_v42 = vcombine.high %v12281_v49, %v12285_v61 }
 0x890   :  { %v12231_v6 = vmax.f32 %v19041_v33, 0.0  ;;  %v20095_v15 = vpack.c.bf16 %v12228_v13, %v12228_v13  ;;  %v12413_v25 = vld [vmem:[#allocation11 + $0x568] sm:$0xff]  ;;  %v18404_v38 = vcombine.low %v12281_v49, %v12285_v61 }
 0x891   :  { %v20093_v43 = vpack.c.bf16 %v12229_v30, %v12229_v30  ;;  %v20099_v0 = vpack.c.bf16 %v12230_v8, %v12230_v8  ;;  %v18533_v4 = vcombine.high %v12409_v32, %v12413_v25  ;;  %v12289_v59 = vld [vmem:[#allocation11 + $0x188] sm:$0xff]  ;;  %v18532_v8 = vcombine.low %v12409_v32, %v12413_v25 }
 0x892   :  { %v20097_v35 = vpack.c.bf16 %v12231_v6, %v12231_v6  ;;  %v12293_v13 = vld [vmem:[#allocation11 + $0x1a8] sm:$0xff] }
 0x893   :  { %15426 = vmatprep.mubr.bf16.mxu0 %v20093_v43  ;;  %v12417_v33 = vld [vmem:[#allocation11 + $0x588] sm:$0xff]  ;;  %v18413_v30 = vcombine.high %v12289_v59, %v12293_v13  ;;  %v18412_v14 = vcombine.low %v12289_v59, %v12293_v13 }
 0x894   :  { %15467 = vmatprep.mubr.bf16.mxu1 %v20097_v35  ;;  %15427 = vmatmul.mubr.bf16.vlgmr.msra.gmra.mrb[60].mxu0 %v20095_v15  ;;  %v12421_v26 = vld [vmem:[#allocation11 + $0x5a8] sm:$0xff] }
 0x895   :  { %15468 = vmatmul.mubr.bf16.vlgmr.msra.gmra.mrb[60].mxu1 %v20099_v0  ;;  %15477 = vmatpush1.bf16.msra.mxu0 %v18364_v41  ;;  %v12273_v41 = vld [vmem:[#allocation11 + $0x108] sm:$0xff]  ;;  %v18541_v47 = vcombine.high %v12417_v33, %v12421_v26 }
 0x896   :  { %15518 = vmatpush1.bf16.msra.mxu1 %v18492_v16  ;;  %15508 = vmatprep.mubr.bf16.mxu0 %v20055_v31  ;;  %v12277_v16 = vld [vmem:[#allocation11 + $0x128] sm:$0xff] }
 0x897   :  { %15549 = vmatprep.mubr.bf16.mxu1 %v20058_v22  ;;  %15478 = vmatprep.subr.bf16.mxu0 %v18373_v27  ;;  %v18397_v1 = vcombine.high %v12273_v41, %v12277_v16  ;;  %v18396_v57 = vcombine.low %v12273_v41, %v12277_v16  ;;  %v12297_v6 = vld [vmem:[#allocation11 + $0x1c8] sm:$0xff]  ;;  %v18540_v27 = vcombine.low %v12417_v33, %v12421_v26 }
 0x898   :  { %15519 = vmatprep.subr.bf16.mxu1 %v18501_v60  ;;  %v18421_v46 = vcombine.high %v12297_v6, %v12301_v24  ;;  %v12305_v60 = vld [vmem:[#allocation11 + $0x208] sm:$0xff] }
 0x899   :  { %15479 = vmatpush1.bf16.msra.mxu0 %v18372_v44  ;;  %v12437_v44 = vld [vmem:[#allocation11 + $0x628] sm:$0xff] }
 0x89a   :  { %15520 = vmatpush1.bf16.msra.mxu1 %v18500_v40  ;;  %15480 = vmatprep.subr.bf16.mxu0 %v18381_v29  ;;  %v18420_v40 = vcombine.low %v12297_v6, %v12301_v24  ;;  %v18548_v29 = vcombine.low %v12425_v17, %v12429_v28  ;;  %v18557_v12 = vcombine.high %v12433_v19, %v12437_v44  ;;  %v12313_v54 = vld [vmem:[#allocation11 + $0x248] sm:$0xff] }
 0x89b   :  { %15521 = vmatprep.subr.bf16.mxu1 %v18509_v36  ;;  %v18429_v36 = vcombine.high %v12305_v60, %v12309_v52  ;;  %v12321_v16 = vld [vmem:[#allocation11 + $0x288] sm:$0xff] }
 0x89c   :  { %v12325_v34 = vld [vmem:[#allocation11 + $0x2a8] sm:$0xff] }
 0x89d   :  { %15481 = vmatpush1.bf16.msra.mxu0 %v18380_v11  ;;  %v12445_v11 = vld [vmem:[#allocation11 + $0x668] sm:$0xff] }
 0x89e   :  { %15522 = vmatpush1.bf16.msra.mxu1 %v18508_v7  ;;  %15482 = vmatprep.subr.bf16.mxu0 %v18389_v3  ;;  %v18428_v7 = vcombine.low %v12305_v60, %v12309_v52  ;;  %v18556_v3 = vcombine.low %v12433_v19, %v12437_v44  ;;  %v18565_v41 = vcombine.high %v12441_v53, %v12445_v11  ;;  %v12449_v5 = vld [vmem:[#allocation11 + $0x688] sm:$0xff] }
 0x89f   :  { %15523 = vmatprep.subr.bf16.mxu1 %v18517_v9  ;;  %v18437_v9 = vcombine.high %v12313_v54, %v12317_v37  ;;  %v12329_v61 = vld [vmem:[#allocation11 + $0x2c8] sm:$0xff] }
 0x8a0   :  { %v12333_v32 = vld [vmem:[#allocation11 + $0x2e8] sm:$0xff] }
 0x8a1   :  { %15483 = vmatpush1.bf16.msra.mxu0 %v18388_v20  ;;  %v12453_v20 = vld [vmem:[#allocation11 + $0x6a8] sm:$0xff] }
 0x8a2   :  { %15524 = vmatpush1.bf16.msra.mxu1 %v18516_v45  ;;  %15484 = vmatprep.subr.bf16.mxu0 %v18397_v1  ;;  %v18436_v45 = vcombine.low %v12313_v54, %v12317_v37  ;;  %v18564_v1 = vcombine.low %v12441_v53, %v12445_v11  ;;  %v18573_v49 = vcombine.high %v12449_v5, %v12453_v20  ;;  %v12457_v25 = vld [vmem:[#allocation11 + $0x6c8] sm:$0xff] }
 0x8a3   :  { %15525 = vmatprep.subr.bf16.mxu1 %v18525_v48  ;;  %v18445_v48 = vcombine.high %v12321_v16, %v12325_v34  ;;  %v12337_v13 = vld [vmem:[#allocation11 + $0x308] sm:$0xff] }
 0x8a4   :  { %v12341_v33 = vld [vmem:[#allocation11 + $0x328] sm:$0xff] }
 0x8a5   :  { %15485 = vmatpush1.bf16.msra.mxu0 %v18396_v57  ;;  %v12461_v57 = vld [vmem:[#allocation11 + $0x6e8] sm:$0xff] }
 0x8a6   :  { %15526 = vmatpush1.bf16.msra.mxu1 %v18524_v51  ;;  %15486 = vmatprep.subr.bf16.mxu0 %v18405_v42  ;;  %v18444_v51 = vcombine.low %v12321_v16, %v12325_v34  ;;  %v18572_v42 = vcombine.low %v12449_v5, %v12453_v20  ;;  %v18581_v59 = vcombine.high %v12457_v25, %v12461_v57  ;;  %v12465_v26 = vld [vmem:[#allocation11 + $0x708] sm:$0xff] }
 0x8a7   :  { %15527 = vmatprep.subr.bf16.mxu1 %v18533_v4  ;;  %v18453_v4 = vcombine.high %v12329_v61, %v12333_v32  ;;  %v12345_v24 = vld [vmem:[#allocation11 + $0x348] sm:$0xff] }
 0x8a8   :  { %v12349_v17 = vld [vmem:[#allocation11 + $0x368] sm:$0xff] }
 0x8a9   :  { %15487 = vmatpush1.bf16.msra.mxu0 %v18404_v38  ;;  %v12469_v38 = vld [vmem:[#allocation11 + $0x728] sm:$0xff] }
 0x8aa   :  { %15528 = vmatpush1.bf16.msra.mxu1 %v18532_v8  ;;  %15488 = vmatprep.subr.bf16.mxu0 %v18413_v30  ;;  %v18452_v8 = vcombine.low %v12329_v61, %v12333_v32  ;;  %v18580_v30 = vcombine.low %v12457_v25, %v12461_v57  ;;  %v18589_v6 = vcombine.high %v12465_v26, %v12469_v38  ;;  %v12473_v28 = vld [vmem:[#allocation11 + $0x748] sm:$0xff] }
 0x8ab   :  { %15529 = vmatprep.subr.bf16.mxu1 %v18541_v47  ;;  %v18461_v47 = vcombine.high %v12337_v13, %v12341_v33  ;;  %v12353_v52 = vld [vmem:[#allocation11 + $0x388] sm:$0xff] }
 0x8ac   :  { %v12357_v19 = vld [vmem:[#allocation11 + $0x3a8] sm:$0xff] }
 0x8ad   :  { %15489 = vmatpush1.bf16.msra.mxu0 %v18412_v14  ;;  %v12477_v14 = vld [vmem:[#allocation11 + $0x768] sm:$0xff] }
 0x8ae   :  { %15530 = vmatpush1.bf16.msra.mxu1 %v18540_v27  ;;  %15490 = vmatprep.subr.bf16.mxu0 %v18421_v46  ;;  %v18460_v27 = vcombine.low %v12337_v13, %v12341_v33  ;;  %v18588_v46 = vcombine.low %v12465_v26, %v12469_v38  ;;  %v18597_v60 = vcombine.high %v12473_v28, %v12477_v14  ;;  %v12481_v44 = vld [vmem:[#allocation11 + $0x788] sm:$0xff] }
 0x8af   :  { %15531 = vmatprep.subr.bf16.mxu1 %v18549_v18  ;;  %v18469_v18 = vcombine.high %v12345_v24, %v12349_v17  ;;  %v12361_v37 = vld [vmem:[#allocation11 + $0x3c8] sm:$0xff] }
 0x8b0   :  { %v12365_v53 = vld [vmem:[#allocation11 + $0x3e8] sm:$0xff] }
 0x8b1   :  { %15491 = vmatpush1.bf16.msra.mxu0 %v18420_v40  ;;  %v12485_v40 = vld [vmem:[#allocation11 + $0x7a8] sm:$0xff]  ;;  %v18484_v57 = vcombine.low %v12361_v37, %v12365_v53 }
 0x8b2   :  { %15532 = vmatpush1.bf16.msra.mxu1 %v18548_v29  ;;  %15492 = vmatprep.subr.bf16.mxu0 %v18429_v36  ;;  %v18468_v29 = vcombine.low %v12345_v24, %v12349_v17  ;;  %v18596_v36 = vcombine.low %v12473_v28, %v12477_v14  ;;  %v18605_v54 = vcombine.high %v12481_v44, %v12485_v40  ;;  %v12489_v11 = vld [vmem:[#allocation11 + $0x7c8] sm:$0xff] }
 0x8b3   :  { %15533 = vmatprep.subr.bf16.mxu1 %v18557_v12  ;;  %v18477_v12 = vcombine.high %v12353_v52, %v12357_v19  ;;  %v12497_v5 = vld [vmem:[#allocation11 + $0x808] sm:$0xff] }
 0x8b4   :  { %v12501_v20 = vld [vmem:[#allocation11 + $0x828] sm:$0xff] }
 0x8b5   :  { %15493 = vmatpush1.bf16.msra.mxu0 %v18428_v7  ;;  %v12493_v7 = vld [vmem:[#allocation11 + $0x7e8] sm:$0xff]  ;;  %v18621_v13 = vcombine.high %v12497_v5, %v12501_v20 }
 0x8b6   :  { %15534 = vmatpush1.bf16.msra.mxu1 %v18556_v3  ;;  %15494 = vmatprep.subr.bf16.mxu0 %v18437_v9  ;;  %v18476_v3 = vcombine.low %v12353_v52, %v12357_v19  ;;  %v18604_v9 = vcombine.low %v12481_v44, %v12485_v40  ;;  %v18613_v34 = vcombine.high %v12489_v11, %v12493_v7  ;;  %v12505_v38 = vld [vmem:[#allocation11 + $0x848] sm:$0xff] }
 0x8b7   :  { %15535 = vmatprep.subr.bf16.mxu1 %v18565_v41  ;;  %v18485_v41 = vcombine.high %v12361_v37, %v12365_v53  ;;  %v12513_v28 = vld [vmem:[#allocation11 + $0x888] sm:$0xff] }
 0x8b8   :  { %v12517_v14 = vld [vmem:[#allocation11 + $0x8a8] sm:$0xff] }
 0x8b9   :  { %15495 = vmatpush1.bf16.msra.mxu0 %v18436_v45  ;;  %v18637_v19 = vcombine.high %v12513_v28, %v12517_v14  ;;  %v12521_v40 = vld [vmem:[#allocation11 + $0x8c8] sm:$0xff] }
 0x8ba   :  { %15536 = vmatpush1.bf16.msra.mxu1 %v18564_v1  ;;  %15496 = vmatprep.subr.bf16.mxu0 %v18445_v48  ;;  %v12625_v48 = vld [vmem:[#allocation11 + $0xc08] sm:$0xff] }
 0x8bb   :  { %15537 = vmatprep.subr.bf16.mxu1 %v18573_v49  ;;  %v12629_v49 = vld [vmem:[#allocation11 + $0xc28] sm:$0xff] }
 0x8bc   :  { %v18749_v26 = vcombine.high %v12625_v48, %v12629_v49  ;;  %v18748_v24 = vcombine.low %v12625_v48, %v12629_v49  ;;  %v12665_v48 = vld [vmem:[#allocation11 + $0xd48] sm:$0xff] }
 0x8bd   :  { %15497 = vmatpush1.bf16.msra.mxu0 %v18444_v51  ;;  %v12669_v49 = vld [vmem:[#allocation11 + $0xd68] sm:$0xff] }
 0x8be   :  { %15538 = vmatpush1.bf16.msra.mxu1 %v18572_v42  ;;  %15498 = vmatprep.subr.bf16.mxu0 %v18453_v4 }
 0x8bf   :  { %15539 = vmatprep.subr.bf16.mxu1 %v18581_v59  ;;  %v18612_v59 = vcombine.low %v12489_v11, %v12493_v7  ;;  %v12529_v7 = vld [vmem:[#allocation11 + $0x908] sm:$0xff] }
 0x8c1   :  { %15499 = vmatpush1.bf16.msra.mxu0 %v18452_v8  ;;  %v12509_v8 = vld [vmem:[#allocation11 + $0x868] sm:$0xff] }
 0x8c2   :  { %15540 = vmatpush1.bf16.msra.mxu1 %v18580_v30  ;;  %15500 = vmatprep.subr.bf16.mxu0 %v18461_v47  ;;  %v18620_v30 = vcombine.low %v12497_v5, %v12501_v20  ;;  %v12633_v47 = vld [vmem:[#allocation11 + $0xc48] sm:$0xff]  ;;  %v18629_v17 = vcombine.high %v12505_v38, %v12509_v8 }
 0x8c3   :  { %15541 = vmatprep.subr.bf16.mxu1 %v18589_v6  ;;  %v12637_v6 = vld [vmem:[#allocation11 + $0xc68] sm:$0xff] }
 0x8c4   :  { %v18756_v52 = vcombine.low %v12633_v47, %v12637_v6 }
 0x8c5   :  { %15501 = vmatpush1.bf16.msra.mxu0 %v18460_v27  ;;  %v18757_v27 = vcombine.high %v12633_v47, %v12637_v6  ;;  %v12553_v47 = vld [vmem:[#allocation11 + $0x9c8] sm:$0xff] }
 0x8c6   :  { %15542 = vmatpush1.bf16.msra.mxu1 %v18588_v46  ;;  %15502 = vmatprep.subr.bf16.mxu0 %v18469_v18  ;;  %v12641_v46 = vld [vmem:[#allocation11 + $0xc88] sm:$0xff] }
 0x8c7   :  { %15543 = vmatprep.subr.bf16.mxu1 %v18597_v60  ;;  %v12645_v18 = vld [vmem:[#allocation11 + $0xca8] sm:$0xff]  ;;  %v18628_v60 = vcombine.low %v12505_v38, %v12509_v8  ;;  %v18788_v38 = vcombine.low %v12665_v48, %v12669_v49 }
 0x8c8   :  { %v18765_v44 = vcombine.high %v12641_v46, %v12645_v18  ;;  %v18764_v37 = vcombine.low %v12641_v46, %v12645_v18  ;;  %v12557_v6 = vld [vmem:[#allocation11 + $0x9e8] sm:$0xff] }
 0x8c9   :  { %15503 = vmatpush1.bf16.msra.mxu0 %v18468_v29  ;;  %v12525_v29 = vld [vmem:[#allocation11 + $0x8e8] sm:$0xff] }
 0x8ca   :  { %15544 = vmatpush1.bf16.msra.mxu1 %v18596_v36  ;;  %15504 = vmatprep.subr.bf16.mxu0 %v18477_v12  ;;  %v12649_v36 = vld [vmem:[#allocation11 + $0xcc8] sm:$0xff]  ;;  %v18645_v53 = vcombine.high %v12521_v40, %v12525_v29 }
 0x8cb   :  { %v15346_v16 = vpop.f32.mrb[56].mxu0  ;;  %15545 = vmatprep.subr.bf16.mxu1 %v18605_v54  ;;  %v12653_v12 = vld [vmem:[#allocation11 + $0xce8] sm:$0xff]  ;;  %v18636_v54 = vcombine.low %v12513_v28, %v12517_v14 }
 0x8cc   :  { %v15387_v45 = vpop.f32.mrb[56].mxu1  ;;  %v15348_v1 = vpop.f32.mrb[57].mxu0  ;;  %v18773_v11 = vcombine.high %v12649_v36, %v12653_v12  ;;  %v12561_v18 = vld [vmem:[#allocation11 + $0xa08] sm:$0xff] }
 0x8cd   :  { %v20113_v61 = vadd.f32 %v15387_v45, %v15346_v16  ;;  %v15389_v32 = vpop.f32.mrb[57].mxu1  ;;  %15505 = vmatpush1.bf16.msra.mxu0 %v18476_v3  ;;  %v15350_v25 = vpop.f32.mrb[58].mxu0  ;;  %v12533_v3 = vld [vmem:[#allocation11 + $0x928] sm:$0xff]  ;;  %v18644_v16 = vcombine.low %v12521_v40, %v12525_v29 }
 0x8ce   :  { %v20115_v51 = vadd.f32 %v15389_v32, %v15348_v1  ;;  %15546 = vmatpush1.bf16.msra.mxu1 %v18604_v9  ;;  %v15391_v42 = vpop.f32.mrb[58].mxu1  ;;  %v15351_v4 = vpop.f32.mrb[59].mxu0  ;;  %15506 = vmatprep.subr.bf16.mxu0 %v18485_v41  ;;  %v12657_v9 = vld [vmem:[#allocation11 + $0xd08] sm:$0xff]  ;;  %v18653_v5 = vcombine.high %v12529_v7, %v12533_v3  ;;  %v18652_v32 = vcombine.low %v12529_v7, %v12533_v3 }
 0x8cf   :  { %v15392_v33 = vpop.f32.mrb[59].mxu1  ;;  %15547 = vmatprep.subr.bf16.mxu1 %v18613_v34  ;;  %v12661_v41 = vld [vmem:[#allocation11 + $0xd28] sm:$0xff]  ;;  %v18772_v34 = vcombine.low %v12649_v36, %v12653_v12  ;;  %v18789_v42 = vcombine.high %v12665_v48, %v12669_v49 }
 0x8d0   :  { %v18781_v20 = vcombine.high %v12657_v9, %v12661_v41  ;;  %v12537_v45 = vld [vmem:[#allocation11 + $0x948] sm:$0xff]  ;;  %v18780_v25 = vcombine.low %v12657_v9, %v12661_v41 }
 0x8d1   :  { %15507 = vmatpush1.bf16.msra.mxu0 %v18484_v57  ;;  %v12541_v1 = vld [vmem:[#allocation11 + $0x968] sm:$0xff] }
 0x8d2   :  { %15548 = vmatpush1.bf16.msra.mxu1 %v18612_v59  ;;  %15558 = vmatprep.subr.bf16.mxu0 %v18621_v13  ;;  %v18661_v57 = vcombine.high %v12537_v45, %v12541_v1  ;;  %v12545_v4 = vld [vmem:[#allocation11 + $0x988] sm:$0xff] }
 0x8d3   :  { %15599 = vmatprep.subr.bf16.mxu1 %v18749_v26  ;;  %v12549_v59 = vld [vmem:[#allocation11 + $0x9a8] sm:$0xff]  ;;  %v18660_v26 = vcombine.low %v12537_v45, %v12541_v1 }
 0x8d4   :  { %15509 = vmatmul.mubr.bf16.vlgmr.msra.gmra.mrb[64].mxu0 %v20067_v39  ;;  %v12673_v13 = vld [vmem:[#allocation11 + $0xd88] sm:$0xff]  ;;  %v18669_v8 = vcombine.high %v12545_v4, %v12549_v59  ;;  %v18668_v28 = vcombine.low %v12545_v4, %v12549_v59 }
 0x8d5   :  { %15550 = vmatmul.mubr.bf16.vlgmr.msra.gmra.mrb[64].mxu1 %v20069_v62  ;;  %15559 = vmatpush1.bf16.msra.mxu0 %v18620_v30  ;;  %v12677_v33 = vld [vmem:[#allocation11 + $0xda8] sm:$0xff] }
 0x8d6   :  { %15590 = vmatprep.mubr.bf16.mxu0 %v20093_v43  ;;  %15600 = vmatpush1.bf16.msra.mxu1 %v18748_v24  ;;  %v18797_v30 = vcombine.high %v12673_v13, %v12677_v33  ;;  %v12681_v24 = vld [vmem:[#allocation11 + $0xdc8] sm:$0xff]  ;;  %v18796_v14 = vcombine.low %v12673_v13, %v12677_v33 }
 0x8d7   :  { %15631 = vmatprep.mubr.bf16.mxu1 %v20097_v35  ;;  %15560 = vmatprep.subr.bf16.mxu0 %v18629_v17  ;;  %v12685_v17 = vld [vmem:[#allocation11 + $0xde8] sm:$0xff] }
 0x8d8   :  { %15601 = vmatprep.subr.bf16.mxu1 %v18757_v27  ;;  %v18677_v27 = vcombine.high %v12553_v47, %v12557_v6  ;;  %v18805_v46 = vcombine.high %v12681_v24, %v12685_v17  ;;  %v18804_v40 = vcombine.low %v12681_v24, %v12685_v17  ;;  %v12569_v12 = vld [vmem:[#allocation11 + $0xa48] sm:$0xff] }
 0x8d9   :  { %15561 = vmatpush1.bf16.msra.mxu0 %v18628_v60  ;;  %v12565_v60 = vld [vmem:[#allocation11 + $0xa28] sm:$0xff] }
 0x8da   :  { %15602 = vmatpush1.bf16.msra.mxu1 %v18756_v52  ;;  %15562 = vmatprep.subr.bf16.mxu0 %v18637_v19  ;;  %v12689_v52 = vld [vmem:[#allocation11 + $0xe08] sm:$0xff]  ;;  %v18685_v29 = vcombine.high %v12561_v18, %v12565_v60 }
 0x8db   :  { %15603 = vmatprep.subr.bf16.mxu1 %v18765_v44  ;;  %v12693_v19 = vld [vmem:[#allocation11 + $0xe28] sm:$0xff]  ;;  %v18676_v44 = vcombine.low %v12553_v47, %v12557_v6 }
 0x8dc   :  { %v18813_v36 = vcombine.high %v12689_v52, %v12693_v19  ;;  %v18812_v7 = vcombine.low %v12689_v52, %v12693_v19  ;;  %v12577_v41 = vld [vmem:[#allocation11 + $0xa88] sm:$0xff] }
 0x8dd   :  { %15563 = vmatpush1.bf16.msra.mxu0 %v18636_v54  ;;  %v12573_v54 = vld [vmem:[#allocation11 + $0xa68] sm:$0xff] }
 0x8de   :  { %15604 = vmatpush1.bf16.msra.mxu1 %v18764_v37  ;;  %15564 = vmatprep.subr.bf16.mxu0 %v18645_v53  ;;  %v12697_v37 = vld [vmem:[#allocation11 + $0xe48] sm:$0xff]  ;;  %v18693_v3 = vcombine.high %v12569_v12, %v12573_v54 }
 0x8df   :  { %15605 = vmatprep.subr.bf16.mxu1 %v18773_v11  ;;  %v12701_v53 = vld [vmem:[#allocation11 + $0xe68] sm:$0xff]  ;;  %v18684_v11 = vcombine.low %v12561_v18, %v12565_v60 }
 0x8e0   :  { %v18821_v9 = vcombine.high %v12697_v37, %v12701_v53  ;;  %v18820_v45 = vcombine.low %v12697_v37, %v12701_v53  ;;  %v12585_v49 = vld [vmem:[#allocation11 + $0xac8] sm:$0xff] }
 0x8e1   :  { %15565 = vmatpush1.bf16.msra.mxu0 %v18644_v16  ;;  %v12581_v16 = vld [vmem:[#allocation11 + $0xaa8] sm:$0xff] }
 0x8e2   :  { %15606 = vmatpush1.bf16.msra.mxu1 %v18772_v34  ;;  %15566 = vmatprep.subr.bf16.mxu0 %v18653_v5  ;;  %v12705_v34 = vld [vmem:[#allocation11 + $0xe88] sm:$0xff]  ;;  %v18701_v1 = vcombine.high %v12577_v41, %v12581_v16 }
 0x8e3   :  { %15607 = vmatprep.subr.bf16.mxu1 %v18781_v20  ;;  %v12709_v5 = vld [vmem:[#allocation11 + $0xea8] sm:$0xff]  ;;  %v18692_v20 = vcombine.low %v12569_v12, %v12573_v54 }
 0x8e4   :  { %v18829_v48 = vcombine.high %v12705_v34, %v12709_v5  ;;  %v18828_v4 = vcombine.low %v12705_v34, %v12709_v5  ;;  %v12593_v33 = vld [vmem:[#allocation11 + $0xb08] sm:$0xff]  ;;  %v12242_v5 = vld [vmem:[#allocation11 + $0x10] sm:$0xff] }
 0x8e5   :  { %15567 = vmatpush1.bf16.msra.mxu0 %v18652_v32  ;;  %v12589_v32 = vld [vmem:[#allocation11 + $0xae8] sm:$0xff] }
 0x8e6   :  { %15608 = vmatpush1.bf16.msra.mxu1 %v18780_v25  ;;  %15568 = vmatprep.subr.bf16.mxu0 %v18661_v57  ;;  %v12713_v25 = vld [vmem:[#allocation11 + $0xec8] sm:$0xff]  ;;  %v18709_v59 = vcombine.high %v12585_v49, %v12589_v32 }
 0x8e7   :  { %15609 = vmatprep.subr.bf16.mxu1 %v18789_v42  ;;  %v12717_v57 = vld [vmem:[#allocation11 + $0xee8] sm:$0xff]  ;;  %v18700_v42 = vcombine.low %v12577_v41, %v12581_v16 }
 0x8e8   :  { %v18837_v13 = vcombine.high %v12713_v25, %v12717_v57  ;;  %v18836_v47 = vcombine.low %v12713_v25, %v12717_v57  ;;  %v12601_v17 = vld [vmem:[#allocation11 + $0xb48] sm:$0xff]  ;;  %v12250_v57 = vld [vmem:[#allocation11 + $0x50] sm:$0xff] }
 0x8e9   :  { %15569 = vmatpush1.bf16.msra.mxu0 %v18660_v26  ;;  %v12597_v26 = vld [vmem:[#allocation11 + $0xb28] sm:$0xff] }
 0x8ea   :  { %15610 = vmatpush1.bf16.msra.mxu1 %v18788_v38  ;;  %15570 = vmatprep.subr.bf16.mxu0 %v18669_v8  ;;  %v12721_v38 = vld [vmem:[#allocation11 + $0xf08] sm:$0xff]  ;;  %v18717_v6 = vcombine.high %v12593_v33, %v12597_v26 }
 0x8eb   :  { %15611 = vmatprep.subr.bf16.mxu1 %v18797_v30  ;;  %v12725_v8 = vld [vmem:[#allocation11 + $0xf28] sm:$0xff]  ;;  %v18708_v30 = vcombine.low %v12585_v49, %v12589_v32 }
 0x8ec   :  { %v18845_v24 = vcombine.high %v12721_v38, %v12725_v8  ;;  %v18844_v18 = vcombine.low %v12721_v38, %v12725_v8  ;;  %v12609_v19 = vld [vmem:[#allocation11 + $0xb88] sm:$0xff]  ;;  %v12258_v38 = vld [vmem:[#allocation11 + $0x90] sm:$0xff] }
 0x8ed   :  { %15571 = vmatpush1.bf16.msra.mxu0 %v18668_v28  ;;  %v12605_v28 = vld [vmem:[#allocation11 + $0xb68] sm:$0xff]  ;;  %v12262_v8 = vld [vmem:[#allocation11 + $0xb0] sm:$0xff] }
 0x8ee   :  { %15612 = vmatpush1.bf16.msra.mxu1 %v18796_v14  ;;  %15572 = vmatprep.subr.bf16.mxu0 %v18677_v27  ;;  %v12729_v14 = vld [vmem:[#allocation11 + $0xf48] sm:$0xff]  ;;  %v18725_v60 = vcombine.high %v12601_v17, %v12605_v28 }
 0x8ef   :  { %15613 = vmatprep.subr.bf16.mxu1 %v18805_v46  ;;  %v12733_v27 = vld [vmem:[#allocation11 + $0xf68] sm:$0xff]  ;;  %v18716_v46 = vcombine.low %v12593_v33, %v12597_v26 }
 0x8f0   :  { %v18853_v52 = vcombine.high %v12729_v14, %v12733_v27  ;;  %v18852_v12 = vcombine.low %v12729_v14, %v12733_v27  ;;  %v12617_v53 = vld [vmem:[#allocation11 + $0xbc8] sm:$0xff]  ;;  %v12266_v27 = vld [vmem:[#allocation11 + $0xd0] sm:$0xff] }
 0x8f1   :  { %15573 = vmatpush1.bf16.msra.mxu0 %v18676_v44  ;;  %v12613_v44 = vld [vmem:[#allocation11 + $0xba8] sm:$0xff] }
 0x8f2   :  { %15614 = vmatpush1.bf16.msra.mxu1 %v18804_v40  ;;  %15574 = vmatprep.subr.bf16.mxu0 %v18685_v29  ;;  %v12737_v40 = vld [vmem:[#allocation11 + $0xf88] sm:$0xff]  ;;  %v18733_v54 = vcombine.high %v12609_v19, %v12613_v44 }
 0x8f3   :  { %15615 = vmatprep.subr.bf16.mxu1 %v18813_v36  ;;  %v12741_v29 = vld [vmem:[#allocation11 + $0xfa8] sm:$0xff]  ;;  %v18724_v36 = vcombine.low %v12601_v17, %v12605_v28  ;;  %v18383_v28 = vcombine.high %v12258_v38, %v12262_v8 }
 0x8f4   :  { %v18861_v37 = vcombine.high %v12737_v40, %v12741_v29  ;;  %v18860_v41 = vcombine.low %v12737_v40, %v12741_v29  ;;  %v12274_v29 = vld [vmem:[#allocation11 + $0x110] sm:$0xff] }
 0x8f5   :  { %15575 = vmatpush1.bf16.msra.mxu0 %v18684_v11  ;;  %v12621_v11 = vld [vmem:[#allocation11 + $0xbe8] sm:$0xff] }
 0x8f6   :  { %15616 = vmatpush1.bf16.msra.mxu1 %v18812_v7  ;;  %15576 = vmatprep.subr.bf16.mxu0 %v18693_v3  ;;  %v12745_v7 = vld [vmem:[#allocation11 + $0xfc8] sm:$0xff]  ;;  %v18741_v16 = vcombine.high %v12617_v53, %v12621_v11 }
 0x8f7   :  { %15617 = vmatprep.subr.bf16.mxu1 %v18821_v9  ;;  %v12749_v3 = vld [vmem:[#allocation11 + $0xfe8] sm:$0xff]  ;;  %v18732_v9 = vcombine.low %v12609_v19, %v12613_v44 }
 0x8f8   :  { %v18869_v34 = vcombine.high %v12745_v7, %v12749_v3  ;;  %v18868_v49 = vcombine.low %v12745_v7, %v12749_v3  ;;  %v12282_v3 = vld [vmem:[#allocation11 + $0x150] sm:$0xff] }
 0x8f9   :  { %15577 = vmatpush1.bf16.msra.mxu0 %v18692_v20  ;;  %v12246_v20 = vld [vmem:[#allocation11 + $0x30] sm:$0xff] }
 0x8fa   :  { %15618 = vmatpush1.bf16.msra.mxu1 %v18820_v45  ;;  %15578 = vmatprep.subr.bf16.mxu0 %v18701_v1  ;;  %v12370_v45 = vld [vmem:[#allocation11 + $0x410] sm:$0xff]  ;;  %v18367_v32 = vcombine.high %v12242_v5, %v12246_v20 }
 0x8fb   :  { %15619 = vmatprep.subr.bf16.mxu1 %v18829_v48  ;;  %v12374_v1 = vld [vmem:[#allocation11 + $0x430] sm:$0xff]  ;;  %v18740_v48 = vcombine.low %v12617_v53, %v12621_v11 }
 0x8fc   :  { %v18495_v25 = vcombine.high %v12370_v45, %v12374_v1  ;;  %v18494_v33 = vcombine.low %v12370_v45, %v12374_v1  ;;  %v12290_v1 = vld [vmem:[#allocation11 + $0x190] sm:$0xff] }
 0x8fd   :  { %15579 = vmatpush1.bf16.msra.mxu0 %v18700_v42  ;;  %v12254_v42 = vld [vmem:[#allocation11 + $0x70] sm:$0xff] }
 0x8fe   :  { %15620 = vmatpush1.bf16.msra.mxu1 %v18828_v4  ;;  %15580 = vmatprep.subr.bf16.mxu0 %v18709_v59  ;;  %v18366_v4 = vcombine.low %v12242_v5, %v12246_v20  ;;  %v12378_v59 = vld [vmem:[#allocation11 + $0x450] sm:$0xff]  ;;  %v18375_v26 = vcombine.high %v12250_v57, %v12254_v42 }
 0x8ff   :  { %15621 = vmatprep.subr.bf16.mxu1 %v18837_v13  ;;  %v12382_v13 = vld [vmem:[#allocation11 + $0x470] sm:$0xff] }
 0x900   :  { %v18502_v17 = vcombine.low %v12378_v59, %v12382_v13 }
 0x901   :  { %15581 = vmatpush1.bf16.msra.mxu0 %v18708_v30  ;;  %v18503_v30 = vcombine.high %v12378_v59, %v12382_v13  ;;  %v12298_v59 = vld [vmem:[#allocation11 + $0x1d0] sm:$0xff] }
 0x902   :  { %15622 = vmatpush1.bf16.msra.mxu1 %v18836_v47  ;;  %15582 = vmatprep.subr.bf16.mxu0 %v18717_v6  ;;  %v12386_v47 = vld [vmem:[#allocation11 + $0x490] sm:$0xff] }
 0x903   :  { %15623 = vmatprep.subr.bf16.mxu1 %v18845_v24  ;;  %v12390_v6 = vld [vmem:[#allocation11 + $0x4b0] sm:$0xff]  ;;  %v18374_v24 = vcombine.low %v12250_v57, %v12254_v42 }
 0x904   :  { %v18511_v14 = vcombine.high %v12386_v47, %v12390_v6  ;;  %v18510_v19 = vcombine.low %v12386_v47, %v12390_v6  ;;  %v12302_v13 = vld [vmem:[#allocation11 + $0x1f0] sm:$0xff] }
 0x905   :  { %15583 = vmatpush1.bf16.msra.mxu0 %v18716_v46  ;;  %v12270_v46 = vld [vmem:[#allocation11 + $0xf0] sm:$0xff] }
 0x906   :  { %15624 = vmatpush1.bf16.msra.mxu1 %v18844_v18  ;;  %15584 = vmatprep.subr.bf16.mxu0 %v18725_v60  ;;  %v12394_v18 = vld [vmem:[#allocation11 + $0x4d0] sm:$0xff]  ;;  %v18391_v44 = vcombine.high %v12266_v27, %v12270_v46 }
 0x907   :  { %15625 = vmatprep.subr.bf16.mxu1 %v18853_v52  ;;  %v12398_v60 = vld [vmem:[#allocation11 + $0x4f0] sm:$0xff]  ;;  %v18382_v52 = vcombine.low %v12258_v38, %v12262_v8 }
 0x908   :  { %v18519_v40 = vcombine.high %v12394_v18, %v12398_v60  ;;  %v18518_v53 = vcombine.low %v12394_v18, %v12398_v60  ;;  %v12306_v6 = vld [vmem:[#allocation11 + $0x210] sm:$0xff] }
 0x909   :  { %15585 = vmatpush1.bf16.msra.mxu0 %v18724_v36  ;;  %v12278_v36 = vld [vmem:[#allocation11 + $0x130] sm:$0xff] }
 0x90a   :  { %15626 = vmatpush1.bf16.msra.mxu1 %v18852_v12  ;;  %15586 = vmatprep.subr.bf16.mxu0 %v18733_v54  ;;  %v12402_v12 = vld [vmem:[#allocation11 + $0x510] sm:$0xff]  ;;  %v18399_v11 = vcombine.high %v12274_v29, %v12278_v36 }
 0x90b   :  { %15627 = vmatprep.subr.bf16.mxu1 %v18861_v37  ;;  %v12406_v54 = vld [vmem:[#allocation11 + $0x530] sm:$0xff]  ;;  %v18390_v37 = vcombine.low %v12266_v27, %v12270_v46 }
 0x90c   :  { %v18527_v7 = vcombine.high %v12402_v12, %v12406_v54  ;;  %v18526_v5 = vcombine.low %v12402_v12, %v12406_v54  ;;  %v12314_v60 = vld [vmem:[#allocation11 + $0x250] sm:$0xff] }
 0x90d   :  { %15587 = vmatpush1.bf16.msra.mxu0 %v18732_v9  ;;  %v12286_v9 = vld [vmem:[#allocation11 + $0x170] sm:$0xff] }
 0x90e   :  { %15628 = vmatpush1.bf16.msra.mxu1 %v18860_v41  ;;  %15588 = vmatprep.subr.bf16.mxu0 %v18741_v16  ;;  %v12410_v41 = vld [vmem:[#allocation11 + $0x550] sm:$0xff]  ;;  %v18407_v20 = vcombine.high %v12282_v3, %v12286_v9 }
 0x90f   :  { %15629 = vmatprep.subr.bf16.mxu1 %v18869_v34  ;;  %v12414_v16 = vld [vmem:[#allocation11 + $0x570] sm:$0xff]  ;;  %v18398_v34 = vcombine.low %v12274_v29, %v12278_v36 }
 0x910   :  { %v18535_v45 = vcombine.high %v12410_v41, %v12414_v16  ;;  %v18534_v57 = vcombine.low %v12410_v41, %v12414_v16  ;;  %v12322_v54 = vld [vmem:[#allocation11 + $0x290] sm:$0xff] }
 0x911   :  { %15589 = vmatpush1.bf16.msra.mxu0 %v18740_v48  ;;  %v12294_v48 = vld [vmem:[#allocation11 + $0x1b0] sm:$0xff] }
 0x912   :  { %15630 = vmatpush1.bf16.msra.mxu1 %v18868_v49  ;;  %15640 = vmatprep.subr.bf16.mxu0 %v18367_v32  ;;  %v12418_v49 = vld [vmem:[#allocation11 + $0x590] sm:$0xff]  ;;  %v18415_v42 = vcombine.high %v12290_v1, %v12294_v48  ;;  %v18414_v38 = vcombine.low %v12290_v1, %v12294_v48 }
 0x913   :  { %15681 = vmatprep.subr.bf16.mxu1 %v18495_v25  ;;  %v12422_v32 = vld [vmem:[#allocation11 + $0x5b0] sm:$0xff]  ;;  %v18406_v25 = vcombine.low %v12282_v3, %v12286_v9 }
 0x914   :  { %15591 = vmatmul.mubr.bf16.vlgmr.msra.gmra.mrb[68].mxu0 %v20095_v15  ;;  %v18542_v8 = vcombine.low %v12418_v49, %v12422_v32  ;;  %v12330_v16 = vld [vmem:[#allocation11 + $0x2d0] sm:$0xff] }
 0x915   :  { %15632 = vmatmul.mubr.bf16.vlgmr.msra.gmra.mrb[68].mxu1 %v20099_v0  ;;  %15641 = vmatpush1.bf16.msra.mxu0 %v18366_v4  ;;  %v18543_v4 = vcombine.high %v12418_v49, %v12422_v32  ;;  %v12338_v32 = vld [vmem:[#allocation11 + $0x310] sm:$0xff] }
 0x916   :  { %15672 = vmatprep.mubr.bf16.mxu0 %v20055_v31  ;;  %15682 = vmatpush1.bf16.msra.mxu1 %v18494_v33  ;;  %v12426_v33 = vld [vmem:[#allocation11 + $0x5d0] sm:$0xff] }
 0x917   :  { %15713 = vmatprep.mubr.bf16.mxu1 %v20058_v22  ;;  %15642 = vmatprep.subr.bf16.mxu0 %v18375_v26  ;;  %v12430_v26 = vld [vmem:[#allocation11 + $0x5f0] sm:$0xff] }
 0x918   :  { %15683 = vmatprep.subr.bf16.mxu1 %v18503_v30  ;;  %v18423_v30 = vcombine.high %v12298_v59, %v12302_v13  ;;  %v18551_v47 = vcombine.high %v12426_v33, %v12430_v26  ;;  %v18550_v27 = vcombine.low %v12426_v33, %v12430_v26  ;;  %v12346_v26 = vld [vmem:[#allocation11 + $0x350] sm:$0xff] }
 0x919   :  { %15643 = vmatpush1.bf16.msra.mxu0 %v18374_v24  ;;  %v12310_v24 = vld [vmem:[#allocation11 + $0x230] sm:$0xff] }
 0x91a   :  { %15684 = vmatpush1.bf16.msra.mxu1 %v18502_v17  ;;  %15644 = vmatprep.subr.bf16.mxu0 %v18383_v28  ;;  %v12434_v17 = vld [vmem:[#allocation11 + $0x610] sm:$0xff]  ;;  %v18431_v46 = vcombine.high %v12306_v6, %v12310_v24 }
 0x91b   :  { %15685 = vmatprep.subr.bf16.mxu1 %v18511_v14  ;;  %v12438_v28 = vld [vmem:[#allocation11 + $0x630] sm:$0xff]  ;;  %v18422_v14 = vcombine.low %v12298_v59, %v12302_v13 }
 0x91c   :  { %v18559_v18 = vcombine.high %v12434_v17, %v12438_v28  ;;  %v18558_v29 = vcombine.low %v12434_v17, %v12438_v28  ;;  %v12354_v28 = vld [vmem:[#allocation11 + $0x390] sm:$0xff] }
 0x91d   :  { %15645 = vmatpush1.bf16.msra.mxu0 %v18382_v52  ;;  %v12318_v52 = vld [vmem:[#allocation11 + $0x270] sm:$0xff] }
 0x91e   :  { %15686 = vmatpush1.bf16.msra.mxu1 %v18510_v19  ;;  %15646 = vmatprep.subr.bf16.mxu0 %v18391_v44  ;;  %v12442_v19 = vld [vmem:[#allocation11 + $0x650] sm:$0xff]  ;;  %v18439_v36 = vcombine.high %v12314_v60, %v12318_v52 }
 0x91f   :  { %15687 = vmatprep.subr.bf16.mxu1 %v18519_v40  ;;  %v12446_v44 = vld [vmem:[#allocation11 + $0x670] sm:$0xff]  ;;  %v18430_v40 = vcombine.low %v12306_v6, %v12310_v24 }
 0x920   :  { %v18567_v12 = vcombine.high %v12442_v19, %v12446_v44  ;;  %v18566_v3 = vcombine.low %v12442_v19, %v12446_v44  ;;  %v12362_v44 = vld [vmem:[#allocation11 + $0x3d0] sm:$0xff] }
 0x921   :  { %15647 = vmatpush1.bf16.msra.mxu0 %v18390_v37  ;;  %v12326_v37 = vld [vmem:[#allocation11 + $0x2b0] sm:$0xff] }
 0x922   :  { %15688 = vmatpush1.bf16.msra.mxu1 %v18518_v53  ;;  %15648 = vmatprep.subr.bf16.mxu0 %v18399_v11  ;;  %v12450_v53 = vld [vmem:[#allocation11 + $0x690] sm:$0xff]  ;;  %v18447_v9 = vcombine.high %v12322_v54, %v12326_v37 }
 0x923   :  { %15689 = vmatprep.subr.bf16.mxu1 %v18527_v7  ;;  %v12454_v11 = vld [vmem:[#allocation11 + $0x6b0] sm:$0xff]  ;;  %v18438_v7 = vcombine.low %v12314_v60, %v12318_v52 }
 0x924   :  { %v18575_v41 = vcombine.high %v12450_v53, %v12454_v11  ;;  %v18574_v1 = vcombine.low %v12450_v53, %v12454_v11  ;;  %v12498_v11 = vld [vmem:[#allocation11 + $0x810] sm:$0xff] }
 0x925   :  { %15649 = vmatpush1.bf16.msra.mxu0 %v18398_v34  ;;  %v12334_v34 = vld [vmem:[#allocation11 + $0x2f0] sm:$0xff] }
 0x926   :  { %15690 = vmatpush1.bf16.msra.mxu1 %v18526_v5  ;;  %15650 = vmatprep.subr.bf16.mxu0 %v18407_v20  ;;  %v12458_v5 = vld [vmem:[#allocation11 + $0x6d0] sm:$0xff]  ;;  %v18455_v48 = vcombine.high %v12330_v16, %v12334_v34 }
 0x927   :  { %15691 = vmatprep.subr.bf16.mxu1 %v18535_v45  ;;  %v12462_v20 = vld [vmem:[#allocation11 + $0x6f0] sm:$0xff]  ;;  %v18446_v45 = vcombine.low %v12322_v54, %v12326_v37 }
 0x928   :  { %v18583_v49 = vcombine.high %v12458_v5, %v12462_v20  ;;  %v18582_v59 = vcombine.low %v12458_v5, %v12462_v20  ;;  %v12506_v20 = vld [vmem:[#allocation11 + $0x850] sm:$0xff] }
 0x929   :  { %15651 = vmatpush1.bf16.msra.mxu0 %v18406_v25  ;;  %v12342_v25 = vld [vmem:[#allocation11 + $0x330] sm:$0xff] }
 0x92a   :  { %15692 = vmatpush1.bf16.msra.mxu1 %v18534_v57  ;;  %15652 = vmatprep.subr.bf16.mxu0 %v18415_v42  ;;  %v12466_v57 = vld [vmem:[#allocation11 + $0x710] sm:$0xff]  ;;  %v18463_v13 = vcombine.high %v12338_v32, %v12342_v25 }
 0x92b   :  { %15693 = vmatprep.subr.bf16.mxu1 %v18543_v4  ;;  %v12470_v42 = vld [vmem:[#allocation11 + $0x730] sm:$0xff]  ;;  %v18454_v4 = vcombine.low %v12330_v16, %v12334_v34 }
 0x92c   :  { %v18591_v33 = vcombine.high %v12466_v57, %v12470_v42  ;;  %v18590_v6 = vcombine.low %v12466_v57, %v12470_v42  ;;  %v12514_v57 = vld [vmem:[#allocation11 + $0x890] sm:$0xff] }
 0x92d   :  { %15653 = vmatpush1.bf16.msra.mxu0 %v18414_v38  ;;  %v12350_v38 = vld [vmem:[#allocation11 + $0x370] sm:$0xff] }
 0x92e   :  { %15694 = vmatpush1.bf16.msra.mxu1 %v18542_v8  ;;  %15654 = vmatprep.subr.bf16.mxu0 %v18423_v30  ;;  %v12474_v8 = vld [vmem:[#allocation11 + $0x750] sm:$0xff]  ;;  %v18471_v24 = vcombine.high %v12346_v26, %v12350_v38 }
 0x92f   :  { %15695 = vmatprep.subr.bf16.mxu1 %v18551_v47  ;;  %v12478_v30 = vld [vmem:[#allocation11 + $0x770] sm:$0xff]  ;;  %v18462_v47 = vcombine.low %v12338_v32, %v12342_v25 }
 0x930   :  { %v18599_v17 = vcombine.high %v12474_v8, %v12478_v30  ;;  %v18598_v60 = vcombine.low %v12474_v8, %v12478_v30  ;;  %v12518_v42 = vld [vmem:[#allocation11 + $0x8b0] sm:$0xff] }
 0x931   :  { %15655 = vmatpush1.bf16.msra.mxu0 %v18422_v14  ;;  %v12358_v14 = vld [vmem:[#allocation11 + $0x3b0] sm:$0xff] }
 0x932   :  { %15696 = vmatpush1.bf16.msra.mxu1 %v18550_v27  ;;  %15656 = vmatprep.subr.bf16.mxu0 %v18431_v46  ;;  %v12482_v27 = vld [vmem:[#allocation11 + $0x790] sm:$0xff]  ;;  %v18479_v52 = vcombine.high %v12354_v28, %v12358_v14 }
 0x933   :  { %15697 = vmatprep.subr.bf16.mxu1 %v18559_v18  ;;  %v12486_v46 = vld [vmem:[#allocation11 + $0x7b0] sm:$0xff]  ;;  %v18470_v18 = vcombine.low %v12346_v26, %v12350_v38  ;;  %v18639_v38 = vcombine.high %v12514_v57, %v12518_v42 }
 0x934   :  { %v18607_v19 = vcombine.high %v12482_v27, %v12486_v46  ;;  %v18606_v54 = vcombine.low %v12482_v27, %v12486_v46  ;;  %v12522_v30 = vld [vmem:[#allocation11 + $0x8d0] sm:$0xff] }
 0x935   :  { %15657 = vmatpush1.bf16.msra.mxu0 %v18430_v40  ;;  %v12366_v40 = vld [vmem:[#allocation11 + $0x3f0] sm:$0xff] }
 0x936   :  { %15698 = vmatpush1.bf16.msra.mxu1 %v18558_v29  ;;  %15658 = vmatprep.subr.bf16.mxu0 %v18439_v36  ;;  %v12490_v29 = vld [vmem:[#allocation11 + $0x7d0] sm:$0xff]  ;;  %v18487_v37 = vcombine.high %v12362_v44, %v12366_v40 }
 0x937   :  { %15699 = vmatprep.subr.bf16.mxu1 %v18567_v12  ;;  %v12494_v36 = vld [vmem:[#allocation11 + $0x7f0] sm:$0xff]  ;;  %v18478_v12 = vcombine.low %v12354_v28, %v12358_v14 }
 0x938   :  { %v18615_v53 = vcombine.high %v12490_v29, %v12494_v36  ;;  %v18614_v16 = vcombine.low %v12490_v29, %v12494_v36  ;;  %v12530_v46 = vld [vmem:[#allocation11 + $0x910] sm:$0xff] }
 0x939   :  { %15659 = vmatpush1.bf16.msra.mxu0 %v18438_v7  ;;  %v12502_v7 = vld [vmem:[#allocation11 + $0x830] sm:$0xff] }
 0x93a   :  { %15700 = vmatpush1.bf16.msra.mxu1 %v18566_v3  ;;  %15660 = vmatprep.subr.bf16.mxu0 %v18447_v9  ;;  %v12626_v3 = vld [vmem:[#allocation11 + $0xc10] sm:$0xff]  ;;  %v18623_v34 = vcombine.high %v12498_v11, %v12502_v7 }
 0x93b   :  { %15701 = vmatprep.subr.bf16.mxu1 %v18575_v41  ;;  %v12630_v9 = vld [vmem:[#allocation11 + $0xc30] sm:$0xff]  ;;  %v18486_v41 = vcombine.low %v12362_v44, %v12366_v40 }
 0x93c   :  { %v18751_v5 = vcombine.high %v12626_v3, %v12630_v9  ;;  %v18750_v32 = vcombine.low %v12626_v3, %v12630_v9  ;;  %v12538_v36 = vld [vmem:[#allocation11 + $0x950] sm:$0xff] }
 0x93d   :  { %15661 = vmatpush1.bf16.msra.mxu0 %v18446_v45  ;;  %v12510_v45 = vld [vmem:[#allocation11 + $0x870] sm:$0xff] }
 0x93e   :  { %15702 = vmatpush1.bf16.msra.mxu1 %v18574_v1  ;;  %15662 = vmatprep.subr.bf16.mxu0 %v18455_v48  ;;  %v18622_v1 = vcombine.low %v12498_v11, %v12502_v7  ;;  %v12634_v48 = vld [vmem:[#allocation11 + $0xc50] sm:$0xff]  ;;  %v18631_v25 = vcombine.high %v12506_v20, %v12510_v45 }
 0x93f   :  { %15703 = vmatprep.subr.bf16.mxu1 %v18583_v49  ;;  %v12638_v49 = vld [vmem:[#allocation11 + $0xc70] sm:$0xff] }
 0x940   :  { %v18758_v26 = vcombine.low %v12634_v48, %v12638_v49  ;;  %v12546_v9 = vld [vmem:[#allocation11 + $0x990] sm:$0xff] }
 0x941   :  { %15663 = vmatpush1.bf16.msra.mxu0 %v18454_v4  ;;  %v18759_v4 = vcombine.high %v12634_v48, %v12638_v49  ;;  %v12554_v49 = vld [vmem:[#allocation11 + $0x9d0] sm:$0xff] }
 0x942   :  { %15704 = vmatpush1.bf16.msra.mxu1 %v18582_v59  ;;  %15664 = vmatprep.subr.bf16.mxu0 %v18463_v13  ;;  %v12642_v59 = vld [vmem:[#allocation11 + $0xc90] sm:$0xff] }
 0x943   :  { %15705 = vmatprep.subr.bf16.mxu1 %v18591_v33  ;;  %v12646_v13 = vld [vmem:[#allocation11 + $0xcb0] sm:$0xff]  ;;  %v18630_v33 = vcombine.low %v12506_v20, %v12510_v45 }
 0x944   :  { %v18767_v8 = vcombine.high %v12642_v59, %v12646_v13  ;;  %v18766_v28 = vcombine.low %v12642_v59, %v12646_v13  ;;  %v12686_v59 = vld [vmem:[#allocation11 + $0xdf0] sm:$0xff] }
 0x945   :  { %15665 = vmatpush1.bf16.msra.mxu0 %v18462_v47  ;;  %v12526_v47 = vld [vmem:[#allocation11 + $0x8f0] sm:$0xff] }
 0x946   :  { %15706 = vmatpush1.bf16.msra.mxu1 %v18590_v6  ;;  %15666 = vmatprep.subr.bf16.mxu0 %v18471_v24  ;;  %v12650_v6 = vld [vmem:[#allocation11 + $0xcd0] sm:$0xff]  ;;  %v18647_v14 = vcombine.high %v12522_v30, %v12526_v47 }
 0x947   :  { %15707 = vmatprep.subr.bf16.mxu1 %v18599_v17  ;;  %v12654_v24 = vld [vmem:[#allocation11 + $0xcf0] sm:$0xff]  ;;  %v18638_v17 = vcombine.low %v12514_v57, %v12518_v42 }
 0x948   :  { %v18775_v27 = vcombine.high %v12650_v6, %v12654_v24  ;;  %v18774_v44 = vcombine.low %v12650_v6, %v12654_v24 }
 0x949   :  { %15667 = vmatpush1.bf16.msra.mxu0 %v18470_v18  ;;  %v12534_v18 = vld [vmem:[#allocation11 + $0x930] sm:$0xff] }
 0x94a   :  { %15708 = vmatpush1.bf16.msra.mxu1 %v18598_v60  ;;  %15668 = vmatprep.subr.bf16.mxu0 %v18479_v52  ;;  %v12658_v60 = vld [vmem:[#allocation11 + $0xd10] sm:$0xff]  ;;  %v18655_v40 = vcombine.high %v12530_v46, %v12534_v18 }
 0x94b   :  { %15709 = vmatprep.subr.bf16.mxu1 %v18607_v19  ;;  %v12662_v52 = vld [vmem:[#allocation11 + $0xd30] sm:$0xff]  ;;  %v18646_v19 = vcombine.low %v12522_v30, %v12526_v47 }
 0x94c   :  { %v18783_v29 = vcombine.high %v12658_v60, %v12662_v52  ;;  %v18782_v11 = vcombine.low %v12658_v60, %v12662_v52 }
 0x94d   :  { %15669 = vmatpush1.bf16.msra.mxu0 %v18478_v12  ;;  %v12542_v12 = vld [vmem:[#allocation11 + $0x970] sm:$0xff] }
 0x94e   :  { %15710 = vmatpush1.bf16.msra.mxu1 %v18606_v54  ;;  %15670 = vmatprep.subr.bf16.mxu0 %v18487_v37  ;;  %v12666_v54 = vld [vmem:[#allocation11 + $0xd50] sm:$0xff]  ;;  %v18663_v7 = vcombine.high %v12538_v36, %v12542_v12 }
 0x94f   :  { %15711 = vmatprep.subr.bf16.mxu1 %v18615_v53  ;;  %v12670_v37 = vld [vmem:[#allocation11 + $0xd70] sm:$0xff]  ;;  %v18654_v53 = vcombine.low %v12530_v46, %v12534_v18 }
 0x950   :  { %v18791_v3 = vcombine.high %v12666_v54, %v12670_v37  ;;  %v18790_v20 = vcombine.low %v12666_v54, %v12670_v37  ;;  %v12694_v46 = vld [vmem:[#allocation11 + $0xe30] sm:$0xff] }
 0x951   :  { %15671 = vmatpush1.bf16.msra.mxu0 %v18486_v41  ;;  %v12550_v41 = vld [vmem:[#allocation11 + $0x9b0] sm:$0xff] }
 0x952   :  { %15712 = vmatpush1.bf16.msra.mxu1 %v18614_v16  ;;  %15722 = vmatprep.subr.bf16.mxu0 %v18623_v34  ;;  %v12674_v16 = vld [vmem:[#allocation11 + $0xd90] sm:$0xff]  ;;  %v18671_v45 = vcombine.high %v12546_v9, %v12550_v41 }
 0x953   :  { %15763 = vmatprep.subr.bf16.mxu1 %v18751_v5  ;;  %v12678_v34 = vld [vmem:[#allocation11 + $0xdb0] sm:$0xff]  ;;  %v18662_v5 = vcombine.low %v12538_v36, %v12542_v12 }
 0x954   :  { %15673 = vmatmul.mubr.bf16.vlgmr.msra.gmra.mrb[72].mxu0 %v20067_v39  ;;  %v18799_v48 = vcombine.high %v12674_v16, %v12678_v34  ;;  %v18798_v6 = vcombine.low %v12674_v16, %v12678_v34  ;;  %v12702_v36 = vld [vmem:[#allocation11 + $0xe70] sm:$0xff] }
 0x955   :  { %15714 = vmatmul.mubr.bf16.vlgmr.msra.gmra.mrb[72].mxu1 %v20069_v62  ;;  %15723 = vmatpush1.bf16.msra.mxu0 %v18622_v1 }
 0x956   :  { %15754 = vmatprep.mubr.bf16.mxu0 %v20093_v43  ;;  %15764 = vmatpush1.bf16.msra.mxu1 %v18750_v32  ;;  %v12558_v32 = vld [vmem:[#allocation11 + $0x9f0] sm:$0xff] }
 0x957   :  { %15795 = vmatprep.mubr.bf16.mxu1 %v20097_v35  ;;  %15724 = vmatprep.subr.bf16.mxu0 %v18631_v25  ;;  %v18679_v24 = vcombine.high %v12554_v49, %v12558_v32  ;;  %v18678_v18 = vcombine.low %v12554_v49, %v12558_v32 }
 0x958   :  { %15765 = vmatprep.subr.bf16.mxu1 %v18759_v4  ;;  %v12682_v4 = vld [vmem:[#allocation11 + $0xdd0] sm:$0xff] }
 0x959   :  { %15725 = vmatpush1.bf16.msra.mxu0 %v18630_v33  ;;  %v18806_v60 = vcombine.low %v12682_v4, %v12686_v59 }
 0x95a   :  { %15766 = vmatpush1.bf16.msra.mxu1 %v18758_v26  ;;  %15726 = vmatprep.subr.bf16.mxu0 %v18639_v38  ;;  %v18670_v38 = vcombine.low %v12546_v9, %v12550_v41  ;;  %v12710_v9 = vld [vmem:[#allocation11 + $0xeb0] sm:$0xff] }
 0x95b   :  { %15767 = vmatprep.subr.bf16.mxu1 %v18767_v8 }
 0x95d   :  { %15727 = vmatpush1.bf16.msra.mxu0 %v18638_v17 }
 0x95e   :  { %15768 = vmatpush1.bf16.msra.mxu1 %v18766_v28  ;;  %15728 = vmatprep.subr.bf16.mxu0 %v18647_v14  ;;  %v18807_v28 = vcombine.high %v12682_v4, %v12686_v59  ;;  %v12562_v14 = vld [vmem:[#allocation11 + $0xa10] sm:$0xff] }
 0x95f   :  { %15769 = vmatprep.subr.bf16.mxu1 %v18775_v27  ;;  %v12566_v27 = vld [vmem:[#allocation11 + $0xa30] sm:$0xff] }
 0x960   :  { %v18687_v52 = vcombine.high %v12562_v14, %v12566_v27  ;;  %v18686_v12 = vcombine.low %v12562_v14, %v12566_v27  ;;  %v12598_v4 = vld [vmem:[#allocation11 + $0xb30] sm:$0xff] }
 0x961   :  { %15729 = vmatpush1.bf16.msra.mxu0 %v18646_v19  ;;  %v12722_v59 = vld [vmem:[#allocation11 + $0xf10] sm:$0xff] }
 0x962   :  { %15770 = vmatpush1.bf16.msra.mxu1 %v18774_v44  ;;  %15730 = vmatprep.subr.bf16.mxu0 %v18655_v40  ;;  %v12570_v44 = vld [vmem:[#allocation11 + $0xa50] sm:$0xff] }
 0x963   :  { %15771 = vmatprep.subr.bf16.mxu1 %v18783_v29  ;;  %v12574_v40 = vld [vmem:[#allocation11 + $0xa70] sm:$0xff] }
 0x964   :  { %v12698_v29 = vld [vmem:[#allocation11 + $0xe50] sm:$0xff]  ;;  %v18695_v37 = vcombine.high %v12570_v44, %v12574_v40  ;;  %v18694_v41 = vcombine.low %v12570_v44, %v12574_v40 }
 0x965   :  { %15731 = vmatpush1.bf16.msra.mxu0 %v18654_v53  ;;  %v18823_v53 = vcombine.high %v12698_v29, %v12702_v36  ;;  %v18822_v16 = vcombine.low %v12698_v29, %v12702_v36  ;;  %v12618_v36 = vld [vmem:[#allocation11 + $0xbd0] sm:$0xff] }
 0x966   :  { %15772 = vmatpush1.bf16.msra.mxu1 %v18782_v11  ;;  %15732 = vmatprep.subr.bf16.mxu0 %v18663_v7  ;;  %v12578_v11 = vld [vmem:[#allocation11 + $0xa90] sm:$0xff] }
 0x967   :  { %v15428_v1 = vpop.f32.mrb[60].mxu0  ;;  %15773 = vmatprep.subr.bf16.mxu1 %v18791_v3  ;;  %v12582_v7 = vld [vmem:[#allocation11 + $0xab0] sm:$0xff] }
 0x968   :  { %v15429_v25 = vadd.f32 %v15428_v1, %v20113_v61  ;;  %v15469_v57 = vpop.f32.mrb[60].mxu1  ;;  %v15430_v42 = vpop.f32.mrb[61].mxu0  ;;  %v12706_v3 = vld [vmem:[#allocation11 + $0xe90] sm:$0xff]  ;;  %v18703_v34 = vcombine.high %v12578_v11, %v12582_v7  ;;  %v18702_v49 = vcombine.low %v12578_v11, %v12582_v7 }
 0x969   :  { %v15431_v13 = vadd.f32 %v15430_v42, %v20115_v51  ;;  %v15471_v33 = vpop.f32.mrb[61].mxu1  ;;  %15733 = vmatpush1.bf16.msra.mxu0 %v18662_v5  ;;  %v15432_v26 = vpop.f32.mrb[62].mxu0  ;;  %v12690_v51 = vld [vmem:[#allocation11 + $0xe10] sm:$0xff]  ;;  %v18831_v5 = vcombine.high %v12706_v3, %v12710_v9  ;;  %v18830_v32 = vcombine.low %v12706_v3, %v12710_v9  ;;  %v12243_v9 = vld [vmem:[#allocation11 + $0x18] sm:$0xff] }
 0x96a   :  { %v20131_v8 = vadd.f32 %v15469_v57, %v15429_v25  ;;  %15774 = vmatpush1.bf16.msra.mxu1 %v18790_v20  ;;  %v15473_v30 = vpop.f32.mrb[62].mxu1  ;;  %v15433_v47 = vpop.f32.mrb[63].mxu0  ;;  %15734 = vmatprep.subr.bf16.mxu0 %v18671_v45  ;;  %v18815_v19 = vcombine.high %v12690_v51, %v12694_v46  ;;  %v18814_v54 = vcombine.low %v12690_v51, %v12694_v46  ;;  %v12586_v20 = vld [vmem:[#allocation11 + $0xad0] sm:$0xff] }
 0x96b   :  { %v20133_v17 = vadd.f32 %v15471_v33, %v15431_v13  ;;  %v15474_v61 = vpop.f32.mrb[63].mxu1  ;;  %15775 = vmatprep.subr.bf16.mxu1 %v18799_v48  ;;  %v12590_v45 = vld [vmem:[#allocation11 + $0xaf0] sm:$0xff] }
 0x96c   :  { %v12714_v1 = vld [vmem:[#allocation11 + $0xed0] sm:$0xff]  ;;  %v18711_v25 = vcombine.high %v12586_v20, %v12590_v45  ;;  %v18710_v33 = vcombine.low %v12586_v20, %v12590_v45 }
 0x96d   :  { %15735 = vmatpush1.bf16.msra.mxu0 %v18670_v38  ;;  %v12718_v48 = vld [vmem:[#allocation11 + $0xef0] sm:$0xff] }
 0x96e   :  { %15776 = vmatpush1.bf16.msra.mxu1 %v18798_v6  ;;  %15736 = vmatprep.subr.bf16.mxu0 %v18679_v24  ;;  %v18839_v57 = vcombine.high %v12714_v1, %v12718_v48  ;;  %v12594_v42 = vld [vmem:[#allocation11 + $0xb10] sm:$0xff]  ;;  %v18838_v26 = vcombine.low %v12714_v1, %v12718_v48  ;;  %v12251_v48 = vld [vmem:[#allocation11 + $0x58] sm:$0xff] }
 0x96f   :  { %15777 = vmatprep.subr.bf16.mxu1 %v18807_v28  ;;  %v12726_v13 = vld [vmem:[#allocation11 + $0xf30] sm:$0xff]  ;;  %v18719_v38 = vcombine.high %v12594_v42, %v12598_v4  ;;  %v18718_v28 = vcombine.low %v12594_v42, %v12598_v4 }
 0x970   :  { %v18847_v30 = vcombine.high %v12722_v59, %v12726_v13  ;;  %v12602_v47 = vld [vmem:[#allocation11 + $0xb50] sm:$0xff]  ;;  %v18846_v14 = vcombine.low %v12722_v59, %v12726_v13  ;;  %v12259_v59 = vld [vmem:[#allocation11 + $0x98] sm:$0xff] }
 0x971   :  { %15737 = vmatpush1.bf16.msra.mxu0 %v18678_v18  ;;  %v12606_v6 = vld [vmem:[#allocation11 + $0xb70] sm:$0xff]  ;;  %v12263_v13 = vld [vmem:[#allocation11 + $0xb8] sm:$0xff] }
 0x972   :  { %15778 = vmatpush1.bf16.msra.mxu1 %v18806_v60  ;;  %15738 = vmatprep.subr.bf16.mxu0 %v18687_v52  ;;  %v12730_v24 = vld [vmem:[#allocation11 + $0xf50] sm:$0xff]  ;;  %v18727_v27 = vcombine.high %v12602_v47, %v12606_v6 }
 0x973   :  { %15779 = vmatprep.subr.bf16.mxu1 %v18815_v19  ;;  %v12734_v61 = vld [vmem:[#allocation11 + $0xf70] sm:$0xff]  ;;  %v18726_v19 = vcombine.low %v12602_v47, %v12606_v6  ;;  %v18385_v6 = vcombine.high %v12259_v59, %v12263_v13 }
 0x974   :  { %v18855_v51 = vcombine.high %v12730_v24, %v12734_v61  ;;  %v12610_v46 = vld [vmem:[#allocation11 + $0xb90] sm:$0xff]  ;;  %v18854_v44 = vcombine.low %v12730_v24, %v12734_v61  ;;  %v12267_v61 = vld [vmem:[#allocation11 + $0xd8] sm:$0xff] }
 0x975   :  { %15739 = vmatpush1.bf16.msra.mxu0 %v18686_v12  ;;  %v12614_v18 = vld [vmem:[#allocation11 + $0xbb0] sm:$0xff] }
 0x976   :  { %15780 = vmatpush1.bf16.msra.mxu1 %v18814_v54  ;;  %15740 = vmatprep.subr.bf16.mxu0 %v18695_v37  ;;  %v12738_v60 = vld [vmem:[#allocation11 + $0xf90] sm:$0xff]  ;;  %v18735_v40 = vcombine.high %v12610_v46, %v12614_v18 }
 0x977   :  { %15781 = vmatprep.subr.bf16.mxu1 %v18823_v53  ;;  %v12742_v52 = vld [vmem:[#allocation11 + $0xfb0] sm:$0xff]  ;;  %v18734_v53 = vcombine.low %v12610_v46, %v12614_v18 }
 0x978   :  { %v18863_v29 = vcombine.high %v12738_v60, %v12742_v52  ;;  %v12622_v12 = vld [vmem:[#allocation11 + $0xbf0] sm:$0xff]  ;;  %v18862_v11 = vcombine.low %v12738_v60, %v12742_v52  ;;  %v12275_v60 = vld [vmem:[#allocation11 + $0x118] sm:$0xff] }
 0x979   :  { %15741 = vmatpush1.bf16.msra.mxu0 %v18694_v41  ;;  %v12746_v54 = vld [vmem:[#allocation11 + $0xfd0] sm:$0xff]  ;;  %v18743_v7 = vcombine.high %v12618_v36, %v12622_v12  ;;  %v12247_v41 = vld [vmem:[#allocation11 + $0x38] sm:$0xff] }
 0x97a   :  { %15782 = vmatpush1.bf16.msra.mxu1 %v18822_v16  ;;  %15742 = vmatprep.subr.bf16.mxu0 %v18703_v34  ;;  %v12750_v37 = vld [vmem:[#allocation11 + $0xff0] sm:$0xff]  ;;  %v12371_v16 = vld [vmem:[#allocation11 + $0x418] sm:$0xff]  ;;  %v18369_v45 = vcombine.high %v12243_v9, %v12247_v41 }
 0x97b   :  { %15783 = vmatprep.subr.bf16.mxu1 %v18831_v5  ;;  %v18871_v3 = vcombine.high %v12746_v54, %v12750_v37  ;;  %v12375_v34 = vld [vmem:[#allocation11 + $0x438] sm:$0xff]  ;;  %v18742_v5 = vcombine.low %v12618_v36, %v12622_v12  ;;  %v18870_v20 = vcombine.low %v12746_v54, %v12750_v37 }
 0x97c   :  { %v18497_v1 = vcombine.high %v12371_v16, %v12375_v34  ;;  %v18496_v42 = vcombine.low %v12371_v16, %v12375_v34  ;;  %v12279_v52 = vld [vmem:[#allocation11 + $0x138] sm:$0xff] }
 0x97d   :  { %15743 = vmatpush1.bf16.msra.mxu0 %v18702_v49  ;;  %v12255_v49 = vld [vmem:[#allocation11 + $0x78] sm:$0xff] }
 0x97e   :  { %15784 = vmatpush1.bf16.msra.mxu1 %v18830_v32  ;;  %15744 = vmatprep.subr.bf16.mxu0 %v18711_v25  ;;  %v18368_v32 = vcombine.low %v12243_v9, %v12247_v41  ;;  %v12379_v25 = vld [vmem:[#allocation11 + $0x458] sm:$0xff]  ;;  %v18377_v4 = vcombine.high %v12251_v48, %v12255_v49 }
 0x97f   :  { %15785 = vmatprep.subr.bf16.mxu1 %v18839_v57  ;;  %v12383_v57 = vld [vmem:[#allocation11 + $0x478] sm:$0xff] }
 0x980   :  { %v18504_v47 = vcombine.low %v12379_v25, %v12383_v57  ;;  %v12283_v12 = vld [vmem:[#allocation11 + $0x158] sm:$0xff] }
 0x981   :  { %15745 = vmatpush1.bf16.msra.mxu0 %v18710_v33  ;;  %v18505_v33 = vcombine.high %v12379_v25, %v12383_v57  ;;  %v12287_v54 = vld [vmem:[#allocation11 + $0x178] sm:$0xff] }
 0x982   :  { %15786 = vmatpush1.bf16.msra.mxu1 %v18838_v26  ;;  %15746 = vmatprep.subr.bf16.mxu0 %v18719_v38  ;;  %v12387_v26 = vld [vmem:[#allocation11 + $0x498] sm:$0xff] }
 0x983   :  { %15787 = vmatprep.subr.bf16.mxu1 %v18847_v30  ;;  %v12391_v38 = vld [vmem:[#allocation11 + $0x4b8] sm:$0xff]  ;;  %v18376_v30 = vcombine.low %v12251_v48, %v12255_v49 }
 0x984   :  { %v18513_v24 = vcombine.high %v12387_v26, %v12391_v38  ;;  %v18512_v46 = vcombine.low %v12387_v26, %v12391_v38  ;;  %v12411_v37 = vld [vmem:[#allocation11 + $0x558] sm:$0xff] }
 0x985   :  { %15747 = vmatpush1.bf16.msra.mxu0 %v18718_v28  ;;  %v12271_v28 = vld [vmem:[#allocation11 + $0xf8] sm:$0xff] }
 0x986   :  { %15788 = vmatpush1.bf16.msra.mxu1 %v18846_v14  ;;  %15748 = vmatprep.subr.bf16.mxu0 %v18727_v27  ;;  %v12395_v14 = vld [vmem:[#allocation11 + $0x4d8] sm:$0xff]  ;;  %v18393_v18 = vcombine.high %v12267_v61, %v12271_v28 }
 0x987   :  { %15789 = vmatprep.subr.bf16.mxu1 %v18855_v51  ;;  %v12399_v27 = vld [vmem:[#allocation11 + $0x4f8] sm:$0xff]  ;;  %v18384_v51 = vcombine.low %v12259_v59, %v12263_v13 }
 0x988   :  { %v12291_v41 = vld [vmem:[#allocation11 + $0x198] sm:$0xff] }
 0x989   :  { %15749 = vmatpush1.bf16.msra.mxu0 %v18726_v19  ;;  %v12403_v19 = vld [vmem:[#allocation11 + $0x518] sm:$0xff] }
 0x98a   :  { %15790 = vmatpush1.bf16.msra.mxu1 %v18854_v44  ;;  %15750 = vmatprep.subr.bf16.mxu0 %v18735_v40  ;;  %v12407_v44 = vld [vmem:[#allocation11 + $0x538] sm:$0xff]  ;;  %v18520_v40 = vcombine.low %v12395_v14, %v12399_v27 }
 0x98b   :  { %15791 = vmatprep.subr.bf16.mxu1 %v18863_v29  ;;  %v18401_v29 = vcombine.high %v12275_v60, %v12279_v52  ;;  %v18529_v36 = vcombine.high %v12403_v19, %v12407_v44  ;;  %v12295_v16 = vld [vmem:[#allocation11 + $0x1b8] sm:$0xff] }
 0x98c   :  { %v12419_v34 = vld [vmem:[#allocation11 + $0x598] sm:$0xff]  ;;  %v18416_v38 = vcombine.low %v12291_v41, %v12295_v16 }
 0x98d   :  { %15751 = vmatpush1.bf16.msra.mxu0 %v18734_v53  ;;  %v12415_v53 = vld [vmem:[#allocation11 + $0x578] sm:$0xff] }
 0x98e   :  { %15792 = vmatpush1.bf16.msra.mxu1 %v18862_v11  ;;  %15752 = vmatprep.subr.bf16.mxu0 %v18743_v7  ;;  %v18400_v11 = vcombine.low %v12275_v60, %v12279_v52  ;;  %v18528_v7 = vcombine.low %v12403_v19, %v12407_v44  ;;  %v18537_v9 = vcombine.high %v12411_v37, %v12415_v53  ;;  %v12303_v25 = vld [vmem:[#allocation11 + $0x1f8] sm:$0xff] }
 0x98f   :  { %15793 = vmatprep.subr.bf16.mxu1 %v18871_v3  ;;  %v18409_v3 = vcombine.high %v12283_v12, %v12287_v54  ;;  %v12431_v59 = vld [vmem:[#allocation11 + $0x5f8] sm:$0xff] }
 0x990   :  { %v12315_v44 = vld [vmem:[#allocation11 + $0x258] sm:$0xff] }
 0x991   :  { %15753 = vmatpush1.bf16.msra.mxu0 %v18742_v5  ;;  %v12423_v5 = vld [vmem:[#allocation11 + $0x5b8] sm:$0xff] }
 0x992   :  { %15794 = vmatpush1.bf16.msra.mxu1 %v18870_v20  ;;  %15804 = vmatprep.subr.bf16.mxu0 %v18369_v45  ;;  %v18408_v20 = vcombine.low %v12283_v12, %v12287_v54  ;;  %v18536_v45 = vcombine.low %v12411_v37, %v12415_v53  ;;  %v18545_v49 = vcombine.high %v12419_v34, %v12423_v5  ;;  %v12323_v53 = vld [vmem:[#allocation11 + $0x298] sm:$0xff] }
 0x993   :  { %15845 = vmatprep.subr.bf16.mxu1 %v18497_v1  ;;  %v18417_v1 = vcombine.high %v12291_v41, %v12295_v16 }
 0x994   :  { %15755 = vmatmul.mubr.bf16.vlgmr.msra.gmra.mrb[76].mxu0 %v20095_v15 }
 0x995   :  { %15796 = vmatmul.mubr.bf16.vlgmr.msra.gmra.mrb[76].mxu1 %v20099_v0  ;;  %15805 = vmatpush1.bf16.msra.mxu0 %v18368_v32  ;;  %v12299_v32 = vld [vmem:[#allocation11 + $0x1d8] sm:$0xff] }
 0x996   :  { %15836 = vmatprep.mubr.bf16.mxu0 %v20055_v31  ;;  %15846 = vmatpush1.bf16.msra.mxu1 %v18496_v42  ;;  %v18521_v31 = vcombine.high %v12395_v14, %v12399_v27  ;;  %v12307_v27 = vld [vmem:[#allocation11 + $0x218] sm:$0xff] }
 0x997   :  { %15877 = vmatprep.mubr.bf16.mxu1 %v20058_v22  ;;  %15806 = vmatprep.subr.bf16.mxu0 %v18377_v4  ;;  %v18392_v22 = vcombine.low %v12267_v61, %v12271_v28  ;;  %v12427_v4 = vld [vmem:[#allocation11 + $0x5d8] sm:$0xff]  ;;  %v18425_v61 = vcombine.high %v12299_v32, %v12303_v25 }
 0x998   :  { %15847 = vmatprep.subr.bf16.mxu1 %v18505_v33  ;;  %v18553_v14 = vcombine.high %v12427_v4, %v12431_v59  ;;  %v18552_v60 = vcombine.low %v12427_v4, %v12431_v59  ;;  %v12467_v4 = vld [vmem:[#allocation11 + $0x718] sm:$0xff] }
 0x999   :  { %15807 = vmatpush1.bf16.msra.mxu0 %v18376_v30  ;;  %v12471_v59 = vld [vmem:[#allocation11 + $0x738] sm:$0xff] }
 0x99a   :  { %15848 = vmatpush1.bf16.msra.mxu1 %v18504_v47  ;;  %15808 = vmatprep.subr.bf16.mxu0 %v18385_v6 }
 0x99b   :  { %15849 = vmatprep.subr.bf16.mxu1 %v18513_v24  ;;  %v18544_v24 = vcombine.low %v12419_v34, %v12423_v5  ;;  %v12331_v5 = vld [vmem:[#allocation11 + $0x2d8] sm:$0xff] }
 0x99d   :  { %15809 = vmatpush1.bf16.msra.mxu0 %v18384_v51  ;;  %v12311_v51 = vld [vmem:[#allocation11 + $0x238] sm:$0xff] }
 0x99e   :  { %15850 = vmatpush1.bf16.msra.mxu1 %v18512_v46  ;;  %15810 = vmatprep.subr.bf16.mxu0 %v18393_v18  ;;  %v12435_v46 = vld [vmem:[#allocation11 + $0x618] sm:$0xff]  ;;  %v18433_v52 = vcombine.high %v12307_v27, %v12311_v51 }
 0x99f   :  { %15851 = vmatprep.subr.bf16.mxu1 %v18521_v31  ;;  %v12439_v18 = vld [vmem:[#allocation11 + $0x638] sm:$0xff]  ;;  %v18424_v31 = vcombine.low %v12299_v32, %v12303_v25 }
 0x9a0   :  { %v18561_v19 = vcombine.high %v12435_v46, %v12439_v18  ;;  %v18560_v12 = vcombine.low %v12435_v46, %v12439_v18  ;;  %v12355_v18 = vld [vmem:[#allocation11 + $0x398] sm:$0xff] }
 0x9a1   :  { %15811 = vmatpush1.bf16.msra.mxu0 %v18392_v22  ;;  %v12319_v22 = vld [vmem:[#allocation11 + $0x278] sm:$0xff] }
 0x9a2   :  { %15852 = vmatpush1.bf16.msra.mxu1 %v18520_v40  ;;  %15812 = vmatprep.subr.bf16.mxu0 %v18401_v29  ;;  %v12443_v40 = vld [vmem:[#allocation11 + $0x658] sm:$0xff]  ;;  %v18441_v54 = vcombine.high %v12315_v44, %v12319_v22 }
 0x9a3   :  { %15853 = vmatprep.subr.bf16.mxu1 %v18529_v36  ;;  %v12447_v29 = vld [vmem:[#allocation11 + $0x678] sm:$0xff]  ;;  %v18432_v36 = vcombine.low %v12307_v27, %v12311_v51  ;;  %v18592_v27 = vcombine.low %v12467_v4, %v12471_v59 }
 0x9a4   :  { %v18569_v37 = vcombine.high %v12443_v40, %v12447_v29  ;;  %v18568_v41 = vcombine.low %v12443_v40, %v12447_v29  ;;  %v12363_v29 = vld [vmem:[#allocation11 + $0x3d8] sm:$0xff] }
 0x9a5   :  { %15813 = vmatpush1.bf16.msra.mxu0 %v18400_v11  ;;  %v12327_v11 = vld [vmem:[#allocation11 + $0x2b8] sm:$0xff] }
 0x9a6   :  { %15854 = vmatpush1.bf16.msra.mxu1 %v18528_v7  ;;  %15814 = vmatprep.subr.bf16.mxu0 %v18409_v3  ;;  %v12451_v7 = vld [vmem:[#allocation11 + $0x698] sm:$0xff]  ;;  %v18449_v16 = vcombine.high %v12323_v53, %v12327_v11 }
 0x9a7   :  { %v15510_v48 = vpop.f32.mrb[64].mxu0  ;;  %15855 = vmatprep.subr.bf16.mxu1 %v18537_v9  ;;  %v12455_v3 = vld [vmem:[#allocation11 + $0x6b8] sm:$0xff]  ;;  %v18440_v9 = vcombine.low %v12315_v44, %v12319_v22 }
 0x9a8   :  { %v15551_v57 = vpop.f32.mrb[64].mxu1  ;;  %v15512_v42 = vpop.f32.mrb[65].mxu0  ;;  %v18577_v34 = vcombine.high %v12451_v7, %v12455_v3 }
 0x9a9   :  { %v20139_v13 = vadd.f32 %v15551_v57, %v15510_v48  ;;  %v15553_v33 = vpop.f32.mrb[65].mxu1  ;;  %v15514_v26 = vpop.f32.mrb[66].mxu0  ;;  %15815 = vmatpush1.bf16.msra.mxu0 %v18408_v20  ;;  %v12335_v20 = vld [vmem:[#allocation11 + $0x2f8] sm:$0xff]  ;;  %v18448_v48 = vcombine.low %v12323_v53, %v12327_v11 }
 0x9aa   :  { %v20141_v30 = vadd.f32 %v15553_v33, %v15512_v42  ;;  %v15555_v47 = vpop.f32.mrb[66].mxu1  ;;  %15856 = vmatpush1.bf16.msra.mxu1 %v18536_v45  ;;  %v15515_v6 = vpop.f32.mrb[67].mxu0  ;;  %15816 = vmatprep.subr.bf16.mxu0 %v18417_v1  ;;  %v12459_v45 = vld [vmem:[#allocation11 + $0x6d8] sm:$0xff]  ;;  %v18457_v32 = vcombine.high %v12331_v5, %v12335_v20  ;;  %v18456_v33 = vcombine.low %v12331_v5, %v12335_v20 }
 0x9ab   :  { %v15556_v28 = vpop.f32.mrb[67].mxu1  ;;  %15857 = vmatprep.subr.bf16.mxu1 %v18545_v49  ;;  %v12463_v1 = vld [vmem:[#allocation11 + $0x6f8] sm:$0xff]  ;;  %v18576_v49 = vcombine.low %v12451_v7, %v12455_v3  ;;  %v18593_v47 = vcombine.high %v12467_v4, %v12471_v59 }
 0x9ac   :  { %v18585_v25 = vcombine.high %v12459_v45, %v12463_v1  ;;  %v12339_v57 = vld [vmem:[#allocation11 + $0x318] sm:$0xff]  ;;  %v18584_v26 = vcombine.low %v12459_v45, %v12463_v1 }
 0x9ad   :  { %15817 = vmatpush1.bf16.msra.mxu0 %v18416_v38  ;;  %v12343_v42 = vld [vmem:[#allocation11 + $0x338] sm:$0xff] }
 0x9ae   :  { %15858 = vmatpush1.bf16.msra.mxu1 %v18544_v24  ;;  %15818 = vmatprep.subr.bf16.mxu0 %v18425_v61  ;;  %v18465_v38 = vcombine.high %v12339_v57, %v12343_v42  ;;  %v12347_v6 = vld [vmem:[#allocation11 + $0x358] sm:$0xff] }
 0x9af   :  { %15859 = vmatprep.subr.bf16.mxu1 %v18553_v14  ;;  %v12351_v24 = vld [vmem:[#allocation11 + $0x378] sm:$0xff]  ;;  %v18464_v14 = vcombine.low %v12339_v57, %v12343_v42 }
 0x9b0   :  { %v12475_v61 = vld [vmem:[#allocation11 + $0x758] sm:$0xff]  ;;  %v18473_v51 = vcombine.high %v12347_v6, %v12351_v24 }
 0x9b1   :  { %15819 = vmatpush1.bf16.msra.mxu0 %v18424_v31  ;;  %v12479_v28 = vld [vmem:[#allocation11 + $0x778] sm:$0xff] }
 0x9b2   :  { %15860 = vmatpush1.bf16.msra.mxu1 %v18552_v60  ;;  %15820 = vmatprep.subr.bf16.mxu0 %v18433_v52  ;;  %v18601_v46 = vcombine.high %v12475_v61, %v12479_v28  ;;  %v12359_v31 = vld [vmem:[#allocation11 + $0x3b8] sm:$0xff]  ;;  %v18600_v44 = vcombine.low %v12475_v61, %v12479_v28 }
 0x9b3   :  { %15861 = vmatprep.subr.bf16.mxu1 %v18561_v19  ;;  %v12483_v60 = vld [vmem:[#allocation11 + $0x798] sm:$0xff]  ;;  %v18472_v19 = vcombine.low %v12347_v6, %v12351_v24  ;;  %v18481_v22 = vcombine.high %v12355_v18, %v12359_v31 }
 0x9b4   :  { %v12487_v52 = vld [vmem:[#allocation11 + $0x7b8] sm:$0xff] }
 0x9b5   :  { %15821 = vmatpush1.bf16.msra.mxu0 %v18432_v36  ;;  %v18609_v40 = vcombine.high %v12483_v60, %v12487_v52  ;;  %v12367_v36 = vld [vmem:[#allocation11 + $0x3f8] sm:$0xff]  ;;  %v18608_v53 = vcombine.low %v12483_v60, %v12487_v52 }
 0x9b6   :  { %15862 = vmatpush1.bf16.msra.mxu1 %v18560_v12  ;;  %15822 = vmatprep.subr.bf16.mxu0 %v18441_v54  ;;  %v12491_v12 = vld [vmem:[#allocation11 + $0x7d8] sm:$0xff]  ;;  %v18489_v11 = vcombine.high %v12363_v29, %v12367_v36 }
 0x9b7   :  { %15863 = vmatprep.subr.bf16.mxu1 %v18569_v37  ;;  %v12495_v54 = vld [vmem:[#allocation11 + $0x7f8] sm:$0xff]  ;;  %v18480_v37 = vcombine.low %v12355_v18, %v12359_v31 }
 0x9b8   :  { %v18617_v7 = vcombine.high %v12491_v12, %v12495_v54  ;;  %v12499_v3 = vld [vmem:[#allocation11 + $0x818] sm:$0xff]  ;;  %v18616_v5 = vcombine.low %v12491_v12, %v12495_v54 }
 0x9b9   :  { %15823 = vmatpush1.bf16.msra.mxu0 %v18440_v9  ;;  %v12503_v9 = vld [vmem:[#allocation11 + $0x838] sm:$0xff] }
 0x9ba   :  { %15864 = vmatpush1.bf16.msra.mxu1 %v18568_v41  ;;  %15824 = vmatprep.subr.bf16.mxu0 %v18449_v16  ;;  %v12627_v41 = vld [vmem:[#allocation11 + $0xc18] sm:$0xff]  ;;  %v18625_v20 = vcombine.high %v12499_v3, %v12503_v9 }
 0x9bb   :  { %15865 = vmatprep.subr.bf16.mxu1 %v18577_v34  ;;  %v12631_v16 = vld [vmem:[#allocation11 + $0xc38] sm:$0xff]  ;;  %v18488_v34 = vcombine.low %v12363_v29, %v12367_v36 }
 0x9bc   :  { %v18753_v45 = vcombine.high %v12627_v41, %v12631_v16  ;;  %v12507_v1 = vld [vmem:[#allocation11 + $0x858] sm:$0xff]  ;;  %v18752_v57 = vcombine.low %v12627_v41, %v12631_v16 }
 0x9bd   :  { %15825 = vmatpush1.bf16.msra.mxu0 %v18448_v48  ;;  %v12511_v48 = vld [vmem:[#allocation11 + $0x878] sm:$0xff] }
 0x9be   :  { %15866 = vmatpush1.bf16.msra.mxu1 %v18576_v49  ;;  %15826 = vmatprep.subr.bf16.mxu0 %v18457_v32  ;;  %v18624_v49 = vcombine.low %v12499_v3, %v12503_v9  ;;  %v12635_v32 = vld [vmem:[#allocation11 + $0xc58] sm:$0xff]  ;;  %v18633_v42 = vcombine.high %v12507_v1, %v12511_v48 }
 0x9bf   :  { %15867 = vmatprep.subr.bf16.mxu1 %v18585_v25  ;;  %v12639_v25 = vld [vmem:[#allocation11 + $0xc78] sm:$0xff] }
 0x9c0   :  { %v12515_v4 = vld [vmem:[#allocation11 + $0x898] sm:$0xff]  ;;  %v18760_v6 = vcombine.low %v12635_v32, %v12639_v25 }
 0x9c1   :  { %15827 = vmatpush1.bf16.msra.mxu0 %v18456_v33  ;;  %v12519_v59 = vld [vmem:[#allocation11 + $0x8b8] sm:$0xff]  ;;  %v18761_v33 = vcombine.high %v12635_v32, %v12639_v25 }
 0x9c2   :  { %15868 = vmatpush1.bf16.msra.mxu1 %v18584_v26  ;;  %15828 = vmatprep.subr.bf16.mxu0 %v18465_v38  ;;  %v12643_v26 = vld [vmem:[#allocation11 + $0xc98] sm:$0xff]  ;;  %v18641_v24 = vcombine.high %v12515_v4, %v12519_v59 }
 0x9c3   :  { %15869 = vmatprep.subr.bf16.mxu1 %v18593_v47  ;;  %v12647_v38 = vld [vmem:[#allocation11 + $0xcb8] sm:$0xff]  ;;  %v18632_v47 = vcombine.low %v12507_v1, %v12511_v48 }
 0x9c4   :  { %v18769_v61 = vcombine.high %v12643_v26, %v12647_v38  ;;  %v12523_v28 = vld [vmem:[#allocation11 + $0x8d8] sm:$0xff] }
 0x9c5   :  { %15829 = vmatpush1.bf16.msra.mxu0 %v18464_v14  ;;  %v12527_v14 = vld [vmem:[#allocation11 + $0x8f8] sm:$0xff] }
 0x9c6   :  { %15870 = vmatpush1.bf16.msra.mxu1 %v18592_v27  ;;  %15830 = vmatprep.subr.bf16.mxu0 %v18473_v51  ;;  %v12655_v27 = vld [vmem:[#allocation11 + $0xcf8] sm:$0xff]  ;;  %v18640_v51 = vcombine.low %v12515_v4, %v12519_v59 }
 0x9c7   :  { %15871 = vmatprep.subr.bf16.mxu1 %v18601_v46  ;;  %v18649_v46 = vcombine.high %v12523_v28, %v12527_v14  ;;  %v12531_v18 = vld [vmem:[#allocation11 + $0x918] sm:$0xff] }
 0x9c8   :  { %v12535_v31 = vld [vmem:[#allocation11 + $0x938] sm:$0xff] }
 0x9c9   :  { %15831 = vmatpush1.bf16.msra.mxu0 %v18472_v19  ;;  %v12659_v60 = vld [vmem:[#allocation11 + $0xd18] sm:$0xff]  ;;  %v18656_v54 = vcombine.low %v12531_v18, %v12535_v31 }
 0x9ca   :  { %15872 = vmatpush1.bf16.msra.mxu1 %v18600_v44  ;;  %15832 = vmatprep.subr.bf16.mxu0 %v18481_v22  ;;  %v12663_v52 = vld [vmem:[#allocation11 + $0xd38] sm:$0xff]  ;;  %v18657_v44 = vcombine.high %v12531_v18, %v12535_v31 }
 0x9cb   :  { %15873 = vmatprep.subr.bf16.mxu1 %v18609_v40  ;;  %v18785_v22 = vcombine.high %v12659_v60, %v12663_v52  ;;  %v12539_v40 = vld [vmem:[#allocation11 + $0x958] sm:$0xff] }
 0x9cc   :  { %v12543_v29 = vld [vmem:[#allocation11 + $0x978] sm:$0xff] }
 0x9cd   :  { %15833 = vmatpush1.bf16.msra.mxu0 %v18480_v37  ;;  %v12667_v36 = vld [vmem:[#allocation11 + $0xd58] sm:$0xff]  ;;  %v18784_v37 = vcombine.low %v12659_v60, %v12663_v52  ;;  %v18664_v16 = vcombine.low %v12539_v40, %v12543_v29 }
 0x9ce   :  { %15874 = vmatpush1.bf16.msra.mxu1 %v18608_v53  ;;  %15834 = vmatprep.subr.bf16.mxu0 %v18489_v11  ;;  %v12671_v12 = vld [vmem:[#allocation11 + $0xd78] sm:$0xff]  ;;  %v18665_v53 = vcombine.high %v12539_v40, %v12543_v29 }
 0x9cf   :  { %15875 = vmatprep.subr.bf16.mxu1 %v18617_v7  ;;  %v18793_v11 = vcombine.high %v12667_v36, %v12671_v12  ;;  %v12547_v7 = vld [vmem:[#allocation11 + $0x998] sm:$0xff] }
 0x9d0   :  { %v12551_v3 = vld [vmem:[#allocation11 + $0x9b8] sm:$0xff] }
 0x9d1   :  { %15835 = vmatpush1.bf16.msra.mxu0 %v18488_v34  ;;  %v12675_v9 = vld [vmem:[#allocation11 + $0xd98] sm:$0xff]  ;;  %v18792_v34 = vcombine.low %v12667_v36, %v12671_v12 }
 0x9d2   :  { %15876 = vmatpush1.bf16.msra.mxu1 %v18616_v5  ;;  %15886 = vmatprep.subr.bf16.mxu0 %v18625_v20  ;;  %v12679_v41 = vld [vmem:[#allocation11 + $0xdb8] sm:$0xff]  ;;  %v18673_v5 = vcombine.high %v12547_v7, %v12551_v3 }
 0x9d3   :  { %15927 = vmatprep.subr.bf16.mxu1 %v18753_v45  ;;  %v18801_v45 = vcombine.high %v12675_v9, %v12679_v41  ;;  %v12555_v1 = vld [vmem:[#allocation11 + $0x9d8] sm:$0xff] }
 0x9d4   :  { %15837 = vmatmul.mubr.bf16.vlgmr.msra.gmra.mrb[80].mxu0 %v20067_v39  ;;  %v12651_v39 = vld [vmem:[#allocation11 + $0xcd8] sm:$0xff] }
 0x9d5   :  { %15878 = vmatmul.mubr.bf16.vlgmr.msra.gmra.mrb[80].mxu1 %v20069_v62  ;;  %15887 = vmatpush1.bf16.msra.mxu0 %v18624_v49  ;;  %v18768_v62 = vcombine.low %v12643_v26, %v12647_v38  ;;  %v18776_v19 = vcombine.low %v12651_v39, %v12655_v27  ;;  %v12559_v48 = vld [vmem:[#allocation11 + $0x9f8] sm:$0xff]  ;;  %v18672_v26 = vcombine.low %v12547_v7, %v12551_v3 }
 0x9d6   :  { %15918 = vmatprep.mubr.bf16.mxu0 %v20093_v43  ;;  %15928 = vmatpush1.bf16.msra.mxu1 %v18752_v57  ;;  %v18777_v43 = vcombine.high %v12651_v39, %v12655_v27  ;;  %v12683_v57 = vld [vmem:[#allocation11 + $0xdd8] sm:$0xff] }
 0x9d7   :  { %15959 = vmatprep.mubr.bf16.mxu1 %v20097_v35  ;;  %15888 = vmatprep.subr.bf16.mxu0 %v18633_v42  ;;  %v18648_v35 = vcombine.low %v12523_v28, %v12527_v14  ;;  %v12687_v42 = vld [vmem:[#allocation11 + $0xdf8] sm:$0xff] }
 0x9d8   :  { %15929 = vmatprep.subr.bf16.mxu1 %v18761_v33  ;;  %v18809_v14 = vcombine.high %v12683_v57, %v12687_v42  ;;  %v12563_v39 = vld [vmem:[#allocation11 + $0xa18] sm:$0xff] }
 0x9d9   :  { %15889 = vmatpush1.bf16.msra.mxu0 %v18632_v47  ;;  %v12567_v27 = vld [vmem:[#allocation11 + $0xa38] sm:$0xff] }
 0x9da   :  { %15930 = vmatpush1.bf16.msra.mxu1 %v18760_v6  ;;  %15890 = vmatprep.subr.bf16.mxu0 %v18641_v24  ;;  %v18800_v24 = vcombine.low %v12675_v9, %v12679_v41  ;;  %v12571_v31 = vld [vmem:[#allocation11 + $0xa58] sm:$0xff] }
 0x9db   :  { %15931 = vmatprep.subr.bf16.mxu1 %v18769_v61  ;;  %v18681_v61 = vcombine.high %v12555_v1, %v12559_v48  ;;  %v12575_v60 = vld [vmem:[#allocation11 + $0xa78] sm:$0xff] }
 0x9dc   :  { %v12699_v52 = vld [vmem:[#allocation11 + $0xe58] sm:$0xff] }
 0x9dd   :  { %15891 = vmatpush1.bf16.msra.mxu0 %v18640_v51  ;;  %v12695_v51 = vld [vmem:[#allocation11 + $0xe38] sm:$0xff] }
 0x9de   :  { %15932 = vmatpush1.bf16.msra.mxu1 %v18768_v62  ;;  %15892 = vmatprep.subr.bf16.mxu0 %v18649_v46  ;;  %v18680_v62 = vcombine.low %v12555_v1, %v12559_v48  ;;  %v18808_v46 = vcombine.low %v12683_v57, %v12687_v42  ;;  %v12579_v29 = vld [vmem:[#allocation11 + $0xa98] sm:$0xff] }
 0x9df   :  { %15933 = vmatprep.subr.bf16.mxu1 %v18777_v43  ;;  %v18689_v43 = vcombine.high %v12563_v39, %v12567_v27  ;;  %v12583_v36 = vld [vmem:[#allocation11 + $0xab8] sm:$0xff] }
 0x9e0   :  { %v12707_v12 = vld [vmem:[#allocation11 + $0xe98] sm:$0xff] }
 0x9e1   :  { %15893 = vmatpush1.bf16.msra.mxu0 %v18648_v35  ;;  %v12703_v35 = vld [vmem:[#allocation11 + $0xe78] sm:$0xff] }
 0x9e2   :  { %15934 = vmatpush1.bf16.msra.mxu1 %v18776_v19  ;;  %15894 = vmatprep.subr.bf16.mxu0 %v18657_v44  ;;  %v18688_v19 = vcombine.low %v12563_v39, %v12567_v27  ;;  %v18825_v40 = vcombine.high %v12699_v52, %v12703_v35  ;;  %v12587_v3 = vld [vmem:[#allocation11 + $0xad8] sm:$0xff]  ;;  %v20154_v27 = vsub.s32 4, %v19691_v63 }
 0x9e3   :  { %15935 = vmatprep.subr.bf16.mxu1 %v18785_v22  ;;  %v18697_v22 = vcombine.high %v12571_v31, %v12575_v60  ;;  %v12591_v9 = vld [vmem:[#allocation11 + $0xaf8] sm:$0xff] }
 0x9e4   :  { %v12715_v41 = vld [vmem:[#allocation11 + $0xed8] sm:$0xff] }
 0x9e5   :  { %15895 = vmatpush1.bf16.msra.mxu0 %v18656_v54  ;;  %v12711_v54 = vld [vmem:[#allocation11 + $0xeb8] sm:$0xff] }
 0x9e6   :  { %15936 = vmatpush1.bf16.msra.mxu1 %v18784_v37  ;;  %15896 = vmatprep.subr.bf16.mxu0 %v18665_v53  ;;  %v18696_v37 = vcombine.low %v12571_v31, %v12575_v60  ;;  %v18824_v53 = vcombine.low %v12699_v52, %v12703_v35  ;;  %v18833_v7 = vcombine.high %v12707_v12, %v12711_v54  ;;  %v12595_v1 = vld [vmem:[#allocation11 + $0xb18] sm:$0xff]  ;;  %v19249_v35 = vld [vmem:[#allocation14 + $0x8] sm:$0xff] }
 0x9e7   :  { %v15592_v20 = vpop.f32.mrb[68].mxu0  ;;  %15937 = vmatprep.subr.bf16.mxu1 %v18793_v11  ;;  %v18705_v11 = vcombine.high %v12579_v29, %v12583_v36  ;;  %v12599_v48 = vld [vmem:[#allocation11 + $0xb38] sm:$0xff]  ;;  %v15969_v52 = vadd.f32 %v20133_v17, %v19922_v2 }
 0x9e8   :  { %v15593_v49 = vadd.f32 %v15592_v20, %v20139_v13  ;;  %v15633_v32 = vpop.f32.mrb[68].mxu1  ;;  %v15594_v25 = vpop.f32.mrb[69].mxu0  ;;  %v18713_v20 = vcombine.high %v12587_v3, %v12591_v9  ;;  %v18721_v42 = vcombine.high %v12595_v1, %v12599_v48  ;;  %v12615_v39 = vld [vmem:[#allocation11 + $0xbb8] sm:$0xff] }
 0x9e9   :  { %v15595_v4 = vadd.f32 %v15594_v25, %v20141_v30  ;;  %v15635_v59 = vpop.f32.mrb[69].mxu1  ;;  %v15596_v33 = vpop.f32.mrb[70].mxu0  ;;  %15897 = vmatpush1.bf16.msra.mxu0 %v18664_v16  ;;  %v12691_v30 = vld [vmem:[#allocation11 + $0xe18] sm:$0xff]  ;;  %v18712_v25 = vcombine.low %v12587_v3, %v12591_v9  ;;  %v19161_v3 = vld [vmem:[#allocation13 + $0x40] sm:$0xff]  }
 0x9ea   :  { %v20149_v38 = vadd.f32 %v15633_v32, %v15593_v49  ;;  %v15637_v47 = vpop.f32.mrb[70].mxu1  ;;  %15938 = vmatpush1.bf16.msra.mxu1 %v18792_v34  ;;  %v15597_v6 = vpop.f32.mrb[71].mxu0  ;;  %15898 = vmatprep.subr.bf16.mxu0 %v18673_v5  ;;  %v18817_v18 = vcombine.high %v12691_v30, %v12695_v51  ;;  %v18816_v44 = vcombine.low %v12691_v30, %v12695_v51  ;;  %v12719_v16 = vld [vmem:[#allocation11 + $0xef8] sm:$0xff]  ;;  %v19163_v9 = vld [vmem:[#allocation13] sm:$0xff]  }
 0x9eb   :  { %v20151_v28 = vadd.f32 %v15635_v59, %v15595_v4  ;;  %v15638_v13 = vpop.f32.mrb[71].mxu1  ;;  %15939 = vmatprep.subr.bf16.mxu1 %v18801_v45  ;;  %v18704_v34 = vcombine.low %v12579_v29, %v12583_v36  ;;  %v18832_v5 = vcombine.low %v12707_v12, %v12711_v54  ;;  %v18841_v45 = vcombine.high %v12715_v41, %v12719_v16  ;;  %v12723_v49 = vld [vmem:[#allocation11 + $0xf18] sm:$0xff] }
 0x9ec   :  { %v12727_v32 = vld [vmem:[#allocation11 + $0xf38] sm:$0xff]  ;;  %v18840_v57 = vcombine.low %v12715_v41, %v12719_v16  ;;  %v18720_v6 = vcombine.low %v12595_v1, %v12599_v48  ;;  %v19164_v16 = vld [vmem:[#allocation13 + $0x80] sm:$0xff]   ;;  %v19167_v1 = vld [vmem:[#allocation13 + $0x8] sm:$0xff]  }
 0x9ed   :  { %15899 = vmatpush1.bf16.msra.mxu0 %v18672_v26  ;;  %v18849_v4 = vcombine.high %v12723_v49, %v12727_v32  ;;  %v12603_v59 = vld [vmem:[#allocation11 + $0xb58] sm:$0xff]  ;;  %v19168_v48 = vld [vmem:[#allocation13 + $0x88] sm:$0xff]  }
 0x9ee   :  { %15940 = vmatpush1.bf16.msra.mxu1 %v18800_v24  ;;  %15900 = vmatprep.subr.bf16.mxu0 %v18681_v61  ;;  %v12607_v33 = vld [vmem:[#allocation11 + $0xb78] sm:$0xff]  ;;  %v18848_v24 = vcombine.low %v12723_v49, %v12727_v32  ;;  %v19169_v49 = vld [vmem:[#allocation13 + $0x50] sm:$0xff]  }
 0x9ef   :  { %15941 = vmatprep.subr.bf16.mxu1 %v18809_v14  ;;  %v12731_v26 = vld [vmem:[#allocation11 + $0xf58] sm:$0xff]  ;;  %v18729_v61 = vcombine.high %v12603_v59, %v12607_v33  ;;  %v19170_v32 = vld [vmem:[#allocation13 + $0xd0] sm:$0xff]  }
 0x9f0   :  { %v12735_v47 = vld [vmem:[#allocation11 + $0xf78] sm:$0xff] }
 0x9f1   :  { %15901 = vmatpush1.bf16.msra.mxu0 %v18680_v62  ;;  %v18857_v13 = vcombine.high %v12731_v26, %v12735_v47  ;;  %v12611_v14 = vld [vmem:[#allocation11 + $0xb98] sm:$0xff]  ;;  %v18728_v62 = vcombine.low %v12603_v59, %v12607_v33  ;;  %v19177_v59 = vld [vmem:[#allocation13 + $0x60] sm:$0xff]  }
 0x9f2   :  { %15942 = vmatpush1.bf16.msra.mxu1 %v18808_v46  ;;  %15902 = vmatprep.subr.bf16.mxu0 %v18689_v43  ;;  %v12739_v30 = vld [vmem:[#allocation11 + $0xf98] sm:$0xff]  ;;  %v18856_v46 = vcombine.low %v12731_v26, %v12735_v47  ;;  %v18737_v43 = vcombine.high %v12611_v14, %v12615_v39  ;;  %v18736_v12 = vcombine.low %v12611_v14, %v12615_v39  ;;  %v19178_v33 = vld [vmem:[#allocation13 + $0xe0] sm:$0xff]  }
 0x9f3   :  { %15943 = vmatprep.subr.bf16.mxu1 %v18817_v18  ;;  %v12743_v51 = vld [vmem:[#allocation11 + $0xfb8] sm:$0xff]  ;;  %v19179_v26 = vld [vmem:[#allocation13 + $0x20] sm:$0xff]  }
 0x9f4   :  { %v18865_v18 = vcombine.high %v12739_v30, %v12743_v51  ;;  %v12619_v31 = vld [vmem:[#allocation11 + $0xbd8] sm:$0xff]  ;;  %v18864_v54 = vcombine.low %v12739_v30, %v12743_v51  ;;  %v19180_v47 = vld [vmem:[#allocation13 + $0xa0] sm:$0xff]   ;;  %v19184_v30 = vld [vmem:[#allocation13 + $0xa8] sm:$0xff]  }
 0x9f5   :  { %15903 = vmatpush1.bf16.msra.mxu0 %v18688_v19  ;;  %v12623_v60 = vld [vmem:[#allocation11 + $0xbf8] sm:$0xff]  ;;  %v15983_v19 = vrot.slane %v19249_v35, %v20154_v27  ;;  %v20166_v14 = vld [vmem:[#allocation14] sm:$0xff]  ;;  %v19185_v51 = vld [vmem:[#allocation13 + $0x70] sm:$0xff]  }
 0x9f6   :  { %15944 = vmatpush1.bf16.msra.mxu1 %v18816_v44  ;;  %15904 = vmatprep.subr.bf16.mxu0 %v18697_v22  ;;  %v12747_v44 = vld [vmem:[#allocation11 + $0xfd8] sm:$0xff]  ;;  %v15979_v39 = vrot.slane %v20166_v14, %v20154_v27 }
 0x9f7   :  { %15945 = vmatprep.subr.bf16.mxu1 %v18825_v40  ;;  %v12751_v22 = vld [vmem:[#allocation11 + $0xff8] sm:$0xff]  ;;  %v15971_v40 = vadd.f32 %v20151_v28, %v19944_v56  ;;  %v16009_v2 = vadd.f32 %v15983_v19, %v15969_v52  ;;  %v19162_v56 = vld [vmem:[#allocation13 + $0xc0] sm:$0xff]   ;;  %v19187_v19 = vld [vmem:[#allocation13 + $0x30] sm:$0xff]  }
 0x9f8   :  { %v19250_v29 = vld [vmem:[#allocation14 + $0x18] sm:$0xff] }
 0x9f9   :  { %15905 = vmatpush1.bf16.msra.mxu0 %v18696_v37  ;;  %v15991_v36 = vrot.slane %v19250_v29, %v20154_v27  ;;  %v18745_v37 = vcombine.high %v12619_v31, %v12623_v60  ;;  %v16017_v28 = vmax.f32 %v16009_v2, 0.0  ;;  %v19189_v29 = vld [vmem:[#allocation13 + $0x78] sm:$0xff]  }
 0x9fa   :  { %15946 = vmatpush1.bf16.msra.mxu1 %v18824_v53  ;;  %15906 = vmatprep.subr.bf16.mxu0 %v18705_v11  ;;  %v18873_v53 = vcombine.high %v12747_v44, %v12751_v22  ;;  %v18744_v11 = vcombine.low %v12619_v31, %v12623_v60  ;;  %v19186_v31 = vld [vmem:[#allocation13 + $0xf0] sm:$0xff]   ;;  %v19192_v2 = vld [vmem:[#allocation13 + $0xb8] sm:$0xff]  }
 0x9fb   :  { %15947 = vmatprep.subr.bf16.mxu1 %v18833_v7  ;;  %v16011_v17 = vadd.f32 %v15991_v36, %v15971_v40  ;;  %v18872_v7 = vcombine.low %v12747_v44, %v12751_v22 }
 0x9fd   :  { %15907 = vmatpush1.bf16.msra.mxu0 %v18704_v34  ;;  %v16019_v41 = vmax.f32 %v16011_v17, 0.0  ;;  %v19165_v34 = vld [vmem:[#allocation13 + $0x48] sm:$0xff]   ;;  %v19193_v17 = vld [vmem:[#allocation13 + $0x140] sm:$0xff]  }
 0x9fe   :  { %15948 = vmatpush1.bf16.msra.mxu1 %v18832_v5  ;;  %15908 = vmatprep.subr.bf16.mxu0 %v18713_v20  ;;  %v16025_v5 = vpack.c.bf16 %v16017_v28, %v16017_v28  ;;  %v19166_v20 = vld [vmem:[#allocation13 + $0xc8] sm:$0xff]  }
 0x9ff   :  { %15949 = vmatprep.subr.bf16.mxu1 %v18841_v45  ;;  %v16027_v45 = vpack.c.bf16 %v16019_v41, %v16019_v41  ;;  %v19195_v28 = vld [vmem:[#allocation13 + $0x148] sm:$0xff]  }
 0xa01   :  { %15909 = vmatpush1.bf16.msra.mxu0 %v18712_v25  ;;  %v19171_v25 = vld [vmem:[#allocation13 + $0x10] sm:$0xff]  }
 0xa02   :  { %15950 = vmatpush1.bf16.msra.mxu1 %v18840_v57  ;;  %15910 = vmatprep.subr.bf16.mxu0 %v18721_v42  ;;  %v19173_v57 = vld [vmem:[#allocation13 + $0x58] sm:$0xff]  }
 0xa03   :  { %15951 = vmatprep.subr.bf16.mxu1 %v18849_v4  ;;  %v19174_v42 = vld [vmem:[#allocation13 + $0xd8] sm:$0xff]  }
 0xa04   :  { %v19176_v4 = vld [vmem:[#allocation13 + $0x98] sm:$0xff]  }
 0xa05   :  { %15911 = vmatpush1.bf16.msra.mxu0 %v18720_v6  ;;  %v19181_v6 = vld [vmem:[#allocation13 + $0x68] sm:$0xff]  }
 0xa06   :  { %15952 = vmatpush1.bf16.msra.mxu1 %v18848_v24  ;;  %15912 = vmatprep.subr.bf16.mxu0 %v18729_v61  ;;  %v19182_v24 = vld [vmem:[#allocation13 + $0xe8] sm:$0xff]  }
 0xa07   :  { %15953 = vmatprep.subr.bf16.mxu1 %v18857_v13  ;;  %v19183_v61 = vld [vmem:[#allocation13 + $0x28] sm:$0xff]   ;;  %v15968_v13 = vadd.f32 %v20131_v8, %v19942_v21 }
 0xa09   :  { %15913 = vmatpush1.bf16.msra.mxu0 %v18728_v62  ;;  %v15970_v62 = vadd.f32 %v20149_v38, %v19970_v50  ;;  %v16008_v44 = vadd.f32 %v15979_v39, %v15968_v13  ;;  %v19188_v38 = vld [vmem:[#allocation13 + $0xb0] sm:$0xff]  }
 0xa0a   :  { %15954 = vmatpush1.bf16.msra.mxu1 %v18856_v46  ;;  %15914 = vmatprep.subr.bf16.mxu0 %v18737_v43  ;;  %v19252_v46 = vld [vmem:[#allocation14 + $0x10] sm:$0xff] }
 0xa0b   :  { %15955 = vmatprep.subr.bf16.mxu1 %v18865_v18  ;;  %v15987_v43 = vrot.slane %v19252_v46, %v20154_v27 }
 0xa0d   :  { %15915 = vmatpush1.bf16.msra.mxu0 %v18736_v12  ;;  %v16010_v36 = vadd.f32 %v15987_v43, %v15970_v62 }
 0xa0e   :  { %15956 = vmatpush1.bf16.msra.mxu1 %v18864_v54  ;;  %15916 = vmatprep.subr.bf16.mxu0 %v18745_v37  ;;  %v19190_v54 = vld [vmem:[#allocation13 + $0xf8] sm:$0xff]  }
 0xa0f   :  { %15957 = vmatprep.subr.bf16.mxu1 %v18873_v53  ;;  %v19191_v37 = vld [vmem:[#allocation13 + $0x38] sm:$0xff]   ;;  %v16016_v53 = vmax.f32 %v16008_v44, 0.0 }
 0xa11   :  { %15917 = vmatpush1.bf16.msra.mxu0 %v18744_v11  ;;  %v16018_v11 = vmax.f32 %v16010_v36, 0.0 }
 0xa12   :  { %15958 = vmatpush1.bf16.msra.mxu1 %v18872_v7  ;;  %18938 = vmatprep.subr.bf16.mxu0 %v19161_v3  ;;  %v19209_v7 = vld [vmem:[#allocation13 + $0x1c0] sm:$0xff]  }
 0xa13   :  { %18960 = vmatprep.subr.bf16.mxu1 %v19162_v56  ;;  %v19194_v3 = vld [vmem:[#allocation13 + $0x100] sm:$0xff]   ;;  %v16024_v56 = vpack.c.bf16 %v16016_v53, %v16016_v53  ;;  %v16026_v41 = vpack.c.bf16 %v16018_v11, %v16018_v11  ;;  %v19223_v53 = vld [vmem:[#allocation13 + $0x1f8] sm:$0xff]  }
 0xa14   :  { %15919 = vmatmul.mubr.bf16.vlgmr.msra.gmra.mrb[84].mxu0 %v20095_v15  ;;  %v19172_v15 = vld [vmem:[#allocation13 + $0x90] sm:$0xff]  }
 0xa15   :  { %15960 = vmatmul.mubr.bf16.vlgmr.msra.gmra.mrb[84].mxu1 %v20099_v0  ;;  %18939 = vmatpush3.bf16.msra.mxu0 %v19163_v9  ;;  %v19175_v0 = vld [vmem:[#allocation13 + $0x18] sm:$0xff]   ;;  %v19210_v9 = vld [vmem:[#allocation13 + $0x180] sm:$0xff]  }
 0xa16   :  { %16580 = vmatprep.mubr.bf16.mxu0 %v16025_v5  ;;  %18961 = vmatpush3.bf16.msra.mxu1 %v19164_v16  ;;  %v19211_v16 = vld [vmem:[#allocation13 + $0x1c8] sm:$0xff]   ;;  %v19197_v5 = vld [vmem:[#allocation13 + $0x150] sm:$0xff]  }
 0xa17   :  { %16620 = vmatprep.mubr.bf16.mxu1 %v16027_v45  ;;  %18940 = vmatprep.subr.bf16.mxu0 %v19165_v34  ;;  %v19196_v34 = vld [vmem:[#allocation13 + $0x108] sm:$0xff]   ;;  %v19213_v45 = vld [vmem:[#allocation13 + $0x1d0] sm:$0xff]  }
 0xa18   :  { %18962 = vmatprep.subr.bf16.mxu1 %v19166_v20  ;;  %v19212_v20 = vld [vmem:[#allocation13 + $0x188] sm:$0xff]  }
 0xa19   :  { %18941 = vmatpush3.bf16.msra.mxu0 %v19167_v1  ;;  %v19198_v1 = vld [vmem:[#allocation13 + $0x110] sm:$0xff]  }
 0xa1a   :  { %18963 = vmatpush3.bf16.msra.mxu1 %v19168_v48  ;;  %18942 = vmatprep.subr.bf16.mxu0 %v19169_v49  ;;  %v19199_v48 = vld [vmem:[#allocation13 + $0x158] sm:$0xff]   ;;  %v19214_v49 = vld [vmem:[#allocation13 + $0x190] sm:$0xff]  }
 0xa1b   :  { %18964 = vmatprep.subr.bf16.mxu1 %v19170_v32  ;;  %v19215_v32 = vld [vmem:[#allocation13 + $0x1d8] sm:$0xff]  }
 0xa1d   :  { %18943 = vmatpush3.bf16.msra.mxu0 %v19171_v25  ;;  %v19200_v25 = vld [vmem:[#allocation13 + $0x118] sm:$0xff]  }
 0xa1e   :  { %18965 = vmatpush3.bf16.msra.mxu1 %v19172_v15  ;;  %18944 = vmatprep.subr.bf16.mxu0 %v19173_v57  ;;  %v19201_v15 = vld [vmem:[#allocation13 + $0x160] sm:$0xff]   ;;  %v19216_v57 = vld [vmem:[#allocation13 + $0x198] sm:$0xff]  }
 0xa1f   :  { %18966 = vmatprep.subr.bf16.mxu1 %v19174_v42  ;;  %v19217_v42 = vld [vmem:[#allocation13 + $0x1e0] sm:$0xff]  }
 0xa21   :  { %18945 = vmatpush3.bf16.msra.mxu0 %v19175_v0  ;;  %v19202_v0 = vld [vmem:[#allocation13 + $0x120] sm:$0xff]  }
 0xa22   :  { %18967 = vmatpush3.bf16.msra.mxu1 %v19176_v4  ;;  %18946 = vmatprep.subr.bf16.mxu0 %v19177_v59  ;;  %v19203_v4 = vld [vmem:[#allocation13 + $0x168] sm:$0xff]  }
 0xa23   :  { %18968 = vmatprep.subr.bf16.mxu1 %v19178_v33  ;;  %v19204_v59 = vld [vmem:[#allocation13 + $0x128] sm:$0xff]   ;;  %v19205_v33 = vld [vmem:[#allocation13 + $0x170] sm:$0xff]  }
 0xa25   :  { %18947 = vmatpush3.bf16.msra.mxu0 %v19179_v26  ;;  %v19206_v26 = vld [vmem:[#allocation13 + $0x130] sm:$0xff]  }
 0xa26   :  { %18969 = vmatpush3.bf16.msra.mxu1 %v19180_v47  ;;  %18948 = vmatprep.subr.bf16.mxu0 %v19181_v6  ;;  %v19207_v47 = vld [vmem:[#allocation13 + $0x178] sm:$0xff]  }
 0xa27   :  { %v15674_v18 = vpop.f32.mrb[72].mxu0  ;;  %18970 = vmatprep.subr.bf16.mxu1 %v19182_v24  ;;  %v19208_v6 = vld [vmem:[#allocation13 + $0x138] sm:$0xff]  }
 0xa28   :  { %v15715_v60 = vpop.f32.mrb[72].mxu1  ;;  %v15676_v21 = vpop.f32.mrb[73].mxu0 }
 0xa29   :  { %v20173_v8 = vadd.f32 %v15715_v60, %v15674_v18  ;;  %v15717_v52 = vpop.f32.mrb[73].mxu1  ;;  %v15678_v35 = vpop.f32.mrb[74].mxu0  ;;  %18949 = vmatpush3.bf16.msra.mxu0 %v19183_v61  ;;  %v19218_v61 = vld [vmem:[#allocation13 + $0x1a0] sm:$0xff]  }
 0xa2a   :  { %v20175_v22 = vadd.f32 %v15717_v52, %v15676_v21  ;;  %v15719_v40 = vpop.f32.mrb[74].mxu1  ;;  %18971 = vmatpush3.bf16.msra.mxu1 %v19184_v30  ;;  %v15679_v50 = vpop.f32.mrb[75].mxu0  ;;  %18950 = vmatprep.subr.bf16.mxu0 %v19185_v51  ;;  %v19253_v18 = vld [vmem:[#allocation14 + $0x20] sm:$0xff]  ;;  %v19219_v52 = vld [vmem:[#allocation13 + $0x1e8] sm:$0xff]  }
 0xa2b   :  { %v15720_v12 = vpop.f32.mrb[75].mxu1  ;;  %18972 = vmatprep.subr.bf16.mxu1 %v19186_v31  ;;  %v15995_v31 = vrot.slane %v19253_v18, %v20154_v27 }
 0xa2c   :  { %v19222_v12 = vld [vmem:[#allocation13 + $0x1b0] sm:$0xff]  }
 0xa2d   :  { %18951 = vmatpush3.bf16.msra.mxu0 %v19187_v19  ;;  %v19254_v19 = vld [vmem:[#allocation14 + $0x28] sm:$0xff] }
 0xa2e   :  { %18973 = vmatpush3.bf16.msra.mxu1 %v19188_v38  ;;  %18952 = vmatprep.subr.bf16.mxu0 %v19189_v29  ;;  %v15999_v44 = vrot.slane %v19254_v19, %v20154_v27  ;;  %v19221_v29 = vld [vmem:[#allocation13 + $0x1f0] sm:$0xff]  }
 0xa2f   :  { %18974 = vmatprep.subr.bf16.mxu1 %v19190_v54 }
 0xa31   :  { %18953 = vmatpush3.bf16.msra.mxu0 %v19191_v37 }
 0xa32   :  { %18975 = vmatpush3.bf16.msra.mxu1 %v19192_v2  ;;  %18982 = vmatprep.subr.bf16.mxu0 %v19193_v17  ;;  %v19224_v2 = vld [vmem:[#allocation13 + $0x1b8] sm:$0xff]  }
 0xa33   :  { %19004 = vmatprep.subr.bf16.mxu1 %v19209_v7 }
 0xa34   :  { %16581 = vmatmul.mubr.bf16.vlgmr.msra.gmra.mrb[88].mxu0 %v16024_v56 }
 0xa35   :  { %16621 = vmatmul.mubr.bf16.vlgmr.msra.gmra.mrb[88].mxu1 %v16026_v41  ;;  %18983 = vmatpush3.bf16.msra.mxu0 %v19194_v3 }
 0xa36   :  { %18984 = vmatprep.subr.bf16.mxu0 %v19195_v28  ;;  %19005 = vmatpush3.bf16.msra.mxu1 %v19210_v9 }
 0xa37   :  { %19006 = vmatprep.subr.bf16.mxu1 %v19211_v16 }
 0xa39   :  { %18985 = vmatpush3.bf16.msra.mxu0 %v19196_v34 }
 0xa3a   :  { %18986 = vmatprep.subr.bf16.mxu0 %v19197_v5  ;;  %19007 = vmatpush3.bf16.msra.mxu1 %v19212_v20 }
 0xa3b   :  { %19008 = vmatprep.subr.bf16.mxu1 %v19213_v45 }
 0xa3d   :  { %18987 = vmatpush3.bf16.msra.mxu0 %v19198_v1 }
 0xa3e   :  { %18988 = vmatprep.subr.bf16.mxu0 %v19199_v48  ;;  %19009 = vmatpush3.bf16.msra.mxu1 %v19214_v49 }
 0xa3f   :  { %19010 = vmatprep.subr.bf16.mxu1 %v19215_v32 }
 0xa41   :  { %18989 = vmatpush3.bf16.msra.mxu0 %v19200_v25 }
 0xa42   :  { %18990 = vmatprep.subr.bf16.mxu0 %v19201_v15  ;;  %19011 = vmatpush3.bf16.msra.mxu1 %v19216_v57  ;;  %v19255_v15 = vld [vmem:[#allocation14 + $0x30] sm:$0xff] }
 0xa43   :  { %19012 = vmatprep.subr.bf16.mxu1 %v19217_v42  ;;  %v16003_v57 = vrot.slane %v19255_v15, %v20154_v27 }
 0xa45   :  { %18991 = vmatpush3.bf16.msra.mxu0 %v19202_v0 }
 0xa46   :  { %18992 = vmatprep.subr.bf16.mxu0 %v19203_v4  ;;  %19013 = vmatpush3.bf16.msra.mxu1 %v19218_v61 }
 0xa47   :  { %19014 = vmatprep.subr.bf16.mxu1 %v19219_v52 }
 0xa49   :  { %18993 = vmatpush3.bf16.msra.mxu0 %v19204_v59  ;;  %v19256_v59 = vld [vmem:[#allocation14 + $0x38] sm:$0xff] }
 0xa4a   :  { %18994 = vmatprep.subr.bf16.mxu0 %v19205_v33  ;;  %v16007_v33 = vrot.slane %v19256_v59, %v20154_v27 }
 0xa4d   :  { %18995 = vmatpush3.bf16.msra.mxu0 %v19206_v26 }
 0xa4e   :  { %18996 = vmatprep.subr.bf16.mxu0 %v19207_v47 }
 0xa51   :  { %18997 = vmatpush3.bf16.msra.mxu0 %v19208_v6 }
 0xa67   :  { %v15756_v24 = vpop.f32.mrb[76].mxu0 }
 0xa68   :  { %v15757_v13 = vadd.f32 %v15756_v24, %v20173_v8  ;;  %v15797_v39 = vpop.f32.mrb[76].mxu1  ;;  %v15758_v30 = vpop.f32.mrb[77].mxu0  ;;  %v19220_v8 = vld [vmem:[#allocation13 + $0x1a8] sm:$0xff]  }
 0xa69   :  { %v15759_v51 = vadd.f32 %v15758_v30, %v20175_v22  ;;  %v15799_v62 = vpop.f32.mrb[77].mxu1  ;;  %v15760_v46 = vpop.f32.mrb[78].mxu0  ;;  %19015 = vmatpush3.bf16.msra.mxu1 %v19220_v8 }
 0xa6a   :  { %v15798_v43 = vadd.f32 %v15797_v39, %v15757_v13  ;;  %v15801_v60 = vpop.f32.mrb[78].mxu1  ;;  %v15761_v21 = vpop.f32.mrb[79].mxu0  ;;  %19016 = vmatprep.subr.bf16.mxu1 %v19221_v29 }
 0xa6b   :  { %v15800_v35 = vadd.f32 %v15799_v62, %v15759_v51  ;;  %v15802_v40 = vpop.f32.mrb[79].mxu1  ;;  %v16162_v62 = vsub.s32 5, %v19691_v63 }
 0xa6c   :  { %v15972_v50 = vadd.f32 %v15798_v43, %v19993_v23 }
 0xa6d   :  { %v15973_v22 = vadd.f32 %v15800_v35, %v19972_v55  ;;  %19017 = vmatpush3.bf16.msra.mxu1 %v19222_v12  ;;  %v16163_v43 = vrot.slane %v20166_v14, %v16162_v62 }
 0xa6e   :  { %v16012_v38 = vadd.f32 %v15995_v31, %v15972_v50  ;;  %19018 = vmatprep.subr.bf16.mxu1 %v19223_v53 }
 0xa6f   :  { %v16013_v36 = vadd.f32 %v15999_v44, %v15973_v22 }
 0xa70   :  { %v16020_v54 = vmax.f32 %v16012_v38, 0.0 }
 0xa71   :  { %v16021_v37 = vmax.f32 %v16013_v36, 0.0  ;;  %19019 = vmatpush3.bf16.msra.mxu1 %v19224_v2 }
 0xa72   :  { %v16028_v11 = vpack.c.bf16 %v16020_v54, %v16020_v54 }
 0xa73   :  { %v16029_v17 = vpack.c.bf16 %v16021_v37, %v16021_v37 }
 0xa75   :  { %16660 = vmatprep.mubr.bf16.mxu0 %v16029_v17 }
 0xa76   :  { %16661 = vmatmul.mubr.bf16.vlgmr.msra.gmra.mrb[92].mxu0 %v16028_v11 }
 0xaa7   :  { %v15838_v23 = vpop.f32.mrb[80].mxu0 }
 0xaa8   :  { %v15879_v7 = vpop.f32.mrb[80].mxu1  ;;  %v15840_v55 = vpop.f32.mrb[81].mxu0 }
 0xaa9   :  { %v15880_v3 = vadd.f32 %v15879_v7, %v15838_v23  ;;  %v15881_v56 = vpop.f32.mrb[81].mxu1  ;;  %v15842_v28 = vpop.f32.mrb[82].mxu0 }
 0xaaa   :  { %v15882_v9 = vadd.f32 %v15881_v56, %v15840_v55  ;;  %v15883_v41 = vpop.f32.mrb[82].mxu1  ;;  %v15843_v16 = vpop.f32.mrb[83].mxu0 }
 0xaab   :  { %v15884_v34 = vpop.f32.mrb[83].mxu1 }
 0xae7   :  { %v15920_v5 = vpop.f32.mrb[84].mxu0 }
 0xae8   :  { %v15921_v20 = vadd.f32 %v15920_v5, %v15880_v3  ;;  %v15961_v45 = vpop.f32.mrb[84].mxu1  ;;  %v15922_v1 = vpop.f32.mrb[85].mxu0 }
 0xae9   :  { %v15923_v48 = vadd.f32 %v15922_v1, %v15882_v9  ;;  %v15963_v49 = vpop.f32.mrb[85].mxu1  ;;  %v15924_v32 = vpop.f32.mrb[86].mxu0 }
 0xaea   :  { %v15962_v25 = vadd.f32 %v15961_v45, %v15921_v20  ;;  %v15965_v42 = vpop.f32.mrb[86].mxu1  ;;  %v15925_v0 = vpop.f32.mrb[87].mxu0 }
 0xaeb   :  { %v15964_v4 = vadd.f32 %v15963_v49, %v15923_v48  ;;  %v15966_v26 = vpop.f32.mrb[87].mxu1 }
 0xaec   :  { %v15974_v47 = vadd.f32 %v15962_v25, %v20018_v58 }
 0xaed   :  { %v15975_v6 = vadd.f32 %v15964_v4, %v20007_v10 }
 0xaee   :  { %v16014_v24 = vadd.f32 %v16003_v57, %v15974_v47 }
 0xaef   :  { %v16015_v61 = vadd.f32 %v16007_v33, %v15975_v6 }
 0xaf0   :  { %v16022_v13 = vmax.f32 %v16014_v24, 0.0 }
 0xaf1   :  { %v16023_v39 = vmax.f32 %v16015_v61, 0.0 }
 0xaf2   :  { %v16030_v51 = vpack.c.bf16 %v16022_v13, %v16022_v13 }
 0xaf3   :  { %v16031_v30 = vpack.c.bf16 %v16023_v39, %v16023_v39 }
 0xaf5   :  { %16700 = vmatprep.mubr.bf16.mxu1 %v16031_v30 }
 0xaf6   :  { %16701 = vmatmul.mubr.bf16.vlgmr.msra.gmra.mrb[92].mxu1 %v16030_v51 }
 0xb07   :  { %v18954_v46 = vpop.f32.mrb[88].mxu0 }
 0xb08   :  { %v18976_v18 = vpop.f32.mrb[88].mxu1  ;;  %v18955_v27 = vpop.f32.mrb[89].mxu0 }
 0xb09   :  { %v18956_v31 = vadd.f32 %v18955_v27, %v18954_v46  ;;  %v18977_v60 = vpop.f32.mrb[89].mxu1  ;;  %v18957_v58 = vpop.f32.mrb[90].mxu0 }
 0xb0a   :  { %v18978_v21 = vadd.f32 %v18977_v60, %v18976_v18  ;;  %v18979_v10 = vpop.f32.mrb[90].mxu1  ;;  %v18958_v52 = vpop.f32.mrb[91].mxu0 }
 0xb0b   :  { %v16583_v35 = vadd.f32 %v18956_v31, %v16163_v43  ;;  %v18980_v19 = vpop.f32.mrb[91].mxu1 }
 0xb0d   :  { %v16623_v44 = vadd.f32 %v18978_v21, %v16583_v35 }
 0xb49   :  { %v18998_v40 = vpop.f32.mrb[92].mxu0 }
 0xb4a   :  { %v18999_v8 = vpop.f32.mrb[93].mxu0 }
 0xb4b   :  { %v19000_v50 = vadd.f32 %v18999_v8, %v18998_v40  ;;  %v19001_v22 = vpop.f32.mrb[94].mxu0 }
 0xb4c   :  { %v19002_v38 = vpop.f32.mrb[95].mxu0 }
 0xb4d   :  { %v16663_v63 = vadd.f32 %v19000_v50, %v16623_v44 }
 0xbc9   :  { %v19020_v29 = vpop.f32.mrb[92].mxu1 }
 0xbca   :  { %v19021_v36 = vpop.f32.mrb[93].mxu1 }
 0xbcb   :  { %v19022_v14 = vadd.f32 %v19021_v36, %v19020_v29  ;;  %v19023_v12 = vpop.f32.mrb[94].mxu1 }
 0xbcc   :  { %v19024_v54 = vpop.f32.mrb[95].mxu1 }
 0xbcd   :  { %v16703_v37 = vadd.f32 %v19022_v14, %v16663_v63 }
 0xbcf   :  { %16708 = vst [vmem:[#allocation16] sm:$0xff] %v16703_v37 }
 0xbd0   :  { %19444 = shalt.err (!%p19441_p12)
}
 0xbd1   :  { %s19445_s22 = scalar_lea.hbm %s20209_s8, 128 }
 0xbd2   :  { %p19446_p13 = scmp.ne.s32.totalorder %s20209_s8, %s19445_s22  ;;  %p19449_p0 = scmp.lt.u32.totalorder %s19445_s22, %s20209_s8 }
 0xbd4   :  { %p19451_p1 = pnand %p19449_p0, %p19446_p13 }
 0xbd6   :  { %19454 = shalt.err (!%p19451_p1)
}
 0xbd7   :  { %16718 = dma.vmem_to_hbm [thread:$0]  %s16716_s9, 128, %s20209_s8, [#allocation4]  }
 0xbd8   :  { %19465 = dma.done.wait [#allocation4], 128  }
 0xbd9   :  { %19466 = vsyncadd [#allocation4], 4294967168 }
 0xbda   :  { %16722 = vsyncpa [#allocation3], 1 }
 0xbdb   :  { %16723 = vsyncpa [#allocation6], 1 }
 0xbdc   :  { %16724 = vsyncpa [#allocation9], 1 }
 0xbdd   :  { %16725 = vsyncpa [#allocation12], 1 }
 0xbde   :  { %16726 = vsyncpa [#allocation15], 1 }
 0xbdf   :  { %16727 = vsyncpa [#allocation4], 1 }

</bundles_post_ra>
